<compile_context>
chip_gen: v6e
topology: v6e:2x2x1
jax: 0.10.0
libtpu: 0.0.40
codegen_flags: <defaults>
</compile_context>

<pallas_src>
import functools

import jax
import jax.numpy as jnp
import numpy as np
from jax.experimental import pallas as pl
from jax.experimental.pallas import tpu as pltpu

# ----------------------------- model hyper-params -----------------------------
SIN_W0 = 2.0
N_JOINTS = 8
PER_NODE_INPUT = 7
W_HIDDEN = 32
VOXEL_FEAT = 3          # output channels per node
ROOT_ID = 0
BATCH = 64


# ----------------------------- device heuristics ------------------------------
def _device_kind():
    try:
        return jax.devices()[0].device_kind.lower()
    except Exception:
        return ""


def _default_elementwise_dtype():
    # v6e / v7x VPUs have native bf16; v5e (and older) do not -> keep f32 there.
    kind = _device_kind()
    return jnp.bfloat16 if ("v6" in kind or "v7" in kind) else jnp.float32


def _pick_tile_b(batch):
    """Batch-axis tiling policy.

    Small batches: one grid step (the kernel is launch/overhead bound; extra grid
    steps cost ~0.35us each for no benefit).  Large batches: >=8 MXU-aligned
    tiles (128 rows on v5e, 256 on v6e/v7x) so the "parallel" grid axis can be
    sharded across v7x's two TensorCores and each matmul covers the systolic
    fill/drain.  Per-step buffers are KiB-scale, so VMEM is never the limit.
    """
    kind = _device_kind()
    mxu_rows = 128 if "v5" in kind else 256
    if batch <= 4 * mxu_rows or batch % mxu_rows:
        return batch                                   # grid=(1,)
    tile = max(mxu_rows, (batch // 8) // mxu_rows * mxu_rows)
    while batch % tile:                                # keep the grid exact
        tile -= mxu_rows
    return tile


# --------------------------------- the kernel ---------------------------------
def gnn_sine_kernel(x_ref,
                    w0_ref, b0_ref, w1_ref, b1_ref,
                    w2_ref, b2_ref, w3_ref, b3_ref,
                    o_ref, *, n_split, matmul_dtype):
    """Four fused layers; each layer is one lane-dense MXU matmul + bias + sin.

    mask, adj_w and sin_w0 are already folded into the w*/b* operands.  The
    batch tile is processed as `n_split` independent sub-tiles so the VLIW
    scheduler overlaps one sub-tile's sin (VALU) with the other's matmul (MXU).
    Hidden-layer elementwise dtype == the bias dtype (bf16 on v6e/v7x, f32 on
    v5e); the final layer's bias + sin stay in f32.
    """
    layers = ((w0_ref, b0_ref), (w1_ref, b1_ref), (w2_ref, b2_ref), (w3_ref, b3_ref))

    def chain(h):
        for li, (w_ref, b_ref) in enumerate(layers):
            acc = jnp.dot(h, w_ref[...], preferred_element_type=jnp.float32)
            b = b_ref[...]
            h = jnp.sin(acc.astype(b.dtype) + b)
            if li + 1 < len(layers) and h.dtype != matmul_dtype:
                h = h.astype(matmul_dtype)             # operand dtype for next MXU call
        return h

    rows = x_ref.shape[0]
    sub = rows // n_split
    for s in range(n_split):                           # unrolled: one basic block
        lo, hi = s * sub, (s + 1) * sub
        o_ref[lo:hi, :] = chain(x_ref[lo:hi, :]).astype(o_ref.dtype)


# ------------------------ wrapper-side weight fusion ---------------------------
def _fuse_layer(adjw, w, bias, *, node_scale=None, scale=SIN_W0, pad_cin_to=None):
    """Fold adjacency weights (or identity), the optional per-node input mask and
    the sin frequency into one (N*Cin, N*Cout) weight and a (1, N*Cout) bias:

        big[(j, k), (i, c)] = adjw[i, j] * w[j, k, c] * scale

    so that flat_x @ big equals the adjacency-aggregated per-node linear,
    flattened node-major on the lane axis.  `pad_cin_to` zero-pads the per-node
    input channels (7 -> 8) so the fused K dim packs cleanly for bf16 tiles.
    """
    n, cin, cout = w.shape
    if node_scale is not None:                         # fold root mask into layer-0 rows
        w = w * node_scale[:, None, None]
    if pad_cin_to is not None and pad_cin_to > cin:
        w = jnp.pad(w, ((0, 0), (0, pad_cin_to - cin), (0, 0)))
        cin = pad_cin_to
    big = jnp.einsum('ij,jkc->jkic', adjw, w).reshape(n * cin, n * cout) * scale
    if bias.ndim == 1:                                 # DenseWGCN bias: shared across nodes
        b_big = jnp.tile(bias, n)
    else:                                              # ParallelLinear bias: per node
        b_big = bias.reshape(-1)
    return big, (b_big * scale).reshape(1, n * cout)


# --------------------- forward factory (fusion hoisted once) -------------------
def make_gnn_sine_forward(mask, adjw0, adjw1, w0, b0, w1, b1, w2, b2, w3, b3, *,
                          matmul_dtype=jnp.bfloat16,
                          elementwise_dtype=None,
                          out_dtype=jnp.bfloat16,
                          tile_b=None,
                          interleave=2):
    """Fuse the GNN parameters once and return a jitted `forward(x)`."""
    if elementwise_dtype is None:
        elementwise_dtype = _default_elementwise_dtype()

    n, cin_raw, _ = w0.shape
    out_ch = w3.shape[-1]
    cin = ((cin_raw + 7) // 8) * 8                     # 7 -> 8 (fused K: 56 -> 64)

    eye = jnp.eye(n, dtype=jnp.float32)
    W0, B0 = _fuse_layer(adjw0, w0, b0, node_scale=mask, pad_cin_to=cin)  # GCN 0 (+mask)
    W1, B1 = _fuse_layer(adjw1, w1, b1)                                   # GCN 1
    W2, B2 = _fuse_layer(eye, w2, b2)                  # ParallelLinear (block-diag)
    W3, B3 = _fuse_layer(eye, w3, b3)                  # ParallelLinear (block-diag)

    Ws = tuple(w.astype(matmul_dtype) for w in (W0, W1, W2, W3))
    # hidden biases carry the elementwise dtype (bf16 on v6e/v7x); final bias stays f32
    Bs = (B0.astype(elementwise_dtype), B1.astype(elementwise_dtype),
          B2.astype(elementwise_dtype), B3.astype(jnp.float32))
    Ws, Bs = jax.block_until_ready((Ws, Bs))           # pay fusion cost here, once

    flat_params = tuple(a for wb in zip(Ws, Bs) for a in wb)  # w0,b0,w1,b1,w2,b2,w3,b3

    def full_spec(a):
        nd = a.ndim
        return pl.BlockSpec(a.shape, lambda i, _nd=nd: (0,) * _nd)

    @jax.jit
    def forward(x):
        B = x.shape[0]
        if cin > cin_raw:                              # zero-pad per-node input channels
            x = jnp.pad(x, ((0, 0), (0, 0), (0, cin - cin_raw)))
        x_flat = x.reshape(B, n * cin).astype(matmul_dtype)   # lane-dense, MXU dtype

        tb = tile_b if tile_b is not None else _pick_tile_b(B)
        assert B % tb == 0, (B, tb)
        n_split = interleave if (interleave > 1 and tb % (8 * interleave) == 0) else 1

        out_flat = pl.pallas_call(
            functools.partial(gnn_sine_kernel, n_split=n_split,
                              matmul_dtype=matmul_dtype),
            out_shape=jax.ShapeDtypeStruct((B, n * out_ch), out_dtype),
            grid=(B // tb,),
            in_specs=[pl.BlockSpec((tb, n * cin), lambda i: (i, 0))]
                     + [full_spec(a) for a in flat_params],
            out_specs=pl.BlockSpec((tb, n * out_ch), lambda i: (i, 0)),
            # "parallel" only matters once the grid has >=2 steps (large B); then
            # v7x's two TensorCores split the batch tiles.
            compiler_params=pltpu.CompilerParams(
                dimension_semantics=("parallel",)),
        )(x_flat, *flat_params)

        return out_flat.reshape(B, n, out_ch)          # free reshape back to (B, N, Cout)

    return forward


# ----------------------------- pure-JAX reference ------------------------------
def gnn_sine_reference(x, mask, adjw0, adjw1, w0, b0, w1, b1, w2, b2, w3, b3):
    n = x * mask[None, :, None]
    # L0 PNGCN
    h = jnp.einsum('bkl,klj->bkj', n, w0)
    h = jnp.einsum('ij,bjc->bic', adjw0, h) + b0[None, None, :]
    n = jnp.sin(h * SIN_W0)
    # L1 PNGCN
    h = jnp.einsum('bkl,klj->bkj', n, w1)
    h = jnp.einsum('ij,bjc->bic', adjw1, h) + b1[None, None, :]
    n = jnp.sin(h * SIN_W0)
    # L2 ParallelLinear
    h = jnp.einsum('bkl,klj->bkj', n, w2) + b2[None, :, :]
    n = jnp.sin(h * SIN_W0)
    # L3 ParallelLinear
    h = jnp.einsum('bkl,klj->bkj', n, w3) + b3[None, :, :]
    n = jnp.sin(h * SIN_W0)
    return n


# ----------------------------- parameter construction --------------------------
def build_adjacency(joint_trees):
    n = len(joint_trees)
    adj = np.eye(n, dtype=np.float32)
    for i, p in enumerate(joint_trees):
        if i == p:
            continue
        adj[p, i] = 1.0
        adj[i, p] = 1.0
    return adj


def make_adj_w(key, adj, init_w=0.05, perturb=0.1):
    # DenseWGCN: adj_w = adj * clamp(init_w + (rand-0.5)*perturb, 0.01, 1.0), diag = 1
    r = jax.random.uniform(key, adj.shape, dtype=jnp.float32)
    w = jnp.clip(init_w + (r - 0.5) * perturb, 0.01, 1.0) * adj
    idx = jnp.arange(adj.shape[0])
    return w.at[idx, idx].set(1.0)


def make_pl_weight(key, n, cin, cout, bound):
    return jax.random.uniform(key, (n, cin, cout), minval=-bound, maxval=bound,
                              dtype=jnp.float32)


if __name__ == "__main__":
    key = jax.random.PRNGKey(0)
    ks = jax.random.split(key, 8)

    # synthetic skeleton (root = joint 0)
    joint_trees = np.array([0, 0, 1, 2, 0, 4, 5, 4])
    adj = jnp.asarray(build_adjacency(joint_trees))

    # root mask (1, N, 1) in the module -> stored as (N,) here
    mask = jnp.ones((N_JOINTS,), jnp.float32).at[ROOT_ID].set(0.0)

    # learnable adjacency weights for the two GCN layers
    adjw0 = make_adj_w(ks[0], adj)
    adjw1 = make_adj_w(ks[1], adj)

    # ParallelLinear weights (sine-init semantics)
    w0 = make_pl_weight(ks[2], N_JOINTS, PER_NODE_INPUT, W_HIDDEN, 1.0 / W_HIDDEN)
    w1 = make_pl_weight(ks[3], N_JOINTS, W_HIDDEN, W_HIDDEN,
                        np.sqrt(6.0 / W_HIDDEN) / SIN_W0)
    w2 = make_pl_weight(ks[4], N_JOINTS, W_HIDDEN, W_HIDDEN,
                        np.sqrt(6.0 / W_HIDDEN) / SIN_W0)
    w3 = make_pl_weight(ks[5], N_JOINTS, W_HIDDEN, VOXEL_FEAT,
                        np.sqrt(6.0 / VOXEL_FEAT) / SIN_W0)

    # biases are zero-initialized in the module (kept as parameters of the math)
    b0 = jnp.zeros((W_HIDDEN,), jnp.float32)
    b1 = jnp.zeros((W_HIDDEN,), jnp.float32)
    b2 = jnp.zeros((N_JOINTS, W_HIDDEN), jnp.float32)
    b3 = jnp.zeros((N_JOINTS, VOXEL_FEAT), jnp.float32)

    # inputs: (B, N_joints, per_node_input)
    x = jax.random.normal(ks[6], (BATCH, N_JOINTS, PER_NODE_INPUT), jnp.float32)

    params = (mask, adjw0, adjw1, w0, b0, w1, b1, w2, b2, w3, b3)
    ref = gnn_sine_reference(x, *params)

    # --- exact-semantics check: f32 operands / f32 elementwise / f32 output ----
    fwd_f32 = make_gnn_sine_forward(*params, matmul_dtype=jnp.float32,
                                    elementwise_dtype=jnp.float32,
                                    out_dtype=jnp.float32)
    out_f32 = jax.block_until_ready(fwd_f32(x))
    np.testing.assert_allclose(np.asarray(out_f32), np.asarray(ref),
                               rtol=1e-4, atol=1e-5)

    # --- primary path: bf16 MXU operands, bf16 hidden sin on v6e/v7x, bf16 out -
    fwd = make_gnn_sine_forward(*params)
    try:
        out = jax.block_until_ready(fwd(x))
    except Exception:
        # bf16 elementwise sin not lowerable on this Mosaic build / generation:
        # fall back to the f32-elementwise (v5e-style) variant of the same kernel.
        fwd = make_gnn_sine_forward(*params, elementwise_dtype=jnp.float32)
        out = jax.block_until_ready(fwd(x))

    out = jax.block_until_ready(fwd(x))                # steady-state call (fusion hoisted)
    np.testing.assert_allclose(np.asarray(out.astype(jnp.float32)),
                               np.asarray(ref), rtol=5e-2, atol=5e-2)

    print("KERNEL_OK")
</pallas_src>

<mosaic_0001>
module attributes {stable_mosaic.version = 11 : i64} {
  func.func @gnn_sine_kernel(%arg0: i32, %arg1: memref<64x64xf32, #tpu.memory_space<vmem>>, %arg2: memref<64x256xf32, #tpu.memory_space<vmem>>, %arg3: memref<1x256xf32, #tpu.memory_space<vmem>>, %arg4: memref<256x256xf32, #tpu.memory_space<vmem>>, %arg5: memref<1x256xf32, #tpu.memory_space<vmem>>, %arg6: memref<256x256xf32, #tpu.memory_space<vmem>>, %arg7: memref<1x256xf32, #tpu.memory_space<vmem>>, %arg8: memref<256x24xf32, #tpu.memory_space<vmem>>, %arg9: memref<1x24xf32, #tpu.memory_space<vmem>>, %arg10: memref<64x24xf32, #tpu.memory_space<vmem>>) attributes {dimension_semantics = [#tpu.dimension_semantics<parallel>], iteration_bounds = array<i64: 1>, scalar_prefetch = 0 : i64, scratch_operands = 0 : i64, tpu.core_type = #tpu.core_type<tc>, window_params = [{transform_indices = @transform_0, window_bounds = array<i64: 64, 64>}, {pipeline_mode = #tpu.pipeline_mode<synchronous>, transform_indices = @transform_1, window_bounds = array<i64: 64, 256>}, {pipeline_mode = #tpu.pipeline_mode<synchronous>, transform_indices = @transform_2, window_bounds = array<i64: 1, 256>}, {pipeline_mode = #tpu.pipeline_mode<synchronous>, transform_indices = @transform_3, window_bounds = array<i64: 256, 256>}, {pipeline_mode = #tpu.pipeline_mode<synchronous>, transform_indices = @transform_4, window_bounds = array<i64: 1, 256>}, {pipeline_mode = #tpu.pipeline_mode<synchronous>, transform_indices = @transform_5, window_bounds = array<i64: 256, 256>}, {pipeline_mode = #tpu.pipeline_mode<synchronous>, transform_indices = @transform_6, window_bounds = array<i64: 1, 256>}, {pipeline_mode = #tpu.pipeline_mode<synchronous>, transform_indices = @transform_7, window_bounds = array<i64: 256, 24>}, {pipeline_mode = #tpu.pipeline_mode<synchronous>, transform_indices = @transform_8, window_bounds = array<i64: 1, 24>}, {transform_indices = @transform_9, window_bounds = array<i64: 64, 24>}]} {
    %c0 = arith.constant 0 : index
    %c0_0 = arith.constant 0 : index
    %0 = vector.load %arg1[%c0, %c0_0] : memref<64x64xf32, #tpu.memory_space<vmem>>, vector<32x64xf32>
    %c0_1 = arith.constant 0 : index
    %c0_2 = arith.constant 0 : index
    %1 = vector.load %arg2[%c0_1, %c0_2] : memref<64x256xf32, #tpu.memory_space<vmem>>, vector<64x256xf32>
    %cst = arith.constant dense<0.000000e+00> : vector<32x256xf32>
    %2 = tpu.matmul %0, %1, %cst {dimension_numbers = #tpu.dot_dimension_numbers<[1], [0], [0], [1], [0, 0, 1, 1], [], []>} : vector<32x64xf32>, vector<64x256xf32>, vector<32x256xf32> -> vector<32x256xf32>
    %c0_3 = arith.constant 0 : index
    %c0_4 = arith.constant 0 : index
    %3 = vector.load %arg3[%c0_3, %c0_4] : memref<1x256xf32, #tpu.memory_space<vmem>>, vector<1x256xf32>
    %4 = vector.broadcast %3 : vector<1x256xf32> to vector<32x256xf32>
    %5 = arith.addf %2, %4 : vector<32x256xf32>
    %6 = math.sin %5 : vector<32x256xf32>
    %c0_5 = arith.constant 0 : index
    %c0_6 = arith.constant 0 : index
    %7 = vector.load %arg4[%c0_5, %c0_6] : memref<256x256xf32, #tpu.memory_space<vmem>>, vector<256x256xf32>
    %cst_7 = arith.constant dense<0.000000e+00> : vector<32x256xf32>
    %8 = tpu.matmul %6, %7, %cst_7 {dimension_numbers = #tpu.dot_dimension_numbers<[1], [0], [0], [1], [0, 0, 1, 1], [], []>} : vector<32x256xf32>, vector<256x256xf32>, vector<32x256xf32> -> vector<32x256xf32>
    %c0_8 = arith.constant 0 : index
    %c0_9 = arith.constant 0 : index
    %9 = vector.load %arg5[%c0_8, %c0_9] : memref<1x256xf32, #tpu.memory_space<vmem>>, vector<1x256xf32>
    %10 = vector.broadcast %9 : vector<1x256xf32> to vector<32x256xf32>
    %11 = arith.addf %8, %10 : vector<32x256xf32>
    %12 = math.sin %11 : vector<32x256xf32>
    %c0_10 = arith.constant 0 : index
    %c0_11 = arith.constant 0 : index
    %13 = vector.load %arg6[%c0_10, %c0_11] : memref<256x256xf32, #tpu.memory_space<vmem>>, vector<256x256xf32>
    %cst_12 = arith.constant dense<0.000000e+00> : vector<32x256xf32>
    %14 = tpu.matmul %12, %13, %cst_12 {dimension_numbers = #tpu.dot_dimension_numbers<[1], [0], [0], [1], [0, 0, 1, 1], [], []>} : vector<32x256xf32>, vector<256x256xf32>, vector<32x256xf32> -> vector<32x256xf32>
    %c0_13 = arith.constant 0 : index
    %c0_14 = arith.constant 0 : index
    %15 = vector.load %arg7[%c0_13, %c0_14] : memref<1x256xf32, #tpu.memory_space<vmem>>, vector<1x256xf32>
    %16 = vector.broadcast %15 : vector<1x256xf32> to vector<32x256xf32>
    %17 = arith.addf %14, %16 : vector<32x256xf32>
    %18 = math.sin %17 : vector<32x256xf32>
    %c0_15 = arith.constant 0 : index
    %c0_16 = arith.constant 0 : index
    %19 = vector.load %arg8[%c0_15, %c0_16] : memref<256x24xf32, #tpu.memory_space<vmem>>, vector<256x24xf32>
    %cst_17 = arith.constant dense<0.000000e+00> : vector<32x24xf32>
    %20 = tpu.matmul %18, %19, %cst_17 {dimension_numbers = #tpu.dot_dimension_numbers<[1], [0], [0], [1], [0, 0, 1, 1], [], []>} : vector<32x256xf32>, vector<256x24xf32>, vector<32x24xf32> -> vector<32x24xf32>
    %c0_18 = arith.constant 0 : index
    %c0_19 = arith.constant 0 : index
    %21 = vector.load %arg9[%c0_18, %c0_19] : memref<1x24xf32, #tpu.memory_space<vmem>>, vector<1x24xf32>
    %22 = vector.broadcast %21 : vector<1x24xf32> to vector<32x24xf32>
    %23 = arith.addf %20, %22 : vector<32x24xf32>
    %24 = math.sin %23 : vector<32x24xf32>
    %c0_20 = arith.constant 0 : index
    %c0_21 = arith.constant 0 : index
    %25 = vector.load %arg10[%c0_20, %c0_21] : memref<64x24xf32, #tpu.memory_space<vmem>>, vector<32x24xf32>
    tpu.vector_store %arg10[%c0_20, %c0_21], %24 {strides = array<i32>} : memref<64x24xf32, #tpu.memory_space<vmem>>, vector<32x24xf32>,
    %c32 = arith.constant 32 : index
    %c0_22 = arith.constant 0 : index
    %26 = vector.load %arg1[%c32, %c0_22] : memref<64x64xf32, #tpu.memory_space<vmem>>, vector<32x64xf32>
    %c0_23 = arith.constant 0 : index
    %c0_24 = arith.constant 0 : index
    %27 = vector.load %arg2[%c0_23, %c0_24] : memref<64x256xf32, #tpu.memory_space<vmem>>, vector<64x256xf32>
    %cst_25 = arith.constant dense<0.000000e+00> : vector<32x256xf32>
    %28 = tpu.matmul %26, %27, %cst_25 {dimension_numbers = #tpu.dot_dimension_numbers<[1], [0], [0], [1], [0, 0, 1, 1], [], []>} : vector<32x64xf32>, vector<64x256xf32>, vector<32x256xf32> -> vector<32x256xf32>
    %c0_26 = arith.constant 0 : index
    %c0_27 = arith.constant 0 : index
    %29 = vector.load %arg3[%c0_26, %c0_27] : memref<1x256xf32, #tpu.memory_space<vmem>>, vector<1x256xf32>
    %30 = vector.broadcast %29 : vector<1x256xf32> to vector<32x256xf32>
    %31 = arith.addf %28, %30 : vector<32x256xf32>
    %32 = math.sin %31 : vector<32x256xf32>
    %c0_28 = arith.constant 0 : index
    %c0_29 = arith.constant 0 : index
    %33 = vector.load %arg4[%c0_28, %c0_29] : memref<256x256xf32, #tpu.memory_space<vmem>>, vector<256x256xf32>
    %cst_30 = arith.constant dense<0.000000e+00> : vector<32x256xf32>
    %34 = tpu.matmul %32, %33, %cst_30 {dimension_numbers = #tpu.dot_dimension_numbers<[1], [0], [0], [1], [0, 0, 1, 1], [], []>} : vector<32x256xf32>, vector<256x256xf32>, vector<32x256xf32> -> vector<32x256xf32>
    %c0_31 = arith.constant 0 : index
    %c0_32 = arith.constant 0 : index
    %35 = vector.load %arg5[%c0_31, %c0_32] : memref<1x256xf32, #tpu.memory_space<vmem>>, vector<1x256xf32>
    %36 = vector.broadcast %35 : vector<1x256xf32> to vector<32x256xf32>
    %37 = arith.addf %34, %36 : vector<32x256xf32>
    %38 = math.sin %37 : vector<32x256xf32>
    %c0_33 = arith.constant 0 : index
    %c0_34 = arith.constant 0 : index
    %39 = vector.load %arg6[%c0_33, %c0_34] : memref<256x256xf32, #tpu.memory_space<vmem>>, vector<256x256xf32>
    %cst_35 = arith.constant dense<0.000000e+00> : vector<32x256xf32>
    %40 = tpu.matmul %38, %39, %cst_35 {dimension_numbers = #tpu.dot_dimension_numbers<[1], [0], [0], [1], [0, 0, 1, 1], [], []>} : vector<32x256xf32>, vector<256x256xf32>, vector<32x256xf32> -> vector<32x256xf32>
    %c0_36 = arith.constant 0 : index
    %c0_37 = arith.constant 0 : index
    %41 = vector.load %arg7[%c0_36, %c0_37] : memref<1x256xf32, #tpu.memory_space<vmem>>, vector<1x256xf32>
    %42 = vector.broadcast %41 : vector<1x256xf32> to vector<32x256xf32>
    %43 = arith.addf %40, %42 : vector<32x256xf32>
    %44 = math.sin %43 : vector<32x256xf32>
    %c0_38 = arith.constant 0 : index
    %c0_39 = arith.constant 0 : index
    %45 = vector.load %arg8[%c0_38, %c0_39] : memref<256x24xf32, #tpu.memory_space<vmem>>, vector<256x24xf32>
    %cst_40 = arith.constant dense<0.000000e+00> : vector<32x24xf32>
    %46 = tpu.matmul %44, %45, %cst_40 {dimension_numbers = #tpu.dot_dimension_numbers<[1], [0], [0], [1], [0, 0, 1, 1], [], []>} : vector<32x256xf32>, vector<256x24xf32>, vector<32x24xf32> -> vector<32x24xf32>
    %c0_41 = arith.constant 0 : index
    %c0_42 = arith.constant 0 : index
    %47 = vector.load %arg9[%c0_41, %c0_42] : memref<1x24xf32, #tpu.memory_space<vmem>>, vector<1x24xf32>
    %48 = vector.broadcast %47 : vector<1x24xf32> to vector<32x24xf32>
    %49 = arith.addf %46, %48 : vector<32x24xf32>
    %50 = math.sin %49 : vector<32x24xf32>
    %c32_43 = arith.constant 32 : index
    %c0_44 = arith.constant 0 : index
    %51 = vector.load %arg10[%c32_43, %c0_44] : memref<64x24xf32, #tpu.memory_space<vmem>>, vector<32x24xf32>
    tpu.vector_store %arg10[%c32_43, %c0_44], %50 {strides = array<i32>} : memref<64x24xf32, #tpu.memory_space<vmem>>, vector<32x24xf32>,
    return
  }
  func.func @transform_0(%arg0: i32) -> (i32, i32) {
    %c0_i32 = arith.constant 0 : i32
    %c0_i32_0 = arith.constant 0 : i32
    return %arg0, %c0_i32 : i32, i32
  }
  func.func @transform_1(%arg0: i32) -> (i32, i32) {
    %c0_i32 = arith.constant 0 : i32
    %c0_i32_0 = arith.constant 0 : i32
    %c0_i32_1 = arith.constant 0 : i32
    return %c0_i32, %c0_i32_0 : i32, i32
  }
  func.func @transform_2(%arg0: i32) -> (i32, i32) {
    %c0_i32 = arith.constant 0 : i32
    %c0_i32_0 = arith.constant 0 : i32
    %c0_i32_1 = arith.constant 0 : i32
    return %c0_i32, %c0_i32_0 : i32, i32
  }
  func.func @transform_3(%arg0: i32) -> (i32, i32) {
    %c0_i32 = arith.constant 0 : i32
    %c0_i32_0 = arith.constant 0 : i32
    %c0_i32_1 = arith.constant 0 : i32
    return %c0_i32, %c0_i32_0 : i32, i32
  }
  func.func @transform_4(%arg0: i32) -> (i32, i32) {
    %c0_i32 = arith.constant 0 : i32
    %c0_i32_0 = arith.constant 0 : i32
    %c0_i32_1 = arith.constant 0 : i32
    return %c0_i32, %c0_i32_0 : i32, i32
  }
  func.func @transform_5(%arg0: i32) -> (i32, i32) {
    %c0_i32 = arith.constant 0 : i32
    %c0_i32_0 = arith.constant 0 : i32
    %c0_i32_1 = arith.constant 0 : i32
    return %c0_i32, %c0_i32_0 : i32, i32
  }
  func.func @transform_6(%arg0: i32) -> (i32, i32) {
    %c0_i32 = arith.constant 0 : i32
    %c0_i32_0 = arith.constant 0 : i32
    %c0_i32_1 = arith.constant 0 : i32
    return %c0_i32, %c0_i32_0 : i32, i32
  }
  func.func @transform_7(%arg0: i32) -> (i32, i32) {
    %c0_i32 = arith.constant 0 : i32
    %c0_i32_0 = arith.constant 0 : i32
    %c0_i32_1 = arith.constant 0 : i32
    return %c0_i32, %c0_i32_0 : i32, i32
  }
  func.func @transform_8(%arg0: i32) -> (i32, i32) {
    %c0_i32 = arith.constant 0 : i32
    %c0_i32_0 = arith.constant 0 : i32
    %c0_i32_1 = arith.constant 0 : i32
    return %c0_i32, %c0_i32_0 : i32, i32
  }
  func.func @transform_9(%arg0: i32) -> (i32, i32) {
    %c0_i32 = arith.constant 0 : i32
    %c0_i32_0 = arith.constant 0 : i32
    return %arg0, %c0_i32 : i32, i32
  }
}

</mosaic_0001>

<bundles_post_ra>
// kernel: forward.1
= control target key start
LH: loop header
LB: loop body
LE: loop exit
PB: predicated region body
PF: predicated region fallthrough
CT: control target
= control target key end

     0   :  { %14 = vsyncpa [#allocation3], 0  ;;  %s13376_s0 = inlined_call_operand.vmem [shape: f32[64,64], index: 0, kind: input, shape index: {}]   ;;  %s13377_s1 = inlined_call_operand.vmem [shape: f32[64,256], index: 1, kind: input, shape index: {}]   ;;  %s13378_s2 = inlined_call_operand.vmem [shape: f32[1,256], index: 2, kind: input, shape index: {}, may-alias: {2,4,6}]   ;;  %s13379_s3 = inlined_call_operand.hbm [shape: f32[256,256], index: 3, kind: input, shape index: {}]   ;;  %s13380_s4 = inlined_call_operand.vmem [shape: f32[1,256], index: 4, kind: input, shape index: {}, may-alias: {2,4,6}]   ;;  %s13381_s5 = inlined_call_operand.hbm [shape: f32[256,256], index: 5, kind: input, shape index: {}]   ;;  %s13382_s6 = inlined_call_operand.vmem [shape: f32[1,256], index: 6, kind: input, shape index: {}, may-alias: {2,4,6}]   ;;  %s13383_s7 = inlined_call_operand.vmem [shape: f32[256,24], index: 7, kind: input, shape index: {}]   ;;  %s13384_s8 = inlined_call_operand.vmem [shape: f32[1,24], index: 8, kind: input, shape index: {}]   ;;  %s13385_s9 = inlined_call_operand.vmem [shape: f32[64,24], index: 9, kind: output, shape index: {}]  }
   0x1   :  { %15 = vsyncpa [#allocation5], 0  ;;  %s7899_s30 = smov [#allocation2]  }
   0x2   :  { %s27_s10 = sshll.u32 %s7899_s30, 4  ;;  %s28_s10 = int_to_ptr.vmem [resolvable:$true] %s27_s10 }
   0x3   :  { %s7863_s11 = scalar_lea.vmem %s28_s10, 8192  ;;  %p7868_p1 = scmp.lt.s32.totalorder %s28_s10, %s28_s10 }
   0x4   :  { %p7864_p0 = scmp.ne.s32.totalorder %s28_s10, %s7863_s11  ;;  %p7869_p2 = scmp.lt.s32.totalorder %s7863_s11, %s7863_s11 }
   0x6   :  { %p7870_p3 = por %p7869_p2, %p7868_p1 }
   0x8   :  { %p7871_p4 = pnand %p7870_p3, %p7864_p0 }
   0xa   :  { %7874 = shalt.err (!%p7871_p4)
}
   0xb   :  { %s7900_s12 = smov 256   ;;  %s7901_s13 = smov 16  }
   0xc   :  { %33 = dma.hbm_to_vmem [thread:$0]  %s13379_s3, 8192, %s28_s10, [#allocation3], %s7900_s12, %s7900_s12, %s7901_s13  }
   0xd   :  { %s7902_s16 = smov [#allocation4]  }
   0xe   :  { %s41_s17 = sshll.u32 %s7902_s16, 4  ;;  %s42_s17 = int_to_ptr.vmem [resolvable:$true] %s41_s17 }
   0xf   :  { %s7883_s18 = scalar_lea.vmem %s42_s17, 8192  ;;  %p7888_p6 = scmp.lt.s32.totalorder %s42_s17, %s42_s17 }
  0x10   :  { %p7884_p5 = scmp.ne.s32.totalorder %s42_s17, %s7883_s18  ;;  %p7889_p7 = scmp.lt.s32.totalorder %s7883_s18, %s7883_s18 }
  0x12   :  { %p7890_p8 = por %p7889_p7, %p7888_p6 }
  0x14   :  { %p7891_p9 = pnand %p7890_p8, %p7884_p5 }
  0x16   :  { %7894 = shalt.err (!%p7891_p9)
}
  0x17   :  { %47 = dma.hbm_to_vmem [thread:$0]  %s13381_s5, 8192, %s42_s17, [#allocation5], %s7900_s12, %s7900_s12, %s7901_s13  }
  0x18   :  { %7895 = dma.done.wait [#allocation3], 8192  }
  0x19   :  { %7896 = vsyncadd [#allocation3], 4294959104 }
  0x1a   :  { %7897 = dma.done.wait [#allocation5], 8192  }
  0x1b   :  { %7898 = vsyncadd [#allocation5], 4294959104  ;;  %v13386_v0 = vmov 0.0   ;;  %v79_v1 = vld [vmem:[%s13377_s1 + $0x78] sm:$0xff]  ;;  %v78_v2 = vld [vmem:[%s13377_s1 + $0x70] sm:$0xff]  ;;  %vm92_vm0 = vcmask 523264   ;;  %v82_v21 = vlaneseq }
  0x1c   :  { %169 = vmatprep.mubr.f32.mxu1 %v13386_v0  ;;  %v77_v3 = vld [vmem:[%s13377_s1 + $0x68] sm:$0xff]  ;;  %121 = vmatprep.subr.mxu1 %v79_v1  ;;  %v76_v4 = vld [vmem:[%s13377_s1 + $0x60] sm:$0xff]  ;;  %v75_v5 = vld [vmem:[%s13377_s1 + $0x58] sm:$0xff] }
  0x1d   :  { %122 = vmatpush1.msra.mxu1 %v78_v2  ;;  %v74_v6 = vld [vmem:[%s13377_s1 + $0x50] sm:$0xff]  ;;  %v73_v7 = vld [vmem:[%s13377_s1 + $0x48] sm:$0xff]  ;;  %v72_v8 = vld [vmem:[%s13377_s1 + $0x40] sm:$0xff]  ;;  %v83_v22 = vshrl.u32 %v82_v21, 7  ;;  %v13412_v2 = vmov 683565275  }
  0x1e   :  { %123 = vmatprep.subr.mxu1 %v77_v3  ;;  %v71_v9 = vld [vmem:[%s13377_s1 + $0x38] sm:$0xff]  ;;  %v70_v10 = vld [vmem:[%s13377_s1 + $0x30] sm:$0xff]  ;;  %v69_v11 = vld [vmem:[%s13377_s1 + $0x28] sm:$0xff] }
  0x1f   :  { %124 = vmatpush1.msra.mxu1 %v76_v4  ;;  %v68_v12 = vld [vmem:[%s13377_s1 + $0x20] sm:$0xff]  ;;  %v67_v13 = vld [vmem:[%s13377_s1 + $0x18] sm:$0xff]  ;;  %v66_v14 = vld [vmem:[%s13377_s1 + $0x10] sm:$0xff]  ;;  %v8034_v23 = vsub.s32 0, %v83_v22  ;;  %v8039_v25 = vsub.s32 1, %v83_v22 }
  0x20   :  { %125 = vmatprep.subr.mxu1 %v75_v5  ;;  %v65_v15 = vld [vmem:[%s13377_s1 + $0x8] sm:$0xff]  ;;  %v64_v16 = vld [vmem:[%s13377_s1] sm:$0xff]  ;;  %v62_v19 = vld [vmem:[%s13376_s0 + $0x10] sm:$0xff]  ;;  %v13408_v4 = vmov 2475754826  }
  0x21   :  { %126 = vmatpush1.msra.mxu1 %v74_v6  ;;  %v60_v17 = vld [vmem:[%s13376_s0] sm:$0xff]  ;;  %v61_v18 = vld [vmem:[%s13376_s0 + $0x8] sm:$0xff]  ;;  %v63_v20 = vld [vmem:[%s13376_s0 + $0x18] sm:$0xff]  ;;  %13501 = vst [vmem:[#allocation8_spill] sm:$0xff] %v8034_v23  ;;  %v13406_v6 = vmov 2131351028  }
  0x22   :  { %127 = vmatprep.subr.mxu1 %v73_v7  ;;  %v80_v24 = vld [vmem:[%s13378_s2] sm:$0x3]  ;;  %13502 = vst [vmem:[#allocation9_spill] sm:$0xff] %v8039_v25  ;;  %v1055_v21 = vld [vmem:[#allocation2 + $0xe8] sm:$0xff] }
  0x23   :  { %128 = vmatpush1.msra.mxu1 %v72_v8  ;;  %v8042_v26 = vrot.slane %v80_v24, %v8034_v23  ;;  %v8045_v27 = vrot.slane %v80_v24, %v8039_v25  ;;  %v13404_v8 = vmov 2102212464  }
  0x24   :  { %129 = vmatprep.subr.mxu1 %v71_v9 }
  0x25   :  { %130 = vmatpush1.msra.mxu1 %v70_v10  ;;  %v13402_v10 = vmov 920167782  }
  0x26   :  { %131 = vmatprep.subr.mxu1 %v69_v11 }
  0x27   :  { %132 = vmatpush1.msra.mxu1 %v68_v12  ;;  %v1057_v12 = vld [vmem:[#allocation2 + $0xf8] sm:$0xff] }
  0x28   :  { %133 = vmatprep.subr.mxu1 %v67_v13 }
  0x29   :  { %134 = vmatpush1.msra.mxu1 %v66_v14 }
  0x2a   :  { %135 = vmatprep.subr.mxu1 %v65_v15 }
  0x2b   :  { %136 = vmatpush1.msra.mxu1 %v64_v16  ;;  %v1056_v16 = vld [vmem:[#allocation2 + $0xf0] sm:$0xff] }
  0x2c   :  { %7074 = vmatmul.mubr.msk.f32.vlgmr.msra.gmra.mxu1 %vm92_vm0, %v60_v17  ;;  %1102 = vmatprep.subr.mxu1 %v1057_v12  ;;  %v1049_v12 = vld [vmem:[#allocation2 + $0xb8] sm:$0xff] }
  0x2d   :  { %175 = vmatprep.mubr.f32.mxu1 %v13386_v0  ;;  %1103 = vmatpush1.msra.mxu1 %v1056_v16 }
  0x2e   :  { %1104 = vmatprep.subr.mxu1 %v1055_v21 }
  0x30   :  { %7075 = vmatmul.mubr.msk.f32.gmra.mxu1 %vm92_vm0, %v61_v18 }
  0x31   :  { %181 = vmatprep.mubr.f32.mxu1 %v13386_v0 }
  0x34   :  { %7076 = vmatmul.mubr.msk.f32.gmra.mxu1 %vm92_vm0, %v62_v19  ;;  %v13400_v19 = vmov 1326507024  }
  0x35   :  { %187 = vmatprep.mubr.f32.mxu1 %v13386_v0 }
  0x38   :  { %7077 = vmatmul.mubr.msk.f32.gmra.mxu1 %vm92_vm0, %v63_v20 }
  0xec   :  { %v171_v28 = vpop.f32.mrf.mxu1 }
  0xed   :  { %v8048_v29 = vadd.f32 %v171_v28, %v8042_v26 }
  0xee   :  { %v173_v30 = vpop.f32.mrf.mxu1 }
  0xef   :  { %v194_v31 = vand.u32 2147483647, %v8048_v29  ;;  %v197_v32 = vand.u32 2139095040, %v8048_v29  ;;  %v8053_v33 = vadd.f32 %v173_v30, %v8045_v27 }
  0xf0   :  { %v177_v34 = vpop.f32.mrf.mxu1 }
  0xf1   :  { %v198_v35 = vshrl.u32 %v197_v32, 23  ;;  %v201_v36 = vand.u32 8388607, %v194_v31  ;;  %v298_v37 = vand.u32 2147483647, %v8053_v33  ;;  %v301_v38 = vand.u32 2139095040, %v8053_v33 }
  0xf2   :  { %v8060_v39 = vadd.f32 %v177_v34, %v8042_v26  ;;  %v179_v40 = vpop.f32.mrf.mxu1  ;;  %v1054_v32 = vld [vmem:[#allocation2 + $0xe0] sm:$0xff] }
  0xf3   :  { %v7078_v41 = vadd.s32 4294967169, %v198_v35  ;;  %v8063_v42 = vadd.f32 %v179_v40, %v8045_v27  ;;  %v302_v43 = vshrl.u32 %v301_v38, 23  ;;  %v305_v44 = vand.u32 8388607, %v298_v37  ;;  %1105 = vmatpush1.msra.mxu1 %v1054_v32  ;;  %v1053_v38 = vld [vmem:[#allocation2 + $0xd8] sm:$0xff]  ;;  %v1046_v32 = vld [vmem:[#allocation2 + $0xa0] sm:$0xff] }
  0xf4   :  { %v13392_v45 = vand.u32 2147483647, %v8060_v39  ;;  %v202_v46 = vor.u32 8388608, %v201_v36  ;;  %v405_v48 = vand.u32 2139095040, %v8060_v39  ;;  %1106 = vmatprep.subr.mxu1 %v1053_v38 }
  0xf5   :  { %v204_v47 = vadd.s32 1, %v7078_v41  ;;  %v7082_v49 = vadd.s32 4294967169, %v302_v43  ;;  %v306_v50 = vor.u32 8388608, %v305_v44  ;;  %v13393_v52 = vand.u32 2147483647, %v8063_v42 }
  0xf6   :  { %v8071_v51 = vand.u32 8388607, %v13392_v45  ;;  %v406_v53 = vshrl.u32 %v405_v48, 23  ;;  %v8076_v58 = vshll.u32 %v202_v46, 8  ;;  %v509_v59 = vand.u32 2139095040, %v8063_v42  ;;  %v1052_v46 = vld [vmem:[#allocation2 + $0xd0] sm:$0xff] }
  0xf7   :  { %vm205_vm1 = vcmp.gt.s32.totalorder %v204_v47, 0  ;;  %v308_v55 = vadd.s32 1, %v7082_v49  ;;  %v8079_v60 = vshll.u32 %v306_v50, 8  ;;  %v8086_v63 = vand.u32 8388607, %v13393_v52  ;;  %1107 = vmatpush1.msra.mxu1 %v1052_v46  ;;  %v1044_v46 = vld [vmem:[#allocation2 + $0x90] sm:$0xff] }
  0xf8   :  { %v206_v54 = vsel %vm205_vm1, %v204_v47, 0  ;;  %v8081_v61 = vadd.s32 4294967169, %v406_v53  ;;  %v410_v62 = vor.u32 8388608, %v8071_v51  ;;  %v1051_v53 = vld [vmem:[#allocation2 + $0xc8] sm:$0xff] }
  0xf9   :  { %v8074_v56 = vshrl.u32 %v206_v54, 5  ;;  %v208_v57 = vand.u32 31, %v206_v54  ;;  %vm309_vm2 = vcmp.gt.s32.totalorder %v308_v55, 0  ;;  %1108 = vmatprep.subr.mxu1 %v1051_v53 }
  0xfa   :  { %v310_v30 = vsel %vm309_vm2, %v308_v55, 0 }
  0xfb   :  { %v209_v1 = vsub.s32 32, %v208_v57  ;;  %v211_v3 = vshll.u32 %v13412_v2, %v208_v57  ;;  %v214_v5 = vshll.u32 %v13408_v4, %v208_v57  ;;  %v217_v7 = vshll.u32 %v13406_v6, %v208_v57 }
  0xfc   :  { %v220_v9 = vshll.u32 %v13404_v8, %v208_v57  ;;  %v223_v11 = vshll.u32 %v13402_v10, %v208_v57  ;;  %vm226_vm3 = vcmp.lt.s32.totalorder %v8074_v56, 1  ;;  %vm227_vm4 = vcmp.lt.s32.totalorder %v8074_v56, 2 }
  0xfd   :  { %v212_v13 = vshrl.u32 %v13408_v4, %v209_v1  ;;  %v215_v14 = vshrl.u32 %v13406_v6, %v209_v1  ;;  %v218_v15 = vshrl.u32 %v13404_v8, %v209_v1  ;;  %v210_v17 = vshrl.u32 %v13412_v2, %v209_v1 }
  0xfe   :  { %v221_v18 = vshrl.u32 %v13402_v10, %v209_v1  ;;  %v224_v20 = vshrl.u32 %v13400_v19, %v209_v1  ;;  %vm228_vm5 = vcmp.lt.s32.totalorder %v8074_v56, 3  ;;  %vm229_vm6 = vcmp.lt.s32.totalorder %v8074_v56, 4 }
  0xff   :  { %v213_v22 = vor.u32 %v212_v13, %v211_v3  ;;  %v216_v24 = vor.u32 %v215_v14, %v214_v5  ;;  %v219_v28 = vor.u32 %v218_v15, %v217_v7  ;;  %v312_v36 = vand.u32 31, %v310_v30  ;;  %v1050_v3 = vld [vmem:[#allocation2 + $0xc0] sm:$0xff] }
 0x100   :  { %v222_v34 = vor.u32 %v221_v18, %v220_v9  ;;  %v225_v35 = vor.u32 %v224_v20, %v223_v11  ;;  %v8118_v1 = vshrl.u32 %v310_v30, 5  ;;  %1109 = vmatpush1.msra.mxu1 %v1050_v3 }
 0x101   :  { %v230_v40 = vsel %vm226_vm3, %v210_v17, %v213_v22  ;;  %v231_v41 = vsel %vm229_vm6, %v219_v28, 2102212464  ;;  %v234_v43 = vsel %vm226_vm3, %v213_v22, %v216_v24  ;;  %v238_v44 = vsel %vm226_vm3, %v216_v24, %v219_v28  ;;  %1110 = vmatprep.subr.mxu1 %v1049_v12  ;;  %v1048_v17 = vld [vmem:[#allocation2 + $0xb0] sm:$0xff]  ;;  %v1047_v22 = vld [vmem:[#allocation2 + $0xa8] sm:$0xff] }
 0x102   :  { %v232_v47 = vsel %vm228_vm5, %v216_v24, %v231_v41  ;;  %v235_v48 = vsel %vm229_vm6, %v222_v34, 920167782  ;;  %v239_v49 = vsel %vm229_vm6, %v225_v35, 1326507024  ;;  %v313_v50 = vsub.s32 32, %v312_v36  ;;  %1111 = vmatpush1.msra.mxu1 %v1048_v17  ;;  %v1045_v41 = vld [vmem:[#allocation2 + $0x98] sm:$0xff] }
 0x103   :  { %v233_v54 = vsel %vm227_vm4, %v230_v40, %v232_v47  ;;  %v236_v55 = vsel %vm228_vm5, %v219_v28, %v235_v48  ;;  %v240_v57 = vsel %vm228_vm5, %v222_v34, %v239_v49  ;;  %v315_v11 = vshll.u32 %v13412_v2, %v312_v36  ;;  %1112 = vmatprep.subr.mxu1 %v1047_v22  ;;  %v1040_v17 = vld [vmem:[#allocation2 + $0x70] sm:$0xff] }
 0x104   :  { %v237_v5 = vsel %vm227_vm4, %v234_v43, %v236_v55  ;;  %v241_v7 = vsel %vm227_vm4, %v238_v44, %v240_v57  ;;  %v249_v9 = vmul.u32 %v8076_v58, %v233_v54  ;;  %v314_v56 = vshrl.u32 %v13412_v2, %v313_v50  ;;  %1113 = vmatpush1.msra.mxu1 %v1046_v32  ;;  %v1042_v54 = vld [vmem:[#allocation2 + $0x80] sm:$0xff] }
 0x105   :  { %v8127_v13 = vmul.u32.u64.low %v8076_v58, %v241_v7  ;;  %v8128_v14 = vmul.u32.u64.high %v8076_v58, %v241_v7, %v8127_v13  ;;  %v8131_v15 = vmul.u32.u64.low %v8076_v58, %v237_v5  ;;  %v8132_v16 = vmul.u32.u64.high %v8076_v58, %v237_v5, %v8131_v15  ;;  %1114 = vmatprep.subr.mxu1 %v1045_v41  ;;  %v1041_v7 = vld [vmem:[#allocation2 + $0x78] sm:$0xff] }
 0x106   :  { %v316_v18 = vshrl.u32 %v13408_v4, %v313_v50  ;;  %v318_v20 = vshll.u32 %v13408_v4, %v312_v36  ;;  %v319_v21 = vshrl.u32 %v13406_v6, %v313_v50  ;;  %v321_v24 = vshll.u32 %v13406_v6, %v312_v36  ;;  %1115 = vmatpush1.msra.mxu1 %v1044_v46  ;;  %v1035_v46 = vld [vmem:[#allocation2 + $0x48] sm:$0xff] }
 0x107   :  { %v322_v28 = vshrl.u32 %v13404_v8, %v313_v50  ;;  %v324_v58 = vshll.u32 %v13404_v8, %v312_v36  ;;  %v325_v30 = vshrl.u32 %v13402_v10, %v313_v50  ;;  %v327_v38 = vshll.u32 %v13402_v10, %v312_v36  ;;  %v1043_v36 = vld [vmem:[#allocation2 + $0x88] sm:$0xff] }
 0x108   :  { %v317_v34 = vor.u32 %v316_v18, %v315_v11  ;;  %v320_v35 = vor.u32 %v319_v21, %v318_v20  ;;  %v328_v40 = vshrl.u32 %v13400_v19, %v313_v50  ;;  %vm251_vm7 = vc.u32 %v8128_v14, %v8131_v15  ;;  %1116 = vmatprep.subr.mxu1 %v1043_v36  ;;  %v1039_v21 = vld [vmem:[#allocation2 + $0x68] sm:$0xff] }
 0x109   :  { %v252_v43 = vadd.s32 1, %v8132_v16  ;;  %v323_v44 = vor.u32 %v322_v28, %v321_v24  ;;  %vm330_vm8 = vcmp.lt.s32.totalorder %v8118_v1, 1  ;;  %v326_v47 = vor.u32 %v325_v30, %v324_v58  ;;  %1117 = vmatpush1.msra.mxu1 %v1042_v54  ;;  %v1038_v58 = vld [vmem:[#allocation2 + $0x60] sm:$0xff]  ;;  %v1033_v54 = vld [vmem:[#allocation2 + $0x38] sm:$0xff] }
 0x10a   :  { %v329_v48 = vor.u32 %v328_v40, %v327_v38  ;;  %vm331_vm9 = vcmp.lt.s32.totalorder %v8118_v1, 2  ;;  %vm332_vm10 = vcmp.lt.s32.totalorder %v8118_v1, 3  ;;  %vm333_vm11 = vcmp.lt.s32.totalorder %v8118_v1, 4  ;;  %1118 = vmatprep.subr.mxu1 %v1041_v7  ;;  %v1036_v1 = vld [vmem:[#allocation2 + $0x50] sm:$0xff] }
 0x10b   :  { %v253_v49 = vsel %vm251_vm7, %v252_v43, %v8132_v16  ;;  %v334_v50 = vsel %vm330_vm8, %v314_v56, %v317_v34  ;;  %v338_v53 = vsel %vm330_vm8, %v317_v34, %v320_v35  ;;  %v335_v57 = vsel %vm333_vm11, %v323_v44, 2102212464  ;;  %1119 = vmatpush1.msra.mxu1 %v1040_v17  ;;  %v183_v34 = vpop.f32.mrf.mxu1 }
 0x10c   :  { %v254_v55 = vadd.s32 %v253_v49, %v249_v9  ;;  %v339_v3 = vsel %vm333_vm11, %v326_v47, 920167782  ;;  %v342_v5 = vsel %vm330_vm8, %v320_v35, %v323_v44  ;;  %v336_v11 = vsel %vm332_vm10, %v320_v35, %v335_v57  ;;  %1120 = vmatprep.subr.mxu1 %v1039_v21  ;;  %v1037_v35 = vld [vmem:[#allocation2 + $0x58] sm:$0xff] }
 0x10d   :  { %v340_v12 = vsel %vm332_vm10, %v323_v44, %v339_v3  ;;  %v343_v13 = vsel %vm333_vm11, %v329_v48, 1326507024  ;;  %v412_v16 = vadd.s32 1, %v8081_v61  ;;  %v510_v20 = vshrl.u32 %v509_v59, 23  ;;  %1121 = vmatpush1.msra.mxu1 %v1038_v58  ;;  %v1032_v3 = vld [vmem:[#allocation2 + $0x30] sm:$0xff] }
 0x10e   :  { %v255_v56 = vadd.s32 536870912, %v254_v55  ;;  %v341_v9 = vsel %vm331_vm9, %v338_v53, %v340_v12  ;;  %v344_v18 = vsel %vm332_vm10, %v326_v47, %v343_v13  ;;  %v337_v22 = vsel %vm331_vm9, %v334_v50, %v336_v11  ;;  %1122 = vmatprep.subr.mxu1 %v1037_v35  ;;  %v1034_v50 = vld [vmem:[#allocation2 + $0x40] sm:$0xff]  ;;  %v1031_v12 = vld [vmem:[#allocation2 + $0x28] sm:$0xff]  ;;  %v1028_v35 = vld [vmem:[#allocation2 + $0x10] sm:$0xff] }
 0x10f   :  { %v345_v61 = vsel %vm331_vm9, %v342_v5, %v344_v18  ;;  %v8175_v24 = vmul.u32.u64.low %v8079_v60, %v341_v9  ;;  %v8176_v28 = vmul.u32.u64.high %v8079_v60, %v341_v9, %v8175_v24  ;;  %vm413_vm12 = vcmp.gt.s32.totalorder %v412_v16, 0  ;;  %1123 = vmatpush1.msra.mxu1 %v1036_v1  ;;  %v1030_v9 = vld [vmem:[#allocation2 + $0x20] sm:$0xff] }
 0x110   :  { %v8179_v30 = vshrl.u32 %v255_v56, 30  ;;  %v8182_v32 = vmul.u32.u64.low %v8079_v60, %v345_v61  ;;  %v8183_v59 = vmul.u32.u64.high %v8079_v60, %v345_v61, %v8182_v32  ;;  %v414_v38 = vsel %vm413_vm12, %v412_v16, 0  ;;  %1124 = vmatprep.subr.mxu1 %v1035_v46  ;;  %v1029_v61 = vld [vmem:[#allocation2 + $0x18] sm:$0xff] }
 0x111   :  { %v416_v41 = vand.u32 31, %v414_v38  ;;  %v8188_v43 = vshll.u32 %v410_v62, 8  ;;  %v514_v44 = vor.u32 8388608, %v8086_v63  ;;  %v8193_v47 = vadd.s32 %v8131_v15, %v8128_v14  ;;  %1125 = vmatpush1.msra.mxu1 %v1034_v50 }
 0x112   :  { %v257_v40 = vshll.u32 %v8179_v30, 30  ;;  %v353_v48 = vmul.u32 %v8079_v60, %v337_v22  ;;  %v356_v36 = vadd.s32 1, %v8176_v28  ;;  %v8198_v49 = vadd.f32 %v183_v34, %v8042_v26  ;;  %1126 = vmatprep.subr.mxu1 %v1033_v54 }
 0x113   :  { %vm355_vm13 = vc.u32 %v8183_v59, %v8175_v24  ;;  %v417_v62 = vsub.s32 32, %v416_v41  ;;  %v7090_v53 = vadd.s32 4294967169, %v510_v20  ;;  %v8205_v15 = vshrl.u32 %v414_v38, 5  ;;  %1127 = vmatpush1.msra.mxu1 %v1032_v3 }
 0x114   :  { %v8200_v51 = vsub.s32 %v254_v55, %v257_v40  ;;  %v357_v14 = vsel %vm355_vm13, %v356_v36, %v8176_v28  ;;  %v419_v60 = vshll.u32 %v13412_v2, %v416_v41  ;;  %v422_v57 = vshll.u32 %v13408_v4, %v416_v41  ;;  %1128 = vmatprep.subr.mxu1 %v1031_v12 }
 0x115   :  { %v358_v5 = vadd.s32 %v357_v14, %v353_v48  ;;  %v420_v7 = vshrl.u32 %v13408_v4, %v417_v62  ;;  %v425_v11 = vshll.u32 %v13406_v6, %v416_v41  ;;  %v423_v13 = vshrl.u32 %v13406_v6, %v417_v62  ;;  %1129 = vmatpush1.msra.mxu1 %v1030_v9  ;;  %v1027_v48 = vld [vmem:[#allocation2 + $0x8] sm:$0xff] }
 0x116   :  { %v260_v55 = vsub.s32 0, %v8200_v51  ;;  %v426_v16 = vshrl.u32 %v13404_v8, %v417_v62  ;;  %v428_v17 = vshll.u32 %v13404_v8, %v416_v41  ;;  %v429_v56 = vshrl.u32 %v13402_v10, %v417_v62  ;;  %1130 = vmatprep.subr.mxu1 %v1029_v61  ;;  %v1085_v61 = vld [vmem:[#allocation2 + $0x1d8] sm:$0xff] }
 0x117   :  { %v359_v20 = vadd.s32 536870912, %v358_v5  ;;  %v421_v21 = vor.u32 %v420_v7, %v419_v60  ;;  %v431_v22 = vshll.u32 %v13402_v10, %v416_v41  ;;  %v424_v28 = vor.u32 %v423_v13, %v422_v57  ;;  %1131 = vmatpush1.msra.mxu1 %v1028_v35  ;;  %v1026_v41 = vld [vmem:[#allocation2] sm:$0xff]  ;;  %v1087_v13 = vld [vmem:[#allocation2 + $0x1e8] sm:$0xff] }
 0x118   :  { %v7079_v18 = vmin.u32 %v260_v55, %v8200_v51  ;;  %v427_v58 = vor.u32 %v426_v16, %v425_v11  ;;  %v430_v32 = vor.u32 %v429_v56, %v428_v17  ;;  %v432_v34 = vshrl.u32 %v13400_v19, %v417_v62  ;;  %1132 = vmatprep.subr.mxu1 %v1027_v48  ;;  %v1088_v55 = vld [vmem:[#allocation2 + $0x1f0] sm:$0xff]  ;;  %v1083_v48 = vld [vmem:[#allocation2 + $0x1c8] sm:$0xff] }
 0x119   :  { %v8219_v1 = vshrl.u32 %v359_v20, 30  ;;  %v418_v40 = vshrl.u32 %v13412_v2, %v417_v62  ;;  %v516_v46 = vadd.s32 1, %v7090_v53  ;;  %vm434_vm14 = vcmp.lt.s32.totalorder %v8205_v15, 1  ;;  %1133 = vmatpush1.msra.mxu1 %v1026_v41  ;;  %v1089_v62 = vld [vmem:[#allocation2 + $0x1f8] sm:$0xff] }
 0x11a   :  { %v262_v38 = vclz %v7079_v18  ;;  %v433_v36 = vor.u32 %v432_v34, %v431_v22  ;;  %vm435_vm15 = vcmp.lt.s32.totalorder %v8205_v15, 2  ;;  %vm437_vm1 = vcmp.lt.s32.totalorder %v8205_v15, 4  ;;  %1134 = vmatprep.subr.mxu1 %v1089_v62  ;;  %v1086_v18 = vld [vmem:[#allocation2 + $0x1e0] sm:$0xff] }
 0x11b   :  { %v361_v54 = vshll.u32 %v8219_v1, 30  ;;  %v439_v14 = vsel %vm437_vm1, %v427_v58, 2102212464  ;;  %v442_v60 = vsel %vm434_vm14, %v421_v21, %v424_v28  ;;  %vm436_vm2 = vcmp.lt.s32.totalorder %v8205_v15, 3  ;;  %1135 = vmatpush2.msra.mxu1 %v1088_v55 }
 0x11c   :  { %v7080_v50 = vadd.s32 4294967294, %v262_v38  ;;  %v438_v53 = vsel %vm434_vm14, %v418_v40, %v421_v21  ;;  %v443_v57 = vsel %vm437_vm1, %v430_v32, 920167782  ;;  %v447_v3 = vsel %vm437_vm1, %v433_v36, 1326507024  ;;  %1136 = vmatprep.subr.mxu1 %v1087_v13 }
 0x11d   :  { %v8231_v7 = vsub.s32 %v358_v5, %v361_v54  ;;  %v444_v11 = vsel %vm436_vm2, %v427_v58, %v443_v57  ;;  %v446_v12 = vsel %vm434_vm14, %v424_v28, %v427_v58  ;;  %v440_v17 = vsel %vm436_vm2, %v424_v28, %v439_v14  ;;  %1137 = vmatpush2.msra.mxu1 %v1086_v18  ;;  %v1082_v54 = vld [vmem:[#allocation2 + $0x1c0] sm:$0xff]  ;;  %v1081_v57 = vld [vmem:[#allocation2 + $0x1b8] sm:$0xff] }
 0x11e   :  { %vm7081_vm3 = vcmp.lt.s32.totalorder %v7080_v50, 0  ;;  %v445_v56 = vsel %vm435_vm15, %v442_v60, %v444_v11  ;;  %v448_v9 = vsel %vm436_vm2, %v430_v32, %v447_v3  ;;  %vm517_vm4 = vcmp.gt.s32.totalorder %v516_v46, 0  ;;  %1138 = vmatprep.subr.mxu1 %v1085_v61  ;;  %v1084_v32 = vld [vmem:[#allocation2 + $0x1d0] sm:$0xff] }
 0x11f   :  { %v265_v16 = vsel %vm7081_vm3, 0, %v7080_v50  ;;  %v364_v5 = vsub.s32 0, %v8231_v7  ;;  %v449_v58 = vsel %vm435_vm15, %v446_v12, %v448_v9  ;;  %v518_v40 = vsel %vm517_vm4, %v516_v46, 0  ;;  %1139 = vmatpush2.msra.mxu1 %v1084_v32  ;;  %v1080_v12 = vld [vmem:[#allocation2 + $0x1b0] sm:$0xff]  ;;  %v1078_v9 = vld [vmem:[#allocation2 + $0x1a0] sm:$0xff] }
 0x120   :  { %v266_v20 = vsub.s32 32, %v265_v16  ;;  %v267_v21 = vshll.u32 %v8200_v51, %v265_v16  ;;  %v270_v22 = vsub.s32 4294967266, %v265_v16  ;;  %v8252_v50 = vand.u32 31, %v518_v40  ;;  %1140 = vmatprep.subr.mxu1 %v1083_v48  ;;  %v1076_v61 = vld [vmem:[#allocation2 + $0x190] sm:$0xff] }
 0x121   :  { %v8242_v34 = vmul.u32.u64.low %v8188_v43, %v445_v56  ;;  %v8243_v28 = vmul.u32.u64.high %v8188_v43, %v445_v56, %v8242_v34  ;;  %v7083_v51 = vmin.u32 %v364_v5, %v8231_v7  ;;  %1141 = vmatpush2.msra.mxu1 %v1082_v54  ;;  %v8262_v55 = vshll.u32 %v514_v44, 8  ;;  %v1074_v54 = vld [vmem:[#allocation2 + $0x180] sm:$0xff] }
 0x122   :  { %v268_v35 = vshrl.u32 %v8193_v47, %v266_v20  ;;  %v271_v38 = vadd.s32 127, %v270_v22  ;;  %v8249_v36 = vmul.u32.u64.low %v8188_v43, %v449_v58  ;;  %v8250_v41 = vmul.u32.u64.high %v8188_v43, %v449_v58, %v8249_v36  ;;  %1142 = vmatprep.subr.mxu1 %v1081_v57  ;;  %v1077_v20 = vld [vmem:[#allocation2 + $0x198] sm:$0xff] }
 0x123   :  { %v366_v62 = vclz %v7083_v51  ;;  %v441_v47 = vsel %vm435_vm15, %v438_v53, %v440_v17  ;;  %v460_v46 = vadd.s32 1, %v8243_v28  ;;  %v8258_v3 = vsub.s32 32, %v8252_v50  ;;  %1143 = vmatpush2.msra.mxu1 %v1080_v12  ;;  %v1079_v17 = vld [vmem:[#allocation2 + $0x1a8] sm:$0xff]  ;;  %v1073_v57 = vld [vmem:[#allocation2 + $0x178] sm:$0xff] }
 0x124   :  { %v269_v14 = vor.u32 %v268_v35, %v267_v21  ;;  %v272_v60 = vshll.u32 %v271_v38, 23  ;;  %v13390_v11 = vand.u32 2147483647, %v8198_v49  ;;  %v354_v15 = vadd.s32 %v8175_v24, %v8183_v59  ;;  %1144 = vmatprep.subr.mxu1 %v1079_v17 }
 0x125   :  { %v7084_v53 = vadd.s32 4294967294, %v366_v62  ;;  %v613_v16 = vand.u32 2139095040, %v8198_v49  ;;  %vm196_vm5 = vcmp.lt.s32.totalorder %v8048_v29, 0  ;;  %v457_v56 = vmul.u32 %v8188_v43, %v441_v47  ;;  %1145 = vmatpush2.msra.mxu1 %v1078_v9 }
 0x126   :  { %v273_v13 = vor.u32 4788187, %v272_v60  ;;  %vm459_vm6 = vc.u32 %v8250_v41, %v8242_v34  ;;  %v8272_v63 = vshrl.u32 %v518_v40, 5  ;;  %v524_v44 = vshrl.u32 %v13408_v4, %v8258_v3  ;;  %1146 = vmatprep.subr.mxu1 %v1077_v20 }
 0x127   :  { %v276_v59 = vcvt.s32.f32 %v269_v14  ;;  %vm7085_vm7 = vcmp.lt.s32.totalorder %v7084_v53, 0  ;;  %v461_v18 = vsel %vm459_vm6, %v460_v46, %v8243_v28  ;;  %v523_v43 = vshll.u32 %v13412_v2, %v8252_v50  ;;  %1147 = vmatpush2.msra.mxu1 %v1076_v61  ;;  %v1075_v28 = vld [vmem:[#allocation2 + $0x188] sm:$0xff] }
 0x128   :  { %v274_v24 = vand.u32 2147483647, %v273_v13  ;;  %v369_v21 = vsel %vm7085_vm7, 0, %v7084_v53  ;;  %v462_v22 = vadd.s32 %v461_v18, %v457_v56  ;;  %v527_v5 = vshrl.u32 %v13406_v6, %v8258_v3  ;;  %1148 = vmatprep.subr.mxu1 %v1075_v28  ;;  %v1072_v56 = vld [vmem:[#allocation2 + $0x170] sm:$0xff]  ;;  %v1067_v28 = vld [vmem:[#allocation2 + $0x148] sm:$0xff] }
 0x129   :  { %v370_v32 = vsub.s32 32, %v369_v21  ;;  %v374_v35 = vsub.s32 4294967266, %v369_v21  ;;  %v530_v38 = vshrl.u32 %v13404_v8, %v8258_v3  ;;  %v525_v40 = vor.u32 %v524_v44, %v523_v43  ;;  %1149 = vmatpush2.msra.mxu1 %v1074_v54 }
 0x12a   :  { %v277_v58 = vmul.f32 %v276_v59, %v274_v24  ;;  %v463_v51 = vadd.s32 536870912, %v462_v22  ;;  %v526_v48 = vshll.u32 %v13408_v4, %v8252_v50  ;;  %v529_v36 = vshll.u32 %v13406_v6, %v8252_v50  ;;  %1150 = vmatprep.subr.mxu1 %v1073_v57 }
 0x12b   :  { %v375_v60 = vadd.s32 127, %v374_v35  ;;  %v532_v62 = vshll.u32 %v13404_v8, %v8252_v50  ;;  %v533_v47 = vshrl.u32 %v13402_v10, %v8258_v3  ;;  %vm8293_vm8 = vcmp.le.f32.partialorder %v194_v31, 0.7853982  ;;  %1151 = vmatpush2.msra.mxu1 %v1072_v56  ;;  %v1071_v31 = vld [vmem:[#allocation2 + $0x168] sm:$0xff] }
 0x12c   :  { %v278_v14 = vxor.u32 2147483648, %v277_v58  ;;  %v372_v12 = vshrl.u32 %v354_v15, %v370_v32  ;;  %v8297_v13 = vshrl.u32 %v463_v51, 30  ;;  %v528_v53 = vor.u32 %v527_v5, %v526_v48  ;;  %1152 = vmatprep.subr.mxu1 %v1071_v31  ;;  %v1070_v5 = vld [vmem:[#allocation2 + $0x160] sm:$0xff] }
 0x12d   :  { %v536_v17 = vshrl.u32 %v13400_v19, %v8258_v3  ;;  %v376_v44 = vshll.u32 %v375_v60, 23  ;;  %v531_v9 = vor.u32 %v530_v38, %v529_v36  ;;  %v534_v24 = vor.u32 %v533_v47, %v532_v62  ;;  %1153 = vmatpush2.msra.mxu1 %v1070_v5  ;;  %v1068_v38 = vld [vmem:[#allocation2 + $0x150] sm:$0xff] }
 0x12e   :  { %v535_v59 = vshll.u32 %v13402_v10, %v8252_v50  ;;  %v371_v18 = vshll.u32 %v8231_v7, %v369_v21  ;;  %v465_v15 = vshll.u32 %v8297_v13, 30  ;;  %v522_v20 = vshrl.u32 %v13412_v2, %v8258_v3  ;;  %v1069_v50 = vld [vmem:[#allocation2 + $0x158] sm:$0xff]  ;;  %v1066_v3 = vld [vmem:[#allocation2 + $0x140] sm:$0xff]  ;;  %v1064_v60 = vld [vmem:[#allocation2 + $0x130] sm:$0xff] }
 0x12f   :  { %v614_v43 = vshrl.u32 %v613_v16, 23  ;;  %v279_v61 = vsel %vm196_vm5, %v278_v14, %v277_v58  ;;  %v377_v32 = vor.u32 4788187, %v376_v44  ;;  %vm538_vm9 = vcmp.lt.s32.totalorder %v8272_v63, 1  ;;  %1154 = vmatprep.subr.mxu1 %v1069_v50  ;;  %v1060_v50 = vld [vmem:[#allocation2 + $0x110] sm:$0xff] }
 0x130   :  { %v537_v35 = vor.u32 %v536_v17, %v535_v59  ;;  %v373_v7 = vor.u32 %v372_v12, %v371_v18  ;;  %v8310_v21 = vsub.s32 %v462_v22, %v465_v15  ;;  %vm539_vm10 = vcmp.lt.s32.totalorder %v8272_v63, 2  ;;  %1155 = vmatpush2.msra.mxu1 %v1068_v38  ;;  %v1065_v22 = vld [vmem:[#allocation2 + $0x138] sm:$0xff] }
 0x131   :  { %vm541_vm11 = vcmp.lt.s32.totalorder %v8272_v63, 4  ;;  %vm540_vm12 = vcmp.lt.s32.totalorder %v8272_v63, 3  ;;  %v546_v58 = vsel %vm538_vm9, %v525_v40, %v528_v53  ;;  %v542_v36 = vsel %vm538_vm9, %v522_v20, %v525_v40  ;;  %1156 = vmatprep.subr.mxu1 %v1067_v28  ;;  %v1063_v40 = vld [vmem:[#allocation2 + $0x128] sm:$0xff]  ;;  %v1061_v15 = vld [vmem:[#allocation2 + $0x118] sm:$0xff] }
 0x132   :  { %v543_v16 = vsel %vm541_vm11, %v531_v9, 2102212464  ;;  %v547_v51 = vsel %vm541_vm11, %v534_v24, 920167782  ;;  %v468_v48 = vsub.s32 0, %v8310_v21  ;;  %v550_v14 = vsel %vm538_vm9, %v528_v53, %v531_v9  ;;  %1157 = vmatpush2.msra.mxu1 %v1066_v3 }
 0x133   :  { %v548_v54 = vsel %vm540_vm12, %v531_v9, %v547_v51  ;;  %v378_v62 = vand.u32 2147483647, %v377_v32  ;;  %v544_v47 = vsel %vm540_vm12, %v528_v53, %v543_v16  ;;  %v551_v12 = vsel %vm541_vm11, %v537_v35, 1326507024  ;;  %1158 = vmatprep.subr.mxu1 %v1065_v22  ;;  %v1062_v53 = vld [vmem:[#allocation2 + $0x120] sm:$0xff]  ;;  %v185_v35 = vpop.f32.mrf.mxu1 }
 0x134   :  { %v549_v57 = vsel %vm539_vm10, %v546_v58, %v548_v54  ;;  %v7087_v17 = vmin.u32 %v468_v48, %v8310_v21  ;;  %v552_v56 = vsel %vm540_vm12, %v534_v24, %v551_v12  ;;  %v282_v59 = vsel %vm8293_vm8, %v8048_v29, %v279_v61  ;;  %1159 = vmatpush2.msra.mxu1 %v1064_v60  ;;  %v1059_v61 = vld [vmem:[#allocation2 + $0x108] sm:$0xff]  ;;  %v1058_v58 = vld [vmem:[#allocation2 + $0x100] sm:$0xff] }
 0x135   :  { %v8338_v44 = vmul.u32.u64.low %v8262_v55, %v549_v57  ;;  %v8339_v9 = vmul.u32.u64.high %v8262_v55, %v549_v57, %v8338_v44  ;;  %v553_v31 = vsel %vm539_vm10, %v550_v14, %v552_v56  ;;  %v7094_v18 = vadd.s32 4294967169, %v614_v43  ;;  %1160 = vmatprep.subr.mxu1 %v1063_v40  ;;  %v189_v48 = vpop.f32.mrf.mxu1 }
 0x136   :  { %v380_v20 = vcvt.s32.f32 %v373_v7  ;;  %v470_v5 = vclz %v7087_v17  ;;  %v8348_v24 = vmul.u32.u64.low %v8262_v55, %v553_v31  ;;  %v8349_v32 = vmul.u32.u64.high %v8262_v55, %v553_v31, %v8348_v24  ;;  %1161 = vmatpush2.msra.mxu1 %v1062_v53 }
 0x137   :  { %v545_v38 = vsel %vm539_vm10, %v542_v36, %v544_v47  ;;  %v620_v28 = vadd.s32 1, %v7094_v18  ;;  %v564_v16 = vadd.s32 1, %v8339_v9  ;;  %v617_v7 = vand.u32 8388607, %v13390_v11  ;;  %1162 = vmatprep.subr.mxu1 %v1061_v15 }
 0x138   :  { %v8353_v3 = vmul.f32 %v380_v20, %v378_v62  ;;  %v7088_v43 = vadd.s32 4294967294, %v470_v5  ;;  %7631 = vcosq.f32 %v282_v59  ;;  %v458_v51 = vadd.s32 %v8242_v34, %v8250_v41  ;;  %1163 = vmatpush2.msra.mxu1 %v1060_v50 }
 0x139   :  { %vm621_vm13 = vcmp.gt.s32.totalorder %v620_v28, 0  ;;  %v561_v63 = vmul.u32 %v8262_v55, %v545_v38  ;;  %vm563_vm15 = vc.u32 %v8349_v32, %v8338_v44  ;;  %1164 = vmatprep.subr.mxu1 %v1059_v61  ;;  %7633 = vsinq.f32 %v282_v59 }
 0x13a   :  { %vm7089_vm14 = vcmp.lt.s32.totalorder %v7088_v43, 0  ;;  %v622_v22 = vsel %vm621_vm13, %v620_v28, 0  ;;  %v565_v54 = vsel %vm563_vm15, %v564_v16, %v8339_v9  ;;  %1165 = vmatpush2.msra.mxu1 %v1058_v58  ;;  %v382_v34 = vxor.u32 2147483648, %v8353_v3 }
 0x13b   :  { %v8363_v36 = vsel %vm7089_vm14, 0, %v7088_v43  ;;  %v624_v14 = vand.u32 31, %v622_v22  ;;  %v566_v60 = vadd.s32 %v565_v54, %v561_v63  ;;  %v618_v62 = vor.u32 8388608, %v617_v7 }
 0x13c   :  { %v478_v41 = vsub.s32 4294967266, %v8363_v36  ;;  %v474_v55 = vsub.s32 32, %v8363_v36  ;;  %v8370_v57 = vadd.f32 %v185_v35, %v8045_v27  ;;  %v8373_v12 = vadd.f32 %v189_v48, %v8042_v26 }
 0x13d   :  { %v625_v47 = vsub.s32 32, %v624_v14  ;;  %v567_v40 = vadd.s32 536870912, %v566_v60  ;;  %v627_v17 = vshll.u32 %v13412_v2, %v624_v14  ;;  %v630_v56 = vshll.u32 %v13408_v4, %v624_v14 }
 0x13e   :  { %v633_v9 = vshll.u32 %v13406_v6, %v624_v14  ;;  %v479_v53 = vadd.s32 127, %v478_v41  ;;  %v623_v20 = vshrl.u32 %v622_v22, 5  ;;  %v636_v26 = vshll.u32 %v13404_v8, %v624_v14 }
 0x13f   :  { %v628_v59 = vshrl.u32 %v13408_v4, %v625_v47  ;;  %v631_v31 = vshrl.u32 %v13406_v6, %v625_v47  ;;  %v634_v18 = vshrl.u32 %v13404_v8, %v625_v47  ;;  %v8381_v15 = vshrl.u32 %v567_v40, 30 }
 0x140   :  { %v637_v5 = vshrl.u32 %v13402_v10, %v625_v47  ;;  %v8385_v38 = vshll.u32 %v618_v62, 8  ;;  %v13391_v43 = vand.u32 2147483647, %v8370_v57  ;;  %v717_v16 = vand.u32 2139095040, %v8370_v57 }
 0x141   :  { %v629_v24 = vor.u32 %v628_v59, %v627_v17  ;;  %v632_v35 = vor.u32 %v631_v31, %v630_v56  ;;  %v635_v50 = vor.u32 %v634_v18, %v633_v9  ;;  %v569_v28 = vshll.u32 %v8381_v15, 30  ;;  %v191_v59 = vpop.f32.mrf.mxu1 }
 0x142   :  { %v638_v61 = vor.u32 %v637_v5, %v636_v26  ;;  %v476_v7 = vshrl.u32 %v458_v51, %v474_v55  ;;  %v480_v58 = vshll.u32 %v479_v53, 23  ;;  %v639_v63 = vshll.u32 %v13402_v10, %v624_v14 }
 0x143   :  { %v640_v22 = vshrl.u32 %v13400_v19, %v625_v47  ;;  %v8392_v48 = vsub.s32 %v566_v60, %v569_v28  ;;  %vm642_vm1 = vcmp.lt.s32.totalorder %v623_v20, 1  ;;  %vm644_vm2 = vcmp.lt.s32.totalorder %v623_v20, 3 }
 0x144   :  { %vm645_vm3 = vcmp.lt.s32.totalorder %v623_v20, 4  ;;  %v650_v62 = vsel %vm642_vm1, %v629_v24, %v632_v35  ;;  %v626_v51 = vshrl.u32 %v13412_v2, %v625_v47  ;;  %vm643_vm4 = vcmp.lt.s32.totalorder %v623_v20, 2 }
 0x145   :  { %v641_v54 = vor.u32 %v640_v22, %v639_v63  ;;  %v647_v41 = vsel %vm645_vm3, %v635_v50, 2102212464  ;;  %v651_v40 = vsel %vm645_vm3, %v638_v61, 920167782  ;;  %v8395_v17 = vpop.eup %7631  ;;  %v572_v56 = vsub.s32 0, %v8392_v48 }
 0x146   :  { %v652_v14 = vsel %vm644_vm2, %v635_v50, %v651_v40  ;;  %v481_v55 = vor.u32 4788187, %v480_v58  ;;  %v654_v9 = vsel %vm642_vm1, %v632_v35, %v635_v50  ;;  %v8402_v31 = vpop.eup %7633  ;;  %v646_v26 = vsel %vm642_vm1, %v626_v51, %v629_v24 }
 0x147   :  { %v653_v60 = vsel %vm643_vm4, %v650_v62, %v652_v14  ;;  %v655_v53 = vsel %vm645_vm3, %v641_v54, 1326507024  ;;  %v7091_v18 = vmin.u32 %v572_v56, %v8392_v48  ;;  %v648_v5 = vsel %vm644_vm2, %v632_v35, %v647_v41 }
 0x148   :  { %v656_v47 = vsel %vm644_vm2, %v638_v61, %v655_v53  ;;  %vm300_vm6 = vcmp.lt.s32.totalorder %v8053_v33, 0  ;;  %v8411_v58 = vmul.u32.u64.low %v8385_v38, %v653_v60  ;;  %v8412_v63 = vmul.u32.u64.high %v8385_v38, %v653_v60, %v8411_v58 }
 0x149   :  { %v657_v28 = vsel %vm643_vm4, %v654_v9, %v656_v47  ;;  %v718_v50 = vshrl.u32 %v717_v16, 23  ;;  %v574_v22 = vclz %v7091_v18  ;;  %v8420_v24 = vadd.f32 %v191_v59, %v8045_v27 }
 0x14a   :  { %v8416_v54 = vmul.u32.u64.low %v8385_v38, %v657_v28  ;;  %v8417_v62 = vmul.u32.u64.high %v8385_v38, %v657_v28, %v8416_v54  ;;  %v475_v35 = vshll.u32 %v8310_v21, %v8363_v36  ;;  %v649_v61 = vsel %vm643_vm4, %v646_v26, %v648_v5 }
 0x14b   :  { %v7098_v41 = vadd.s32 4294967169, %v718_v50  ;;  %v721_v40 = vand.u32 8388607, %v13391_v43  ;;  %v562_v16 = vadd.s32 %v8338_v44, %v8349_v32  ;;  %v7092_v56 = vadd.s32 4294967294, %v574_v22 }
 0x14c   :  { %v13388_v51 = vand.u32 2147483647, %v8373_v12  ;;  %v821_v14 = vand.u32 2139095040, %v8373_v12  ;;  %v477_v60 = vor.u32 %v476_v7, %v475_v35  ;;  %v482_v27 = vand.u32 2147483647, %v481_v55 }
 0x14d   :  { %v668_v9 = vadd.s32 1, %v8412_v63  ;;  %v724_v53 = vadd.s32 1, %v7098_v41  ;;  %vm7093_vm7 = vcmp.lt.s32.totalorder %v7092_v56, 0  ;;  %v665_v21 = vmul.u32 %v8385_v38, %v649_v61 }
 0x14e   :  { %vm667_vm9 = vc.u32 %v8417_v62, %v8411_v58  ;;  %v822_v36 = vshrl.u32 %v821_v14, 23  ;;  %v577_v20 = vsel %vm7093_vm7, 0, %v7092_v56  ;;  %v722_v32 = vor.u32 8388608, %v721_v40 }
 0x14f   :  { %v669_v44 = vsel %vm667_vm9, %v668_v9, %v8412_v63  ;;  %vm725_vm10 = vcmp.gt.s32.totalorder %v724_v53, 0  ;;  %v578_v59 = vsub.s32 32, %v577_v20  ;;  %v582_v18 = vsub.s32 4294967266, %v577_v20 }
 0x150   :  { %v670_v26 = vadd.s32 %v669_v44, %v665_v21  ;;  %v8438_v7 = vand.u32 8388607, %v13388_v51  ;;  %v484_v55 = vcvt.s32.f32 %v477_v60  ;;  %v726_v5 = vsel %vm725_vm10, %v724_v53, 0 }
 0x151   :  { %v7102_v47 = vadd.s32 4294967169, %v822_v36  ;;  %v925_v38 = vand.u32 2139095040, %v8420_v24  ;;  %v8446_v28 = vsel %vm300_vm6, %v382_v34, %v8353_v3  ;;  %v580_v63 = vshrl.u32 %v562_v16, %v578_v59 }
 0x152   :  { %v583_v50 = vadd.s32 127, %v582_v18  ;;  %v671_v22 = vadd.s32 536870912, %v670_v26  ;;  %v8448_v54 = vmul.f32 %v484_v55, %v482_v27  ;;  %v579_v35 = vshll.u32 %v8392_v48, %v577_v20 }
 0x153   :  { %v728_v61 = vand.u32 31, %v726_v5  ;;  %v8451_v41 = vshll.u32 %v722_v32, 8  ;;  %v727_v14 = vshrl.u32 %v726_v5, 5  ;;  %v826_v60 = vor.u32 8388608, %v8438_v7 }
 0x154   :  { %v584_v40 = vshll.u32 %v583_v50, 23  ;;  %v8453_v56 = vshrl.u32 %v671_v22, 30  ;;  %v581_v9 = vor.u32 %v580_v63, %v579_v35  ;;  %v828_v3 = vadd.s32 1, %v7102_v47 }
 0x155   :  { %v729_v53 = vsub.s32 32, %v728_v61  ;;  %v926_v34 = vshrl.u32 %v925_v38, 23  ;;  %v731_v27 = vshll.u32 %v13412_v2, %v728_v61  ;;  %v734_v21 = vshll.u32 %v13408_v4, %v728_v61 }
 0x156   :  { %v673_v16 = vshll.u32 %v8453_v56, 30  ;;  %v737_v48 = vshll.u32 %v13406_v6, %v728_v61  ;;  %v585_v36 = vor.u32 4788187, %v584_v40  ;;  %v740_v18 = vshll.u32 %v13404_v8, %v728_v61 }
 0x157   :  { %v732_v20 = vshrl.u32 %v13408_v4, %v729_v53  ;;  %v735_v44 = vshrl.u32 %v13406_v6, %v729_v53  ;;  %v738_v32 = vshrl.u32 %v13404_v8, %v729_v53  ;;  %v741_v7 = vshrl.u32 %v13402_v10, %v729_v53 }
 0x158   :  { %v8463_v59 = vsub.s32 %v670_v26, %v673_v16  ;;  %v743_v55 = vshll.u32 %v13402_v10, %v728_v61  ;;  %v744_v63 = vshrl.u32 %v13400_v19, %v729_v53  ;;  %v588_v50 = vcvt.s32.f32 %v581_v9 }
 0x159   :  { %v733_v5 = vor.u32 %v732_v20, %v731_v27  ;;  %v736_v47 = vor.u32 %v735_v44, %v734_v21  ;;  %v739_v38 = vor.u32 %v738_v32, %v737_v48  ;;  %v742_v35 = vor.u32 %v741_v7, %v740_v18 }
 0x15a   :  { %v676_v22 = vsub.s32 0, %v8463_v59  ;;  %vm746_vm11 = vcmp.lt.s32.totalorder %v727_v14, 1  ;;  %v586_v40 = vand.u32 2147483647, %v585_v36  ;;  %v730_v26 = vshrl.u32 %v13412_v2, %v729_v53 }
 0x15b   :  { %v745_v16 = vor.u32 %v744_v63, %v743_v55  ;;  %vm749_vm12 = vcmp.lt.s32.totalorder %v727_v14, 4  ;;  %vm747_vm13 = vcmp.lt.s32.totalorder %v727_v14, 2  ;;  %v754_v61 = vsel %vm746_vm11, %v733_v5, %v736_v47 }
 0x15c   :  { %v7095_v0 = vmin.u32 %v676_v22, %v8463_v59  ;;  %v751_v51 = vsel %vm749_vm12, %v739_v38, 2102212464  ;;  %vm748_vm14 = vcmp.lt.s32.totalorder %v727_v14, 3  ;;  %v755_v27 = vsel %vm749_vm12, %v742_v35, 920167782 }
 0x15d   :  { %v758_v21 = vsel %vm746_vm11, %v736_v47, %v739_v38  ;;  %v759_v48 = vsel %vm749_vm12, %v745_v16, 1326507024  ;;  %v750_v9 = vsel %vm746_vm11, %v730_v26, %v733_v5  ;;  %v752_v44 = vsel %vm748_vm14, %v736_v47, %v751_v51 }
 0x15e   :  { %v678_v20 = vclz %v7095_v0  ;;  %v756_v32 = vsel %vm748_vm14, %v739_v38, %v755_v27  ;;  %v8472_v18 = vmul.f32 %v588_v50, %v586_v40  ;;  %v760_v53 = vsel %vm748_vm14, %v742_v35, %v759_v48 }
 0x15f   :  { %v757_v36 = vsel %vm747_vm13, %v754_v61, %v756_v32  ;;  %vm829_vm15 = vcmp.gt.s32.totalorder %v828_v3, 0  ;;  %v761_v55 = vsel %vm747_vm13, %v758_v21, %v760_v53  ;;  %v753_v16 = vsel %vm747_vm13, %v750_v9, %v752_v44 }
 0x160   :  { %v7096_v7 = vadd.s32 4294967294, %v678_v20  ;;  %v8477_v63 = vmul.u32.u64.low %v8451_v41, %v757_v36  ;;  %v8478_v22 = vmul.u32.u64.high %v8451_v41, %v757_v36, %v8477_v63  ;;  %v830_v5 = vsel %vm829_vm15, %v828_v3, 0 }
 0x161   :  { %v8483_v0 = vmul.u32.u64.low %v8451_v41, %v761_v55  ;;  %v8484_v51 = vmul.u32.u64.high %v8451_v41, %v761_v55, %v8483_v0  ;;  %v832_v47 = vand.u32 31, %v830_v5  ;;  %v13389_v38 = vand.u32 2147483647, %v8420_v24 }
 0x162   :  { %vm7097_vm1 = vcmp.lt.s32.totalorder %v7096_v7, 0  ;;  %v7106_v50 = vadd.s32 4294967169, %v926_v34  ;;  %v486_v35 = vxor.u32 2147483648, %v8448_v54  ;;  %v666_v40 = vadd.s32 %v8411_v58, %v8417_v62 }
 0x163   :  { %v681_v26 = vsel %vm7097_vm1, 0, %v7096_v7  ;;  %v8490_v61 = vshll.u32 %v826_v60, 8  ;;  %v590_v14 = vxor.u32 2147483648, %v8472_v18  ;;  %v769_v21 = vmul.u32 %v8451_v41, %v753_v16 }
 0x164   :  { %v686_v27 = vsub.s32 4294967266, %v681_v26  ;;  %v772_v3 = vadd.s32 1, %v8478_v22  ;;  %v682_v48 = vsub.s32 32, %v681_v26  ;;  %vm771_vm2 = vc.u32 %v8484_v51, %v8477_v63 }
 0x165   :  { %v831_v34 = vshrl.u32 %v830_v5, 5  ;;  %v833_v20 = vsub.s32 32, %v832_v47  ;;  %v8500_v58 = vand.u32 8388607, %v13389_v38  ;;  %v932_v62 = vadd.s32 1, %v7106_v50 }
 0x166   :  { %v687_v9 = vadd.s32 127, %v686_v27  ;;  %v773_v44 = vsel %vm771_vm2, %v772_v3, %v8478_v22  ;;  %v835_v32 = vshll.u32 %v13412_v2, %v832_v47  ;;  %v838_v7 = vshll.u32 %v13408_v4, %v832_v47 }
 0x167   :  { %v774_v60 = vadd.s32 %v773_v44, %v769_v21  ;;  %v836_v41 = vshrl.u32 %v13408_v4, %v833_v20  ;;  %v839_v36 = vshrl.u32 %v13406_v6, %v833_v20  ;;  %v841_v55 = vshll.u32 %v13406_v6, %v832_v47 }
 0x168   :  { %v688_v53 = vshll.u32 %v687_v9, 23  ;;  %v842_v16 = vshrl.u32 %v13404_v8, %v833_v20  ;;  %v683_v22 = vshll.u32 %v8463_v59, %v681_v26  ;;  %v684_v0 = vshrl.u32 %v666_v40, %v682_v48 }
 0x169   :  { %v775_v5 = vadd.s32 536870912, %v774_v60  ;;  %v837_v27 = vor.u32 %v836_v41, %v835_v32  ;;  %v840_v50 = vor.u32 %v839_v36, %v838_v7  ;;  %v844_v3 = vshll.u32 %v13404_v8, %v832_v47 }
 0x16a   :  { %v843_v21 = vor.u32 %v842_v16, %v841_v55  ;;  %v845_v44 = vshrl.u32 %v13402_v10, %v833_v20  ;;  %v834_v9 = vshrl.u32 %v13412_v2, %v833_v20  ;;  %v847_v11 = vshll.u32 %v13402_v10, %v832_v47 }
 0x16b   :  { %v8511_v38 = vshrl.u32 %v775_v5, 30  ;;  %v848_v43 = vshrl.u32 %v13400_v19, %v833_v20  ;;  %v689_v45 = vor.u32 4788187, %v688_v53  ;;  %vm850_vm3 = vcmp.lt.s32.totalorder %v831_v34, 1 }
 0x16c   :  { %v846_v52 = vor.u32 %v845_v44, %v844_v3  ;;  %vm851_vm4 = vcmp.lt.s32.totalorder %v831_v34, 2  ;;  %vm8518_vm7 = vcmp.le.f32.partialorder %v298_v37, 0.7853982  ;;  %vm852_vm9 = vcmp.lt.s32.totalorder %v831_v34, 3 }
 0x16d   :  { %v777_v40 = vshll.u32 %v8511_v38, 30  ;;  %v849_v26 = vor.u32 %v848_v43, %v847_v11  ;;  %vm853_vm10 = vcmp.lt.s32.totalorder %v831_v34, 4  ;;  %v854_v48 = vsel %vm850_vm3, %v834_v9, %v837_v27 }
 0x16e   :  { %v855_v32 = vsel %vm853_vm10, %v843_v21, 2102212464  ;;  %v858_v47 = vsel %vm850_vm3, %v837_v27, %v840_v50  ;;  %v859_v41 = vsel %vm853_vm10, %v846_v52, 920167782  ;;  %v862_v7 = vsel %vm850_vm3, %v840_v50, %v843_v21 }
 0x16f   :  { %v8523_v20 = vsub.s32 %v774_v60, %v777_v40  ;;  %v856_v36 = vsel %vm852_vm9, %v840_v50, %v855_v32  ;;  %v860_v53 = vsel %vm852_vm9, %v843_v21, %v859_v41  ;;  %v685_v55 = vor.u32 %v684_v0, %v683_v22 }
 0x170   :  { %v861_v37 = vsel %vm851_vm4, %v858_v47, %v860_v53  ;;  %v863_v16 = vsel %vm853_vm10, %v849_v26, 1326507024  ;;  %v384_v5 = vsub.s32 4, %v8219_v1  ;;  %v690_v27 = vand.u32 2147483647, %v689_v45 }
 0x171   :  { %v780_v3 = vsub.s32 0, %v8523_v20  ;;  %v864_v11 = vsel %vm852_vm9, %v846_v52, %v863_v16  ;;  %v8529_v43 = vmul.u32.u64.low %v8490_v61, %v861_v37  ;;  %v8530_v44 = vmul.u32.u64.high %v8490_v61, %v861_v37, %v8529_v43 }
 0x172   :  { %v857_v60 = vsel %vm851_vm4, %v854_v48, %v856_v36  ;;  %v865_v9 = vsel %vm851_vm4, %v862_v7, %v864_v11  ;;  %v930_v22 = vor.u32 8388608, %v8500_v58  ;;  %vm933_vm11 = vcmp.gt.s32.totalorder %v932_v62, 0 }
 0x173   :  { %v7099_v0 = vmin.u32 %v780_v3, %v8523_v20  ;;  %v8538_v50 = vmul.u32.u64.low %v8490_v61, %v865_v9  ;;  %v8539_v21 = vmul.u32.u64.high %v8490_v61, %v865_v9, %v8538_v50  ;;  %v692_v52 = vcvt.s32.f32 %v685_v55 }
 0x174   :  { %v770_v40 = vadd.s32 %v8477_v63, %v8484_v51  ;;  %v934_v26 = vsel %vm933_vm11, %v932_v62, 0  ;;  %v8546_v45 = vsel %vm300_vm6, %v384_v5, %v8219_v1  ;;  %v876_v58 = vadd.s32 1, %v8530_v44 }
 0x175   :  { %v782_v34 = vclz %v7099_v0  ;;  %v936_v48 = vand.u32 31, %v934_v26  ;;  %v8553_v32 = vsel %vm8518_vm7, %v8053_v33, %v8446_v28  ;;  %v8555_v47 = vmul.f32 %v692_v52, %v690_v27 }
 0x176   :  { %v873_v63 = vmul.u32 %v8490_v61, %v857_v60  ;;  %v8558_v51 = vshrl.u32 %v934_v26, 5  ;;  %v8560_v62 = vshll.u32 %v930_v22, 8  ;;  %vm875_vm6 = vc.u32 %v8539_v21, %v8529_v43 }
 0x177   :  { %v7100_v1 = vadd.s32 4294967294, %v782_v34  ;;  %v937_v41 = vsub.s32 32, %v936_v48  ;;  %v387_v36 = vsel %vm8518_vm7, 0, %v8546_v45  ;;  %v877_v28 = vsel %vm875_vm6, %v876_v58, %v8530_v44 }
 0x178   :  { %v939_v53 = vshll.u32 %v13412_v2, %v936_v48  ;;  %7635 = vcosq.f32 %v8553_v32  ;;  %v280_v61 = vsub.s32 4, %v8179_v30  ;;  %v878_v7 = vadd.s32 %v877_v28, %v873_v63 }
 0x179   :  { %vm7101_vm12 = vcmp.lt.s32.totalorder %v7100_v1, 0  ;;  %v940_v55 = vshrl.u32 %v13408_v4, %v937_v41  ;;  %v942_v37 = vshll.u32 %v13408_v4, %v936_v48  ;;  %v943_v5 = vshrl.u32 %v13406_v6, %v937_v41 }
 0x17a   :  { %v785_v16 = vsel %vm7101_vm12, 0, %v7100_v1  ;;  %v945_v59 = vshll.u32 %v13406_v6, %v936_v48  ;;  %v946_v3 = vshrl.u32 %v13404_v8, %v937_v41  ;;  %v879_v27 = vadd.s32 536870912, %v878_v7 }
 0x17b   :  { %v786_v11 = vsub.s32 32, %v785_v16  ;;  %v790_v44 = vsub.s32 4294967266, %v785_v16  ;;  %v948_v60 = vshll.u32 %v13404_v8, %v936_v48  ;;  %v787_v9 = vshll.u32 %v8523_v20, %v785_v16 }
 0x17c   :  { %v941_v22 = vor.u32 %v940_v55, %v939_v53  ;;  %v944_v0 = vor.u32 %v943_v5, %v942_v37  ;;  %v949_v50 = vshrl.u32 %v13402_v10, %v937_v41  ;;  %v8579_v45 = vshrl.u32 %v879_v27, 30 }
 0x17d   :  { %v788_v52 = vshrl.u32 %v770_v40, %v786_v11  ;;  %v791_v26 = vadd.s32 127, %v790_v44  ;;  %v947_v34 = vor.u32 %v946_v3, %v945_v59  ;;  %vm404_vm13 = vcmp.lt.s32.totalorder %v8060_v39, 0 }
 0x17e   :  { %vm508_vm14 = vcmp.lt.s32.totalorder %v8063_v42, 0  ;;  %v938_v58 = vshrl.u32 %v13412_v2, %v937_v41  ;;  %v950_v63 = vor.u32 %v949_v50, %v948_v60  ;;  %v951_v1 = vshll.u32 %v13402_v10, %v936_v48 }
 0x17f   :  { %v952_v20 = vshrl.u32 %v13400_v19, %v937_v41  ;;  %v789_v28 = vor.u32 %v788_v52, %v787_v9  ;;  %v792_v53 = vshll.u32 %v791_v26, 23  ;;  %v881_v55 = vshll.u32 %v8579_v45, 30 }
 0x180   :  { %vm954_vm15 = vcmp.lt.s32.totalorder %v8558_v51, 1  ;;  %vm956_vm1 = vcmp.lt.s32.totalorder %v8558_v51, 3  ;;  %vm957_vm2 = vcmp.lt.s32.totalorder %v8558_v51, 4  ;;  %vm955_vm3 = vcmp.lt.s32.totalorder %v8558_v51, 2 }
 0x181   :  { %v953_v40 = vor.u32 %v952_v20, %v951_v1  ;;  %v958_v37 = vsel %vm954_vm15, %v938_v58, %v941_v22  ;;  %v793_v16 = vor.u32 4788187, %v792_v53  ;;  %v8590_v5 = vsub.s32 %v878_v7, %v881_v55 }
 0x182   :  { %v959_v59 = vsel %vm957_vm2, %v947_v34, 2102212464  ;;  %v962_v3 = vsel %vm954_vm15, %v941_v22, %v944_v0  ;;  %v963_v41 = vsel %vm957_vm2, %v950_v63, 920167782  ;;  %v966_v11 = vsel %vm954_vm15, %v944_v0, %v947_v34 }
 0x183   :  { %v960_v48 = vsel %vm956_vm1, %v944_v0, %v959_v59  ;;  %v967_v44 = vsel %vm957_vm2, %v953_v40, 1326507024  ;;  %v796_v27 = vcvt.s32.f32 %v789_v28  ;;  %v884_v60 = vsub.s32 0, %v8590_v5 }
 0x184   :  { %v964_v9 = vsel %vm956_vm1, %v947_v34, %v963_v41  ;;  %v794_v50 = vand.u32 2147483647, %v793_v16  ;;  %v968_v7 = vsel %vm956_vm1, %v950_v63, %v967_v44  ;;  %7637 = vsinq.f32 %v8553_v32 }
 0x185   :  { %v965_v52 = vsel %vm955_vm3, %v962_v3, %v964_v9  ;;  %v8601_v22 = vpop.eup %7635  ;;  %v7103_v0 = vmin.u32 %v884_v60, %v8590_v5  ;;  %v961_v26 = vsel %vm955_vm3, %v958_v37, %v960_v48  ;;  %v969_v58 = vsel %vm955_vm3, %v966_v11, %v968_v7 }
 0x186   :  { %v391_v1 = vadd.s32 3, %v387_v36  ;;  %v8605_v20 = vmul.u32.u64.low %v8560_v62, %v969_v58  ;;  %v8606_v28 = vmul.u32.u64.high %v8560_v62, %v969_v58, %v8605_v20  ;;  %v8618_v32 = vsel %vm404_vm13, %v486_v35, %v8448_v54 }
 0x187   :  { %v8609_v34 = vmul.u32.u64.low %v8560_v62, %v965_v52  ;;  %v8610_v53 = vmul.u32.u64.high %v8560_v62, %v965_v52, %v8609_v34  ;;  %v591_v51 = vsel %vm508_vm14, %v590_v14, %v8472_v18  ;;  %v886_v36 = vclz %v7103_v0 }
 0x188   :  { %v694_v63 = vxor.u32 2147483648, %v8555_v47  ;;  %v797_v55 = vmul.f32 %v796_v27, %v794_v50  ;;  %v281_v40 = vsel %vm196_vm5, %v280_v61, %v8179_v30  ;;  %v592_v37 = vsub.s32 4, %v8381_v15 }
 0x189   :  { %v874_v54 = vadd.s32 %v8529_v43, %v8539_v21  ;;  %v7104_v35 = vadd.s32 4294967294, %v886_v36  ;;  %v977_v16 = vmul.u32 %v8560_v62, %v961_v26  ;;  %v291_v18 = vxor.u32 2147483648, %v8402_v31 }
 0x18a   :  { %vm979_vm4 = vc.u32 %v8606_v28, %v8609_v34  ;;  %v980_v14 = vadd.s32 1, %v8610_v53  ;;  %v392_v59 = vand.u32 3, %v391_v1  ;;  %v13507_v3 = vand.u32 2147483647, %v8063_v42 }
 0x18b   :  { %vm716_vm5 = vcmp.lt.s32.totalorder %v8370_v57, 0  ;;  %vm7105_vm9 = vcmp.lt.s32.totalorder %v7104_v35, 0  ;;  %v283_v43 = vsel %vm8293_vm8, 0, %v281_v40  ;;  %v593_v21 = vsel %vm508_vm14, %v592_v37, %v8381_v15 }
 0x18c   :  { %vm8641_vm7 = vcmp.le.f32.partialorder %v13507_v3, 0.7853982  ;;  %v798_v61 = vxor.u32 2147483648, %v797_v55  ;;  %v889_v48 = vsel %vm7105_vm9, 0, %v7104_v35  ;;  %v981_v41 = vsel %vm979_vm4, %v980_v14, %v8610_v53 }
 0x18d   :  { %v594_v62 = vsel %vm8641_vm7, %v8063_v42, %v591_v51  ;;  %v287_v11 = vadd.s32 3, %v283_v43  ;;  %v890_v44 = vsub.s32 32, %v889_v48  ;;  %v894_v27 = vsub.s32 4294967266, %v889_v48 }
 0x18e   :  { %v982_v60 = vadd.s32 %v981_v41, %v977_v16  ;;  %vm390_vm10 = vweird.f32 %v8053_v33  ;;  %vm286_vm8 = vweird.f32 %v8048_v29  ;;  %v595_v46 = vsel %vm8641_vm7, 0, %v593_v21 }
 0x18f   :  { %v398_v15 = vxor.u32 2147483648, %v8601_v22  ;;  %v288_v9 = vand.u32 3, %v287_v11  ;;  %v294_v50 = vxor.u32 2147483648, %v8395_v17  ;;  %7639 = vcosq.f32 %v594_v62 }
 0x190   :  { %v895_v52 = vadd.s32 127, %v894_v27  ;;  %v983_v7 = vadd.s32 536870912, %v982_v60  ;;  %vm394_vm11 = vcmp.eq.s32.totalorder %v392_v59, 0  ;;  %7641 = vsinq.f32 %v594_v62 }
 0x191   :  { %v892_v0 = vshrl.u32 %v874_v54, %v890_v44  ;;  %vm397_vm6 = vcmp.eq.s32.totalorder %v392_v59, 2  ;;  %vm290_vm12 = vcmp.eq.s32.totalorder %v288_v9, 0  ;;  %v599_v26 = vadd.s32 3, %v595_v46  ;;  %v7638_v58 = vpop.eup %7637 }
 0x192   :  { %vm612_vm14 = vcmp.lt.s32.totalorder %v8198_v49, 0  ;;  %v896_v1 = vshll.u32 %v895_v52, 23  ;;  %v8662_v20 = vshrl.u32 %v983_v7, 30  ;;  %v292_v53 = vsel %vm290_vm12, %v8395_v17, %v291_v18 }
 0x193   :  { %vm293_vm15 = vcmp.eq.s32.totalorder %v288_v9, 2  ;;  %v395_v51 = vxor.u32 2147483648, %v7638_v58  ;;  %v399_v36 = vsel %vm397_vm6, %v398_v15, %v7638_v58  ;;  %vm289_vm1 = vcmp.lt.s32.totalorder %v288_v9, 2 }
 0x194   :  { %v295_v40 = vsel %vm293_vm15, %v294_v50, %v8402_v31  ;;  %v891_v37 = vshll.u32 %v8590_v5, %v889_v48  ;;  %v897_v54 = vor.u32 4788187, %v896_v1  ;;  %v985_v35 = vshll.u32 %v8662_v20, 30 }
 0x195   :  { %v296_v16 = vsel %vm289_vm1, %v292_v53, %v295_v40  ;;  %v799_v14 = vsel %vm716_vm5, %v798_v61, %v797_v55  ;;  %vm393_vm2 = vcmp.lt.s32.totalorder %v392_v59, 2  ;;  %v396_v3 = vsel %vm394_vm11, %v8601_v22, %v395_v51 }
 0x196   :  { %v600_v17 = vand.u32 3, %v599_v26  ;;  %v893_v18 = vor.u32 %v892_v0, %v891_v37  ;;  %v8672_v30 = vsub.s32 %v982_v60, %v985_v35  ;;  %v400_v43 = vsel %vm393_vm2, %v396_v3, %v399_v36 }
 0x197   :  { %v13510_v31 = vand.u32 2147483647, %v8060_v39  ;;  %v401_v21 = vsel %vm390_vm10, nan, %v400_v43  ;;  %v297_v55 = vsel %vm286_vm8, nan, %v296_v16  ;;  %v488_v59 = vsub.s32 4, %v8297_v13 }
 0x198   :  { %v898_v62 = vand.u32 2147483647, %v897_v54  ;;  %v988_v61 = vsub.s32 0, %v8672_v30  ;;  %1166 = vmatprep.mubr.f32.mxu1 %v401_v21  ;;  %v13513_v48 = vand.u32 2147483647, %v8370_v57  ;;  %v800_v41 = vsub.s32 4, %v8511_v38 }
 0x199   :  { %vm8676_vm3 = vcmp.le.f32.partialorder %v13510_v31, 0.7853982  ;;  %1167 = vmatmul.mubr.f32.vlgmr.msra.gmra.mxu1 %v297_v55  ;;  %v489_v29 = vsel %vm404_vm13, %v488_v59, %v8297_v13  ;;  %v900_v11 = vcvt.s32.f32 %v893_v18  ;;  %v695_v13 = vsel %vm612_vm14, %v694_v63, %v8555_v47 }
 0x19a   :  { %v490_v22 = vsel %vm8676_vm3, %v8060_v39, %v8618_v32  ;;  %vm8692_vm4 = vcmp.le.f32.partialorder %v13513_v48, 0.7853982  ;;  %v7107_v44 = vmin.u32 %v988_v61, %v8672_v30  ;;  %v491_v27 = vsel %vm8676_vm3, 0, %v489_v29 }
 0x19b   :  { %7643 = vcosq.f32 %v490_v22  ;;  %v802_v32 = vsel %vm8692_vm4, %v8370_v57, %v799_v14  ;;  %v801_v60 = vsel %vm716_vm5, %v800_v41, %v8511_v38  ;;  %v901_v15 = vmul.f32 %v900_v11, %v898_v62 }
 0x19c   :  { %7645 = vsinq.f32 %v490_v22  ;;  %v7640_v46 = vpop.eup %7639  ;;  %v990_v9 = vclz %v7107_v44  ;;  %v495_v50 = vadd.s32 3, %v491_v27  ;;  %v803_v52 = vsel %vm8692_vm4, 0, %v801_v60 }
 0x19d   :  { %7647 = vcosq.f32 %v802_v32  ;;  %v7642_v7 = vpop.eup %7641  ;;  %vm598_vm13 = vweird.f32 %v8063_v42  ;;  %v606_v0 = vxor.u32 2147483648, %v7640_v46  ;;  %v13516_v26 = vand.u32 2147483647, %v8198_v49 }
 0x19e   :  { %7649 = vsinq.f32 %v802_v32  ;;  %v696_v38 = vsub.s32 4, %v8453_v56  ;;  %v7108_v63 = vadd.s32 4294967294, %v990_v9  ;;  %v603_v58 = vxor.u32 2147483648, %v7642_v7 }
 0x19f   :  { %vm8719_vm7 = vcmp.le.f32.partialorder %v13516_v26, 0.7853982  ;;  %vm605_vm5 = vcmp.eq.s32.totalorder %v600_v17, 2  ;;  %vm601_vm9 = vcmp.lt.s32.totalorder %v600_v17, 2  ;;  %vm602_vm10 = vcmp.eq.s32.totalorder %v600_v17, 0 }
 0x1a0   :  { %v698_v1 = vsel %vm8719_vm7, %v8198_v49, %v695_v13  ;;  %v607_v53 = vsel %vm605_vm5, %v606_v0, %v7642_v7  ;;  %v807_v51 = vadd.s32 3, %v803_v52  ;;  %v902_v36 = vxor.u32 2147483648, %v901_v15 }
 0x1a1   :  { %vm7109_vm8 = vcmp.lt.s32.totalorder %v7108_v63, 0  ;;  %v604_v40 = vsel %vm602_vm10, %v7640_v46, %v603_v58  ;;  %v496_v37 = vand.u32 3, %v495_v50  ;;  %v697_v16 = vsel %vm612_vm14, %v696_v38, %v8453_v56 }
 0x1a2   :  { %v993_v54 = vsel %vm7109_vm8, 0, %v7108_v63  ;;  %v608_v35 = vsel %vm601_vm9, %v604_v40, %v607_v53  ;;  %7651 = vcosq.f32 %v698_v1  ;;  %v978_v14 = vadd.s32 %v8609_v34, %v8606_v28 }
 0x1a3   :  { %v994_v3 = vsub.s32 32, %v993_v54  ;;  %v998_v18 = vsub.s32 4294967266, %v993_v54  ;;  %v609_v17 = vsel %vm598_vm13, nan, %v608_v35  ;;  %vm820_vm11 = vcmp.lt.s32.totalorder %v8373_v12, 0 }
 0x1a4   :  { %1172 = vmatprep.mubr.f32.mxu1 %v609_v17  ;;  %v808_v43 = vand.u32 3, %v807_v51  ;;  %7653 = vsinq.f32 %v698_v1  ;;  %v995_v31 = vshll.u32 %v8672_v30, %v993_v54  ;;  %v699_v56 = vsel %vm8719_vm7, 0, %v697_v16 }
 0x1a5   :  { %v996_v5 = vshrl.u32 %v978_v14, %v994_v3  ;;  %v999_v21 = vadd.s32 127, %v998_v18  ;;  %v903_v28 = vsel %vm820_vm11, %v902_v36, %v901_v15  ;;  %vm494_vm6 = vweird.f32 %v8060_v39 }
 0x1a6   :  { %vm497_vm12 = vcmp.lt.s32.totalorder %v496_v37, 2  ;;  %vm498_vm14 = vcmp.eq.s32.totalorder %v496_v37, 0  ;;  %vm501_vm15 = vcmp.eq.s32.totalorder %v496_v37, 2  ;;  %vm810_vm1 = vcmp.eq.s32.totalorder %v808_v43, 0 }
 0x1a7   :  { %v997_v34 = vor.u32 %v996_v5, %v995_v31  ;;  %v1000_v59 = vshll.u32 %v999_v21, 23  ;;  %v703_v30 = vadd.s32 3, %v699_v56  ;;  %v13519_v32 = vand.u32 2147483647, %v8373_v12 }
 0x1a8   :  { %v7644_v55 = vpop.eup %7643  ;;  %vm813_vm3 = vcmp.eq.s32.totalorder %v808_v43, 2  ;;  %vm806_vm4 = vweird.f32 %v8370_v57  ;;  %vm809_vm13 = vcmp.lt.s32.totalorder %v808_v43, 2  ;;  %v904_v38 = vsub.s32 4, %v8579_v45 }
 0x1a9   :  { %v7646_v42 = vpop.eup %7645  ;;  %v502_v22 = vxor.u32 2147483648, %v7644_v55  ;;  %v1001_v33 = vor.u32 4788187, %v1000_v59  ;;  %vm8743_vm2 = vcmp.le.f32.partialorder %v13519_v32, 0.7853982  ;;  %v1004_v46 = vcvt.s32.f32 %v997_v34 }
 0x1aa   :  { %v7648_v62 = vpop.eup %7647  ;;  %v499_v61 = vxor.u32 2147483648, %v7646_v42  ;;  %v906_v13 = vsel %vm8743_vm2, %v8373_v12, %v903_v28  ;;  %v704_v26 = vand.u32 3, %v703_v30  ;;  %vm924_vm7 = vcmp.lt.s32.totalorder %v8420_v24, 0  ;;  %v8781_v32 = vld [vmem:[%s13380_s4] sm:$0x3] }
 0x1ab   :  { %v7650_v48 = vpop.eup %7649  ;;  %v503_v29 = vsel %vm501_vm15, %v502_v22, %v7646_v42  ;;  %v814_v41 = vxor.u32 2147483648, %v7648_v62  ;;  %v1002_v60 = vand.u32 2147483647, %v1001_v33  ;;  %7655 = vcosq.f32 %v906_v13 }
 0x1ac   :  { %v500_v44 = vsel %vm498_vm14, %v7644_v55, %v499_v61  ;;  %v811_v27 = vxor.u32 2147483648, %v7650_v48  ;;  %7657 = vsinq.f32 %v906_v13  ;;  %v1008_v57 = vsub.s32 4, %v8662_v20 }
 0x1ad   :  { %v504_v15 = vsel %vm497_vm12, %v500_v44, %v503_v29  ;;  %v815_v9 = vsel %vm813_vm3, %v814_v41, %v7650_v48  ;;  %v1005_v7 = vmul.f32 %v1004_v46, %v1002_v60  ;;  %vm709_vm5 = vcmp.eq.s32.totalorder %v704_v26, 2  ;;  %v2053_v46 = vld [vmem:[#allocation4 + $0xf0] sm:$0xff] }
 0x1ae   :  { %v505_v50 = vsel %vm494_vm6, nan, %v504_v15  ;;  %v812_v52 = vsel %vm810_vm1, %v7648_v62, %v811_v27  ;;  %v13522_v51 = vand.u32 2147483647, %v8420_v24  ;;  %v905_v35 = vsel %vm820_vm11, %v904_v38, %v8579_v45  ;;  %v2048_v38 = vld [vmem:[#allocation4 + $0xc8] sm:$0xff] }
 0x1af   :  { %1173 = vmatmul.mubr.f32.gmra.mxu1 %v505_v50  ;;  %v816_v0 = vsel %vm809_vm13, %v812_v52, %v815_v9  ;;  %v7652_v63 = vpop.eup %7651  ;;  %v1006_v58 = vxor.u32 2147483648, %v1005_v7  ;;  %vm706_vm10 = vcmp.eq.s32.totalorder %v704_v26, 0  ;;  %vm705_vm8 = vcmp.lt.s32.totalorder %v704_v26, 2  ;;  %v2052_v9 = vld [vmem:[#allocation4 + $0xe8] sm:$0xff]  ;;  %v2051_v52 = vld [vmem:[#allocation4 + $0xe0] sm:$0xff] }
 0x1b0   :  { %v817_v47 = vsel %vm806_vm4, nan, %v816_v0  ;;  %v710_v39 = vxor.u32 2147483648, %v7652_v63  ;;  %vm8760_vm9 = vcmp.le.f32.partialorder %v13522_v51, 0.7853982  ;;  %v1009_v14 = vsel %vm924_vm7, %v1008_v57, %v8662_v20  ;;  %v2049_v0 = vld [vmem:[#allocation4 + $0xd0] sm:$0xff] }
 0x1b1   :  { %1178 = vmatprep.mubr.f32.mxu1 %v817_v47  ;;  %v7654_v1 = vpop.eup %7653  ;;  %v1007_v53 = vsel %vm924_vm7, %v1006_v58, %v1005_v7  ;;  %vm702_vm6 = vweird.f32 %v8198_v49  ;;  %v907_v18 = vsel %vm8743_vm2, 0, %v905_v35  ;;  %v1011_v43 = vsel %vm8760_vm9, 0, %v1009_v14  ;;  %v2050_v7 = vld [vmem:[#allocation4 + $0xd8] sm:$0xff]  ;;  %v2047_v58 = vld [vmem:[#allocation4 + $0xc0] sm:$0xff] }
 0x1b2   :  { %v707_v40 = vxor.u32 2147483648, %v7654_v1  ;;  %v711_v37 = vsel %vm709_vm5, %v710_v39, %v7654_v1  ;;  %v1010_v54 = vsel %vm8760_vm9, %v8420_v24, %v1007_v53  ;;  %v911_v31 = vadd.s32 3, %v907_v18  ;;  %v2046_v39 = vld [vmem:[#allocation4 + $0xb8] sm:$0xff]  ;;  %v2045_v1 = vld [vmem:[#allocation4 + $0xb0] sm:$0xff]  ;;  %v2043_v18 = vld [vmem:[#allocation4 + $0xa0] sm:$0xff] }
 0x1b3   :  { %7659 = vcosq.f32 %v1010_v54  ;;  %v1015_v5 = vadd.s32 3, %v1011_v43  ;;  %vm1014_vm3 = vweird.f32 %v8420_v24  ;;  %vm910_vm4 = vweird.f32 %v8373_v12  ;;  %v2054_v12 = vld [vmem:[#allocation4 + $0xf8] sm:$0xff] }
 0x1b4   :  { %v708_v16 = vsel %vm706_vm10, %v7652_v63, %v707_v40  ;;  %7661 = vsinq.f32 %v1010_v54  ;;  %v912_v56 = vand.u32 3, %v911_v31  ;;  %v8785_v11 = vrot.slane %v8781_v32, %v8034_v23  ;;  %2099 = vmatprep.subr.mxu0 %v2054_v12  ;;  %v2044_v54 = vld [vmem:[#allocation4 + $0xa8] sm:$0xff] }
 0x1b5   :  { %v712_v3 = vsel %vm705_vm8, %v708_v16, %v711_v37  ;;  %v1016_v20 = vand.u32 3, %v1015_v5  ;;  %2100 = vmatpush1.msra.mxu0 %v2053_v46  ;;  %v2042_v5 = vld [vmem:[#allocation4 + $0x98] sm:$0xff] }
 0x1b6   :  { %v713_v17 = vsel %vm702_vm6, nan, %v712_v3  ;;  %vm914_vm11 = vcmp.eq.s32.totalorder %v912_v56, 0  ;;  %vm917_vm12 = vcmp.eq.s32.totalorder %v912_v56, 2  ;;  %vm913_vm1 = vcmp.lt.s32.totalorder %v912_v56, 2  ;;  %2101 = vmatprep.subr.mxu0 %v2052_v9  ;;  %v2036_v9 = vld [vmem:[#allocation4 + $0x68] sm:$0xff] }
 0x1b7   :  { %1179 = vmatmul.mubr.f32.gmra.mxu1 %v713_v17  ;;  %vm1021_vm14 = vcmp.eq.s32.totalorder %v1016_v20, 2  ;;  %vm1018_vm15 = vcmp.eq.s32.totalorder %v1016_v20, 0  ;;  %vm1017_vm2 = vcmp.lt.s32.totalorder %v1016_v20, 2  ;;  %2102 = vmatpush1.msra.mxu0 %v2051_v52 }
 0x1b8   :  { %v7656_v45 = vpop.eup %7655  ;;  %2103 = vmatprep.subr.mxu0 %v2050_v7 }
 0x1b9   :  { %v7658_v21 = vpop.eup %7657  ;;  %v918_v28 = vxor.u32 2147483648, %v7656_v45  ;;  %2104 = vmatpush1.msra.mxu0 %v2049_v0 }
 0x1ba   :  { %v915_v55 = vxor.u32 2147483648, %v7658_v21  ;;  %2105 = vmatprep.subr.mxu0 %v2048_v38 }
 0x1bb   :  { %v919_v22 = vsel %vm917_vm12, %v918_v28, %v7658_v21  ;;  %2106 = vmatpush1.msra.mxu0 %v2047_v58  ;;  %v2041_v28 = vld [vmem:[#allocation4 + $0x90] sm:$0xff] }
 0x1bc   :  { %v916_v59 = vsel %vm914_vm11, %v7656_v45, %v915_v55  ;;  %2107 = vmatprep.subr.mxu0 %v2046_v39 }
 0x1bd   :  { %v920_v48 = vsel %vm913_vm1, %v916_v59, %v919_v22  ;;  %2108 = vmatpush1.msra.mxu0 %v2045_v1  ;;  %v2032_v1 = vld [vmem:[#allocation4 + $0x48] sm:$0xff] }
 0x1be   :  { %v921_v41 = vsel %vm910_vm4, nan, %v920_v48  ;;  %2109 = vmatprep.subr.mxu0 %v2044_v54 }
 0x1bf   :  { %2110 = vmatpush1.msra.mxu0 %v2043_v18  ;;  %v2029_v18 = vld [vmem:[#allocation4 + $0x30] sm:$0xff] }
 0x1c0   :  { %v7660_v42 = vpop.eup %7659  ;;  %2111 = vmatprep.subr.mxu0 %v2042_v5  ;;  %v2027_v5 = vld [vmem:[#allocation4 + $0x20] sm:$0xff] }
 0x1c1   :  { %v7662_v49 = vpop.eup %7661  ;;  %v1022_v34 = vxor.u32 2147483648, %v7660_v42  ;;  %2112 = vmatpush1.msra.mxu0 %v2041_v28 }
 0x1c2   :  { %v1019_v62 = vxor.u32 2147483648, %v7662_v49 }
 0x1c3   :  { %v1023_v61 = vsel %vm1021_vm14, %v1022_v34, %v7662_v49  ;;  %v2040_v34 = vld [vmem:[#allocation4 + $0x88] sm:$0xff] }
 0x1c4   :  { %v1020_v30 = vsel %vm1018_vm15, %v7660_v42, %v1019_v62  ;;  %2113 = vmatprep.subr.mxu0 %v2040_v34 }
 0x1c5   :  { %v1024_v33 = vsel %vm1017_vm2, %v1020_v30, %v1023_v61  ;;  %v2039_v61 = vld [vmem:[#allocation4 + $0x80] sm:$0xff] }
 0x1c6   :  { %v1025_v29 = vsel %vm1014_vm3, nan, %v1024_v33  ;;  %2114 = vmatpush1.msra.mxu0 %v2039_v61  ;;  %v2038_v33 = vld [vmem:[#allocation4 + $0x78] sm:$0xff] }
 0x1c7   :  { %1184 = vmatprep.mubr.f32.mxu1 %v1025_v29  ;;  %2115 = vmatprep.subr.mxu0 %v2038_v33 }
 0x1c8   :  { %1185 = vmatmul.mubr.f32.gmra.mxu1 %v921_v41 }
 0x259   :  { %v1168_v44 = vpop.f32.mrf.mxu1 }
 0x25a   :  { %v8788_v27 = vadd.f32 %v1168_v44, %v8785_v11 }
 0x25b   :  { %v8800_v37 = vpop.f32.mrf.mxu1 }
 0x25c   :  { %v1194_v24 = vand.u32 2139095040, %v8788_v27  ;;  %v13399_v15 = vand.u32 2147483647, %v8788_v27 }
 0x25e   :  { %v1195_v13 = vshrl.u32 %v1194_v24, 23  ;;  %v1198_v26 = vand.u32 8388607, %v13399_v15  ;;  %v2037_v24 = vld [vmem:[#allocation4 + $0x70] sm:$0xff] }
 0x25f   :  { %2116 = vmatpush1.msra.mxu0 %v2037_v24 }
 0x260   :  { %v7110_v60 = vadd.s32 4294967169, %v1195_v13  ;;  %v1199_v53 = vor.u32 8388608, %v1198_v26  ;;  %2117 = vmatprep.subr.mxu0 %v2036_v9  ;;  %v2035_v26 = vld [vmem:[#allocation4 + $0x60] sm:$0xff] }
 0x261   :  { %2118 = vmatpush1.msra.mxu0 %v2035_v26 }
 0x262   :  { %v1201_v50 = vadd.s32 1, %v7110_v60  ;;  %v8821_v62 = vshll.u32 %v1199_v53, 8  ;;  %v8842_v60 = vrot.slane %v8781_v32, %v8039_v25 }
 0x264   :  { %vm1202_vm13 = vcmp.gt.s32.totalorder %v1201_v50, 0 }
 0x265   :  { %v1203_v47 = vsel %vm1202_vm13, %v1201_v50, 0 }
 0x266   :  { %v1205_v63 = vand.u32 31, %v1203_v47  ;;  %v8796_v51 = vshrl.u32 %v1203_v47, 5  ;;  %v2034_v47 = vld [vmem:[#allocation4 + $0x58] sm:$0xff] }
 0x267   :  { %2119 = vmatprep.subr.mxu0 %v2034_v47 }
 0x268   :  { %v8794_v57 = vsub.s32 32, %v1205_v63  ;;  %v1208_v36 = vshll.u32 %v13412_v2, %v1205_v63  ;;  %v1211_v40 = vshll.u32 %v13408_v4, %v1205_v63  ;;  %v1214_v14 = vshll.u32 %v13406_v6, %v1205_v63 }
 0x269   :  { %v1217_v17 = vshll.u32 %v13404_v8, %v1205_v63  ;;  %v1220_v31 = vshll.u32 %v13402_v10, %v1205_v63  ;;  %vm1223_vm7 = vcmp.lt.s32.totalorder %v8796_v51, 1  ;;  %vm1226_vm5 = vcmp.lt.s32.totalorder %v8796_v51, 4  ;;  %v2033_v63 = vld [vmem:[#allocation4 + $0x50] sm:$0xff] }
 0x26a   :  { %v1209_v35 = vshrl.u32 %v13408_v4, %v8794_v57  ;;  %v1212_v16 = vshrl.u32 %v13406_v6, %v8794_v57  ;;  %v1215_v3 = vshrl.u32 %v13404_v8, %v8794_v57  ;;  %v1218_v43 = vshrl.u32 %v13402_v10, %v8794_v57  ;;  %2120 = vmatpush1.msra.mxu0 %v2033_v63  ;;  %v2083_v63 = vld [vmem:[#allocation4 + $0x1e0] sm:$0xff] }
 0x26b   :  { %v1221_v45 = vshrl.u32 %v13400_v19, %v8794_v57  ;;  %vm1225_vm9 = vcmp.lt.s32.totalorder %v8796_v51, 3  ;;  %vm1224_vm10 = vcmp.lt.s32.totalorder %v8796_v51, 2  ;;  %v1207_v53 = vshrl.u32 %v13412_v2, %v8794_v57  ;;  %2121 = vmatprep.subr.mxu0 %v2032_v1  ;;  %v2024_v51 = vld [vmem:[#allocation4 + $0x8] sm:$0xff] }
 0x26c   :  { %v1210_v21 = vor.u32 %v1209_v35, %v1208_v36  ;;  %v1213_v56 = vor.u32 %v1212_v16, %v1211_v40  ;;  %v1216_v55 = vor.u32 %v1215_v3, %v1214_v14  ;;  %v1219_v20 = vor.u32 %v1218_v43, %v1217_v17  ;;  %v2031_v40 = vld [vmem:[#allocation4 + $0x40] sm:$0xff]  ;;  %v2030_v3 = vld [vmem:[#allocation4 + $0x38] sm:$0xff] }
 0x26d   :  { %v1222_v42 = vor.u32 %v1221_v45, %v1220_v31  ;;  %2122 = vmatpush1.msra.mxu0 %v2031_v40  ;;  %v2028_v31 = vld [vmem:[#allocation4 + $0x28] sm:$0xff]  ;;  %v2082_v40 = vld [vmem:[#allocation4 + $0x1d8] sm:$0xff] }
 0x26e   :  { %v1231_v59 = vsel %vm1223_vm7, %v1210_v21, %v1213_v56  ;;  %v1235_v22 = vsel %vm1223_vm7, %v1213_v56, %v1216_v55  ;;  %v1232_v30 = vsel %vm1226_vm5, %v1219_v20, 920167782  ;;  %v1228_v58 = vsel %vm1226_vm5, %v1216_v55, 2102212464  ;;  %2123 = vmatprep.subr.mxu0 %v2030_v3  ;;  %v2081_v3 = vld [vmem:[#allocation4 + $0x1d0] sm:$0xff] }
 0x26f   :  { %v1174_v49 = vpop.f32.mrf.mxu1  ;;  %v1236_v48 = vsel %vm1226_vm5, %v1222_v42, 1326507024  ;;  %v1233_v29 = vsel %vm1225_vm9, %v1216_v55, %v1232_v30  ;;  %v1227_v54 = vsel %vm1223_vm7, %v1207_v53, %v1210_v21  ;;  %v1229_v35 = vsel %vm1225_vm9, %v1213_v56, %v1228_v58  ;;  %2124 = vmatpush1.msra.mxu0 %v2029_v18  ;;  %v2026_v55 = vld [vmem:[#allocation4 + $0x18] sm:$0xff]  ;;  %v2025_v42 = vld [vmem:[#allocation4 + $0x10] sm:$0xff] }
 0x270   :  { %v1237_v41 = vsel %vm1225_vm9, %v1219_v20, %v1236_v48  ;;  %v8834_v44 = vadd.f32 %v1174_v49, %v8785_v11  ;;  %v1234_v13 = vsel %vm1224_vm10, %v1231_v59, %v1233_v29  ;;  %v1230_v21 = vsel %vm1224_vm10, %v1227_v54, %v1229_v35  ;;  %2125 = vmatprep.subr.mxu0 %v2028_v31  ;;  %v2086_v48 = vld [vmem:[#allocation4 + $0x1f8] sm:$0xff] }
 0x271   :  { %v1238_v12 = vsel %vm1224_vm10, %v1235_v22, %v1237_v41  ;;  %v1176_v46 = vpop.f32.mrf.mxu1  ;;  %v8849_v7 = vmul.u32.u64.low %v8821_v62, %v1234_v13  ;;  %v8850_v0 = vmul.u32.u64.high %v8821_v62, %v1234_v13, %v8849_v7  ;;  %v8876_v56 = vadd.f32 %v8800_v37, %v8842_v60  ;;  %2126 = vmatpush1.msra.mxu0 %v2027_v5  ;;  %v2023_v37 = vld [vmem:[#allocation4] sm:$0xff]  ;;  %v2085_v13 = vld [vmem:[#allocation4 + $0x1f0] sm:$0xff] }
 0x272   :  { %v8845_v50 = vmul.u32.u64.low %v8821_v62, %v1238_v12  ;;  %v8846_v52 = vmul.u32.u64.high %v8821_v62, %v1238_v12, %v8845_v50  ;;  %v1402_v38 = vand.u32 2139095040, %v8834_v44  ;;  %v8855_v32 = vadd.f32 %v1176_v46, %v8842_v60  ;;  %2127 = vmatprep.subr.mxu0 %v2026_v55 }
 0x273   :  { %v13397_v39 = vand.u32 2147483647, %v8834_v44  ;;  %v1249_v17 = vadd.s32 1, %v8850_v0  ;;  %13525 = vst [vmem:[#allocation10_spill] sm:$0xff] %v8876_v56  ;;  %v1246_v22 = vmul.u32 %v8821_v62, %v1230_v21  ;;  %2128 = vmatpush1.msra.mxu0 %v2025_v42  ;;  %v1298_v30 = vand.u32 2139095040, %v8876_v56  ;;  %v2084_v50 = vld [vmem:[#allocation4 + $0x1e8] sm:$0xff] }
 0x274   :  { %v1403_v36 = vshrl.u32 %v1402_v38, 23  ;;  %v1506_v14 = vand.u32 2139095040, %v8855_v32  ;;  %vm1248_vm8 = vc.u32 %v8846_v52, %v8849_v7  ;;  %2129 = vmatprep.subr.mxu0 %v2024_v51  ;;  %v2079_v21 = vld [vmem:[#allocation4 + $0x1c0] sm:$0xff]  ;;  %v2077_v51 = vld [vmem:[#allocation4 + $0x1b0] sm:$0xff] }
 0x275   :  { %v1406_v57 = vand.u32 8388607, %v13397_v39  ;;  %v1250_v49 = vsel %vm1248_vm8, %v1249_v17, %v8850_v0  ;;  %2130 = vmatpush1.msra.mxu0 %v2023_v37 }
 0x276   :  { %v7118_v16 = vadd.s32 4294967169, %v1403_v36  ;;  %v1507_v28 = vshrl.u32 %v1506_v14, 23  ;;  %v8884_v33 = vadd.s32 %v1250_v49, %v1246_v22  ;;  %2131 = vmatprep.subr.mxu0 %v2086_v48  ;;  %v2078_v49 = vld [vmem:[#allocation4 + $0x1b8] sm:$0xff] }
 0x277   :  { %v1180_v43 = vpop.f32.mrf.mxu1  ;;  %v1407_v34 = vor.u32 8388608, %v1406_v57  ;;  %2132 = vmatpush2.msra.mxu0 %v2085_v13  ;;  %v2080_v57 = vld [vmem:[#allocation4 + $0x1c8] sm:$0xff] }
 0x278   :  { %v1409_v45 = vadd.s32 1, %v7118_v16  ;;  %v8879_v20 = vadd.f32 %v1180_v43, %v8785_v11  ;;  %v7122_v41 = vadd.s32 4294967169, %v1507_v28  ;;  %2133 = vmatprep.subr.mxu0 %v2084_v50  ;;  %v1299_v50 = vshrl.u32 %v1298_v30, 23 }
 0x279   :  { %v8891_v9 = vshll.u32 %v1407_v34, 8  ;;  %2134 = vmatpush2.msra.mxu0 %v2083_v63 }
 0x27a   :  { %vm1410_vm6 = vcmp.gt.s32.totalorder %v1409_v45, 0  ;;  %13526 = vst [vmem:[#allocation11_spill] sm:$0xff] %v8879_v20  ;;  %v1610_v24 = vand.u32 2139095040, %v8879_v20  ;;  %v1513_v14 = vadd.s32 1, %v7122_v41  ;;  %2135 = vmatprep.subr.mxu0 %v2082_v40 }
 0x27b   :  { %v1411_v59 = vsel %vm1410_vm6, %v1409_v45, 0  ;;  %2136 = vmatpush2.msra.mxu0 %v2081_v3  ;;  %v2070_v3 = vld [vmem:[#allocation4 + $0x178] sm:$0xff] }
 0x27c   :  { %v1413_v61 = vand.u32 31, %v1411_v59  ;;  %v8887_v12 = vshrl.u32 %v1411_v59, 5  ;;  %v1611_v5 = vshrl.u32 %v1610_v24, 23  ;;  %2137 = vmatprep.subr.mxu0 %v2080_v57  ;;  %vm1514_vm1 = vcmp.gt.s32.totalorder %v1513_v14, 0 }
 0x27d   :  { %2138 = vmatpush2.msra.mxu0 %v2079_v21 }
 0x27e   :  { %v1414_v29 = vsub.s32 32, %v1413_v61  ;;  %v1416_v46 = vshll.u32 %v13412_v2, %v1413_v61  ;;  %v1419_v62 = vshll.u32 %v13408_v4, %v1413_v61  ;;  %v1422_v47 = vshll.u32 %v13406_v6, %v1413_v61  ;;  %2139 = vmatprep.subr.mxu0 %v2078_v49 }
 0x27f   :  { %v1425_v58 = vshll.u32 %v13404_v8, %v1413_v61  ;;  %v1428_v53 = vshll.u32 %v13402_v10, %v1413_v61  ;;  %vm1431_vm11 = vcmp.lt.s32.totalorder %v8887_v12, 1  ;;  %vm1434_vm12 = vcmp.lt.s32.totalorder %v8887_v12, 4  ;;  %2140 = vmatpush2.msra.mxu0 %v2077_v51  ;;  %v2066_v51 = vld [vmem:[#allocation4 + $0x158] sm:$0xff] }
 0x280   :  { %v1417_v0 = vshrl.u32 %v13408_v4, %v1414_v29  ;;  %v1420_v26 = vshrl.u32 %v13406_v6, %v1414_v29  ;;  %v1423_v38 = vshrl.u32 %v13404_v8, %v1414_v29  ;;  %v1426_v1 = vshrl.u32 %v13402_v10, %v1414_v29 }
 0x281   :  { %v1429_v36 = vshrl.u32 %v13400_v19, %v1414_v29  ;;  %v1415_v55 = vshrl.u32 %v13412_v2, %v1414_v29  ;;  %vm1433_vm14 = vcmp.lt.s32.totalorder %v8887_v12, 3  ;;  %vm1432_vm15 = vcmp.lt.s32.totalorder %v8887_v12, 2  ;;  %v2076_v29 = vld [vmem:[#allocation4 + $0x1a8] sm:$0xff] }
 0x282   :  { %v1418_v54 = vor.u32 %v1417_v0, %v1416_v46  ;;  %v1421_v35 = vor.u32 %v1420_v26, %v1419_v62  ;;  %v1424_v16 = vor.u32 %v1423_v38, %v1422_v47  ;;  %v1427_v18 = vor.u32 %v1426_v1, %v1425_v58  ;;  %v2075_v62 = vld [vmem:[#allocation4 + $0x1a0] sm:$0xff]  ;;  %2141 = vmatprep.subr.mxu0 %v2076_v29  ;;  %v2074_v47 = vld [vmem:[#allocation4 + $0x198] sm:$0xff]  ;;  %v2073_v58 = vld [vmem:[#allocation4 + $0x190] sm:$0xff] }
 0x283   :  { %v1430_v17 = vor.u32 %v1429_v36, %v1428_v53  ;;  %v13398_v0 = vand.u32 2147483647, %v8855_v32  ;;  %v1515_v26 = vsel %vm1514_vm1, %v1513_v14, 0  ;;  %2142 = vmatpush2.msra.mxu0 %v2075_v62  ;;  %v1252_v1 = vadd.s32 536870912, %v8884_v33  ;;  %v2072_v36 = vld [vmem:[#allocation4 + $0x188] sm:$0xff]  ;;  %v2065_v29 = vld [vmem:[#allocation4 + $0x150] sm:$0xff] }
 0x284   :  { %v1436_v43 = vsel %vm1434_vm12, %v1424_v16, 2102212464  ;;  %v1439_v31 = vsel %vm1431_vm11, %v1418_v54, %v1421_v35  ;;  %v1443_v45 = vsel %vm1431_vm11, %v1421_v35, %v1424_v16  ;;  %v1440_v28 = vsel %vm1434_vm12, %v1427_v18, 920167782  ;;  %2143 = vmatprep.subr.mxu0 %v2074_v47 }
 0x285   :  { %v1444_v42 = vsel %vm1434_vm12, %v1430_v17, 1326507024  ;;  %v1441_v34 = vsel %vm1433_vm14, %v1424_v16, %v1440_v28  ;;  %v1435_v22 = vsel %vm1431_vm11, %v1415_v55, %v1418_v54  ;;  %v1437_v61 = vsel %vm1433_vm14, %v1421_v35, %v1436_v43  ;;  %2144 = vmatpush2.msra.mxu0 %v2073_v58  ;;  %v2071_v54 = vld [vmem:[#allocation4 + $0x180] sm:$0xff]  ;;  %v2068_v55 = vld [vmem:[#allocation4 + $0x168] sm:$0xff] }
 0x286   :  { %v1445_v59 = vsel %vm1433_vm14, %v1427_v18, %v1444_v42  ;;  %v1442_v37 = vsel %vm1432_vm15, %v1439_v31, %v1441_v34  ;;  %v1438_v38 = vsel %vm1432_vm15, %v1435_v22, %v1437_v61  ;;  %v1517_v63 = vand.u32 31, %v1515_v26  ;;  %2145 = vmatprep.subr.mxu0 %v2072_v36  ;;  %v2069_v31 = vld [vmem:[#allocation4 + $0x170] sm:$0xff]  ;;  %v2063_v58 = vld [vmem:[#allocation4 + $0x140] sm:$0xff] }
 0x287   :  { %v1446_v48 = vsel %vm1432_vm15, %v1443_v45, %v1445_v59  ;;  %v8921_v13 = vmul.u32.u64.low %v8891_v9, %v1442_v37  ;;  %v8922_v46 = vmul.u32.u64.high %v8891_v9, %v1442_v37, %v8921_v13  ;;  %v7126_v53 = vadd.s32 4294967169, %v1611_v5  ;;  %2146 = vmatpush2.msra.mxu0 %v2071_v54  ;;  %v2067_v59 = vld [vmem:[#allocation4 + $0x160] sm:$0xff] }
 0x288   :  { %v8917_v41 = vmul.u32.u64.low %v8891_v9, %v1446_v48  ;;  %v8918_v24 = vmul.u32.u64.high %v8891_v9, %v1446_v48, %v8917_v41  ;;  %v8934_v40 = vsub.s32 32, %v1517_v63  ;;  %v7114_v35 = vadd.s32 4294967169, %v1299_v50  ;;  %2147 = vmatprep.subr.mxu0 %v2070_v3  ;;  %v2064_v50 = vld [vmem:[#allocation4 + $0x148] sm:$0xff] }
 0x289   :  { %v1457_v30 = vadd.s32 1, %v8922_v46  ;;  %v1454_v12 = vmul.u32 %v8891_v9, %v1438_v38  ;;  %v1510_v16 = vand.u32 8388607, %v13398_v0  ;;  %v13395_v14 = vand.u32 2147483647, %v8879_v20  ;;  %2148 = vmatpush2.msra.mxu0 %v2069_v31 }
 0x28a   :  { %vm1456_vm2 = vc.u32 %v8918_v24, %v8921_v13  ;;  %v1520_v17 = vshll.u32 %v13412_v2, %v1517_v63  ;;  %v1521_v57 = vshrl.u32 %v13408_v4, %v8934_v40  ;;  %v1524_v43 = vshrl.u32 %v13406_v6, %v8934_v40  ;;  %2149 = vmatprep.subr.mxu0 %v2068_v55 }
 0x28b   :  { %v1458_v18 = vsel %vm1456_vm2, %v1457_v30, %v8922_v46  ;;  %v8946_v9 = vshrl.u32 %v1252_v1, 30  ;;  %v1523_v5 = vshll.u32 %v13408_v4, %v1517_v63  ;;  %v1617_v21 = vadd.s32 1, %v7126_v53  ;;  %2150 = vmatpush2.msra.mxu0 %v2067_v59  ;;  %v2062_v30 = vld [vmem:[#allocation4 + $0x138] sm:$0xff] }
 0x28c   :  { %v8948_v45 = vadd.s32 %v1458_v18, %v1454_v12  ;;  %v8951_v28 = vshrl.u32 %v1515_v26, 5  ;;  %v8953_v42 = vor.u32 %v1521_v57, %v1520_v17  ;;  %v1526_v49 = vshll.u32 %v13406_v6, %v1517_v63  ;;  %2151 = vmatprep.subr.mxu0 %v2066_v51  ;;  %v2061_v12 = vld [vmem:[#allocation4 + $0x130] sm:$0xff]  ;;  %v2060_v17 = vld [vmem:[#allocation4 + $0x128] sm:$0xff]  ;;  %v2058_v51 = vld [vmem:[#allocation4 + $0x118] sm:$0xff] }
 0x28d   :  { %13527 = vst [vmem:[#allocation12_spill] sm:$0xff] %v8946_v9  ;;  %v1527_v34 = vshrl.u32 %v13404_v8, %v8934_v40  ;;  %v1525_v61 = vor.u32 %v1524_v43, %v1523_v5  ;;  %v1529_v37 = vshll.u32 %v13404_v8, %v1517_v63  ;;  %v1530_v48 = vshrl.u32 %v13402_v10, %v8934_v40  ;;  %v2059_v5 = vld [vmem:[#allocation4 + $0x120] sm:$0xff] }
 0x28e   :  { %v1460_v22 = vadd.s32 536870912, %v8948_v45  ;;  %v1532_v46 = vshll.u32 %v13402_v10, %v1517_v63  ;;  %v1533_v62 = vshrl.u32 %v13400_v19, %v8934_v40  ;;  %v8965_v26 = vadd.s32 1, %v7114_v35  ;;  %v1182_v63 = vpop.f32.mrf.mxu1  ;;  %2152 = vmatpush2.msra.mxu0 %v2065_v29 }
 0x28f   :  { %v1528_v41 = vor.u32 %v1527_v34, %v1526_v49  ;;  %v1511_v47 = vor.u32 8388608, %v1510_v16  ;;  %v1531_v38 = vor.u32 %v1530_v48, %v1529_v37  ;;  %v1254_v1 = vshll.u32 %v8946_v9, 30  ;;  %2153 = vmatprep.subr.mxu0 %v2064_v50 }
 0x290   :  { %v1534_v53 = vor.u32 %v1533_v62, %v1532_v46  ;;  %vm1535_vm3 = vcmp.lt.s32.totalorder %v8951_v28, 1  ;;  %v8971_v36 = vand.u32 8388607, %v13395_v14  ;;  %v8973_v54 = vshrl.u32 %v1460_v22, 30  ;;  %2154 = vmatpush2.msra.mxu0 %v2063_v58  ;;  %v2055_v58 = vld [vmem:[#allocation4 + $0x100] sm:$0xff] }
 0x291   :  { %vm1538_vm4 = vcmp.lt.s32.totalorder %v8951_v28, 4  ;;  %v1543_v35 = vsel %vm1535_vm3, %v8953_v42, %v1525_v61  ;;  %vm1618_vm13 = vcmp.gt.s32.totalorder %v1617_v21, 0  ;;  %vm1537_vm7 = vcmp.lt.s32.totalorder %v8951_v28, 3  ;;  %2155 = vmatprep.subr.mxu0 %v2062_v30 }
 0x292   :  { %13528 = vst [vmem:[#allocation13_spill] sm:$0xff] %v8973_v54  ;;  %v1544_v16 = vsel %vm1538_vm4, %v1531_v38, 920167782  ;;  %v1547_v3 = vsel %vm1535_vm3, %v1525_v61, %v1528_v41  ;;  %v1548_v18 = vsel %vm1538_vm4, %v1534_v53, 1326507024  ;;  %vm1536_vm5 = vcmp.lt.s32.totalorder %v8951_v28, 2  ;;  %2156 = vmatpush2.msra.mxu0 %v2061_v12 }
 0x293   :  { %v1545_v57 = vsel %vm1537_vm7, %v1528_v41, %v1544_v16  ;;  %v8989_v43 = vshll.u32 %v1511_v47, 8  ;;  %v8992_v31 = vadd.f32 %v1182_v63, %v8842_v60  ;;  %v1540_v55 = vsel %vm1538_vm4, %v1528_v41, 2102212464  ;;  %2157 = vmatprep.subr.mxu0 %v2060_v17  ;;  %v2057_v41 = vld [vmem:[#allocation4 + $0x110] sm:$0xff] }
 0x294   :  { %v1546_v49 = vsel %vm1536_vm5, %v1543_v35, %v1545_v57  ;;  %v1549_v34 = vsel %vm1537_vm7, %v1531_v38, %v1548_v18  ;;  %v1619_v59 = vsel %vm1618_vm13, %v1617_v21, 0  ;;  %v9002_v22 = vsub.s32 %v8884_v33, %v1254_v1  ;;  %2158 = vmatpush2.msra.mxu0 %v2059_v5  ;;  %v2056_v33 = vld [vmem:[#allocation4 + $0x108] sm:$0xff] }
 0x295   :  { %13529 = vst [vmem:[#allocation14_spill] sm:$0xff] %v8992_v31  ;;  %v1462_v37 = vshll.u32 %v8973_v54, 30  ;;  %v1519_v48 = vshrl.u32 %v13412_v2, %v8934_v40  ;;  %v1550_v29 = vsel %vm1536_vm5, %v1547_v3, %v1549_v34  ;;  %v1541_v47 = vsel %vm1537_vm7, %v1525_v61, %v1540_v55  ;;  %2159 = vmatprep.subr.mxu0 %v2058_v51 }
 0x296   :  { %v9010_v46 = vmul.u32.u64.low %v8989_v43, %v1550_v29  ;;  %v9011_v62 = vmul.u32.u64.high %v8989_v43, %v1550_v29, %v9010_v46  ;;  %v9014_v21 = vmul.u32.u64.low %v8989_v43, %v1546_v49  ;;  %v9015_v50 = vmul.u32.u64.high %v8989_v43, %v1546_v49, %v9014_v21  ;;  %2160 = vmatpush2.msra.mxu0 %v2057_v41 }
 0x297   :  { %v1539_v40 = vsel %vm1535_vm3, %v1519_v48, %v8953_v42  ;;  %v1621_v38 = vand.u32 31, %v1619_v59  ;;  %vm1306_vm9 = vcmp.gt.s32.totalorder %v8965_v26, 0  ;;  %v1615_v1 = vor.u32 8388608, %v8971_v36  ;;  %2161 = vmatprep.subr.mxu0 %v2056_v33 }
 0x298   :  { %v1257_v53 = vsub.s32 0, %v9002_v22  ;;  %v9027_v63 = vsub.s32 %v8948_v45, %v1462_v37  ;;  %v1714_v35 = vand.u32 2139095040, %v8992_v31  ;;  %v1542_v42 = vsel %vm1536_vm5, %v1539_v40, %v1541_v47  ;;  %2162 = vmatpush2.msra.mxu0 %v2055_v58 }
 0x299   :  { %v1622_v30 = vsub.s32 32, %v1621_v38  ;;  %v1561_v61 = vadd.s32 1, %v9015_v50  ;;  %v1620_v12 = vshrl.u32 %v1619_v59, 5  ;;  %v1624_v16 = vshll.u32 %v13412_v2, %v1621_v38 }
 0x29a   :  { %vm1560_vm10 = vc.u32 %v9011_v62, %v9014_v21  ;;  %v1627_v45 = vshll.u32 %v13408_v4, %v1621_v38  ;;  %v1630_v18 = vshll.u32 %v13406_v6, %v1621_v38  ;;  %v1633_v17 = vshll.u32 %v13404_v8, %v1621_v38 }
 0x29b   :  { %v1625_v36 = vshrl.u32 %v13408_v4, %v1622_v30  ;;  %v1628_v3 = vshrl.u32 %v13406_v6, %v1622_v30  ;;  %v1631_v28 = vshrl.u32 %v13404_v8, %v1622_v30  ;;  %v1634_v57 = vshrl.u32 %v13402_v10, %v1622_v30 }
 0x29c   :  { %v7111_v5 = vmin.u32 %v1257_v53, %v9002_v22  ;;  %v1562_v34 = vsel %vm1560_vm10, %v1561_v61, %v9015_v50  ;;  %v13394_v37 = vand.u32 2147483647, %v8876_v56  ;;  %v1307_v48 = vsel %vm1306_vm9, %v8965_v26, 0 }
 0x29d   :  { %v1626_v55 = vor.u32 %v1625_v36, %v1624_v16  ;;  %v1629_v49 = vor.u32 %v1628_v3, %v1627_v45  ;;  %v1632_v59 = vor.u32 %v1631_v28, %v1630_v18  ;;  %v1635_v51 = vor.u32 %v1634_v57, %v1633_v17 }
 0x29e   :  { %v1465_v29 = vsub.s32 0, %v9027_v63  ;;  %v1558_v41 = vmul.u32 %v8989_v43, %v1542_v42  ;;  %v1655_v46 = vshll.u32 %v1615_v1, 8  ;;  %v1636_v33 = vshll.u32 %v13402_v10, %v1621_v38 }
 0x29f   :  { %v1637_v40 = vshrl.u32 %v13400_v19, %v1622_v30  ;;  %vm1639_vm8 = vcmp.lt.s32.totalorder %v1620_v12, 1  ;;  %v1715_v47 = vshrl.u32 %v1714_v35, 23  ;;  %v1259_v50 = vclz %v7111_v5 }
 0x2a0   :  { %v1563_v58 = vadd.s32 %v1562_v34, %v1558_v41  ;;  %vm1642_vm6 = vcmp.lt.s32.totalorder %v1620_v12, 4  ;;  %v1647_v53 = vsel %vm1639_vm8, %v1626_v55, %v1629_v49  ;;  %vm1641_vm11 = vcmp.lt.s32.totalorder %v1620_v12, 3 }
 0x2a1   :  { %v1638_v61 = vor.u32 %v1637_v40, %v1636_v33  ;;  %v1644_v16 = vsel %vm1642_vm6, %v1632_v59, 2102212464  ;;  %v1648_v26 = vsel %vm1642_vm6, %v1635_v51, 920167782  ;;  %v1623_v36 = vshrl.u32 %v13412_v2, %v1622_v30 }
 0x2a2   :  { %vm1640_vm12 = vcmp.lt.s32.totalorder %v1620_v12, 2  ;;  %v1649_v43 = vsel %vm1641_vm11, %v1632_v59, %v1648_v26  ;;  %v1651_v1 = vsel %vm1639_vm8, %v1629_v49, %v1632_v59  ;;  %v7119_v38 = vmin.u32 %v1465_v29, %v9027_v63 }
 0x2a3   :  { %v1650_v42 = vsel %vm1640_vm12, %v1647_v53, %v1649_v43  ;;  %v1652_v35 = vsel %vm1642_vm6, %v1638_v61, 1326507024  ;;  %v7130_v45 = vadd.s32 4294967169, %v1715_v47  ;;  %v1564_v3 = vadd.s32 536870912, %v1563_v58 }
 0x2a4   :  { %v1643_v18 = vsel %vm1639_vm8, %v1623_v36, %v1626_v55  ;;  %v1645_v28 = vsel %vm1641_vm11, %v1629_v49, %v1644_v16  ;;  %v1653_v17 = vsel %vm1641_vm11, %v1635_v51, %v1652_v35  ;;  %v7112_v41 = vadd.s32 4294967294, %v1259_v50  ;;  %v3584_v50 = vld [vmem:[%s13377_s1 + $0x78] sm:$0xff] }
 0x2a5   :  { %v1654_v57 = vsel %vm1640_vm12, %v1651_v1, %v1653_v17  ;;  %v9060_v5 = vmul.u32.u64.low %v1655_v46, %v1650_v42  ;;  %v9061_v34 = vmul.u32.u64.high %v1655_v46, %v1650_v42, %v9060_v5  ;;  %v1721_v30 = vadd.s32 1, %v7130_v45  ;;  %3625 = vmatprep.subr.mxu0 %v3584_v50 }
 0x2a6   :  { %v9064_v59 = vmul.u32.u64.low %v1655_v46, %v1654_v57  ;;  %v9065_v33 = vmul.u32.u64.high %v1655_v46, %v1654_v57, %v9064_v59  ;;  %v1467_v29 = vclz %v7119_v38  ;;  %v1646_v40 = vsel %vm1640_vm12, %v1643_v18, %v1645_v28 }
 0x2a7   :  { %vm1722_vm14 = vcmp.gt.s32.totalorder %v1721_v30, 0  ;;  %v9070_v55 = vand.u32 8388607, %v13394_v37  ;;  %v9072_v49 = vand.u32 31, %v1307_v48  ;;  %v9074_v51 = vshrl.u32 %v1564_v3, 30 }
 0x2a8   :  { %v1723_v47 = vsel %vm1722_vm14, %v1721_v30, 0  ;;  %v1665_v53 = vadd.s32 1, %v9061_v34  ;;  %vm7113_vm15 = vcmp.lt.s32.totalorder %v7112_v41, 0  ;;  %v1662_v12 = vmul.u32 %v1655_v46, %v1646_v40 }
 0x2a9   :  { %13530 = vst [vmem:[#allocation15_spill] sm:$0xff] %v9074_v51  ;;  %v1725_v61 = vand.u32 31, %v1723_v47  ;;  %vm1664_vm1 = vc.u32 %v9065_v33, %v9060_v5  ;;  %v13396_v16 = vand.u32 2147483647, %v8992_v31  ;;  %v7120_v26 = vadd.s32 4294967294, %v1467_v29 }
 0x2aa   :  { %v1666_v36 = vsel %vm1664_vm1, %v1665_v53, %v9061_v34  ;;  %v1303_v1 = vor.u32 8388608, %v9070_v55  ;;  %v9085_v38 = vshrl.u32 %v1307_v48, 5  ;;  %v9088_v42 = vsub.s32 32, %v9072_v49 }
 0x2ab   :  { %v1726_v43 = vsub.s32 32, %v1725_v61  ;;  %v1566_v35 = vshll.u32 %v9074_v51, 30  ;;  %v9091_v46 = vadd.s32 %v1666_v36, %v1662_v12  ;;  %v9093_v45 = vsel %vm7113_vm15, 0, %v7112_v41 }
 0x2ac   :  { %v1718_v17 = vand.u32 8388607, %v13396_v16  ;;  %v1728_v48 = vshll.u32 %v13412_v2, %v1725_v61  ;;  %v1731_v57 = vshll.u32 %v13408_v4, %v1725_v61  ;;  %vm7121_vm2 = vcmp.lt.s32.totalorder %v7120_v26, 0 }
 0x2ad   :  { %v1729_v3 = vshrl.u32 %v13408_v4, %v1726_v43  ;;  %v1732_v18 = vshrl.u32 %v13406_v6, %v1726_v43  ;;  %v1735_v28 = vshrl.u32 %v13404_v8, %v1726_v43  ;;  %v1738_v34 = vshrl.u32 %v13402_v10, %v1726_v43 }
 0x2ae   :  { %v1668_v30 = vadd.s32 536870912, %v9091_v46  ;;  %v1734_v41 = vshll.u32 %v13406_v6, %v1725_v61  ;;  %v1737_v59 = vshll.u32 %v13404_v8, %v1725_v61  ;;  %v9106_v29 = vsub.s32 %v1563_v58, %v1566_v35 }
 0x2af   :  { %v1724_v40 = vshrl.u32 %v1723_v47, 5  ;;  %v1730_v55 = vor.u32 %v1729_v3, %v1728_v48  ;;  %v1733_v53 = vor.u32 %v1732_v18, %v1731_v57  ;;  %v1740_v36 = vshll.u32 %v13402_v10, %v1725_v61  ;;  %v1186_v47 = vpop.f32.mrf.mxu1 }
 0x2b0   :  { %v1736_v50 = vor.u32 %v1735_v28, %v1734_v41  ;;  %v1739_v12 = vor.u32 %v1738_v34, %v1737_v59  ;;  %v1741_v37 = vshrl.u32 %v13400_v19, %v1726_v43  ;;  %v1321_v14 = vshll.u32 %v13404_v8, %v9072_v49 }
 0x2b1   :  { %v1322_v16 = vshrl.u32 %v13402_v10, %v9088_v42  ;;  %v9116_v39 = vshll.u32 %v13402_v10, %v9072_v49  ;;  %v1719_v58 = vor.u32 8388608, %v1718_v17  ;;  %v1267_v35 = vsub.s32 4294967266, %v9093_v45 }
 0x2b2   :  { %v9121_v3 = vshrl.u32 %v13400_v19, %v9088_v42  ;;  %v9123_v61 = vshrl.u32 %v1668_v30, 30  ;;  %v1742_v18 = vor.u32 %v1741_v37, %v1740_v36  ;;  %v9126_v28 = vsel %vm7121_vm2, 0, %v7120_v26 }
 0x2b3   :  { %v1569_v48 = vsub.s32 0, %v9106_v29  ;;  %vm1743_vm3 = vcmp.lt.s32.totalorder %v1724_v40, 1  ;;  %vm1746_vm4 = vcmp.lt.s32.totalorder %v1724_v40, 4  ;;  %v9130_v41 = vadd.f32 %v1186_v47, %v8785_v11 }
 0x2b4   :  { %13531 = vst [vmem:[#allocation16_spill] sm:$0xff] %v9123_v61  ;;  %v1748_v57 = vsel %vm1746_vm4, %v1736_v50, 2102212464  ;;  %v1751_v34 = vsel %vm1743_vm3, %v1730_v55, %v1733_v53  ;;  %v1752_v17 = vsel %vm1746_vm4, %v1739_v12, 920167782  ;;  %v1727_v59 = vshrl.u32 %v13412_v2, %v1726_v43 }
 0x2b5   :  { %13532 = vst [vmem:[#allocation17_spill] sm:$0xff] %v9130_v41  ;;  %vm1745_vm13 = vcmp.lt.s32.totalorder %v1724_v40, 3  ;;  %v1755_v0 = vsel %vm1743_vm3, %v1733_v53, %v1736_v50  ;;  %v1759_v30 = vshll.u32 %v1719_v58, 8  ;;  %v1670_v37 = vshll.u32 %v9123_v61, 30 }
 0x2b6   :  { %vm1744_vm7 = vcmp.lt.s32.totalorder %v1724_v40, 2  ;;  %v1753_v26 = vsel %vm1745_vm13, %v1736_v50, %v1752_v17  ;;  %v1756_v36 = vsel %vm1746_vm4, %v1742_v18, 1326507024  ;;  %v1747_v15 = vsel %vm1743_vm3, %v1727_v59, %v1730_v55 }
 0x2b7   :  { %v1749_v19 = vsel %vm1745_vm13, %v1733_v53, %v1748_v57  ;;  %v1754_v10 = vsel %vm1744_vm7, %v1751_v34, %v1753_v26  ;;  %v1757_v8 = vsel %vm1745_vm13, %v1739_v12, %v1756_v36  ;;  %v1818_v11 = vand.u32 2139095040, %v9130_v41 }
 0x2b8   :  { %v1758_v6 = vsel %vm1744_vm7, %v1755_v0, %v1757_v8  ;;  %v9134_v4 = vmul.u32.u64.low %v1759_v30, %v1754_v10  ;;  %v9135_v25 = vmul.u32.u64.high %v1759_v30, %v1754_v10, %v9134_v4  ;;  %v9139_v43 = vor.u32 %v1322_v16, %v1321_v14  ;;  %v1188_v0 = vpop.f32.mrf.mxu1 }
 0x2b9   :  { %v9141_v47 = vmul.u32.u64.low %v1759_v30, %v1758_v6  ;;  %v9142_v58 = vmul.u32.u64.high %v1759_v30, %v1758_v6, %v9141_v47  ;;  %v9144_v2 = vshll.u32 %v1303_v1, 8  ;;  %v1326_v40 = vor.u32 %v9121_v3, %v9116_v39 }
 0x2ba   :  { %vm1330_vm5 = vcmp.lt.s32.totalorder %v9085_v38, 4  ;;  %v1750_v55 = vsel %vm1744_vm7, %v1747_v15, %v1749_v19  ;;  %v1819_v8 = vshrl.u32 %v1818_v11, 23  ;;  %v1263_v10 = vsub.s32 32, %v9093_v45 }
 0x2bb   :  { %v1268_v53 = vadd.s32 127, %v1267_v35  ;;  %v1475_v50 = vsub.s32 4294967266, %v9126_v28  ;;  %v7123_v14 = vmin.u32 %v1569_v48, %v9106_v29  ;;  %v9153_v6 = vsub.s32 %v9091_v46, %v1670_v37 }
 0x2bc   :  { %v1769_v16 = vadd.s32 1, %v9135_v25  ;;  %v13414_v1 = vand.u32 2147483647, %v9130_v41  ;;  %v7134_v39 = vadd.s32 4294967169, %v1819_v8  ;;  %v1247_v19 = vadd.s32 %v8849_v7, %v8846_v52 }
 0x2bd   :  { %v1766_v15 = vmul.u32 %v1759_v30, %v1750_v55  ;;  %vm1768_vm9 = vc.u32 %v9142_v58, %v9134_v4  ;;  %v9162_v12 = vadd.f32 %v1188_v0, %v8842_v60  ;;  %v9167_v46 = vsel %vm1330_vm5, %v9139_v43, 920167782 }
 0x2be   :  { %v1770_v35 = vsel %vm1768_vm9, %v1769_v16, %v9135_v25  ;;  %v1825_v3 = vadd.s32 1, %v7134_v39  ;;  %v13534_v18 = vmov 683565275   ;;  %v1265_v52 = vshrl.u32 %v1247_v19, %v1263_v10 }
 0x2bf   :  { %13533 = vst [vmem:[#allocation18_spill] sm:$0xff] %v9162_v12  ;;  %v9172_v48 = vshrl.u32 %v13534_v18, %v9088_v42  ;;  %v1269_v7 = vshll.u32 %v1268_v53, 23  ;;  %v9174_v57 = vadd.s32 127, %v1475_v50  ;;  %v1771_v34 = vadd.s32 %v1770_v35, %v1766_v15 }
 0x2c0   :  { %v1571_v17 = vclz %v7123_v14  ;;  %v1673_v60 = vsub.s32 0, %v9153_v6  ;;  %v1822_v59 = vand.u32 8388607, %v13414_v1  ;;  %vm1826_vm10 = vcmp.gt.s32.totalorder %v1825_v3, 0 }
 0x2c1   :  { %v1264_v25 = vshll.u32 %v9002_v22, %v9093_v45  ;;  %v1772_v30 = vadd.s32 536870912, %v1771_v34  ;;  %v1827_v37 = vsel %vm1826_vm10, %v1825_v3, 0  ;;  %v1922_v26 = vand.u32 2139095040, %v9162_v12 }
 0x2c2   :  { %v9184_v36 = vsel %vm1330_vm5, %v1326_v40, 1326507024  ;;  %v9188_v11 = vadd.s32 %v8921_v13, %v8918_v24  ;;  %v1829_v47 = vand.u32 31, %v1827_v37  ;;  %v9192_v55 = vshll.u32 %v13534_v18, %v9072_v49 }
 0x2c3   :  { %v9194_v8 = vor.u32 %v1265_v52, %v1264_v25  ;;  %v9196_v22 = vor.u32 4788187, %v1269_v7  ;;  %v1471_v45 = vsub.s32 32, %v9126_v28  ;;  %v1477_v0 = vshll.u32 %v9174_v57, 23 }
 0x2c4   :  { %v7124_v10 = vadd.s32 4294967294, %v1571_v17  ;;  %v7127_v40 = vmin.u32 %v1673_v60, %v9153_v6  ;;  %v1823_v53 = vor.u32 8388608, %v1822_v59  ;;  %v1830_v50 = vsub.s32 32, %v1829_v47 }
 0x2c5   :  { %v9201_v24 = vshrl.u32 %v1772_v30, 30  ;;  %v1832_v13 = vshll.u32 %v13534_v18, %v1829_v47  ;;  %v13536_v14 = vmov 2475754826   ;;  %v1923_v39 = vshrl.u32 %v1922_v26, 23 }
 0x2c6   :  { %v1835_v16 = vshll.u32 %v13536_v14, %v1829_v47  ;;  %v1833_v19 = vshrl.u32 %v13536_v14, %v1830_v50  ;;  %v13537_v15 = vmov 2131351028   ;;  %v13538_v52 = vmov 2102212464  }
 0x2c7   :  { %13535 = vst [vmem:[#allocation19_spill] sm:$0xff] %v9201_v24  ;;  %v1836_v35 = vshrl.u32 %v13537_v15, %v1830_v50  ;;  %v1838_v3 = vshll.u32 %v13537_v15, %v1829_v47  ;;  %v1839_v7 = vshrl.u32 %v13538_v52, %v1830_v50  ;;  %v1828_v57 = vshrl.u32 %v1827_v37, 5 }
 0x2c8   :  { %v1841_v17 = vshll.u32 %v13538_v52, %v1829_v47  ;;  %v13539_v60 = vmov 920167782   ;;  %v1834_v30 = vor.u32 %v1833_v19, %v1832_v13  ;;  %v13540_v61 = vmov 1326507024  }
 0x2c9   :  { %v1842_v59 = vshrl.u32 %v13539_v60, %v1830_v50  ;;  %v1844_v25 = vshll.u32 %v13539_v60, %v1829_v47  ;;  %v1837_v1 = vor.u32 %v1836_v35, %v1835_v16  ;;  %v1840_v23 = vor.u32 %v1839_v7, %v1838_v3 }
 0x2ca   :  { %v1845_v26 = vshrl.u32 %v13540_v61, %v1830_v50  ;;  %vm7125_vm8 = vcmp.lt.s32.totalorder %v7124_v10, 0  ;;  %v1774_v41 = vshll.u32 %v9201_v24, 30  ;;  %v1313_v51 = vshrl.u32 %v13536_v14, %v9088_v42 }
 0x2cb   :  { %v1843_v54 = vor.u32 %v1842_v59, %v1841_v17  ;;  %v1675_v56 = vclz %v7127_v40  ;;  %v7138_v20 = vadd.s32 4294967169, %v1923_v39  ;;  %v1831_v9 = vshrl.u32 %v13534_v18, %v1830_v50 }
 0x2cc   :  { %v1846_v37 = vor.u32 %v1845_v26, %v1844_v25  ;;  %vm1847_vm6 = vcmp.lt.s32.totalorder %v1828_v57, 1  ;;  %vm1850_vm11 = vcmp.lt.s32.totalorder %v1828_v57, 4  ;;  %v1863_v47 = vshll.u32 %v1823_v53, 8 }
 0x2cd   :  { %vm1849_vm12 = vcmp.lt.s32.totalorder %v1828_v57, 3  ;;  %v1852_v13 = vsel %vm1850_vm11, %v1840_v23, 2102212464  ;;  %v1855_v16 = vsel %vm1847_vm6, %v1834_v30, %v1837_v1  ;;  %v1856_v19 = vsel %vm1850_vm11, %v1843_v54, 920167782 }
 0x2ce   :  { %v9218_v35 = vsub.s32 %v1771_v34, %v1774_v41  ;;  %vm1848_vm14 = vcmp.lt.s32.totalorder %v1828_v57, 2  ;;  %v1857_v3 = vsel %vm1849_vm12, %v1840_v23, %v1856_v19  ;;  %v1859_v7 = vsel %vm1847_vm6, %v1837_v1, %v1840_v23 }
 0x2cf   :  { %v1851_v17 = vsel %vm1847_vm6, %v1831_v9, %v1834_v30  ;;  %v1858_v40 = vsel %vm1848_vm14, %v1855_v16, %v1857_v3  ;;  %v1860_v59 = vsel %vm1850_vm11, %v1846_v37, 1326507024  ;;  %v1929_v25 = vadd.s32 1, %v7138_v20 }
 0x2d0   :  { %v1853_v39 = vsel %vm1849_vm12, %v1837_v1, %v1852_v13  ;;  %v1861_v26 = vsel %vm1849_vm12, %v1843_v54, %v1860_v59  ;;  %v9221_v50 = vmul.u32.u64.low %v1863_v47, %v1858_v40  ;;  %v9222_v31 = vmul.u32.u64.high %v1863_v47, %v1858_v40, %v9221_v50 }
 0x2d1   :  { %v9226_v53 = vsel %vm7125_vm8, 0, %v7124_v10  ;;  %v1862_v41 = vsel %vm1848_vm14, %v1859_v7, %v1861_v26  ;;  %v13541_v34 = vand.u32 2147483647, %v9162_v12  ;;  %vm1930_vm15 = vcmp.gt.s32.totalorder %v1929_v25, 0 }
 0x2d2   :  { %v1777_v23 = vsub.s32 0, %v9218_v35  ;;  %v9232_v9 = vmul.u32.u64.low %v1863_v47, %v1862_v41  ;;  %v9233_v30 = vmul.u32.u64.high %v1863_v47, %v1862_v41, %v9232_v9  ;;  %v1931_v20 = vsel %vm1930_vm15, %v1929_v25, 0 }
 0x2d3   :  { %v1926_v19 = vand.u32 8388607, %v13541_v34  ;;  %v9238_v1 = vshrl.u32 %v9188_v11, %v1471_v45  ;;  %v1854_v10 = vsel %vm1848_vm14, %v1851_v17, %v1853_v39  ;;  %v1933_v37 = vand.u32 31, %v1931_v20 }
 0x2d4   :  { %v9241_v13 = vor.u32 4788187, %v1477_v0  ;;  %v1579_v16 = vsub.s32 4294967266, %v9226_v53  ;;  %v9244_v3 = vadd.s32 4294967294, %v1675_v56  ;;  %v1873_v7 = vadd.s32 1, %v9222_v31 }
 0x2d5   :  { %v1927_v40 = vor.u32 8388608, %v1926_v19  ;;  %v1934_v59 = vsub.s32 32, %v1933_v37  ;;  %v9248_v25 = vor.u32 %v1313_v51, %v9192_v55  ;;  %v1316_v11 = vshrl.u32 %v13537_v15, %v9088_v42 }
 0x2d6   :  { %v7131_v45 = vmin.u32 %v1777_v23, %v9218_v35  ;;  %v1870_v57 = vmul.u32 %v1863_v47, %v1854_v10  ;;  %vm1872_vm1 = vc.u32 %v9233_v30, %v9221_v50  ;;  %v1936_v0 = vshll.u32 %v13534_v18, %v1933_v37 }
 0x2d7   :  { %v1874_v56 = vsel %vm1872_vm1, %v1873_v7, %v9222_v31  ;;  %v1937_v17 = vshrl.u32 %v13536_v14, %v1934_v59  ;;  %v1939_v39 = vshll.u32 %v13536_v14, %v1933_v37  ;;  %v1940_v51 = vshrl.u32 %v13537_v15, %v1934_v59 }
 0x2d8   :  { %v1875_v55 = vadd.s32 %v1874_v56, %v1870_v57  ;;  %v1932_v26 = vshrl.u32 %v1931_v20, 5  ;;  %v1942_v41 = vshll.u32 %v13537_v15, %v1933_v37  ;;  %v1943_v34 = vshrl.u32 %v13538_v52, %v1934_v59 }
 0x2d9   :  { %v1938_v47 = vor.u32 %v1937_v17, %v1936_v0  ;;  %v1941_v19 = vor.u32 %v1940_v51, %v1939_v39  ;;  %v1945_v23 = vshll.u32 %v13538_v52, %v1933_v37  ;;  %v1946_v9 = vshrl.u32 %v13539_v60, %v1934_v59 }
 0x2da   :  { %v1876_v10 = vadd.s32 536870912, %v1875_v55  ;;  %v1944_v31 = vor.u32 %v1943_v34, %v1942_v41  ;;  %v1967_v7 = vshll.u32 %v1927_v40, 8  ;;  %v1315_v54 = vshll.u32 %v13536_v14, %v9072_v49 }
 0x2db   :  { %v1779_v24 = vclz %v7131_v45  ;;  %v1947_v12 = vor.u32 %v1946_v9, %v1945_v23  ;;  %v1948_v20 = vshll.u32 %v13539_v60, %v1933_v37  ;;  %v1949_v57 = vshrl.u32 %v13540_v61, %v1934_v59 }
 0x2dc   :  { %v9268_v56 = vshrl.u32 %v1876_v10, 30  ;;  %vm1951_vm2 = vcmp.lt.s32.totalorder %v1932_v26, 1  ;;  %v1317_v0 = vor.u32 %v1316_v11, %v1315_v54  ;;  %v1319_v17 = vshrl.u32 %v13538_v52, %v9088_v42 }
 0x2dd   :  { %v1935_v39 = vshrl.u32 %v13534_v18, %v1934_v59  ;;  %v1950_v51 = vor.u32 %v1949_v57, %v1948_v20  ;;  %vm1954_vm3 = vcmp.lt.s32.totalorder %v1932_v26, 4  ;;  %v1959_v40 = vsel %vm1951_vm2, %v1938_v47, %v1941_v19 }
 0x2de   :  { %v1878_v45 = vshll.u32 %v9268_v56, 30  ;;  %vm1953_vm4 = vcmp.lt.s32.totalorder %v1932_v26, 3  ;;  %v1956_v41 = vsel %vm1954_vm3, %v1944_v31, 2102212464  ;;  %v1960_v37 = vsel %vm1954_vm3, %v1947_v12, 920167782 }
 0x2df   :  { %vm1952_vm13 = vcmp.lt.s32.totalorder %v1932_v26, 2  ;;  %v1961_v34 = vsel %vm1953_vm4, %v1944_v31, %v1960_v37  ;;  %v1963_v23 = vsel %vm1951_vm2, %v1941_v19, %v1944_v31  ;;  %v1964_v9 = vsel %vm1954_vm3, %v1950_v51, 1326507024 }
 0x2e0   :  { %v9276_v54 = vsub.s32 %v1875_v55, %v1878_v45  ;;  %v1955_v42 = vsel %vm1951_vm2, %v1935_v39, %v1938_v47  ;;  %v1962_v59 = vsel %vm1952_vm13, %v1959_v40, %v1961_v34  ;;  %v1318_v11 = vshll.u32 %v13537_v15, %v9072_v49 }
 0x2e1   :  { %v1957_v10 = vsel %vm1953_vm4, %v1941_v19, %v1956_v41  ;;  %v1965_v20 = vsel %vm1953_vm4, %v1947_v12, %v1964_v9  ;;  %v9282_v57 = vmul.u32.u64.low %v1967_v7, %v1962_v59  ;;  %v9283_v61 = vmul.u32.u64.high %v1967_v7, %v1962_v59, %v9282_v57 }
 0x2e2   :  { %vm7129_vm7 = vcmp.lt.s32.totalorder %v9244_v3, 0  ;;  %v1881_v31 = vsub.s32 0, %v9276_v54  ;;  %v1966_v55 = vsel %vm1952_vm13, %v1963_v23, %v1965_v20  ;;  %v1320_v51 = vor.u32 %v1319_v17, %v1318_v11 }
 0x2e3   :  { %v1575_v47 = vsub.s32 32, %v9226_v53  ;;  %v1580_v39 = vadd.s32 127, %v1579_v16  ;;  %v9290_v40 = vmul.u32.u64.low %v1967_v7, %v1966_v55  ;;  %v9291_v45 = vmul.u32.u64.high %v1967_v7, %v1966_v55, %v9290_v40 }
 0x2e4   :  { %v7132_v49 = vadd.s32 4294967294, %v1779_v24  ;;  %v1958_v12 = vsel %vm1952_vm13, %v1955_v42, %v1957_v10  ;;  %vm1327_vm9 = vcmp.lt.s32.totalorder %v9085_v38, 1  ;;  %vm1329_vm10 = vcmp.lt.s32.totalorder %v9085_v38, 3 }
 0x2e5   :  { %v9297_v19 = vsel %vm7129_vm7, 0, %v9244_v3  ;;  %v1977_v41 = vadd.s32 1, %v9283_v61  ;;  %v1335_v17 = vsel %vm1327_vm9, %v9248_v25, %v1317_v0  ;;  %v1337_v16 = vsel %vm1329_vm10, %v1320_v51, %v9167_v46 }
 0x2e6   :  { %v7135_v24 = vmin.u32 %v1881_v31, %v9276_v54  ;;  %vm1328_vm8 = vcmp.lt.s32.totalorder %v9085_v38, 2  ;;  %v1332_v26 = vsel %vm1330_vm5, %v1320_v51, 2102212464  ;;  %v1339_v3 = vsel %vm1327_vm9, %v1317_v0, %v1320_v51 }
 0x2e7   :  { %v1974_v37 = vmul.u32 %v1967_v7, %v1958_v12  ;;  %vm1976_vm6 = vc.u32 %v9291_v45, %v9282_v57  ;;  %v1338_v34 = vsel %vm1328_vm8, %v1335_v17, %v1337_v16  ;;  %v1341_v46 = vsel %vm1329_vm10, %v9139_v43, %v9184_v36 }
 0x2e8   :  { %vm7133_vm11 = vcmp.lt.s32.totalorder %v7132_v49, 0  ;;  %v1978_v23 = vsel %vm1976_vm6, %v1977_v41, %v9283_v61  ;;  %v1331_v9 = vsel %vm1327_vm9, %v9172_v48, %v9248_v25  ;;  %v1342_v7 = vsel %vm1328_vm8, %v1339_v3, %v1341_v46 }
 0x2e9   :  { %v1979_v42 = vadd.s32 %v1978_v23, %v1974_v37  ;;  %v1333_v59 = vsel %vm1329_vm10, %v1317_v0, %v1332_v26  ;;  %v9330_v11 = vmul.u32.u64.low %v9144_v2, %v1342_v7  ;;  %v9331_v10 = vmul.u32.u64.high %v9144_v2, %v1342_v7, %v9330_v11 }
 0x2ea   :  { %v1683_v43 = vsub.s32 4294967266, %v9297_v19  ;;  %v1883_v36 = vclz %v7135_v24  ;;  %v9335_v61 = vmul.u32.u64.low %v9144_v2, %v1338_v34  ;;  %v9336_v20 = vmul.u32.u64.high %v9144_v2, %v1338_v34, %v9335_v61 }
 0x2eb   :  { %v1559_v48 = vadd.s32 %v9014_v21, %v9011_v62  ;;  %v1581_v25 = vshll.u32 %v1580_v39, 23  ;;  %v9341_v31 = vsel %vm7133_vm11, 0, %v7132_v49  ;;  %v1980_v55 = vadd.s32 536870912, %v1979_v42 }
 0x2ec   :  { %v1271_v0 = vand.u32 2147483647, %v9196_v22  ;;  %v1273_v51 = vcvt.s32.f32 %v9194_v8  ;;  %v13542_v40 = vshll.u32 %v9027_v63, %v9126_v28  ;;  %v1334_v41 = vsel %vm1328_vm8, %v1331_v9, %v1333_v59 }
 0x2ed   :  { %v1479_v17 = vand.u32 2147483647, %v9241_v13  ;;  %v1577_v16 = vshrl.u32 %v1559_v48, %v1575_v47  ;;  %v9352_v62 = vshrl.u32 %v1980_v55, 30  ;;  %vm1352_vm5 = vc.u32 %v9331_v10, %v9335_v61 }
 0x2ee   :  { %v1474_v12 = vor.u32 %v9238_v1, %v13542_v40  ;;  %v1684_v21 = vadd.s32 127, %v1683_v43  ;;  %v1787_v22 = vsub.s32 4294967266, %v9341_v31  ;;  %v7136_v8 = vadd.s32 4294967294, %v1883_v36 }
 0x2ef   :  { %v1353_v39 = vadd.s32 1, %v9336_v20  ;;  %v1576_v63 = vshll.u32 %v9106_v29, %v9226_v53  ;;  %v1582_v28 = vor.u32 4788187, %v1581_v25  ;;  %v1982_v38 = vshll.u32 %v9352_v62, 30 }
 0x2f0   :  { %v1350_v1 = vmul.u32 %v9144_v2, %v1334_v41  ;;  %v1274_v13 = vmul.f32 %v1273_v51, %v1271_v0  ;;  %v1679_v47 = vsub.s32 32, %v9297_v19  ;;  %v1481_v24 = vcvt.s32.f32 %v1474_v12 }
 0x2f1   :  { %v1354_v49 = vsel %vm1352_vm5, %v1353_v39, %v9336_v20  ;;  %v1578_v26 = vor.u32 %v1577_v16, %v1576_v63  ;;  %v9364_v3 = vsub.s32 %v1979_v42, %v1982_v38  ;;  %v1663_v34 = vadd.s32 %v9060_v5, %v9065_v33  ;;  %v13546_v39 = vld [vmem:[#allocation12_spill] sm:$0xff] }
 0x2f2   :  { %v1355_v37 = vadd.s32 %v1354_v49, %v1350_v1  ;;  %v1685_v46 = vshll.u32 %v1684_v21, 23  ;;  %v1788_v29 = vadd.s32 127, %v1787_v22  ;;  %vm7137_vm12 = vcmp.lt.s32.totalorder %v7136_v8, 0 }
 0x2f3   :  { %v1482_v53 = vmul.f32 %v1481_v24, %v1479_v17  ;;  %v1583_v23 = vand.u32 2147483647, %v1582_v28  ;;  %v1985_v2 = vsub.s32 0, %v9364_v3  ;;  %vm1193_vm14 = vcmp.lt.s32.totalorder %v8788_v27, 0 }
 0x2f4   :  { %v1356_v9 = vadd.s32 536870912, %v1355_v37  ;;  %v1275_v7 = vxor.u32 2147483648, %v1274_v13  ;;  %v1681_v59 = vshrl.u32 %v1663_v34, %v1679_v47  ;;  %v1783_v11 = vsub.s32 32, %v9341_v31 }
 0x2f5   :  { %v1585_v42 = vcvt.s32.f32 %v1578_v26  ;;  %v9371_v43 = vsel %vm7137_vm12, 0, %v7136_v8  ;;  %v7139_v36 = vmin.u32 %v1985_v2, %v9364_v3  ;;  %v1680_v33 = vshll.u32 %v9153_v6, %v9297_v19 }
 0x2f6   :  { %v9374_v5 = vshrl.u32 %v1356_v9, 30  ;;  %v1686_v20 = vor.u32 4788187, %v1685_v46  ;;  %v1767_v48 = vadd.s32 %v9134_v4, %v9142_v58  ;;  %v1789_v25 = vshll.u32 %v1788_v29, 23 }
 0x2f7   :  { %v1483_v55 = vxor.u32 2147483648, %v1482_v53  ;;  %v1586_v0 = vmul.f32 %v1585_v42, %v1583_v23  ;;  %v1987_v51 = vclz %v7139_v36  ;;  %v13543_v12 = vand.u32 2147483647, %v8788_v27 }
 0x2f8   :  { %v1358_v40 = vshll.u32 %v9374_v5, 30  ;;  %vm1401_vm1 = vcmp.lt.s32.totalorder %v8834_v44, 0  ;;  %v1682_v17 = vor.u32 %v1681_v59, %v1680_v33  ;;  %v1785_v6 = vshrl.u32 %v1767_v48, %v1783_v11  ;;  %v13547_v59 = vld [vmem:[#allocation11_spill] sm:$0xff]  ;;  %v13548_v33 = vld [vmem:[#allocation14_spill] sm:$0xff] }
 0x2f9   :  { %vm9383_vm15 = vcmp.le.f32.partialorder %v13543_v12, 0.7853982  ;;  %v1891_v19 = vsub.s32 4294967266, %v9371_v43  ;;  %v1276_v4 = vsel %vm1193_vm14, %v1275_v7, %v1274_v13  ;;  %vm1505_vm2 = vcmp.lt.s32.totalorder %v8855_v32, 0 }
 0x2fa   :  { %v7140_v58 = vadd.s32 4294967294, %v1987_v51  ;;  %v9392_v16 = vsub.s32 %v1355_v37, %v1358_v40  ;;  %v1687_v21 = vand.u32 2147483647, %v1686_v20  ;;  %v1784_v22 = vshll.u32 %v9218_v35, %v9341_v31 }
 0x2fb   :  { %v1790_v8 = vor.u32 4788187, %v1789_v25  ;;  %v1277_v63 = vsub.s32 4, %v13546_v39  ;;  %v9399_v28 = vsel %vm1401_vm1, %v1483_v55, %v1482_v53  ;;  %v1587_v38 = vxor.u32 2147483648, %v1586_v0 }
 0x2fc   :  { %vm7141_vm3 = vcmp.lt.s32.totalorder %v7140_v58, 0  ;;  %v1361_v1 = vsub.s32 0, %v9392_v16  ;;  %v1689_v13 = vcvt.s32.f32 %v1682_v17  ;;  %v1786_v47 = vor.u32 %v1785_v6, %v1784_v22 }
 0x2fd   :  { %v1892_v49 = vadd.s32 127, %v1891_v19  ;;  %v1990_v24 = vsel %vm7141_vm3, 0, %v7140_v58  ;;  %v1975_v26 = vadd.s32 %v9282_v57, %v9291_v45  ;;  %v1791_v46 = vand.u32 2147483647, %v1790_v8 }
 0x2fe   :  { %v1991_v37 = vsub.s32 32, %v1990_v24  ;;  %v1995_v35 = vsub.s32 4294967266, %v1990_v24  ;;  %v7115_v31 = vmin.u32 %v1361_v1, %v9392_v16  ;;  %v1690_v34 = vmul.f32 %v1689_v13, %v1687_v21  ;;  %v13553_v1 = vld [vmem:[#allocation18_spill] sm:$0xff]  ;;  %v13554_v13 = vld [vmem:[#allocation15_spill] sm:$0xff] }
 0x2ff   :  { %v1887_v29 = vsub.s32 32, %v9371_v43  ;;  %v1278_v53 = vsel %vm1193_vm14, %v1277_v63, %v13546_v39  ;;  %v1992_v23 = vshll.u32 %v9364_v3, %v1990_v24  ;;  %vm1609_vm4 = vcmp.lt.s32.totalorder %v13547_v59, 0 }
 0x300   :  { %v1993_v2 = vshrl.u32 %v1975_v26, %v1991_v37  ;;  %v1996_v9 = vadd.s32 127, %v1995_v35  ;;  %v1363_v7 = vclz %v7115_v31  ;;  %v1793_v57 = vcvt.s32.f32 %v1786_v47 }
 0x301   :  { %v1871_v45 = vadd.s32 %v9221_v50, %v9233_v30  ;;  %v1893_v11 = vshll.u32 %v1892_v49, 23  ;;  %v1279_v42 = vsel %vm9383_vm15, %v8788_v27, %v1276_v4  ;;  %v1588_v36 = vsel %vm1505_vm2, %v1587_v38, %v1586_v0  ;;  %v13549_v4 = vld [vmem:[#allocation10_spill] sm:$0xff] }
 0x302   :  { %vm1713_vm13 = vcmp.lt.s32.totalorder %v13548_v33, 0  ;;  %v1994_v3 = vor.u32 %v1993_v2, %v1992_v23  ;;  %v1997_v20 = vshll.u32 %v1996_v9, 23  ;;  %v7116_v48 = vadd.s32 4294967294, %v1363_v7 }
 0x303   :  { %v1691_v25 = vxor.u32 2147483648, %v1690_v34  ;;  %v1794_v55 = vmul.f32 %v1793_v57, %v1791_v46  ;;  %v1889_v51 = vshrl.u32 %v1871_v45, %v1887_v29  ;;  %v1280_v40 = vsel %vm9383_vm15, 0, %v1278_v53 }
 0x304   :  { %v1888_v50 = vshll.u32 %v9276_v54, %v9371_v43  ;;  %v1998_v30 = vor.u32 4788187, %v1997_v20  ;;  %vm7117_vm7 = vcmp.lt.s32.totalorder %v7116_v48, 0  ;;  %7663 = vcosq.f32 %v1279_v42  ;;  %v13561_v20 = vld [vmem:[#allocation13_spill] sm:$0xff] }
 0x305   :  { %v1894_v12 = vor.u32 4788187, %v1893_v11  ;;  %v1351_v0 = vadd.s32 %v9335_v61, %v9331_v10  ;;  %v1366_v17 = vsel %vm7117_vm7, 0, %v7116_v48  ;;  %7665 = vsinq.f32 %v1279_v42 }
 0x306   :  { %v1999_v6 = vand.u32 2147483647, %v1998_v30  ;;  %v2001_v19 = vcvt.s32.f32 %v1994_v3  ;;  %vm1297_vm9 = vcmp.lt.s32.totalorder %v13549_v4, 0  ;;  %v1367_v58 = vsub.s32 32, %v1366_v17 }
 0x307   :  { %v1371_v21 = vsub.s32 4294967266, %v1366_v17  ;;  %v1795_v41 = vxor.u32 2147483648, %v1794_v55  ;;  %v1890_v22 = vor.u32 %v1889_v51, %v1888_v50  ;;  %v1284_v8 = vadd.s32 3, %v1280_v40 }
 0x308   :  { %v13550_v54 = vand.u32 2147483647, %v8855_v32  ;;  %v2002_v39 = vmul.f32 %v2001_v19, %v1999_v6  ;;  %v1368_v10 = vshll.u32 %v9392_v16, %v1366_v17  ;;  %v1369_v61 = vshrl.u32 %v1351_v0, %v1367_v58  ;;  %v13571_v58 = vld [vmem:[#allocation17_spill] sm:$0xff] }
 0x309   :  { %v1372_v63 = vadd.s32 127, %v1371_v21  ;;  %v1895_v38 = vand.u32 2147483647, %v1894_v12  ;;  %vm1921_vm8 = vcmp.lt.s32.totalorder %v13553_v1, 0  ;;  %v1589_v47 = vsub.s32 4, %v13554_v13 }
 0x30a   :  { %vm9428_vm10 = vcmp.le.f32.partialorder %v13550_v54, 0.7853982  ;;  %v1692_v24 = vsel %vm1609_vm4, %v1691_v25, %v1690_v34  ;;  %v2003_v26 = vxor.u32 2147483648, %v2002_v39  ;;  %v1370_v37 = vor.u32 %v1369_v61, %v1368_v10  ;;  %v13572_v54 = vld [vmem:[#allocation19_spill] sm:$0xff] }
 0x30b   :  { %v1591_v49 = vsel %vm9428_vm10, %v8855_v32, %v1588_v36  ;;  %v1373_v35 = vshll.u32 %v1372_v63, 23  ;;  %v1796_v16 = vsel %vm1713_vm13, %v1795_v41, %v1794_v55  ;;  %v1897_v31 = vcvt.s32.f32 %v1890_v22 }
 0x30c   :  { %v1381_v46 = vsub.s32 4, %v9374_v5  ;;  %v13555_v29 = vand.u32 2147483647, %v8834_v44  ;;  %v9449_v2 = vand.u32 3, %v1284_v8  ;;  %7667 = vcosq.f32 %v1591_v49 }
 0x30d   :  { %v1374_v23 = vor.u32 4788187, %v1373_v35  ;;  %v1898_v9 = vmul.f32 %v1897_v31, %v1895_v38  ;;  %v1590_v7 = vsel %vm1505_vm2, %v1589_v47, %v13554_v13  ;;  %7669 = vsinq.f32 %v1591_v49 }
 0x30e   :  { %vm9445_vm6 = vcmp.le.f32.partialorder %v13555_v29, 0.7853982  ;;  %v13558_v57 = vand.u32 2147483647, %v13548_v33  ;;  %v2004_v11 = vsel %vm1921_vm8, %v2003_v26, %v2002_v39  ;;  %v1377_v36 = vcvt.s32.f32 %v1370_v37  ;;  %v13573_v26 = vld [vmem:[#allocation16_spill] sm:$0xff] }
 0x30f   :  { %v1487_v34 = vsel %vm9445_vm6, %v8834_v44, %v9399_v28  ;;  %v1375_v42 = vand.u32 2147483647, %v1374_v23  ;;  %v1382_v3 = vsel %vm1297_vm9, %v1381_v46, %v9374_v5  ;;  %v1485_v48 = vsub.s32 4, %v13561_v20 }
 0x310   :  { %vm9460_vm11 = vcmp.le.f32.partialorder %v13558_v57, 0.7853982  ;;  %7671 = vcosq.f32 %v1487_v34  ;;  %v13562_v25 = vand.u32 2147483647, %v13547_v59  ;;  %v13565_v50 = vand.u32 2147483647, %v13553_v1 }
 0x311   :  { %v1799_v28 = vsel %vm9460_vm11, %v13548_v33, %v1796_v16  ;;  %v1378_v51 = vmul.f32 %v1377_v36, %v1375_v42  ;;  %7673 = vsinq.f32 %v1487_v34  ;;  %v7664_v5 = vpop.eup %7663  ;;  %v1899_v12 = vxor.u32 2147483648, %v1898_v9 }
 0x312   :  { %vm9475_vm5 = vcmp.le.f32.partialorder %v13562_v25, 0.7853982  ;;  %vm9484_vm12 = vcmp.le.f32.partialorder %v13565_v50, 0.7853982  ;;  %v13568_v0 = vand.u32 2147483647, %v13549_v4  ;;  %7675 = vcosq.f32 %v1799_v28  ;;  %v7666_v19 = vpop.eup %7665 }
 0x313   :  { %v1695_v40 = vsel %vm9475_vm5, %v13547_v59, %v1692_v24  ;;  %v2007_v6 = vsel %vm9484_vm12, %v13553_v1, %v2004_v11  ;;  %vm1817_vm15 = vcmp.lt.s32.totalorder %v13571_v58, 0  ;;  %v1379_v21 = vxor.u32 2147483648, %v1378_v51 }
 0x314   :  { %vm9490_vm14 = vcmp.le.f32.partialorder %v13568_v0, 0.7853982  ;;  %v1592_v41 = vsel %vm9428_vm10, 0, %v1590_v7  ;;  %7677 = vsinq.f32 %v1799_v28  ;;  %v1486_v8 = vsel %vm1401_vm1, %v1485_v48, %v13561_v20 }
 0x315   :  { %v1384_v22 = vsel %vm9490_vm14, 0, %v1382_v3  ;;  %v1797_v39 = vsub.s32 4, %v13572_v54  ;;  %7679 = vcosq.f32 %v1695_v40  ;;  %v1380_v10 = vsel %vm1297_vm9, %v1379_v21, %v1378_v51 }
 0x316   :  { %vm1287_vm2 = vcmp.eq.s32.totalorder %v9449_v2, 0  ;;  %v1291_v61 = vxor.u32 2147483648, %v7664_v5  ;;  %7681 = vcosq.f32 %v2007_v6  ;;  %v1900_v43 = vsel %vm1817_vm15, %v1899_v12, %v1898_v9 }
 0x317   :  { %v1383_v63 = vsel %vm9490_vm14, %v13549_v4, %v1380_v10  ;;  %v1288_v38 = vxor.u32 2147483648, %v7666_v19  ;;  %7683 = vsinq.f32 %v2007_v6  ;;  %v1388_v13 = vadd.s32 3, %v1384_v22 }
 0x318   :  { %7685 = vcosq.f32 %v1383_v63  ;;  %v1596_v47 = vadd.s32 3, %v1592_v41  ;;  %v1488_v49 = vsel %vm9445_vm6, 0, %v1486_v8  ;;  %v1798_v24 = vsel %vm1713_vm13, %v1797_v39, %v13572_v54 }
 0x319   :  { %7687 = vsinq.f32 %v1383_v63  ;;  %v1693_v37 = vsub.s32 4, %v13573_v26  ;;  %v13574_v35 = vand.u32 2147483647, %v13571_v58  ;;  %vm1290_vm3 = vcmp.eq.s32.totalorder %v9449_v2, 2  ;;  %v7668_v29 = vpop.eup %7667 }
 0x31a   :  { %7689 = vsinq.f32 %v1695_v40  ;;  %v2005_v31 = vsub.s32 4, %v9352_v62  ;;  %v1289_v53 = vsel %vm1287_vm2, %v7664_v5, %v1288_v38  ;;  %v1292_v23 = vsel %vm1290_vm3, %v1291_v61, %v7666_v19  ;;  %v7670_v34 = vpop.eup %7669 }
 0x31b   :  { %vm9522_vm1 = vcmp.le.f32.partialorder %v13574_v35, 0.7853982  ;;  %v1597_v9 = vand.u32 3, %v1596_v47  ;;  %v1492_v7 = vadd.s32 3, %v1488_v49  ;;  %v1800_v57 = vsel %vm9460_vm11, 0, %v1798_v24 }
 0x31c   :  { %v1903_v46 = vsel %vm9522_vm1, %v13571_v58, %v1900_v43  ;;  %v9535_v11 = vand.u32 3, %v1388_v13  ;;  %vm1286_vm13 = vcmp.lt.s32.totalorder %v9449_v2, 2  ;;  %v1694_v42 = vsel %vm1609_vm4, %v1693_v37, %v13573_v26 }
 0x31d   :  { %7691 = vcosq.f32 %v1903_v46  ;;  %v7672_v36 = vpop.eup %7671  ;;  %v1293_v28 = vsel %vm1286_vm13, %v1289_v53, %v1292_v23  ;;  %v2006_v3 = vsel %vm1921_vm8, %v2005_v31, %v9352_v62  ;;  %v1901_v20 = vsub.s32 4, %v9268_v56 }
 0x31e   :  { %7693 = vsinq.f32 %v1903_v46  ;;  %v7674_v45 = vpop.eup %7673  ;;  %vm1283_vm7 = vweird.f32 %v8788_v27  ;;  %v1600_v48 = vxor.u32 2147483648, %v7670_v34  ;;  %v1603_v25 = vxor.u32 2147483648, %v7668_v29 }
 0x31f   :  { %v1804_v2 = vadd.s32 3, %v1800_v57  ;;  %v7676_v51 = vpop.eup %7675  ;;  %vm1598_vm9 = vcmp.lt.s32.totalorder %v1597_v9, 2  ;;  %vm1599_vm10 = vcmp.eq.s32.totalorder %v1597_v9, 0  ;;  %v1493_v40 = vand.u32 3, %v1492_v7 }
 0x320   :  { %v1696_v50 = vsel %vm9475_vm5, 0, %v1694_v42  ;;  %vm1390_vm4 = vcmp.lt.s32.totalorder %v9535_v11, 2  ;;  %v1294_v62 = vsel %vm1283_vm7, nan, %v1293_v28  ;;  %vm1595_vm8 = vweird.f32 %v8855_v32  ;;  %v3583_v28 = vld [vmem:[%s13377_s1 + $0x70] sm:$0xff]  ;;  %v3582_v32 = vld [vmem:[%s13377_s1 + $0x68] sm:$0xff] }
 0x321   :  { %v7678_v5 = vpop.eup %7677  ;;  %vm1602_vm6 = vcmp.eq.s32.totalorder %v1597_v9, 2  ;;  %v2008_v27 = vsel %vm9484_vm12, 0, %v2006_v3  ;;  %vm1387_vm11 = vweird.f32 %v13549_v4  ;;  %vm1391_vm14 = vcmp.eq.s32.totalorder %v9535_v11, 0  ;;  %v3581_v4 = vld [vmem:[%s13377_s1 + $0x60] sm:$0xff] }
 0x322   :  { %v9552_v12 = vpop.eup %7679  ;;  %v1496_v0 = vxor.u32 2147483648, %v7674_v45  ;;  %v1499_v17 = vxor.u32 2147483648, %v7672_v36  ;;  %v1902_v55 = vsel %vm1817_vm15, %v1901_v20, %v9268_v56  ;;  %v1601_v19 = vsel %vm1599_vm10, %v7668_v29, %v1600_v48 }
 0x323   :  { %v7682_v6 = vpop.eup %7681  ;;  %v1604_v21 = vsel %vm1602_vm6, %v1603_v25, %v7670_v34  ;;  %v1805_v41 = vand.u32 3, %v1804_v2  ;;  %v1700_v22 = vadd.s32 3, %v1696_v50  ;;  %vm1394_vm5 = vcmp.eq.s32.totalorder %v9535_v11, 2  ;;  %v3580_v25 = vld [vmem:[%s13377_s1 + $0x58] sm:$0xff] }
 0x324   :  { %v7684_v30 = vpop.eup %7683  ;;  %vm1494_vm12 = vcmp.lt.s32.totalorder %v1493_v40, 2  ;;  %v1811_v8 = vxor.u32 2147483648, %v7676_v51  ;;  %v2012_v54 = vadd.s32 3, %v2008_v27  ;;  %vm1495_vm2 = vcmp.eq.s32.totalorder %v1493_v40, 0 }
 0x325   :  { %v7686_v39 = vpop.eup %7685  ;;  %vm1498_vm3 = vcmp.eq.s32.totalorder %v1493_v40, 2  ;;  %v1808_v10 = vxor.u32 2147483648, %v7678_v5  ;;  %v1904_v61 = vsel %vm9522_vm1, 0, %v1902_v55  ;;  %v1605_v63 = vsel %vm1598_vm9, %v1601_v19, %v1604_v21  ;;  %v3575_v19 = vld [vmem:[%s13377_s1 + $0x30] sm:$0xff] }
 0x326   :  { %v7688_v56 = vpop.eup %7687  ;;  %v1395_v43 = vxor.u32 2147483648, %v7686_v39  ;;  %v1497_v38 = vsel %vm1495_vm2, %v7672_v36, %v1496_v0  ;;  %v1500_v13 = vsel %vm1498_vm3, %v1499_v17, %v7674_v45  ;;  %vm1807_vm15 = vcmp.eq.s32.totalorder %v1805_v41, 0 }
 0x327   :  { %v7690_v47 = vpop.eup %7689  ;;  %v1392_v49 = vxor.u32 2147483648, %v7688_v56  ;;  %vm1810_vm13 = vcmp.eq.s32.totalorder %v1805_v41, 2  ;;  %v1701_v24 = vand.u32 3, %v1700_v22  ;;  %v2013_v35 = vand.u32 3, %v2012_v54  ;;  %v3574_v22 = vld [vmem:[%s13377_s1 + $0x28] sm:$0xff] }
 0x328   :  { %v1396_v26 = vsel %vm1394_vm5, %v1395_v43, %v7688_v56  ;;  %v1812_v37 = vsel %vm1810_vm13, %v1811_v8, %v7678_v5  ;;  %v1908_v31 = vadd.s32 3, %v1904_v61  ;;  %v1809_v46 = vsel %vm1807_vm15, %v7676_v51, %v1808_v10  ;;  %v3579_v5 = vld [vmem:[%s13377_s1 + $0x50] sm:$0xff]  ;;  %v3569_v10 = vld [vmem:[%s13377_s1] sm:$0xff]  ;;  %v3566_v56 = vld [vmem:[%s13376_s0 + $0x28] sm:$0xff] }
 0x329   :  { %v1393_v16 = vsel %vm1391_vm14, %v7686_v39, %v1392_v49  ;;  %v2016_v29 = vxor.u32 2147483648, %v7684_v30  ;;  %v2019_v53 = vxor.u32 2147483648, %v7682_v6  ;;  %v1606_v9 = vsel %vm1595_vm8, nan, %v1605_v63  ;;  %v3571_v8 = vld [vmem:[%s13377_s1 + $0x10] sm:$0xff]  ;;  %v3570_v39 = vld [vmem:[%s13377_s1 + $0x8] sm:$0xff]  ;;  %v3568_v63 = vld [vmem:[%s13376_s0 + $0x38] sm:$0xff] }
 0x32a   :  { %v7692_v23 = vpop.eup %7691  ;;  %v1397_v34 = vsel %vm1390_vm4, %v1393_v16, %v1396_v26  ;;  %v1704_v7 = vxor.u32 2147483648, %v7690_v47  ;;  %v1707_v57 = vxor.u32 2147483648, %v9552_v12  ;;  %v1501_v3 = vsel %vm1494_vm12, %v1497_v38, %v1500_v13  ;;  %v3567_v43 = vld [vmem:[%s13376_s0 + $0x30] sm:$0xff]  ;;  %v2087_v38 = vld [vmem:[%s13382_s6] sm:$0x3]  ;;  %v13579_v49 = vld [vmem:[#allocation9_spill] sm:$0xff] }
 0x32b   :  { %v7694_v42 = vpop.eup %7693  ;;  %v1398_v36 = vsel %vm1387_vm11, nan, %v1397_v34  ;;  %vm1803_vm1 = vweird.f32 %v13548_v33  ;;  %vm1806_vm7 = vcmp.lt.s32.totalorder %v1805_v41, 2  ;;  %vm1703_vm9 = vcmp.eq.s32.totalorder %v1701_v24, 0  ;;  %v3576_v33 = vld [vmem:[%s13377_s1 + $0x38] sm:$0xff]  ;;  %v13578_v13 = vld [vmem:[#allocation8_spill] sm:$0xff] }
 0x32c   :  { %2163 = vmatprep.mubr.f32.mxu0 %v1398_v36  ;;  %v1813_v11 = vsel %vm1806_vm7, %v1809_v46, %v1812_v37  ;;  %vm2015_vm10 = vcmp.eq.s32.totalorder %v2013_v35, 0  ;;  %vm2018_vm4 = vcmp.eq.s32.totalorder %v2013_v35, 2  ;;  %vm1706_vm8 = vcmp.eq.s32.totalorder %v1701_v24, 2 }
 0x32d   :  { %2164 = vmatmul.mubr.f32.vlgmr.msra.gmra.mxu0 %v1294_v62  ;;  %v2017_v20 = vsel %vm2015_vm10, %v7682_v6, %v2016_v29  ;;  %v2020_v45 = vsel %vm2018_vm4, %v2019_v53, %v7684_v30  ;;  %v1909_v48 = vand.u32 3, %v1908_v31  ;;  %v1705_v2 = vsel %vm1703_vm9, %v9552_v12, %v1704_v7  ;;  %v3578_v12 = vld [vmem:[%s13377_s1 + $0x48] sm:$0xff] }
 0x32e   :  { %3626 = vmatpush1.msra.mxu0 %v3583_v28  ;;  %2169 = vmatprep.mubr.f32.mxu0 %v1606_v9  ;;  %v1708_v51 = vsel %vm1706_vm8, %v1707_v57, %v7690_v47  ;;  %v1912_v40 = vxor.u32 2147483648, %v7694_v42  ;;  %v1915_v50 = vxor.u32 2147483648, %v7692_v23  ;;  %vm1491_vm6 = vweird.f32 %v8834_v44  ;;  %v3577_v44 = vld [vmem:[%s13377_s1 + $0x40] sm:$0xff] }
 0x32f   :  { %3627 = vmatprep.subr.mxu0 %v3582_v32  ;;  %v1814_v62 = vsel %vm1803_vm1, nan, %v1813_v11  ;;  %vm2014_vm11 = vcmp.lt.s32.totalorder %v2013_v35, 2  ;;  %v1502_v27 = vsel %vm1491_vm6, nan, %v1501_v3  ;;  %vm1702_vm14 = vcmp.lt.s32.totalorder %v1701_v24, 2 }
 0x330   :  { %3628 = vmatpush1.msra.mxu0 %v3581_v4  ;;  %v2021_v0 = vsel %vm2014_vm11, %v2017_v20, %v2020_v45  ;;  %v1709_v17 = vsel %vm1702_vm14, %v1705_v2, %v1708_v51  ;;  %vm1911_vm5 = vcmp.eq.s32.totalorder %v1909_v48, 0  ;;  %vm1914_vm12 = vcmp.eq.s32.totalorder %v1909_v48, 2 }
 0x331   :  { %3629 = vmatprep.subr.mxu0 %v3580_v25  ;;  %2170 = vmatmul.mubr.f32.gmra.mxu0 %v1502_v27  ;;  %vm2011_vm2 = vweird.f32 %v13553_v1  ;;  %v1913_v55 = vsel %vm1911_vm5, %v7692_v23, %v1912_v40  ;;  %v1916_v6 = vsel %vm1914_vm12, %v1915_v50, %v7694_v42  ;;  %vm1699_vm3 = vweird.f32 %v13547_v59  ;;  %v3573_v1 = vld [vmem:[%s13377_s1 + $0x20] sm:$0xff]  ;;  %v3572_v59 = vld [vmem:[%s13377_s1 + $0x18] sm:$0xff] }
 0x332   :  { %3630 = vmatpush1.msra.mxu0 %v3579_v5  ;;  %2175 = vmatprep.mubr.f32.mxu0 %v1814_v62  ;;  %v2022_v21 = vsel %vm2011_vm2, nan, %v2021_v0  ;;  %v1710_v41 = vsel %vm1699_vm3, nan, %v1709_v17  ;;  %vm1910_vm15 = vcmp.lt.s32.totalorder %v1909_v48, 2  ;;  %vm1907_vm13 = vweird.f32 %v13571_v58  ;;  %v3565_v58 = vld [vmem:[%s13376_s0 + $0x20] sm:$0xff] }
 0x333   :  { %3631 = vmatprep.subr.mxu0 %v3578_v12  ;;  %v1917_v30 = vsel %vm1910_vm15, %v1913_v55, %v1916_v6  ;;  %v13577_v61 = vmov 0.0   ;;  %v9653_v47 = vrot.slane %v2087_v38, %v13578_v13  ;;  %v9656_v24 = vrot.slane %v2087_v38, %v13579_v49 }
 0x334   :  { %3632 = vmatpush1.msra.mxu0 %v3577_v44  ;;  %v1918_v54 = vsel %vm1907_vm13, nan, %v1917_v30  ;;  %v13582_v30 = vmov 1326507024  }
 0x335   :  { %3633 = vmatprep.subr.mxu0 %v3576_v33  ;;  %2176 = vmatmul.mubr.f32.gmra.mxu0 %v1710_v41 }
 0x336   :  { %3634 = vmatpush1.msra.mxu0 %v3575_v19  ;;  %2181 = vmatprep.mubr.f32.mxu0 %v2022_v21 }
 0x337   :  { %3635 = vmatprep.subr.mxu0 %v3574_v22 }
 0x338   :  { %3636 = vmatpush1.msra.mxu0 %v3573_v1 }
 0x339   :  { %3637 = vmatprep.subr.mxu0 %v3572_v59  ;;  %2182 = vmatmul.mubr.f32.gmra.mxu0 %v1918_v54 }
 0x33a   :  { %3638 = vmatpush1.msra.mxu0 %v3571_v8  ;;  %3673 = vmatprep.mubr.f32.mxu0 %v13577_v61 }
 0x33b   :  { %3639 = vmatprep.subr.mxu0 %v3570_v39 }
 0x33c   :  { %3640 = vmatpush1.msra.mxu0 %v3569_v10 }
 0x33d   :  { %7191 = vmatmul.mubr.msk.f32.vlgmr.msra.gmra.mxu0 %vm92_vm0, %v3565_v58 }
 0x33e   :  { %3679 = vmatprep.mubr.f32.mxu0 %v13577_v61 }
 0x341   :  { %7192 = vmatmul.mubr.msk.f32.gmra.mxu0 %vm92_vm0, %v3566_v56 }
 0x342   :  { %3685 = vmatprep.mubr.f32.mxu0 %v13577_v61 }
 0x345   :  { %7193 = vmatmul.mubr.msk.f32.gmra.mxu0 %vm92_vm0, %v3567_v43 }
 0x346   :  { %3691 = vmatprep.mubr.f32.mxu0 %v13577_v61 }
 0x349   :  { %7194 = vmatmul.mubr.msk.f32.gmra.mxu0 %vm92_vm0, %v3568_v63 }
 0x3ed   :  { %v2165_v26 = vpop.f32.mrf.mxu0 }
 0x3ee   :  { %v9659_v37 = vadd.f32 %v2165_v26, %v9653_v47 }
 0x3ef   :  { %v2167_v35 = vpop.f32.mrf.mxu0 }
 0x3f0   :  { %v2188_v31 = vand.u32 2147483647, %v9659_v37  ;;  %v2191_v16 = vand.u32 2139095040, %v9659_v37  ;;  %v9664_v46 = vadd.f32 %v2167_v35, %v9656_v24 }
 0x3f1   :  { %v2171_v29 = vpop.f32.mrf.mxu0 }
 0x3f2   :  { %v2192_v53 = vshrl.u32 %v2191_v16, 23  ;;  %v2195_v23 = vand.u32 8388607, %v2188_v31  ;;  %v13443_v34 = vand.u32 2147483647, %v9664_v46  ;;  %v2295_v9 = vand.u32 2139095040, %v9664_v46 }
 0x3f3   :  { %v9671_v7 = vadd.f32 %v2171_v29, %v9653_v47  ;;  %v2173_v42 = vpop.f32.mrf.mxu0 }
 0x3f4   :  { %v7142_v57 = vadd.s32 4294967169, %v2192_v53  ;;  %v2296_v36 = vshrl.u32 %v2295_v9, 23  ;;  %v2299_v28 = vand.u32 8388607, %v13443_v34  ;;  %v2196_v11 = vor.u32 8388608, %v2195_v23 }
 0x3f5   :  { %13580 = vst [vmem:[#allocation12_spill] sm:$0xff] %v9671_v7  ;;  %v2399_v32 = vand.u32 2139095040, %v9671_v7  ;;  %v9677_v45 = vadd.f32 %v2173_v42, %v9656_v24  ;;  %v13439_v50 = vand.u32 2147483647, %v9671_v7 }
 0x3f6   :  { %v2198_v3 = vadd.s32 1, %v7142_v57  ;;  %v7146_v4 = vadd.s32 4294967169, %v2296_v36  ;;  %v2300_v20 = vor.u32 8388608, %v2299_v28  ;;  %v9680_v5 = vshll.u32 %v2196_v11, 8 }
 0x3f7   :  { %13581 = vst [vmem:[#allocation11_spill] sm:$0xff] %v9677_v45  ;;  %v2400_v48 = vshrl.u32 %v2399_v32, 23  ;;  %v2503_v12 = vand.u32 2139095040, %v9677_v45 }
 0x3f8   :  { %vm2199_vm0 = vcmp.gt.s32.totalorder %v2198_v3, 0  ;;  %v2302_v2 = vadd.s32 1, %v7146_v4  ;;  %v9682_v62 = vshll.u32 %v2300_v20, 8 }
 0x3f9   :  { %v2200_v25 = vsel %vm2199_vm0, %v2198_v3, 0  ;;  %v9684_v27 = vadd.s32 4294967169, %v2400_v48 }
 0x3fa   :  { %v2201_v51 = vshrl.u32 %v2200_v25, 5  ;;  %v2202_v40 = vand.u32 31, %v2200_v25  ;;  %vm2303_vm1 = vcmp.gt.s32.totalorder %v2302_v2, 0 }
 0x3fb   :  { %v2304_v10 = vsel %vm2303_vm1, %v2302_v2, 0 }
 0x3fc   :  { %v2203_v0 = vsub.s32 32, %v2202_v40  ;;  %v2205_v44 = vshll.u32 %v13534_v18, %v2202_v40  ;;  %v2208_v17 = vshll.u32 %v13536_v14, %v2202_v40  ;;  %v2211_v33 = vshll.u32 %v13537_v15, %v2202_v40 }
 0x3fd   :  { %v2214_v55 = vshll.u32 %v13538_v52, %v2202_v40  ;;  %v2217_v6 = vshll.u32 %v13539_v60, %v2202_v40  ;;  %vm2220_vm7 = vcmp.lt.s32.totalorder %v2201_v51, 1  ;;  %vm2221_vm9 = vcmp.lt.s32.totalorder %v2201_v51, 2 }
 0x3fe   :  { %v2206_v19 = vshrl.u32 %v13536_v14, %v2203_v0  ;;  %v2209_v21 = vshrl.u32 %v13537_v15, %v2203_v0  ;;  %v2212_v41 = vshrl.u32 %v13538_v52, %v2203_v0  ;;  %v2204_v22 = vshrl.u32 %v13534_v18, %v2203_v0 }
 0x3ff   :  { %v2215_v1 = vshrl.u32 %v13539_v60, %v2203_v0  ;;  %v2218_v59 = vshrl.u32 %v13582_v30, %v2203_v0  ;;  %vm2222_vm10 = vcmp.lt.s32.totalorder %v2201_v51, 3  ;;  %vm2223_vm4 = vcmp.lt.s32.totalorder %v2201_v51, 4 }
 0x400   :  { %v2207_v8 = vor.u32 %v2206_v19, %v2205_v44  ;;  %v2210_v54 = vor.u32 %v2209_v21, %v2208_v17  ;;  %v2213_v39 = vor.u32 %v2212_v41, %v2211_v33  ;;  %v2306_v56 = vand.u32 31, %v2304_v10 }
 0x401   :  { %v2216_v61 = vor.u32 %v2215_v1, %v2214_v55  ;;  %v2219_v58 = vor.u32 %v2218_v59, %v2217_v6  ;;  %v2305_v42 = vshrl.u32 %v2304_v10, 5 }
 0x402   :  { %v2224_v43 = vsel %vm2220_vm7, %v2204_v22, %v2207_v8  ;;  %v2225_v63 = vsel %vm2223_vm4, %v2213_v39, 2102212464  ;;  %v2228_v38 = vsel %vm2220_vm7, %v2207_v8, %v2210_v54  ;;  %v2232_v26 = vsel %vm2220_vm7, %v2210_v54, %v2213_v39 }
 0x403   :  { %v2226_v35 = vsel %vm2222_vm10, %v2210_v54, %v2225_v63  ;;  %v2229_v16 = vsel %vm2223_vm4, %v2216_v61, 920167782  ;;  %v2233_v29 = vsel %vm2223_vm4, %v2219_v58, 1326507024  ;;  %v2307_v53 = vsub.s32 32, %v2306_v56 }
 0x404   :  { %v2227_v23 = vsel %vm2221_vm9, %v2224_v43, %v2226_v35  ;;  %v2230_v9 = vsel %vm2222_vm10, %v2213_v39, %v2229_v16  ;;  %v2234_v57 = vsel %vm2222_vm10, %v2216_v61, %v2233_v29  ;;  %v2309_v32 = vshll.u32 %v13534_v18, %v2306_v56 }
 0x405   :  { %v2231_v36 = vsel %vm2221_vm9, %v2228_v38, %v2230_v9  ;;  %v2235_v28 = vsel %vm2221_vm9, %v2232_v26, %v2234_v57  ;;  %v2243_v3 = vmul.u32 %v9680_v5, %v2227_v23  ;;  %v2308_v25 = vshrl.u32 %v13534_v18, %v2307_v53 }
 0x406   :  { %v9711_v11 = vmul.u32.u64.low %v9680_v5, %v2235_v28  ;;  %v9712_v4 = vmul.u32.u64.high %v9680_v5, %v2235_v28, %v9711_v11  ;;  %v9715_v20 = vmul.u32.u64.low %v9680_v5, %v2231_v36  ;;  %v9716_v48 = vmul.u32.u64.high %v9680_v5, %v2231_v36, %v9715_v20 }
 0x407   :  { %v2310_v2 = vshrl.u32 %v13536_v14, %v2307_v53  ;;  %v2312_v51 = vshll.u32 %v13536_v14, %v2306_v56  ;;  %v2313_v40 = vshrl.u32 %v13537_v15, %v2307_v53  ;;  %v2315_v0 = vshll.u32 %v13537_v15, %v2306_v56 }
 0x408   :  { %v2316_v44 = vshrl.u32 %v13538_v52, %v2307_v53  ;;  %v2318_v17 = vshll.u32 %v13538_v52, %v2306_v56  ;;  %v2319_v33 = vshrl.u32 %v13539_v60, %v2307_v53  ;;  %v2321_v6 = vshll.u32 %v13539_v60, %v2306_v56 }
 0x409   :  { %v2311_v55 = vor.u32 %v2310_v2, %v2309_v32  ;;  %v2314_v5 = vor.u32 %v2313_v40, %v2312_v51  ;;  %v2322_v19 = vshrl.u32 %v13582_v30, %v2307_v53  ;;  %vm2245_vm8 = vc.u32 %v9712_v4, %v9715_v20 }
 0x40a   :  { %v2246_v21 = vadd.s32 1, %v9716_v48  ;;  %v2317_v41 = vor.u32 %v2316_v44, %v2315_v0  ;;  %vm2324_vm6 = vcmp.lt.s32.totalorder %v2305_v42, 1  ;;  %v2320_v22 = vor.u32 %v2319_v33, %v2318_v17 }
 0x40b   :  { %v2323_v1 = vor.u32 %v2322_v19, %v2321_v6  ;;  %vm2325_vm11 = vcmp.lt.s32.totalorder %v2305_v42, 2  ;;  %vm2326_vm14 = vcmp.lt.s32.totalorder %v2305_v42, 3  ;;  %vm2327_vm5 = vcmp.lt.s32.totalorder %v2305_v42, 4 }
 0x40c   :  { %v2247_v59 = vsel %vm2245_vm8, %v2246_v21, %v9716_v48  ;;  %v2328_v8 = vsel %vm2324_vm6, %v2308_v25, %v2311_v55  ;;  %v2332_v54 = vsel %vm2324_vm6, %v2311_v55, %v2314_v5  ;;  %v2329_v10 = vsel %vm2327_vm5, %v2317_v41, 2102212464 }
 0x40d   :  { %v2248_v39 = vadd.s32 %v2247_v59, %v2243_v3  ;;  %v2333_v61 = vsel %vm2327_vm5, %v2320_v22, 920167782  ;;  %v2336_v58 = vsel %vm2324_vm6, %v2314_v5, %v2317_v41  ;;  %v2330_v56 = vsel %vm2326_vm14, %v2314_v5, %v2329_v10 }
 0x40e   :  { %v2334_v43 = vsel %vm2326_vm14, %v2317_v41, %v2333_v61  ;;  %v2337_v63 = vsel %vm2327_vm5, %v2323_v1, 1326507024  ;;  %v2406_v38 = vadd.s32 1, %v9684_v27  ;;  %v2504_v29 = vshrl.u32 %v2503_v12, 23 }
 0x40f   :  { %v2249_v26 = vadd.s32 536870912, %v2248_v39  ;;  %v2335_v35 = vsel %vm2325_vm11, %v2332_v54, %v2334_v43  ;;  %v2338_v16 = vsel %vm2326_vm14, %v2320_v22, %v2337_v63  ;;  %v2331_v53 = vsel %vm2325_vm11, %v2328_v8, %v2330_v56 }
 0x410   :  { %v2339_v23 = vsel %vm2325_vm11, %v2336_v58, %v2338_v16  ;;  %v9740_v9 = vmul.u32.u64.low %v9682_v62, %v2335_v35  ;;  %v9741_v57 = vmul.u32.u64.high %v9682_v62, %v2335_v35, %v9740_v9  ;;  %vm2407_vm12 = vcmp.gt.s32.totalorder %v2406_v38, 0 }
 0x411   :  { %v9744_v36 = vshrl.u32 %v2249_v26, 30  ;;  %v9747_v27 = vmul.u32.u64.low %v9682_v62, %v2339_v23  ;;  %v9748_v28 = vmul.u32.u64.high %v9682_v62, %v2339_v23, %v9747_v27  ;;  %v2408_v3 = vsel %vm2407_vm12, %v2406_v38, 0 }
 0x412   :  { %v2410_v12 = vand.u32 31, %v2408_v3  ;;  %v2347_v11 = vmul.u32 %v9682_v62, %v2331_v53  ;;  %v2350_v42 = vadd.s32 1, %v9741_v57  ;;  %v2403_v48 = vand.u32 8388607, %v13439_v50 }
 0x413   :  { %v2251_v32 = vshll.u32 %v9744_v36, 30  ;;  %v13440_v25 = vand.u32 2147483647, %v9677_v45  ;;  %vm2349_vm2 = vc.u32 %v9748_v28, %v9740_v9  ;;  %v7154_v40 = vadd.s32 4294967169, %v2504_v29 }
 0x414   :  { %v2411_v51 = vsub.s32 32, %v2410_v12  ;;  %v2351_v0 = vsel %vm2349_vm2, %v2350_v42, %v9741_v57  ;;  %v2409_v44 = vshrl.u32 %v2408_v3, 5  ;;  %v2413_v17 = vshll.u32 %v13534_v18, %v2410_v12 }
 0x415   :  { %v9756_v2 = vsub.s32 %v2248_v39, %v2251_v32  ;;  %v2416_v62 = vshll.u32 %v13536_v14, %v2410_v12  ;;  %v2352_v55 = vadd.s32 %v2351_v0, %v2347_v11  ;;  %v2419_v6 = vshll.u32 %v13537_v15, %v2410_v12 }
 0x416   :  { %v2414_v5 = vshrl.u32 %v13536_v14, %v2411_v51  ;;  %v2417_v19 = vshrl.u32 %v13537_v15, %v2411_v51  ;;  %v2420_v21 = vshrl.u32 %v13538_v52, %v2411_v51  ;;  %v2422_v41 = vshll.u32 %v13538_v52, %v2410_v12 }
 0x417   :  { %v2254_v33 = vsub.s32 0, %v9756_v2  ;;  %v2423_v22 = vshrl.u32 %v13539_v60, %v2411_v51  ;;  %v2353_v59 = vadd.s32 536870912, %v2352_v55  ;;  %v2425_v54 = vshll.u32 %v13539_v60, %v2410_v12 }
 0x418   :  { %v2415_v8 = vor.u32 %v2414_v5, %v2413_v17  ;;  %v2418_v39 = vor.u32 %v2417_v19, %v2416_v62  ;;  %v2421_v10 = vor.u32 %v2420_v21, %v2419_v6  ;;  %v2426_v58 = vshrl.u32 %v13582_v30, %v2411_v51  ;;  %v2177_v19 = vpop.f32.mrf.mxu0 }
 0x419   :  { %v7143_v1 = vmin.u32 %v2254_v33, %v9756_v2  ;;  %v2424_v61 = vor.u32 %v2423_v22, %v2422_v41  ;;  %v9773_v43 = vshrl.u32 %v2353_v59, 30  ;;  %v2404_v63 = vor.u32 8388608, %v2403_v48 }
 0x41a   :  { %v2510_v38 = vadd.s32 1, %v7154_v40  ;;  %v2427_v26 = vor.u32 %v2426_v58, %v2425_v54  ;;  %vm2428_vm3 = vcmp.lt.s32.totalorder %v2409_v44, 1  ;;  %vm2429_vm15 = vcmp.lt.s32.totalorder %v2409_v44, 2 }
 0x41b   :  { %v2256_v56 = vclz %v7143_v1  ;;  %vm2430_vm13 = vcmp.lt.s32.totalorder %v2409_v44, 3  ;;  %v2355_v16 = vshll.u32 %v9773_v43, 30  ;;  %vm2431_vm0 = vcmp.lt.s32.totalorder %v2409_v44, 4 }
 0x41c   :  { %v2436_v29 = vsel %vm2428_vm3, %v2415_v8, %v2418_v39  ;;  %v2412_v53 = vshrl.u32 %v13534_v18, %v2411_v51  ;;  %v2433_v23 = vsel %vm2431_vm0, %v2421_v10, 2102212464  ;;  %v2437_v57 = vsel %vm2431_vm0, %v2424_v61, 920167782 }
 0x41d   :  { %v7144_v35 = vadd.s32 4294967294, %v2256_v56  ;;  %v2441_v27 = vsel %vm2431_vm0, %v2427_v26, 1326507024  ;;  %v9778_v3 = vsub.s32 %v2352_v55, %v2355_v16  ;;  %v2438_v32 = vsel %vm2430_vm13, %v2421_v10, %v2437_v57 }
 0x41e   :  { %v2440_v12 = vsel %vm2428_vm3, %v2418_v39, %v2421_v10  ;;  %v2439_v42 = vsel %vm2429_vm15, %v2436_v29, %v2438_v32  ;;  %v2442_v48 = vsel %vm2430_vm13, %v2424_v61, %v2441_v27  ;;  %v2444_v40 = vshll.u32 %v2404_v63, 8 }
 0x41f   :  { %vm7145_vm1 = vcmp.lt.s32.totalorder %v7144_v35, 0  ;;  %v2358_v17 = vsub.s32 0, %v9778_v3  ;;  %v2432_v51 = vsel %vm2428_vm3, %v2412_v53, %v2415_v8  ;;  %v2434_v62 = vsel %vm2430_vm13, %v2418_v39, %v2433_v23 }
 0x420   :  { %v2259_v11 = vsel %vm7145_vm1, 0, %v7144_v35  ;;  %v2443_v33 = vsel %vm2429_vm15, %v2440_v12, %v2442_v48  ;;  %v9788_v55 = vmul.u32.u64.low %v2444_v40, %v2439_v42  ;;  %v9789_v5 = vmul.u32.u64.high %v2444_v40, %v2439_v42, %v9788_v55 }
 0x421   :  { %v2264_v0 = vsub.s32 4294967266, %v2259_v11  ;;  %vm2511_vm7 = vcmp.gt.s32.totalorder %v2510_v38, 0  ;;  %v9792_v21 = vmul.u32.u64.low %v2444_v40, %v2443_v33  ;;  %v9793_v41 = vmul.u32.u64.high %v2444_v40, %v2443_v33, %v9792_v21 }
 0x422   :  { %v2512_v6 = vsel %vm2511_vm7, %v2510_v38, 0  ;;  %v2435_v59 = vsel %vm2429_vm15, %v2432_v51, %v2434_v62  ;;  %v2507_v8 = vand.u32 8388607, %v13440_v25  ;;  %v7147_v54 = vmin.u32 %v2358_v17, %v9778_v3 }
 0x423   :  { %v2514_v22 = vand.u32 31, %v2512_v6  ;;  %v2265_v1 = vadd.s32 127, %v2264_v0  ;;  %v2454_v39 = vadd.s32 1, %v9789_v5  ;;  %v9801_v61 = vadd.f32 %v2177_v19, %v9653_v47 }
 0x424   :  { %v2260_v58 = vsub.s32 32, %v2259_v11  ;;  %v2451_v56 = vmul.u32 %v2444_v40, %v2435_v59  ;;  %vm2453_vm9 = vc.u32 %v9793_v41, %v9788_v55  ;;  %v2244_v44 = vadd.s32 %v9715_v20, %v9712_v4 }
 0x425   :  { %v2515_v10 = vsub.s32 32, %v2514_v22  ;;  %v2266_v63 = vshll.u32 %v2265_v1, 23  ;;  %v2455_v38 = vsel %vm2453_vm9, %v2454_v39, %v9789_v5  ;;  %v2508_v26 = vor.u32 8388608, %v2507_v8 }
 0x426   :  { %v2360_v35 = vclz %v7147_v54  ;;  %v2456_v16 = vadd.s32 %v2455_v38, %v2451_v56  ;;  %v2607_v53 = vand.u32 2139095040, %v9801_v61  ;;  %v2261_v23 = vshll.u32 %v9756_v2, %v2259_v11 }
 0x427   :  { %v2518_v29 = vshrl.u32 %v13536_v14, %v2515_v10  ;;  %v2262_v57 = vshrl.u32 %v2244_v44, %v2260_v58  ;;  %v2521_v27 = vshrl.u32 %v13537_v15, %v2515_v10  ;;  %v2524_v32 = vshrl.u32 %v13538_v52, %v2515_v10 }
 0x428   :  { %v2457_v12 = vadd.s32 536870912, %v2456_v16  ;;  %v2513_v42 = vshrl.u32 %v2512_v6, 5  ;;  %v2517_v4 = vshll.u32 %v13534_v18, %v2514_v22  ;;  %v2520_v20 = vshll.u32 %v13536_v14, %v2514_v22 }
 0x429   :  { %v2267_v48 = vor.u32 4788187, %v2266_v63  ;;  %v2523_v40 = vshll.u32 %v13537_v15, %v2514_v22  ;;  %v2526_v0 = vshll.u32 %v13538_v52, %v2514_v22  ;;  %v2527_v17 = vshrl.u32 %v13539_v60, %v2515_v10 }
 0x42a   :  { %v7148_v51 = vadd.s32 4294967294, %v2360_v35  ;;  %v9818_v2 = vshrl.u32 %v2457_v12, 30  ;;  %v2519_v11 = vor.u32 %v2518_v29, %v2517_v4  ;;  %v2530_v62 = vshrl.u32 %v13582_v30, %v2515_v10 }
 0x42b   :  { %v2522_v33 = vor.u32 %v2521_v27, %v2520_v20  ;;  %v2525_v5 = vor.u32 %v2524_v32, %v2523_v40  ;;  %v2528_v6 = vor.u32 %v2527_v17, %v2526_v0  ;;  %v2529_v19 = vshll.u32 %v13539_v60, %v2514_v22 }
 0x42c   :  { %13583 = vst [vmem:[#allocation14_spill] sm:$0xff] %v9818_v2  ;;  %v2263_v21 = vor.u32 %v2262_v57, %v2261_v23  ;;  %v2459_v1 = vshll.u32 %v9818_v2, 30  ;;  %v2548_v59 = vshll.u32 %v2508_v26, 8  ;;  %v2268_v8 = vand.u32 2147483647, %v2267_v48 }
 0x42d   :  { %v2516_v54 = vshrl.u32 %v13534_v18, %v2515_v10  ;;  %v2531_v39 = vor.u32 %v2530_v62, %v2529_v19  ;;  %v2608_v58 = vshrl.u32 %v2607_v53, 23  ;;  %vm7149_vm10 = vcmp.lt.s32.totalorder %v7148_v51, 0  ;;  %v9849_v19 = vld [vmem:[%s13378_s2] sm:$0x3] }
 0x42e   :  { %v9824_v56 = vsub.s32 %v2456_v16, %v2459_v1  ;;  %vm2532_vm4 = vcmp.lt.s32.totalorder %v2513_v42, 1  ;;  %vm2535_vm8 = vcmp.lt.s32.totalorder %v2513_v42, 4  ;;  %vm2534_vm6 = vcmp.lt.s32.totalorder %v2513_v42, 3 }
 0x42f   :  { %v2537_v44 = vsel %vm2535_vm8, %v2525_v5, 2102212464  ;;  %v2540_v63 = vsel %vm2532_vm4, %v2519_v11, %v2522_v33  ;;  %v2541_v38 = vsel %vm2535_vm8, %v2528_v6, 920167782  ;;  %vm2533_vm11 = vcmp.lt.s32.totalorder %v2513_v42, 2 }
 0x430   :  { %v2462_v22 = vsub.s32 0, %v9824_v56  ;;  %v2542_v35 = vsel %vm2534_vm6, %v2525_v5, %v2541_v38  ;;  %v2544_v29 = vsel %vm2532_vm4, %v2522_v33, %v2525_v5  ;;  %v2536_v26 = vsel %vm2532_vm4, %v2516_v54, %v2519_v11 }
 0x431   :  { %v2538_v23 = vsel %vm2534_vm6, %v2522_v33, %v2537_v44  ;;  %v2543_v10 = vsel %vm2533_vm11, %v2540_v63, %v2542_v35  ;;  %v2545_v57 = vsel %vm2535_vm8, %v2531_v39, 1326507024  ;;  %v9834_v12 = vsel %vm7149_vm10, 0, %v7148_v51 }
 0x432   :  { %v7151_v53 = vmin.u32 %v2462_v22, %v9824_v56  ;;  %v2546_v16 = vsel %vm2534_vm6, %v2528_v6, %v2545_v57  ;;  %v9829_v27 = vmul.u32.u64.low %v2548_v59, %v2543_v10  ;;  %v9830_v32 = vmul.u32.u64.high %v2548_v59, %v2543_v10, %v9829_v27 }
 0x433   :  { %v2547_v4 = vsel %vm2533_vm11, %v2544_v29, %v2546_v16  ;;  %v13438_v20 = vand.u32 2147483647, %v9801_v61  ;;  %v7158_v48 = vadd.s32 4294967169, %v2608_v58  ;;  %v2270_v40 = vcvt.s32.f32 %v2263_v21  ;;  %v2179_v58 = vpop.f32.mrf.mxu0 }
 0x434   :  { %v2464_v0 = vclz %v7151_v53  ;;  %v9838_v17 = vmul.u32.u64.low %v2548_v59, %v2547_v4  ;;  %v9839_v11 = vmul.u32.u64.high %v2548_v59, %v2547_v4, %v9838_v17  ;;  %v2539_v62 = vsel %vm2533_vm11, %v2536_v26, %v2538_v23 }
 0x435   :  { %v2614_v33 = vadd.s32 1, %v7158_v48  ;;  %v9842_v5 = vmul.f32 %v2270_v40, %v2268_v8  ;;  %v2364_v6 = vsub.s32 32, %v9834_v12  ;;  %v2558_v51 = vadd.s32 1, %v9830_v32  ;;  %v2183_v16 = vpop.f32.mrf.mxu0 }
 0x436   :  { %v2348_v21 = vadd.s32 %v9740_v9, %v9748_v28  ;;  %v2368_v1 = vsub.s32 4294967266, %v9834_v12  ;;  %v2611_v42 = vand.u32 8388607, %v13438_v20  ;;  %v7152_v8 = vadd.s32 4294967294, %v2464_v0 }
 0x437   :  { %vm2615_vm14 = vcmp.gt.s32.totalorder %v2614_v33, 0  ;;  %v2555_v54 = vmul.u32 %v2548_v59, %v2539_v62  ;;  %vm2557_vm5 = vc.u32 %v9839_v11, %v9829_v27  ;;  %v9861_v38 = vrot.slane %v9849_v19, %v13578_v13 }
 0x438   :  { %v2616_v39 = vsel %vm2615_vm14, %v2614_v33, 0  ;;  %v2559_v44 = vsel %vm2557_vm5, %v2558_v51, %v9830_v32  ;;  %v2272_v9 = vxor.u32 2147483648, %v9842_v5  ;;  %v2365_v28 = vshll.u32 %v9778_v3, %v9834_v12 }
 0x439   :  { %v2618_v63 = vand.u32 31, %v2616_v39  ;;  %v9866_v22 = vshrl.u32 %v2348_v21, %v2364_v6  ;;  %v2560_v59 = vadd.s32 %v2559_v44, %v2555_v54  ;;  %v9868_v35 = vadd.s32 127, %v2368_v1 }
 0x43a   :  { %v2612_v29 = vor.u32 8388608, %v2611_v42  ;;  %v9871_v23 = vadd.f32 %v2179_v58, %v9656_v24  ;;  %vm7153_vm12 = vcmp.lt.s32.totalorder %v7152_v8, 0  ;;  %v2617_v17 = vshrl.u32 %v2616_v39, 5 }
 0x43b   :  { %v2619_v26 = vsub.s32 32, %v2618_v63  ;;  %v2561_v10 = vadd.s32 536870912, %v2560_v59  ;;  %v2621_v57 = vshll.u32 %v13534_v18, %v2618_v63  ;;  %v2624_v53 = vshll.u32 %v13536_v14, %v2618_v63 }
 0x43c   :  { %v2627_v48 = vshll.u32 %v13537_v15, %v2618_v63  ;;  %v2630_v62 = vshll.u32 %v13538_v52, %v2618_v63  ;;  %v9884_v1 = vadd.f32 %v2183_v16, %v9653_v47  ;;  %vm2190_vm2 = vcmp.lt.s32.totalorder %v9659_v37, 0 }
 0x43d   :  { %v2622_v32 = vshrl.u32 %v13536_v14, %v2619_v26  ;;  %v2625_v4 = vshrl.u32 %v13537_v15, %v2619_v26  ;;  %v2628_v40 = vshrl.u32 %v13538_v52, %v2619_v26  ;;  %v9879_v0 = vshrl.u32 %v2561_v10, 30 }
 0x43e   :  { %v2631_v33 = vshrl.u32 %v13539_v60, %v2619_v26  ;;  %v2652_v58 = vshll.u32 %v2612_v29, 8  ;;  %v13442_v44 = vand.u32 2147483647, %v9871_v23  ;;  %v9890_v39 = vsel %vm7153_vm12, 0, %v7152_v8 }
 0x43f   :  { %13584 = vst [vmem:[#allocation10_spill] sm:$0xff] %v9879_v0  ;;  %v2623_v6 = vor.u32 %v2622_v32, %v2621_v57  ;;  %v2626_v51 = vor.u32 %v2625_v4, %v2624_v53  ;;  %v2629_v21 = vor.u32 %v2628_v40, %v2627_v48  ;;  %v2563_v42 = vshll.u32 %v9879_v0, 30  ;;  %v4532_v0 = vld [vmem:[#allocation2 + $0x10] sm:$0xff] }
 0x440   :  { %v2632_v54 = vor.u32 %v2631_v33, %v2630_v62  ;;  %v2633_v10 = vshll.u32 %v13539_v60, %v2618_v63  ;;  %v2634_v57 = vshrl.u32 %v13582_v30, %v2619_v26  ;;  %v2711_v53 = vand.u32 2139095040, %v9871_v23 }
 0x441   :  { %v9895_v32 = vsub.s32 %v2560_v59, %v2563_v42  ;;  %vm2636_vm3 = vcmp.lt.s32.totalorder %v2617_v17, 1  ;;  %vm2638_vm15 = vcmp.lt.s32.totalorder %v2617_v17, 3  ;;  %vm2639_vm13 = vcmp.lt.s32.totalorder %v2617_v17, 4 }
 0x442   :  { %vm9899_vm0 = vcmp.le.f32.partialorder %v2188_v31, 0.7853982  ;;  %v2635_v29 = vor.u32 %v2634_v57, %v2633_v10  ;;  %v2641_v8 = vsel %vm2639_vm13, %v2629_v21, 2102212464  ;;  %v2644_v16 = vsel %vm2636_vm3, %v2623_v6, %v2626_v51 }
 0x443   :  { %v2645_v63 = vsel %vm2639_vm13, %v2632_v54, 920167782  ;;  %v2566_v4 = vsub.s32 0, %v9895_v32  ;;  %v2620_v48 = vshrl.u32 %v13534_v18, %v2619_v26  ;;  %vm2637_vm1 = vcmp.lt.s32.totalorder %v2617_v17, 2 }
 0x444   :  { %v2646_v59 = vsel %vm2638_vm15, %v2629_v21, %v2645_v63  ;;  %v2472_v40 = vsub.s32 4294967266, %v9890_v39  ;;  %v2648_v31 = vsel %vm2636_vm3, %v2626_v51, %v2629_v21  ;;  %v2649_v33 = vsel %vm2639_vm13, %v2635_v29, 1326507024 }
 0x445   :  { %v2647_v62 = vsel %vm2637_vm1, %v2644_v16, %v2646_v59  ;;  %v7155_v42 = vmin.u32 %v2566_v4, %v9895_v32  ;;  %v2640_v10 = vsel %vm2636_vm3, %v2620_v48, %v2623_v6  ;;  %v2642_v57 = vsel %vm2638_vm15, %v2626_v51, %v2641_v8 }
 0x446   :  { %v2650_v20 = vsel %vm2638_vm15, %v2632_v54, %v2649_v33  ;;  %v9915_v50 = vmul.u32.u64.low %v2652_v58, %v2647_v62  ;;  %v9916_v25 = vmul.u32.u64.high %v2652_v58, %v2647_v62, %v9915_v50  ;;  %v2712_v63 = vshrl.u32 %v2711_v53, 23  ;;  %v2185_v33 = vpop.f32.mrf.mxu0 }
 0x447   :  { %v2651_v26 = vsel %vm2637_vm1, %v2648_v31, %v2650_v20  ;;  %v2370_v16 = vshll.u32 %v9868_v35, 23  ;;  %v2568_v59 = vclz %v7155_v42  ;;  %v2273_v6 = vsel %vm2190_vm2, %v2272_v9, %v9842_v5 }
 0x448   :  { %v9920_v21 = vmul.u32.u64.low %v2652_v58, %v2651_v26  ;;  %v9921_v29 = vmul.u32.u64.high %v2652_v58, %v2651_v26, %v9920_v21  ;;  %v2468_v51 = vsub.s32 32, %v9890_v39  ;;  %v2643_v54 = vsel %vm2637_vm1, %v2640_v10, %v2642_v57 }
 0x449   :  { %v7162_v20 = vadd.s32 4294967169, %v2712_v63  ;;  %v2452_v8 = vadd.s32 %v9788_v55, %v9793_v41  ;;  %v2473_v4 = vadd.s32 127, %v2472_v40  ;;  %v7156_v53 = vadd.s32 4294967294, %v2568_v59 }
 0x44a   :  { %v2715_v35 = vand.u32 8388607, %v13442_v44  ;;  %v9936_v48 = vor.u32 %v9866_v22, %v2365_v28  ;;  %v2662_v5 = vadd.s32 1, %v9916_v25  ;;  %v2815_v17 = vand.u32 2139095040, %v9884_v1 }
 0x44b   :  { %v2718_v9 = vadd.s32 1, %v7162_v20  ;;  %v9943_v55 = vsel %vm9899_vm0, %v9659_v37, %v2273_v6  ;;  %v9945_v41 = vor.u32 4788187, %v2370_v16  ;;  %v2659_v40 = vmul.u32 %v2652_v58, %v2643_v54 }
 0x44c   :  { %vm2661_vm7 = vc.u32 %v9921_v29, %v9915_v50  ;;  %v2470_v3 = vshrl.u32 %v2452_v8, %v2468_v51  ;;  %vm7157_vm9 = vcmp.lt.s32.totalorder %v7156_v53, 0  ;;  %v2474_v28 = vshll.u32 %v2473_v4, 23 }
 0x44d   :  { %v2663_v12 = vsel %vm2661_vm7, %v2662_v5, %v9916_v25  ;;  %vm2719_vm10 = vcmp.gt.s32.totalorder %v2718_v9, 0  ;;  %v2716_v62 = vor.u32 8388608, %v2715_v35  ;;  %v13441_v31 = vand.u32 2147483647, %v9884_v1 }
 0x44e   :  { %v2664_v22 = vadd.s32 %v2663_v12, %v2659_v40  ;;  %7695 = vcosq.f32 %v9943_v55  ;;  %v2469_v42 = vshll.u32 %v9824_v56, %v9890_v39  ;;  %v2720_v58 = vsel %vm2719_vm10, %v2718_v9, 0 }
 0x44f   :  { %v2816_v10 = vshrl.u32 %v2815_v17, 23  ;;  %v9956_v63 = vsel %vm7157_vm9, 0, %v7156_v53  ;;  %v9962_v59 = vadd.s32 %v9829_v27, %v9839_v11  ;;  %v2722_v21 = vand.u32 31, %v2720_v58 }
 0x450   :  { %v2665_v25 = vadd.s32 536870912, %v2664_v22  ;;  %v9958_v16 = vor.u32 %v2470_v3, %v2469_v42  ;;  %v9965_v6 = vadd.f32 %v2185_v33, %v9656_v24  ;;  %v9967_v56 = vor.u32 4788187, %v2474_v28 }
 0x451   :  { %v9971_v51 = vshll.u32 %v2716_v62, 8  ;;  %v9975_v54 = vand.u32 8388607, %v13441_v31  ;;  %v2572_v20 = vsub.s32 32, %v9956_v63  ;;  %v2576_v8 = vsub.s32 4294967266, %v9956_v63 }
 0x452   :  { %v9969_v39 = vshrl.u32 %v2665_v25, 30  ;;  %v2723_v27 = vsub.s32 32, %v2722_v21  ;;  %v7166_v11 = vadd.s32 4294967169, %v2816_v10  ;;  %v2721_v24 = vshrl.u32 %v2720_v58, 5 }
 0x453   :  { %v2725_v53 = vshll.u32 %v13534_v18, %v2722_v21  ;;  %v2728_v35 = vshll.u32 %v13536_v14, %v2722_v21  ;;  %v2731_v17 = vshll.u32 %v13537_v15, %v2722_v21  ;;  %v2734_v12 = vshll.u32 %v13538_v52, %v2722_v21 }
 0x454   :  { %13587 = vst [vmem:[#allocation18_spill] sm:$0xff] %v9969_v39  ;;  %v2667_v4 = vshll.u32 %v9969_v39, 30  ;;  %v2726_v5 = vshrl.u32 %v13536_v14, %v2723_v27  ;;  %v2729_v9 = vshrl.u32 %v13537_v15, %v2723_v27  ;;  %v2732_v40 = vshrl.u32 %v13538_v52, %v2723_v27 }
 0x455   :  { %v2735_v28 = vshrl.u32 %v13539_v60, %v2723_v27  ;;  %v2737_v62 = vshll.u32 %v13539_v60, %v2722_v21  ;;  %v2738_v10 = vshrl.u32 %v13582_v30, %v2723_v27  ;;  %v2820_v44 = vor.u32 8388608, %v9975_v54 }
 0x456   :  { %v9986_v3 = vsub.s32 %v2664_v22, %v2667_v4  ;;  %v2727_v33 = vor.u32 %v2726_v5, %v2725_v53  ;;  %v2730_v42 = vor.u32 %v2729_v9, %v2728_v35  ;;  %v2733_v58 = vor.u32 %v2732_v40, %v2731_v17 }
 0x457   :  { %v2736_v31 = vor.u32 %v2735_v28, %v2734_v12  ;;  %v2919_v34 = vand.u32 2139095040, %v9965_v6  ;;  %v2739_v22 = vor.u32 %v2738_v10, %v2737_v62  ;;  %vm2740_vm4 = vcmp.lt.s32.totalorder %v2721_v24, 1 }
 0x458   :  { %v2670_v25 = vsub.s32 0, %v9986_v3  ;;  %vm2743_vm8 = vcmp.lt.s32.totalorder %v2721_v24, 4  ;;  %v2822_v4 = vadd.s32 1, %v7166_v11  ;;  %v2724_v21 = vshrl.u32 %v13534_v18, %v2723_v27 }
 0x459   :  { %v2745_v53 = vsel %vm2743_vm8, %v2733_v58, 2102212464  ;;  %v2748_v35 = vsel %vm2740_vm4, %v2727_v33, %v2730_v42  ;;  %vm2742_vm6 = vcmp.lt.s32.totalorder %v2721_v24, 3  ;;  %v2749_v5 = vsel %vm2743_vm8, %v2736_v31, 920167782 }
 0x45a   :  { %v7159_v26 = vmin.u32 %v2670_v25, %v9986_v3  ;;  %v2752_v9 = vsel %vm2740_vm4, %v2730_v42, %v2733_v58  ;;  %v2753_v17 = vsel %vm2743_vm8, %v2739_v22, 1326507024  ;;  %vm2741_vm11 = vcmp.lt.s32.totalorder %v2721_v24, 2 }
 0x45b   :  { %v9997_v40 = vpop.eup %7695  ;;  %v2744_v54 = vsel %vm2740_vm4, %v2724_v21, %v2727_v33  ;;  %v2750_v28 = vsel %vm2742_vm6, %v2733_v58, %v2749_v5  ;;  %v2746_v62 = vsel %vm2742_vm6, %v2730_v42, %v2745_v53  ;;  %v2754_v57 = vsel %vm2742_vm6, %v2736_v31, %v2753_v17 }
 0x45c   :  { %13588 = vst [vmem:[#allocation15_spill] sm:$0xff] %v9997_v40  ;;  %v2672_v12 = vclz %v7159_v26  ;;  %v2751_v10 = vsel %vm2741_vm11, %v2748_v35, %v2750_v28  ;;  %vm2823_vm14 = vcmp.gt.s32.totalorder %v2822_v4, 0  ;;  %v2755_v25 = vsel %vm2741_vm11, %v2752_v9, %v2754_v57 }
 0x45d   :  { %v10000_v27 = vmul.u32.u64.low %v9971_v51, %v2751_v10  ;;  %v10001_v13 = vmul.u32.u64.high %v9971_v51, %v2751_v10, %v10000_v27  ;;  %v2577_v39 = vadd.s32 127, %v2576_v8  ;;  %v2824_v26 = vsel %vm2823_vm14, %v2822_v4, 0 }
 0x45e   :  { %v7160_v11 = vadd.s32 4294967294, %v2672_v12  ;;  %v10005_v22 = vmul.u32.u64.low %v9971_v51, %v2755_v25  ;;  %v10006_v2 = vmul.u32.u64.high %v9971_v51, %v2755_v25, %v10005_v22  ;;  %v2747_v24 = vsel %vm2741_vm11, %v2744_v54, %v2746_v62 }
 0x45f   :  { %v2826_v33 = vand.u32 31, %v2824_v26  ;;  %v2920_v42 = vshrl.u32 %v2919_v34, 23  ;;  %7697 = vsinq.f32 %v9943_v55  ;;  %v13589_v31 = vand.u32 2147483647, %v9945_v41 }
 0x460   :  { %vm7161_vm5 = vcmp.lt.s32.totalorder %v7160_v11, 0  ;;  %v13590_v57 = vcvt.s32.f32 %v9936_v48  ;;  %v2476_v21 = vand.u32 2147483647, %v9967_v56  ;;  %v2478_v8 = vcvt.s32.f32 %v9958_v16 }
 0x461   :  { %v2573_v53 = vshll.u32 %v9895_v32, %v9956_v63  ;;  %v2574_v4 = vshrl.u32 %v9962_v59, %v2572_v20  ;;  %v2766_v35 = vadd.s32 1, %v10001_v13  ;;  %v13449_v34 = vand.u32 2147483647, %v9965_v6 }
 0x462   :  { %v10013_v58 = vmul.f32 %v13590_v57, %v13589_v31  ;;  %v10022_v55 = vsel %vm7161_vm5, 0, %v7160_v11  ;;  %v2763_v41 = vmul.u32 %v9971_v51, %v2747_v24  ;;  %vm2765_vm12 = vc.u32 %v10006_v2, %v10000_v27 }
 0x463   :  { %v2827_v48 = vsub.s32 32, %v2826_v33  ;;  %v2578_v5 = vshll.u32 %v2577_v39, 23  ;;  %v2767_v9 = vsel %vm2765_vm12, %v2766_v35, %v10001_v13  ;;  %v10028_v17 = vshll.u32 %v2820_v44, 8 }
 0x464   :  { %v7170_v32 = vadd.s32 4294967169, %v2920_v42  ;;  %v2768_v63 = vadd.s32 %v2767_v9, %v2763_v41  ;;  %v2829_v59 = vshll.u32 %v13534_v18, %v2826_v33  ;;  %v2680_v54 = vsub.s32 4294967266, %v10022_v55 }
 0x465   :  { %v2830_v20 = vshrl.u32 %v13536_v14, %v2827_v48  ;;  %v2833_v12 = vshrl.u32 %v13537_v15, %v2827_v48  ;;  %v2832_v51 = vshll.u32 %v13536_v14, %v2826_v33  ;;  %v2835_v28 = vshll.u32 %v13537_v15, %v2826_v33 }
 0x466   :  { %v2836_v39 = vshrl.u32 %v13538_v52, %v2827_v48  ;;  %v10037_v62 = vor.u32 %v2574_v4, %v2573_v53  ;;  %v2769_v13 = vadd.s32 536870912, %v2768_v63  ;;  %v2825_v44 = vshrl.u32 %v2824_v26, 5 }
 0x467   :  { %v2831_v10 = vor.u32 %v2830_v20, %v2829_v59  ;;  %v2834_v11 = vor.u32 %v2833_v12, %v2832_v51  ;;  %v2838_v22 = vshll.u32 %v13538_v52, %v2826_v33  ;;  %v2839_v24 = vshrl.u32 %v13539_v60, %v2827_v48 }
 0x468   :  { %v2837_v25 = vor.u32 %v2836_v39, %v2835_v28  ;;  %v2579_v42 = vor.u32 4788187, %v2578_v5  ;;  %v10041_v31 = vshrl.u32 %v2769_v13, 30  ;;  %v2841_v57 = vshll.u32 %v13539_v60, %v2826_v33 }
 0x469   :  { %v2842_v35 = vshrl.u32 %v13582_v30, %v2827_v48  ;;  %v2681_v41 = vadd.s32 127, %v2680_v54  ;;  %v2828_v53 = vshrl.u32 %v13534_v18, %v2827_v48  ;;  %v2840_v4 = vor.u32 %v2839_v24, %v2838_v22 }
 0x46a   :  { %13591 = vst [vmem:[#allocation13_spill] sm:$0xff] %v10041_v31  ;;  %v2926_v9 = vadd.s32 1, %v7170_v32  ;;  %v2771_v26 = vshll.u32 %v10041_v31, 30  ;;  %vm2844_vm3 = vcmp.lt.s32.totalorder %v2825_v44, 1  ;;  %vm2847_vm15 = vcmp.lt.s32.totalorder %v2825_v44, 4 }
 0x46b   :  { %v2843_v59 = vor.u32 %v2842_v35, %v2841_v57  ;;  %vm2846_vm13 = vcmp.lt.s32.totalorder %v2825_v44, 3  ;;  %v2849_v20 = vsel %vm2847_vm15, %v2837_v25, 2102212464  ;;  %v2852_v12 = vsel %vm2844_vm3, %v2831_v10, %v2834_v11 }
 0x46c   :  { %v2853_v5 = vsel %vm2847_vm15, %v2840_v4, 920167782  ;;  %v10047_v51 = vsub.s32 %v2768_v63, %v2771_v26  ;;  %vm2845_vm1 = vcmp.lt.s32.totalorder %v2825_v44, 2  ;;  %v2856_v28 = vsel %vm2844_vm3, %v2834_v11, %v2837_v25  ;;  %v10049_v39 = vpop.eup %7697 }
 0x46d   :  { %v2854_v33 = vsel %vm2846_vm13, %v2837_v25, %v2853_v5  ;;  %v2848_v54 = vsel %vm2844_vm3, %v2828_v53, %v2831_v10  ;;  %v2850_v48 = vsel %vm2846_vm13, %v2834_v11, %v2849_v20  ;;  %v2857_v13 = vsel %vm2847_vm15, %v2843_v59, 1326507024 }
 0x46e   :  { %v2855_v32 = vsel %vm2845_vm1, %v2852_v12, %v2854_v33  ;;  %v2774_v22 = vsub.s32 0, %v10047_v51  ;;  %v2858_v24 = vsel %vm2846_vm13, %v2840_v4, %v2857_v13  ;;  %v2676_v63 = vsub.s32 32, %v10022_v55  ;;  %v3675_v13 = vpop.f32.mrf.mxu0 }
 0x46f   :  { %v10054_v57 = vmul.u32.u64.low %v10028_v17, %v2855_v32  ;;  %v10055_v35 = vmul.u32.u64.high %v10028_v17, %v2855_v32, %v10054_v57  ;;  %v2682_v26 = vshll.u32 %v2681_v41, 23  ;;  %v2859_v25 = vsel %vm2845_vm1, %v2856_v28, %v2858_v24 }
 0x470   :  { %v2923_v10 = vand.u32 8388607, %v13449_v34  ;;  %v7163_v11 = vmin.u32 %v2774_v22, %v10047_v51  ;;  %v10064_v53 = vmul.u32.u64.low %v10028_v17, %v2859_v25  ;;  %v10065_v59 = vmul.u32.u64.high %v10028_v17, %v2859_v25, %v10064_v53 }
 0x471   :  { %vm2927_vm7 = vcmp.gt.s32.totalorder %v2926_v9, 0  ;;  %v2580_v4 = vand.u32 2147483647, %v2579_v42  ;;  %v2660_v20 = vadd.s32 %v9915_v50, %v9921_v29  ;;  %v2851_v12 = vsel %vm2845_vm1, %v2848_v54, %v2850_v48 }
 0x472   :  { %v2928_v5 = vsel %vm2927_vm7, %v2926_v9, 0  ;;  %v2776_v33 = vclz %v7163_v11  ;;  %v2870_v28 = vadd.s32 1, %v10055_v35  ;;  %v10076_v22 = vmul.f32 %v2478_v8, %v2476_v21 }
 0x473   :  { %v2930_v32 = vand.u32 31, %v2928_v5  ;;  %v2582_v42 = vcvt.s32.f32 %v10037_v62  ;;  %v2678_v24 = vshrl.u32 %v2660_v20, %v2676_v63  ;;  %v10079_v50 = vor.u32 4788187, %v2682_v26 }
 0x474   :  { %v2867_v29 = vmul.u32 %v10028_v17, %v2851_v12  ;;  %vm2869_vm9 = vc.u32 %v10065_v59, %v10054_v57  ;;  %v2924_v44 = vor.u32 8388608, %v2923_v10  ;;  %v2677_v56 = vshll.u32 %v9986_v3, %v10022_v55  ;;  %v3677_v12 = vpop.f32.mrf.mxu0 }
 0x475   :  { %v2931_v9 = vsub.s32 32, %v2930_v32  ;;  %v10084_v54 = vmul.f32 %v2582_v42, %v2580_v4  ;;  %v2871_v16 = vsel %vm2869_vm9, %v2870_v28, %v10055_v35  ;;  %v10090_v21 = vadd.f32 %v3675_v13, %v9861_v38 }
 0x476   :  { %v7164_v8 = vadd.s32 4294967294, %v2776_v33  ;;  %v2872_v62 = vadd.s32 %v2871_v16, %v2867_v29  ;;  %v10095_v17 = vrot.slane %v9849_v19, %v13579_v49  ;;  %v10097_v63 = vor.u32 %v2678_v24, %v2677_v56 }
 0x477   :  { %v2934_v48 = vshrl.u32 %v13536_v14, %v2931_v9  ;;  %v2937_v25 = vshrl.u32 %v13537_v15, %v2931_v9  ;;  %v2940_v3 = vshrl.u32 %v13538_v52, %v2931_v9  ;;  %v2933_v35 = vshll.u32 %v13534_v18, %v2930_v32 }
 0x478   :  { %v2873_v55 = vadd.s32 536870912, %v2872_v62  ;;  %v2936_v10 = vshll.u32 %v13536_v14, %v2930_v32  ;;  %v10104_v11 = vshll.u32 %v2924_v44, 8  ;;  %v2929_v53 = vshrl.u32 %v2928_v5, 5 }
 0x479   :  { %v2939_v4 = vshll.u32 %v13537_v15, %v2930_v32  ;;  %v2942_v19 = vshll.u32 %v13538_v52, %v2930_v32  ;;  %v2943_v20 = vshrl.u32 %v13539_v60, %v2931_v9  ;;  %vm7165_vm10 = vcmp.lt.s32.totalorder %v7164_v8, 0 }
 0x47a   :  { %v10109_v33 = vshrl.u32 %v2873_v55, 30  ;;  %v2935_v28 = vor.u32 %v2934_v48, %v2933_v35  ;;  %v2938_v13 = vor.u32 %v2937_v25, %v2936_v10  ;;  %v2945_v29 = vshll.u32 %v13539_v60, %v2930_v32 }
 0x47b   :  { %v2941_v42 = vor.u32 %v2940_v3, %v2939_v4  ;;  %v2944_v24 = vor.u32 %v2943_v20, %v2942_v19  ;;  %v2946_v44 = vshrl.u32 %v13582_v30, %v2931_v9  ;;  %v3701_v16 = vand.u32 2139095040, %v10090_v21 }
 0x47c   :  { %13592 = vst [vmem:[#allocation17_spill] sm:$0xff] %v10109_v33  ;;  %v2875_v5 = vshll.u32 %v10109_v33, 30  ;;  %v10117_v34 = vadd.f32 %v3677_v12, %v10095_v17  ;;  %v10119_v41 = vsel %vm7165_vm10, 0, %v7164_v8  ;;  %v2932_v48 = vshrl.u32 %v13534_v18, %v2931_v9 }
 0x47d   :  { %v2947_v25 = vor.u32 %v2946_v44, %v2945_v29  ;;  %vm2948_vm4 = vcmp.lt.s32.totalorder %v2929_v53, 1  ;;  %vm2950_vm8 = vcmp.lt.s32.totalorder %v2929_v53, 3  ;;  %vm2951_vm6 = vcmp.lt.s32.totalorder %v2929_v53, 4 }
 0x47e   :  { %v10122_v3 = vsub.s32 %v2872_v62, %v2875_v5  ;;  %v2956_v32 = vsel %vm2948_vm4, %v2935_v28, %v2938_v13  ;;  %v2953_v55 = vsel %vm2951_vm6, %v2941_v42, 2102212464  ;;  %v2957_v35 = vsel %vm2951_vm6, %v2944_v24, 920167782 }
 0x47f   :  { %v2960_v10 = vsel %vm2948_vm4, %v2938_v13, %v2941_v42  ;;  %v2961_v4 = vsel %vm2951_vm6, %v2947_v25, 1326507024  ;;  %vm2294_vm11 = vcmp.lt.s32.totalorder %v9664_v46, 0  ;;  %v2780_v8 = vsub.s32 32, %v10119_v41 }
 0x480   :  { %v2878_v19 = vsub.s32 0, %v10122_v3  ;;  %vm2949_vm14 = vcmp.lt.s32.totalorder %v2929_v53, 2  ;;  %v2958_v9 = vsel %vm2950_vm8, %v2941_v42, %v2957_v35  ;;  %vm2398_vm5 = vcmp.lt.s32.totalorder %v9671_v7, 0 }
 0x481   :  { %vm2502_vm12 = vcmp.lt.s32.totalorder %v9677_v45, 0  ;;  %v2784_v62 = vsub.s32 4294967266, %v10119_v41  ;;  %v2959_v20 = vsel %vm2949_vm14, %v2956_v32, %v2958_v9  ;;  %v2962_v12 = vsel %vm2950_vm8, %v2944_v24, %v2961_v4 }
 0x482   :  { %v3702_v29 = vshrl.u32 %v3701_v16, 23  ;;  %v7167_v44 = vmin.u32 %v2878_v19, %v10122_v3  ;;  %v2952_v5 = vsel %vm2948_vm4, %v2932_v48, %v2935_v28  ;;  %v2954_v25 = vsel %vm2950_vm8, %v2938_v13, %v2953_v55 }
 0x483   :  { %v2963_v26 = vsel %vm2949_vm14, %v2960_v10, %v2962_v12  ;;  %v10144_v56 = vmul.u32.u64.low %v10104_v11, %v2959_v20  ;;  %v10145_v49 = vmul.u32.u64.high %v10104_v11, %v2959_v20, %v10144_v56  ;;  %v2686_v24 = vcvt.s32.f32 %v10097_v63 }
 0x484   :  { %v10140_v42 = vmul.u32.u64.low %v10104_v11, %v2963_v26  ;;  %v10141_v35 = vmul.u32.u64.high %v10104_v11, %v2963_v26, %v10140_v42  ;;  %v2880_v16 = vclz %v7167_v44  ;;  %v7195_v32 = vadd.s32 4294967169, %v3702_v29 }
 0x485   :  { %v13593_v4 = vand.u32 2147483647, %v10090_v21  ;;  %v2480_v13 = vxor.u32 2147483648, %v10076_v22  ;;  %v2764_v48 = vadd.s32 %v10000_v27, %v10006_v2  ;;  %v2955_v26 = vsel %vm2949_vm14, %v2952_v5, %v2954_v25 }
 0x486   :  { %v3805_v55 = vand.u32 2139095040, %v10117_v34  ;;  %v2584_v10 = vxor.u32 2147483648, %v10084_v54  ;;  %v13594_v19 = vand.u32 2147483647, %v10079_v50  ;;  %v7168_v63 = vadd.s32 4294967294, %v2880_v16 }
 0x487   :  { %v3705_v28 = vand.u32 8388607, %v13593_v4  ;;  %v3708_v20 = vadd.s32 1, %v7195_v32  ;;  %v2782_v12 = vshrl.u32 %v2764_v48, %v2780_v8  ;;  %v10161_v29 = vadd.s32 127, %v2784_v62 }
 0x488   :  { %v10159_v9 = vmul.f32 %v2686_v24, %v13594_v19  ;;  %vm2973_vm3 = vc.u32 %v10141_v35, %v10144_v56  ;;  %v2974_v2 = vadd.s32 1, %v10145_v49  ;;  %vm7169_vm15 = vcmp.lt.s32.totalorder %v7168_v63, 0 }
 0x489   :  { %v2971_v27 = vmul.u32 %v10104_v11, %v2955_v26  ;;  %v3706_v53 = vor.u32 8388608, %v3705_v28  ;;  %vm3709_vm13 = vcmp.gt.s32.totalorder %v3708_v20, 0  ;;  %v13595_v50 = vxor.u32 2147483648, %v10013_v58 }
 0x48a   :  { %v2975_v8 = vsel %vm2973_vm3, %v2974_v2, %v10145_v49  ;;  %v3710_v62 = vsel %vm3709_vm13, %v3708_v20, 0  ;;  %v3806_v5 = vshrl.u32 %v3805_v55, 23  ;;  %v10178_v25 = vsel %vm2398_vm5, %v2480_v13, %v10076_v22 }
 0x48b   :  { %v10172_v44 = vsel %vm2294_vm11, %v13595_v50, %v10013_v58  ;;  %13596 = vst [vmem:[#allocation19_spill] sm:$0xff] %v10178_v25  ;;  %v10183_v11 = vsel %vm2502_vm12, %v2584_v10, %v10084_v54  ;;  %v2781_v42 = vshll.u32 %v10047_v51, %v10119_v41  ;;  %v2976_v24 = vadd.s32 %v2975_v8, %v2971_v27  ;;  %v3681_v58 = vpop.f32.mrf.mxu0 }
 0x48c   :  { %13597 = vst [vmem:[#allocation16_spill] sm:$0xff] %v10183_v11  ;;  %v2868_v49 = vadd.s32 %v10054_v57, %v10065_v59  ;;  %v10190_v32 = vsel %vm7169_vm15, 0, %v7168_v63  ;;  %v3712_v4 = vand.u32 31, %v3710_v62  ;;  %v2786_v28 = vshll.u32 %v10161_v29, 23 }
 0x48d   :  { %v10192_v22 = vor.u32 %v2782_v12, %v2781_v42  ;;  %v2977_v13 = vadd.s32 536870912, %v2976_v24  ;;  %v10195_v54 = vshll.u32 %v3706_v53, 8  ;;  %v13457_v51 = vand.u32 2147483647, %v10117_v34  ;;  %v3683_v11 = vpop.f32.mrf.mxu0 }
 0x48e   :  { %v3713_v48 = vsub.s32 32, %v3712_v4  ;;  %v7199_v41 = vadd.s32 4294967169, %v3806_v5  ;;  %v10199_v26 = vadd.f32 %v3681_v58, %v9861_v38  ;;  %v2888_v55 = vsub.s32 4294967266, %v10190_v32 }
 0x48f   :  { %v10202_v57 = vshrl.u32 %v2977_v13, 30  ;;  %v3715_v59 = vshll.u32 %v13534_v18, %v3712_v4  ;;  %v3718_v10 = vshll.u32 %v13536_v14, %v3712_v4  ;;  %v3721_v20 = vshll.u32 %v13537_v15, %v3712_v4 }
 0x490   :  { %13598 = vst [vmem:[#allocation20_spill] sm:$0xff] %v10199_v26  ;;  %v3716_v19 = vshrl.u32 %v13536_v14, %v3713_v48  ;;  %v3719_v63 = vshrl.u32 %v13537_v15, %v3713_v48  ;;  %v3722_v12 = vshrl.u32 %v13538_v52, %v3713_v48  ;;  %v3711_v2 = vshrl.u32 %v3710_v62, 5 }
 0x491   :  { %13599 = vst [vmem:[#allocation21_spill] sm:$0xff] %v10202_v57  ;;  %v2979_v29 = vshll.u32 %v10202_v57, 30  ;;  %v3724_v27 = vshll.u32 %v13538_v52, %v3712_v4  ;;  %v3725_v53 = vshrl.u32 %v13539_v60, %v3713_v48  ;;  %v10215_v42 = vand.u32 8388607, %v13457_v51 }
 0x492   :  { %v3717_v50 = vor.u32 %v3716_v19, %v3715_v59  ;;  %v3720_v8 = vor.u32 %v3719_v63, %v3718_v10  ;;  %v3723_v5 = vor.u32 %v3722_v12, %v3721_v20  ;;  %v3727_v16 = vshll.u32 %v13539_v60, %v3712_v4 }
 0x493   :  { %v10217_v58 = vsub.s32 %v2976_v24, %v2979_v29  ;;  %v3726_v13 = vor.u32 %v3725_v53, %v3724_v27  ;;  %v3728_v33 = vshrl.u32 %v13582_v30, %v3713_v48  ;;  %v2884_v62 = vsub.s32 32, %v10190_v32 }
 0x494   :  { %v2889_v57 = vadd.s32 127, %v2888_v55  ;;  %v3714_v31 = vshrl.u32 %v13534_v18, %v3713_v48  ;;  %v3812_v25 = vadd.s32 1, %v7199_v41  ;;  %vm3730_vm1 = vcmp.lt.s32.totalorder %v3711_v2, 1 }
 0x495   :  { %v2982_v59 = vsub.s32 0, %v10217_v58  ;;  %v3729_v10 = vor.u32 %v3728_v33, %v3727_v16  ;;  %vm3733_vm7 = vcmp.lt.s32.totalorder %v3711_v2, 4  ;;  %vm3732_vm9 = vcmp.lt.s32.totalorder %v3711_v2, 3 }
 0x496   :  { %v3735_v19 = vsel %vm3733_vm7, %v3723_v5, 2102212464  ;;  %v3738_v24 = vsel %vm3730_vm1, %v3717_v50, %v3720_v8  ;;  %v3739_v63 = vsel %vm3733_vm7, %v3726_v13, 920167782  ;;  %vm3731_vm10 = vcmp.lt.s32.totalorder %v3711_v2, 2 }
 0x497   :  { %v7171_v20 = vmin.u32 %v2982_v59, %v10217_v58  ;;  %v3740_v4 = vsel %vm3732_vm9, %v3723_v5, %v3739_v63  ;;  %v3742_v12 = vsel %vm3730_vm1, %v3720_v8, %v3723_v5  ;;  %v2886_v29 = vshrl.u32 %v2868_v49, %v2884_v62 }
 0x498   :  { %v3741_v55 = vsel %vm3731_vm10, %v3738_v24, %v3740_v4  ;;  %v3743_v27 = vsel %vm3733_vm7, %v3729_v10, 1326507024  ;;  %vm3813_vm4 = vcmp.gt.s32.totalorder %v3812_v25, 0  ;;  %v3734_v41 = vsel %vm3730_vm1, %v3714_v31, %v3717_v50  ;;  %v4561_v10 = vld [vmem:[#allocation2 + $0xf8] sm:$0xff] }
 0x499   :  { %v2984_v48 = vclz %v7171_v20  ;;  %v3736_v53 = vsel %vm3732_vm9, %v3720_v8, %v3735_v19  ;;  %v3744_v33 = vsel %vm3732_vm9, %v3726_v13, %v3743_v27  ;;  %v3814_v59 = vsel %vm3813_vm4, %v3812_v25, 0  ;;  %4606 = vmatprep.subr.mxu0 %v4561_v10  ;;  %v4560_v13 = vld [vmem:[#allocation2 + $0xf0] sm:$0xff]  ;;  %v4559_v20 = vld [vmem:[#allocation2 + $0xe8] sm:$0xff]  ;;  %v4557_v27 = vld [vmem:[#allocation2 + $0xd8] sm:$0xff] }
 0x49a   :  { %v3745_v16 = vsel %vm3731_vm10, %v3742_v12, %v3744_v33  ;;  %v10228_v51 = vmul.u32.u64.low %v10195_v54, %v3741_v55  ;;  %v10229_v7 = vmul.u32.u64.high %v10195_v54, %v3741_v55, %v10228_v51  ;;  %v2890_v63 = vshll.u32 %v2889_v57, 23  ;;  %4607 = vmatpush1.msra.mxu0 %v4560_v13  ;;  %v4558_v12 = vld [vmem:[#allocation2 + $0xe0] sm:$0xff]  ;;  %v4553_v13 = vld [vmem:[#allocation2 + $0xb8] sm:$0xff] }
 0x49b   :  { %v7172_v5 = vadd.s32 4294967294, %v2984_v48  ;;  %v10233_v49 = vmul.u32.u64.low %v10195_v54, %v3745_v16  ;;  %v10234_v62 = vmul.u32.u64.high %v10195_v54, %v3745_v16, %v10233_v49  ;;  %v10236_v24 = vor.u32 4788187, %v2786_v28  ;;  %4608 = vmatprep.subr.mxu0 %v4559_v20  ;;  %v4555_v16 = vld [vmem:[#allocation2 + $0xc8] sm:$0xff]  ;;  %v4554_v10 = vld [vmem:[#allocation2 + $0xc0] sm:$0xff] }
 0x49c   :  { %v3737_v31 = vsel %vm3731_vm10, %v3734_v41, %v3736_v53  ;;  %v3810_v50 = vor.u32 8388608, %v10215_v42  ;;  %v3816_v8 = vand.u32 31, %v3814_v59  ;;  %v2885_v25 = vshll.u32 %v10122_v3, %v10190_v32  ;;  %4609 = vmatpush1.msra.mxu0 %v4558_v12 }
 0x49d   :  { %vm7173_vm8 = vcmp.lt.s32.totalorder %v7172_v5, 0  ;;  %v10244_v57 = vadd.f32 %v3683_v11, %v10095_v17  ;;  %v10248_v28 = vadd.s32 %v10144_v56, %v10141_v35  ;;  %v3756_v2 = vadd.s32 1, %v10229_v7  ;;  %4610 = vmatprep.subr.mxu0 %v4557_v27 }
 0x49e   :  { %v3817_v42 = vsub.s32 32, %v3816_v8  ;;  %v13460_v4 = vand.u32 2147483647, %v10199_v26  ;;  %v10252_v55 = vor.u32 %v2886_v29, %v2885_v25  ;;  %v10254_v3 = vor.u32 4788187, %v2890_v63  ;;  %v4556_v29 = vld [vmem:[#allocation2 + $0xd0] sm:$0xff] }
 0x49f   :  { %v3753_v11 = vmul.u32 %v10195_v54, %v3737_v31  ;;  %v10257_v32 = vshrl.u32 %v3814_v59, 5  ;;  %v10260_v56 = vsel %vm7173_vm8, 0, %v7172_v5  ;;  %vm3755_vm6 = vc.u32 %v10234_v62, %v10228_v51  ;;  %4611 = vmatpush1.msra.mxu0 %v4556_v29 }
 0x4a0   :  { %v3820_v35 = vshrl.u32 %v13536_v14, %v3817_v42  ;;  %v10265_v48 = vshll.u32 %v3810_v50, 8  ;;  %v3757_v41 = vsel %vm3755_vm6, %v3756_v2, %v10229_v7  ;;  %v3819_v54 = vshll.u32 %v13534_v18, %v3816_v8  ;;  %4612 = vmatprep.subr.mxu0 %v4555_v16 }
 0x4a1   :  { %v3822_v53 = vshll.u32 %v13536_v14, %v3816_v8  ;;  %v3823_v33 = vshrl.u32 %v13537_v15, %v3817_v42  ;;  %v3758_v59 = vadd.s32 %v3757_v41, %v3753_v11  ;;  %v3825_v63 = vshll.u32 %v13537_v15, %v3816_v8  ;;  %4613 = vmatpush1.msra.mxu0 %v4554_v10  ;;  %v4552_v11 = vld [vmem:[#allocation2 + $0xb0] sm:$0xff]  ;;  %v4549_v10 = vld [vmem:[#allocation2 + $0x98] sm:$0xff] }
 0x4a2   :  { %v3826_v5 = vshrl.u32 %v13538_v52, %v3817_v42  ;;  %v3909_v49 = vand.u32 2139095040, %v10199_v26  ;;  %v2992_v31 = vsub.s32 4294967266, %v10260_v56  ;;  %v3821_v7 = vor.u32 %v3820_v35, %v3819_v54  ;;  %4614 = vmatprep.subr.mxu0 %v4553_v13  ;;  %v4551_v35 = vld [vmem:[#allocation2 + $0xa8] sm:$0xff] }
 0x4a3   :  { %v3824_v50 = vor.u32 %v3823_v33, %v3822_v53  ;;  %vm3834_vm14 = vcmp.lt.s32.totalorder %v10257_v32, 1  ;;  %v3759_v25 = vadd.s32 536870912, %v3758_v59  ;;  %v3828_v2 = vshll.u32 %v13538_v52, %v3816_v8  ;;  %4615 = vmatpush1.msra.mxu0 %v4552_v11  ;;  %v4550_v33 = vld [vmem:[#allocation2 + $0xa0] sm:$0xff]  ;;  %v4548_v11 = vld [vmem:[#allocation2 + $0x90] sm:$0xff] }
 0x4a4   :  { %v3827_v20 = vor.u32 %v3826_v5, %v3825_v63  ;;  %v3829_v12 = vshrl.u32 %v13539_v60, %v3817_v42  ;;  %v3831_v27 = vshll.u32 %v13539_v60, %v3816_v8  ;;  %v3832_v29 = vshrl.u32 %v13582_v30, %v3817_v42  ;;  %4616 = vmatprep.subr.mxu0 %v4551_v35  ;;  %v4547_v35 = vld [vmem:[#allocation2 + $0x88] sm:$0xff] }
 0x4a5   :  { %vm3835_vm3 = vcmp.lt.s32.totalorder %v10257_v32, 2  ;;  %vm3837_vm15 = vcmp.lt.s32.totalorder %v10257_v32, 4  ;;  %v10282_v41 = vshrl.u32 %v3759_v25, 30  ;;  %vm3836_vm13 = vcmp.lt.s32.totalorder %v10257_v32, 3  ;;  %4617 = vmatpush1.msra.mxu0 %v4550_v33  ;;  %v4542_v32 = vld [vmem:[#allocation2 + $0x60] sm:$0xff] }
 0x4a6   :  { %v3830_v54 = vor.u32 %v3829_v12, %v3828_v2  ;;  %v3839_v53 = vsel %vm3837_vm15, %v3827_v20, 2102212464  ;;  %v2988_v8 = vsub.s32 32, %v10260_v56  ;;  %v3818_v16 = vshrl.u32 %v13534_v18, %v3817_v42  ;;  %4618 = vmatprep.subr.mxu0 %v4549_v10 }
 0x4a7   :  { %13600 = vst [vmem:[#allocation22_spill] sm:$0xff] %v10282_v41  ;;  %v3833_v63 = vor.u32 %v3832_v29, %v3831_v27  ;;  %v3842_v5 = vsel %vm3834_vm14, %v3821_v7, %v3824_v50  ;;  %v10291_v13 = vadd.s32 127, %v2992_v31  ;;  %v3761_v25 = vshll.u32 %v10282_v41, 30  ;;  %4619 = vmatpush1.msra.mxu0 %v4548_v11 }
 0x4a8   :  { %v3843_v2 = vsel %vm3837_vm15, %v3830_v54, 920167782  ;;  %v3846_v12 = vsel %vm3834_vm14, %v3824_v50, %v3827_v20  ;;  %v3838_v42 = vsel %vm3834_vm14, %v3818_v16, %v3821_v7  ;;  %v3840_v27 = vsel %vm3836_vm13, %v3824_v50, %v3839_v53  ;;  %4620 = vmatprep.subr.mxu0 %v4547_v35  ;;  %v4546_v16 = vld [vmem:[#allocation2 + $0x80] sm:$0xff] }
 0x4a9   :  { %v3844_v31 = vsel %vm3836_vm13, %v3827_v20, %v3843_v2  ;;  %v3847_v29 = vsel %vm3837_vm15, %v3833_v63, 1326507024  ;;  %v10306_v33 = vsub.s32 %v3758_v59, %v3761_v25  ;;  %v3910_v7 = vshrl.u32 %v3909_v49, 23  ;;  %4621 = vmatpush1.msra.mxu0 %v4546_v16  ;;  %v4545_v49 = vld [vmem:[#allocation2 + $0x78] sm:$0xff] }
 0x4aa   :  { %v3845_v10 = vsel %vm3835_vm3, %v3842_v5, %v3844_v31  ;;  %v3848_v19 = vsel %vm3836_vm13, %v3830_v54, %v3847_v29  ;;  %v10321_v59 = vand.u32 8388607, %v13460_v4  ;;  %v3051_v54 = vld [vmem:[%s13383_s7 + $0xf8] sm:$0xff]  ;;  %4622 = vmatprep.subr.mxu0 %v4545_v49  ;;  %v2990_v29 = vshrl.u32 %v10248_v28, %v2988_v8  ;;  %v3034_v28 = vld [vmem:[%s13383_s7 + $0x70] sm:$0xff] }
 0x4ab   :  { %v3849_v50 = vsel %vm3835_vm3, %v3846_v12, %v3848_v19  ;;  %v10315_v20 = vmul.u32.u64.low %v10265_v48, %v3845_v10  ;;  %v10316_v53 = vmul.u32.u64.high %v10265_v48, %v3845_v10, %v10315_v20  ;;  %v3764_v63 = vsub.s32 0, %v10306_v33  ;;  %7308 = vmatprep.subr.mxu1 %v3051_v54  ;;  %v3035_v2 = vld [vmem:[%s13383_s7 + $0x78] sm:$0xff]  ;;  %v4544_v12 = vld [vmem:[#allocation2 + $0x70] sm:$0xff] }
 0x4ac   :  { %v10328_v5 = vmul.u32.u64.low %v10265_v48, %v3849_v50  ;;  %v10329_v19 = vmul.u32.u64.high %v10265_v48, %v3849_v50, %v10328_v5  ;;  %v7203_v25 = vadd.s32 4294967169, %v3910_v7  ;;  %v3841_v35 = vsel %vm3835_vm3, %v3838_v42, %v3840_v27  ;;  %7309 = vmatpush3.msra.mxu1 %v3035_v2  ;;  %4623 = vmatpush1.msra.mxu0 %v4544_v12  ;;  %v3050_v10 = vld [vmem:[%s13383_s7 + $0xf0] sm:$0xff]  ;;  %v4543_v7 = vld [vmem:[#allocation2 + $0x68] sm:$0xff] }
 0x4ad   :  { %v2994_v50 = vshll.u32 %v10291_v13, 23  ;;  %v7196_v54 = vmin.u32 %v3764_v63, %v10306_v33  ;;  %7310 = vmatprep.subr.mxu1 %v3050_v10  ;;  %4624 = vmatprep.subr.mxu0 %v4543_v7  ;;  %v2989_v8 = vshll.u32 %v10217_v58, %v10260_v56  ;;  %v3860_v42 = vadd.s32 1, %v10316_v53  ;;  %v3049_v13 = vld [vmem:[%s13383_s7 + $0xe8] sm:$0xff]  ;;  %v4541_v63 = vld [vmem:[#allocation2 + $0x58] sm:$0xff]  ;;  %v4540_v56 = vld [vmem:[#allocation2 + $0x50] sm:$0xff] }
 0x4ae   :  { %v3916_v49 = vadd.s32 1, %v7203_v25  ;;  %v3914_v27 = vor.u32 8388608, %v10321_v59  ;;  %v4013_v5 = vand.u32 2139095040, %v10244_v57  ;;  %7311 = vmatpush3.msra.mxu1 %v3034_v28  ;;  %4625 = vmatpush1.msra.mxu0 %v4542_v32  ;;  %v3857_v2 = vmul.u32 %v10265_v48, %v3841_v35  ;;  %v3033_v58 = vld [vmem:[%s13383_s7 + $0x68] sm:$0xff]  ;;  %v3687_v48 = vpop.f32.mrf.mxu0  ;;  %v3048_v35 = vld [vmem:[%s13383_s7 + $0xe0] sm:$0xff]  ;;  %v3030_v4 = vld [vmem:[%s13383_s7 + $0x50] sm:$0xff] }
 0x4af   :  { %v3766_v25 = vclz %v7196_v54  ;;  %vm3859_vm1 = vc.u32 %v10329_v19, %v10315_v20  ;;  %7312 = vmatprep.subr.mxu1 %v3049_v13  ;;  %4626 = vmatprep.subr.mxu0 %v4541_v63  ;;  %v10362_v59 = vor.u32 %v2990_v29, %v2989_v8  ;;  %v3754_v12 = vadd.s32 %v10228_v51, %v10234_v62  ;;  %v4539_v54 = vld [vmem:[#allocation2 + $0x48] sm:$0xff]  ;;  %v3032_v51 = vld [vmem:[%s13383_s7 + $0x60] sm:$0xff] }
 0x4b0   :  { %vm3917_vm7 = vcmp.gt.s32.totalorder %v3916_v49, 0  ;;  %v3861_v10 = vsel %vm3859_vm1, %v3860_v42, %v10316_v53  ;;  %7313 = vmatpush3.msra.mxu1 %v3033_v58  ;;  %4627 = vmatpush1.msra.mxu0 %v4540_v56  ;;  %v10370_v28 = vor.u32 4788187, %v2994_v50  ;;  %v4538_v62 = vld [vmem:[#allocation2 + $0x40] sm:$0xff]  ;;  %v4014_v42 = vshrl.u32 %v4013_v5, 23  ;;  %v3047_v50 = vld [vmem:[%s13383_s7 + $0xd8] sm:$0xff] }
 0x4b1   :  { %v3918_v7 = vsel %vm3917_vm7, %v3916_v49, 0  ;;  %v7197_v32 = vadd.s32 4294967294, %v3766_v25  ;;  %v3862_v13 = vadd.s32 %v3861_v10, %v3857_v2  ;;  %7314 = vmatprep.subr.mxu1 %v3048_v35  ;;  %4628 = vmatprep.subr.mxu0 %v4539_v54  ;;  %v10379_v49 = vshll.u32 %v3914_v27, 8  ;;  %v4537_v27 = vld [vmem:[#allocation2 + $0x38] sm:$0xff]  ;;  %v4536_v58 = vld [vmem:[#allocation2 + $0x30] sm:$0xff]  ;;  %v4535_v54 = vld [vmem:[#allocation2 + $0x28] sm:$0xff] }
 0x4b2   :  { %v10372_v29 = vand.u32 31, %v3918_v7  ;;  %v10377_v53 = vshrl.u32 %v3918_v7, 5  ;;  %7315 = vmatpush3.msra.mxu1 %v3032_v51  ;;  %4629 = vmatpush1.msra.mxu0 %v4538_v62  ;;  %v10389_v2 = vadd.f32 %v3687_v48, %v9861_v38  ;;  %v3031_v5 = vld [vmem:[%s13383_s7 + $0x58] sm:$0xff]  ;;  %v3046_v48 = vld [vmem:[%s13383_s7 + $0xd0] sm:$0xff]  ;;  %v10426_v40 = vadd.s32 4294967169, %v4014_v42 }
 0x4b3   :  { %vm7198_vm9 = vcmp.lt.s32.totalorder %v7197_v32, 0  ;;  %v3863_v63 = vadd.s32 536870912, %v3862_v13  ;;  %7316 = vmatprep.subr.mxu1 %v3047_v50  ;;  %4630 = vmatprep.subr.mxu0 %v4537_v27  ;;  %v4534_v27 = vld [vmem:[#allocation2 + $0x20] sm:$0xff]  ;;  %vm2606_vm10 = vcmp.lt.s32.totalorder %v9801_v61, 0  ;;  %vm13487_vm3 = vcmp.lt.s32.totalorder %v10090_v21, 0 }
 0x4b4   :  { %v10386_v25 = vsub.s32 32, %v10372_v29  ;;  %v3769_v56 = vsel %vm7198_vm9, 0, %v7197_v32  ;;  %v3923_v10 = vshll.u32 %v13534_v18, %v10372_v29  ;;  %v3926_v7 = vshll.u32 %v13536_v14, %v10372_v29  ;;  %7317 = vmatpush3.msra.mxu1 %v3031_v5  ;;  %4631 = vmatpush1.msra.mxu0 %v4536_v58  ;;  %v3045_v58 = vld [vmem:[%s13383_s7 + $0xc8] sm:$0xff] }
 0x4b5   :  { %v3929_v35 = vshll.u32 %v13537_v15, %v10372_v29  ;;  %v3770_v51 = vsub.s32 32, %v3769_v56  ;;  %v3774_v62 = vsub.s32 4294967266, %v3769_v56  ;;  %v10403_v50 = vshrl.u32 %v3863_v63, 30  ;;  %7318 = vmatprep.subr.mxu1 %v3046_v48  ;;  %4632 = vmatprep.subr.mxu0 %v4535_v54  ;;  %v4533_v48 = vld [vmem:[#allocation2 + $0x18] sm:$0xff] }
 0x4b6   :  { %v3932_v32 = vshll.u32 %v13538_v52, %v10372_v29  ;;  %v3771_v5 = vshll.u32 %v10306_v33, %v3769_v56  ;;  %v3924_v31 = vshrl.u32 %v13536_v14, %v10386_v25  ;;  %v3927_v16 = vshrl.u32 %v13537_v15, %v10386_v25  ;;  %7319 = vmatpush3.msra.mxu1 %v3030_v4  ;;  %v3029_v56 = vld [vmem:[%s13383_s7 + $0x48] sm:$0xff] }
 0x4b7   :  { %13601 = vst [vmem:[#allocation23_spill] sm:$0xff] %v10403_v50  ;;  %v3930_v63 = vshrl.u32 %v13538_v52, %v10386_v25  ;;  %v3772_v11 = vshrl.u32 %v3754_v12, %v3770_v51  ;;  %v3775_v8 = vadd.s32 127, %v3774_v62  ;;  %v3865_v41 = vshll.u32 %v10403_v50, 30  ;;  %4633 = vmatpush1.msra.mxu0 %v4534_v27  ;;  %7320 = vmatprep.subr.mxu1 %v3045_v58  ;;  %v3044_v12 = vld [vmem:[%s13383_s7 + $0xc0] sm:$0xff]  ;;  %v4531_v51 = vld [vmem:[#allocation2 + $0x8] sm:$0xff] }
 0x4b8   :  { %v3933_v33 = vshrl.u32 %v13539_v60, %v10386_v25  ;;  %v3925_v54 = vor.u32 %v3924_v31, %v3923_v10  ;;  %v3928_v45 = vor.u32 %v3927_v16, %v3926_v7  ;;  %4634 = vmatprep.subr.mxu0 %v4533_v48  ;;  %7321 = vmatpush3.msra.mxu1 %v3029_v56  ;;  %v3028_v31 = vld [vmem:[%s13383_s7 + $0x40] sm:$0xff]  ;;  %vm3938_vm4 = vcmp.lt.s32.totalorder %v10377_v53, 1  ;;  %v4592_v7 = vld [vmem:[#allocation2 + $0x1f0] sm:$0xff] }
 0x4b9   :  { %v3931_v26 = vor.u32 %v3930_v63, %v3929_v35  ;;  %v10432_v4 = vor.u32 %v3772_v11, %v3771_v5  ;;  %v3776_v62 = vshll.u32 %v3775_v8, 23  ;;  %v10434_v27 = vsub.s32 %v3862_v13, %v3865_v41  ;;  %v4530_v16 = vld [vmem:[#allocation2] sm:$0xff]  ;;  %4635 = vmatpush1.msra.mxu0 %v4532_v0  ;;  %7322 = vmatprep.subr.mxu1 %v3044_v12  ;;  %v3043_v41 = vld [vmem:[%s13383_s7 + $0xb8] sm:$0xff]  ;;  %v4591_v63 = vld [vmem:[#allocation2 + $0x1e8] sm:$0xff] }
 0x4ba   :  { %v3934_v50 = vor.u32 %v3933_v33, %v3932_v32  ;;  %v3935_v42 = vshll.u32 %v13539_v60, %v10372_v29  ;;  %v3936_v10 = vshrl.u32 %v13582_v30, %v10386_v25  ;;  %vm3939_vm8 = vcmp.lt.s32.totalorder %v10377_v53, 2  ;;  %v4593_v11 = vld [vmem:[#allocation2 + $0x1f8] sm:$0xff]  ;;  %4636 = vmatprep.subr.mxu0 %v4531_v51  ;;  %7323 = vmatpush3.msra.mxu1 %v3028_v31  ;;  %v3026_v12 = vld [vmem:[%s13383_s7 + $0x30] sm:$0xff]  ;;  %v4590_v51 = vld [vmem:[#allocation2 + $0x1e0] sm:$0xff] }
 0x4bb   :  { %v3777_v13 = vor.u32 4788187, %v3776_v62  ;;  %v3868_v8 = vsub.s32 0, %v10434_v27  ;;  %v3922_v29 = vshrl.u32 %v13534_v18, %v10386_v25  ;;  %vm3941_vm6 = vcmp.lt.s32.totalorder %v10377_v53, 4  ;;  %v3027_v0 = vld [vmem:[%s13383_s7 + $0x38] sm:$0xff]  ;;  %4637 = vmatpush1.msra.mxu0 %v4530_v16  ;;  %7324 = vmatprep.subr.mxu1 %v3043_v41  ;;  %v3042_v25 = vld [vmem:[%s13383_s7 + $0xb0] sm:$0xff] }
 0x4bc   :  { %v3937_v35 = vor.u32 %v3936_v10, %v3935_v42  ;;  %vm3940_vm14 = vcmp.lt.s32.totalorder %v10377_v53, 3  ;;  %v3943_v32 = vsel %vm3941_vm6, %v3931_v26, 2102212464  ;;  %v3946_v5 = vsel %vm3938_vm4, %v3925_v54, %v3928_v45  ;;  %4638 = vmatprep.subr.mxu0 %v4593_v11  ;;  %7325 = vmatpush3.msra.mxu1 %v3027_v0  ;;  %v3041_v42 = vld [vmem:[%s13383_s7 + $0xa8] sm:$0xff]  ;;  %v4589_v10 = vld [vmem:[#allocation2 + $0x1d8] sm:$0xff] }
 0x4bd   :  { %v3778_v58 = vand.u32 2147483647, %v3777_v13  ;;  %v3780_v48 = vcvt.s32.f32 %v10432_v4  ;;  %v7200_v33 = vmin.u32 %v3868_v8, %v10434_v27  ;;  %v3947_v56 = vsel %vm3941_vm6, %v3934_v50, 920167782  ;;  %4639 = vmatpush2.msra.mxu0 %v4592_v7  ;;  %7326 = vmatprep.subr.mxu1 %v3042_v25  ;;  %v3025_v13 = vld [vmem:[%s13383_s7 + $0x28] sm:$0xff]  ;;  %v4588_v8 = vld [vmem:[#allocation2 + $0x1d0] sm:$0xff] }
 0x4be   :  { %v3942_v62 = vsel %vm3938_vm4, %v3922_v29, %v3925_v54  ;;  %v3948_v31 = vsel %vm3940_vm14, %v3931_v26, %v3947_v56  ;;  %v3950_v4 = vsel %vm3938_vm4, %v3928_v45, %v3931_v26  ;;  %v3951_v16 = vsel %vm3941_vm6, %v3937_v35, 1326507024  ;;  %4640 = vmatprep.subr.mxu0 %v4591_v63  ;;  %7327 = vmatpush3.msra.mxu1 %v3026_v12  ;;  %v3024_v56 = vld [vmem:[%s13383_s7 + $0x20] sm:$0xff] }
 0x4bf   :  { %v3870_v41 = vclz %v7200_v33  ;;  %v3944_v54 = vsel %vm3940_vm14, %v3928_v45, %v3943_v32  ;;  %v3949_v11 = vsel %vm3939_vm8, %v3946_v5, %v3948_v31  ;;  %v3952_v26 = vsel %vm3940_vm14, %v3934_v50, %v3951_v16  ;;  %4641 = vmatpush2.msra.mxu0 %v4590_v51  ;;  %7328 = vmatprep.subr.mxu1 %v3041_v42  ;;  %v3040_v50 = vld [vmem:[%s13383_s7 + $0xa0] sm:$0xff]  ;;  %v4587_v32 = vld [vmem:[#allocation2 + $0x1c8] sm:$0xff] }
 0x4c0   :  { %v3953_v29 = vsel %vm3939_vm8, %v3950_v4, %v3952_v26  ;;  %v10493_v0 = vmul.u32.u64.low %v10379_v49, %v3949_v11  ;;  %v10494_v7 = vmul.u32.u64.high %v10379_v49, %v3949_v11, %v10493_v0  ;;  %v13602_v45 = vand.u32 2147483647, %v10244_v57  ;;  %4642 = vmatprep.subr.mxu0 %v4589_v10  ;;  %7329 = vmatpush3.msra.mxu1 %v3025_v13  ;;  %v4586_v12 = vld [vmem:[#allocation2 + $0x1c0] sm:$0xff] }
 0x4c1   :  { %v10504_v5 = vmul.f32 %v3780_v48, %v3778_v58  ;;  %v7201_v25 = vadd.s32 4294967294, %v3870_v41  ;;  %v10507_v63 = vmul.u32.u64.low %v10379_v49, %v3953_v29  ;;  %v10508_v33 = vmul.u32.u64.high %v10379_v49, %v3953_v29, %v10507_v63  ;;  %4643 = vmatpush2.msra.mxu0 %v4588_v8  ;;  %7330 = vmatprep.subr.mxu1 %v3040_v50  ;;  %v3022_v29 = vld [vmem:[%s13383_s7 + $0x10] sm:$0xff] }
 0x4c2   :  { %v10499_v35 = vand.u32 8388607, %v13602_v45  ;;  %v13603_v51 = vxor.u32 2147483648, %v10159_v9  ;;  %v3945_v58 = vsel %vm3939_vm8, %v3942_v62, %v3944_v54  ;;  %v4020_v48 = vadd.s32 1, %v10426_v40  ;;  %4644 = vmatprep.subr.mxu0 %v4587_v32  ;;  %7331 = vmatpush3.msra.mxu1 %v3024_v56  ;;  %v3039_v40 = vld [vmem:[%s13383_s7 + $0x98] sm:$0xff]  ;;  %v3038_v62 = vld [vmem:[%s13383_s7 + $0x90] sm:$0xff] }
 0x4c3   :  { %v13604_v4 = vand.u32 2147483647, %v10236_v24  ;;  %v13605_v16 = vcvt.s32.f32 %v10192_v22  ;;  %v13606_v10 = vand.u32 2147483647, %v10254_v3  ;;  %v2996_v11 = vand.u32 2147483647, %v10370_v28  ;;  %4645 = vmatpush2.msra.mxu0 %v4586_v12  ;;  %7332 = vmatprep.subr.mxu1 %v3039_v40 }
 0x4c4   :  { %v10518_v31 = vsel %vm2606_vm10, %v13603_v51, %v10159_v9  ;;  %v13607_v9 = vcvt.s32.f32 %v10252_v55  ;;  %vm7202_vm15 = vcmp.lt.s32.totalorder %v7201_v25, 0  ;;  %v4585_v24 = vld [vmem:[#allocation2 + $0x1b8] sm:$0xff]  ;;  %v2998_v3 = vcvt.s32.f32 %v10362_v59  ;;  %v4584_v28 = vld [vmem:[#allocation2 + $0x1b0] sm:$0xff]  ;;  %v4583_v54 = vld [vmem:[#allocation2 + $0x1a8] sm:$0xff] }
 0x4c5   :  { %v10528_v42 = vmul.f32 %v13605_v16, %v13604_v4  ;;  %v3023_v22 = vld [vmem:[%s13383_s7 + $0x18] sm:$0xff]  ;;  %v10544_v53 = vsel %vm7202_vm15, 0, %v7201_v25  ;;  %v3964_v55 = vadd.s32 1, %v10494_v7  ;;  %vm4021_vm13 = vcmp.gt.s32.totalorder %v4020_v48, 0  ;;  %4646 = vmatprep.subr.mxu0 %v4585_v24  ;;  %v4582_v45 = vld [vmem:[#allocation2 + $0x1a0] sm:$0xff]  ;;  %v3689_v25 = vpop.f32.mrf.mxu0  ;;  %v4580_v4 = vld [vmem:[#allocation2 + $0x190] sm:$0xff] }
 0x4c6   :  { %v10534_v41 = vmul.f32 %v13607_v9, %v13606_v10  ;;  %v3782_v26 = vxor.u32 2147483648, %v10504_v5  ;;  %v3961_v13 = vmul.u32 %v10379_v49, %v3945_v58  ;;  %v4018_v8 = vor.u32 8388608, %v10499_v35  ;;  %7333 = vmatpush3.msra.mxu1 %v3023_v22  ;;  %4647 = vmatpush2.msra.mxu0 %v4584_v28  ;;  %v3037_v35 = vld [vmem:[%s13383_s7 + $0x88] sm:$0xff]  ;;  %v4581_v63 = vld [vmem:[#allocation2 + $0x198] sm:$0xff] }
 0x4c7   :  { %v13472_v59 = vand.u32 2147483647, %v10389_v2  ;;  %v3874_v50 = vsub.s32 32, %v10544_v53  ;;  %v3878_v32 = vsub.s32 4294967266, %v10544_v53  ;;  %vm3963_vm1 = vc.u32 %v10508_v33, %v10493_v0  ;;  %7334 = vmatprep.subr.mxu1 %v3038_v62  ;;  %4648 = vmatprep.subr.mxu0 %v4583_v54  ;;  %v4579_v24 = vld [vmem:[#allocation2 + $0x188] sm:$0xff] }
 0x4c8   :  { %v4022_v49 = vsel %vm4021_vm13, %v4020_v48, 0  ;;  %v3965_v51 = vsel %vm3963_vm1, %v3964_v55, %v10494_v7  ;;  %v4117_v58 = vand.u32 2139095040, %v10389_v2  ;;  %7335 = vmatpush3.msra.mxu1 %v3022_v29  ;;  %v3021_v48 = vld [vmem:[%s13383_s7 + $0x8] sm:$0xff]  ;;  %v10572_v16 = vmul.f32 %v2998_v3, %v2996_v11  ;;  %4649 = vmatpush2.msra.mxu0 %v4582_v45  ;;  %v3036_v7 = vld [vmem:[%s13383_s7 + $0x80] sm:$0xff] }
 0x4c9   :  { %v3858_v10 = vadd.s32 %v10315_v20, %v10329_v19  ;;  %v3966_v9 = vadd.s32 %v3965_v51, %v3961_v13  ;;  %v4024_v40 = vand.u32 31, %v4022_v49  ;;  %7336 = vmatprep.subr.mxu1 %v3037_v35  ;;  %v10582_v22 = vsel %vm13487_vm3, %v3782_v26, %v10504_v5  ;;  %4650 = vmatprep.subr.mxu0 %v4581_v63  ;;  %v3020_v19 = vld [vmem:[%s13383_s7] sm:$0xff] }
 0x4ca   :  { %v10584_v55 = vshll.u32 %v4018_v8, 8  ;;  %v10588_v11 = vand.u32 8388607, %v13472_v59  ;;  %v10591_v20 = vadd.f32 %v3689_v25, %v10095_v17  ;;  %7337 = vmatpush3.msra.mxu1 %v3021_v48  ;;  %v10598_v28 = vadd.s32 127, %v3878_v32  ;;  %4651 = vmatpush2.msra.mxu0 %v4580_v4 }
 0x4cb   :  { %v10596_v3 = vshrl.u32 %v3858_v10, %v3874_v50  ;;  %v3967_v5 = vadd.s32 536870912, %v3966_v9  ;;  %v4025_v62 = vsub.s32 32, %v4024_v40  ;;  %7338 = vmatprep.subr.mxu1 %v3036_v7  ;;  %v10600_v54 = vshrl.u32 %v4022_v49, 5  ;;  %4652 = vmatprep.subr.mxu0 %v4579_v24  ;;  %v4578_v24 = vld [vmem:[#allocation2 + $0x180] sm:$0xff] }
 0x4cc   :  { %v4027_v26 = vshll.u32 %v13534_v18, %v4024_v40  ;;  %v4030_v13 = vshll.u32 %v13536_v14, %v4024_v40  ;;  %v4118_v8 = vshrl.u32 %v4117_v58, 23  ;;  %7339 = vmatpush3.msra.mxu1 %v3020_v19  ;;  %v4033_v32 = vshll.u32 %v13537_v15, %v4024_v40  ;;  %v4577_v19 = vld [vmem:[#allocation2 + $0x178] sm:$0xff]  ;;  %4653 = vmatpush2.msra.mxu0 %v4578_v24 }
 0x4cd   :  { %v10604_v29 = vshrl.u32 %v3967_v5, 30  ;;  %v4028_v45 = vshrl.u32 %v13536_v14, %v4025_v62  ;;  %v4031_v50 = vshrl.u32 %v13537_v15, %v4025_v62  ;;  %vm2710_vm7 = vcmp.lt.s32.totalorder %v9871_v23, 0  ;;  %v4576_v5 = vld [vmem:[#allocation2 + $0x170] sm:$0xff]  ;;  %4654 = vmatprep.subr.mxu0 %v4577_v19  ;;  %v4571_v19 = vld [vmem:[#allocation2 + $0x148] sm:$0xff] }
 0x4ce   :  { %v4034_v49 = vshrl.u32 %v13538_v52, %v4025_v62  ;;  %v4036_v25 = vshll.u32 %v13538_v52, %v4024_v40  ;;  %v4037_v35 = vshrl.u32 %v13539_v60, %v4025_v62  ;;  %v4039_v63 = vshll.u32 %v13539_v60, %v4024_v40  ;;  %4655 = vmatpush2.msra.mxu0 %v4576_v5 }
 0x4cf   :  { %13608 = vst [vmem:[#allocation24_spill] sm:$0xff] %v10604_v29  ;;  %v13609_v51 = vand.u32 2147483647, %v10090_v21  ;;  %v13610_v58 = vmov 0  ;;  %v3969_v48 = vshll.u32 %v10604_v29, 30  ;;  %v4029_v4 = vor.u32 %v4028_v45, %v4027_v26  ;;  %v4574_v45 = vld [vmem:[#allocation2 + $0x160] sm:$0xff] }
 0x4d0   :  { %v4032_v10 = vor.u32 %v4031_v50, %v4030_v13  ;;  %v4040_v7 = vshrl.u32 %v13582_v30, %v4025_v62  ;;  %vm2814_vm4 = vcmp.lt.s32.totalorder %v9884_v1, 0  ;;  %v3880_v59 = vshll.u32 %v10598_v28, 23 }
 0x4d1   :  { %vm10616_vm9 = vcmp.le.f32.partialorder %v13609_v51, 0.7853982  ;;  %v4035_v40 = vor.u32 %v4034_v49, %v4033_v32  ;;  %v4038_v12 = vor.u32 %v4037_v35, %v4036_v25  ;;  %vm4042_vm8 = vcmp.lt.s32.totalorder %v10600_v54, 1  ;;  %v4575_v51 = vld [vmem:[#allocation2 + $0x168] sm:$0xff]  ;;  %v4572_v35 = vld [vmem:[#allocation2 + $0x150] sm:$0xff] }
 0x4d2   :  { %v13611_v58 = vsel %vm10616_vm9, 4294967295, %v13610_v58  ;;  %v10625_v56 = vsub.s32 %v3966_v9, %v3969_v48  ;;  %v4026_v26 = vshrl.u32 %v13534_v18, %v4025_v62  ;;  %v4041_v13 = vor.u32 %v4040_v7, %v4039_v63  ;;  %v4573_v9 = vld [vmem:[#allocation2 + $0x158] sm:$0xff]  ;;  %4656 = vmatprep.subr.mxu0 %v4575_v51 }
 0x4d3   :  { %13612 = vst [vmem:[#allocation25_spill] sm:$0xff] %v13611_v58  ;;  %vm4045_vm6 = vcmp.lt.s32.totalorder %v10600_v54, 4  ;;  %vm4044_vm14 = vcmp.lt.s32.totalorder %v10600_v54, 3  ;;  %v4050_v50 = vsel %vm4042_vm8, %v4029_v4, %v4032_v10  ;;  %vm4043_vm15 = vcmp.lt.s32.totalorder %v10600_v54, 2  ;;  %4657 = vmatpush2.msra.mxu0 %v4574_v45  ;;  %v4562_v58 = vld [vmem:[#allocation2 + $0x100] sm:$0xff] }
 0x4d4   :  { %v4047_v28 = vsel %vm4045_vm6, %v4035_v40, 2102212464  ;;  %v4051_v32 = vsel %vm4045_vm6, %v4038_v12, 920167782  ;;  %v3972_v62 = vsub.s32 0, %v10625_v56  ;;  %v4054_v25 = vsel %vm4042_vm8, %v4032_v10, %v4035_v40  ;;  %4658 = vmatprep.subr.mxu0 %v4573_v9 }
 0x4d5   :  { %v4052_v49 = vsel %vm4044_vm14, %v4035_v40, %v4051_v32  ;;  %vm2918_vm13 = vcmp.lt.s32.totalorder %v9965_v6, 0  ;;  %v4046_v63 = vsel %vm4042_vm8, %v4026_v26, %v4029_v4  ;;  %v4048_v48 = vsel %vm4044_vm14, %v4032_v10, %v4047_v28  ;;  %v4570_v4 = vld [vmem:[#allocation2 + $0x140] sm:$0xff]  ;;  %4659 = vmatpush2.msra.mxu0 %v4572_v35  ;;  %v4569_v28 = vld [vmem:[#allocation2 + $0x138] sm:$0xff] }
 0x4d6   :  { %v4053_v7 = vsel %vm4043_vm15, %v4050_v50, %v4052_v49  ;;  %v4055_v24 = vsel %vm4045_vm6, %v4041_v13, 1326507024  ;;  %v7204_v5 = vmin.u32 %v3972_v62, %v10625_v56  ;;  %v3875_v10 = vshll.u32 %v10434_v27, %v10544_v53  ;;  %4660 = vmatprep.subr.mxu0 %v4571_v19  ;;  %v4568_v27 = vld [vmem:[#allocation2 + $0x130] sm:$0xff] }
 0x4d7   :  { %v4056_v40 = vsel %vm4044_vm14, %v4038_v12, %v4055_v24  ;;  %v10655_v51 = vmul.u32.u64.low %v10584_v55, %v4053_v7  ;;  %v10656_v32 = vmul.u32.u64.high %v10584_v55, %v4053_v7, %v10655_v51  ;;  %v3881_v26 = vor.u32 4788187, %v3880_v59  ;;  %4661 = vmatpush2.msra.mxu0 %v4570_v4 }
 0x4d8   :  { %v4057_v13 = vsel %vm4043_vm15, %v4054_v25, %v4056_v40  ;;  %v7211_v45 = vadd.s32 4294967169, %v4118_v8  ;;  %v13613_v12 = vxor.u32 2147483648, %v10528_v42  ;;  %v3974_v62 = vclz %v7204_v5  ;;  %4662 = vmatprep.subr.mxu0 %v4569_v28 }
 0x4d9   :  { %v10671_v9 = vmul.u32.u64.low %v10584_v55, %v4057_v13  ;;  %v10672_v49 = vmul.u32.u64.high %v10584_v55, %v4057_v13, %v10671_v9  ;;  %v3786_v53 = vsel %vm10616_vm9, %v10090_v21, %v10582_v22  ;;  %v3877_v59 = vor.u32 %v10596_v3, %v3875_v10  ;;  %4663 = vmatpush2.msra.mxu0 %v4568_v27  ;;  %v4566_v10 = vld [vmem:[#allocation2 + $0x120] sm:$0xff] }
 0x4da   :  { %v10668_v50 = vsel %vm2710_vm7, %v13613_v12, %v10528_v42  ;;  %v4049_v8 = vsel %vm4043_vm15, %v4046_v63, %v4048_v48  ;;  %v4124_v25 = vadd.s32 1, %v7211_v45  ;;  %v4567_v42 = vld [vmem:[#allocation2 + $0x128] sm:$0xff]  ;;  %v13614_v35 = vxor.u32 2147483648, %v10534_v41 }
 0x4db   :  { %v3000_v24 = vxor.u32 2147483648, %v10572_v16  ;;  %v7205_v19 = vadd.s32 4294967294, %v3974_v62  ;;  %v4068_v22 = vadd.s32 1, %v10656_v32  ;;  %v3882_v3 = vand.u32 2147483647, %v3881_v26  ;;  %4664 = vmatprep.subr.mxu0 %v4567_v42 }
 0x4dc   :  { %v10686_v7 = vsel %vm2814_vm4, %v13614_v35, %v10534_v41  ;;  %v4122_v54 = vor.u32 8388608, %v10588_v11  ;;  %vm4125_vm1 = vcmp.gt.s32.totalorder %v4124_v25, 0  ;;  %v4221_v63 = vand.u32 2139095040, %v10591_v20  ;;  %4665 = vmatpush2.msra.mxu0 %v4566_v10 }
 0x4dd   :  { %7699 = vcosq.f32 %v3786_v53  ;;  %v4065_v48 = vmul.u32 %v10584_v55, %v4049_v8  ;;  %vm4067_vm8 = vc.u32 %v10672_v49, %v10655_v51  ;;  %v4126_v41 = vsel %vm4125_vm1, %v4124_v25, 0  ;;  %v3693_v25 = vpop.f32.mrf.mxu0 }
 0x4de   :  { %v3884_v5 = vcvt.s32.f32 %v3877_v59  ;;  %vm7206_vm6 = vcmp.lt.s32.totalorder %v7205_v19, 0  ;;  %v4069_v40 = vsel %vm4067_vm8, %v4068_v22, %v10656_v32  ;;  %v4128_v4 = vand.u32 31, %v4126_v41 }
 0x4df   :  { %v10699_v11 = vsel %vm2918_vm13, %v3000_v24, %v10572_v16  ;;  %7701 = vsinq.f32 %v3786_v53  ;;  %v4070_v26 = vadd.s32 %v4069_v40, %v4065_v48  ;;  %v13476_v55 = vand.u32 2147483647, %v10591_v20  ;;  %v4565_v48 = vld [vmem:[#allocation2 + $0x118] sm:$0xff]  ;;  %v4563_v40 = vld [vmem:[#allocation2 + $0x108] sm:$0xff] }
 0x4e0   :  { %v10702_v13 = vmul.f32 %v3884_v5, %v3882_v3  ;;  %v4129_v45 = vsub.s32 32, %v4128_v4  ;;  %v10704_v28 = vshll.u32 %v4122_v54, 8  ;;  %v4222_v12 = vshrl.u32 %v4221_v63, 23  ;;  %v4564_v5 = vld [vmem:[#allocation2 + $0x110] sm:$0xff]  ;;  %4666 = vmatprep.subr.mxu0 %v4565_v48 }
 0x4e1   :  { %v10706_v62 = vsel %vm7206_vm6, 0, %v7205_v19  ;;  %v4071_v32 = vadd.s32 536870912, %v4070_v26  ;;  %v4131_v9 = vshll.u32 %v13534_v18, %v4128_v4  ;;  %v4134_v27 = vshll.u32 %v13536_v14, %v4128_v4  ;;  %4667 = vmatpush2.msra.mxu0 %v4564_v5 }
 0x4e2   :  { %v4132_v16 = vshrl.u32 %v13536_v14, %v4129_v45  ;;  %v4135_v53 = vshrl.u32 %v13537_v15, %v4129_v45  ;;  %v4137_v59 = vshll.u32 %v13537_v15, %v4128_v4  ;;  %v4138_v8 = vshrl.u32 %v13538_v52, %v4129_v45  ;;  %4668 = vmatprep.subr.mxu0 %v4563_v40 }
 0x4e3   :  { %v10714_v42 = vshrl.u32 %v4071_v32, 30  ;;  %v4127_v35 = vshrl.u32 %v4126_v41, 5  ;;  %v4140_v24 = vshll.u32 %v13538_v52, %v4128_v4  ;;  %v4141_v19 = vshrl.u32 %v13539_v60, %v4129_v45  ;;  %4669 = vmatpush2.msra.mxu0 %v4562_v58 }
 0x4e4   :  { %v4133_v22 = vor.u32 %v4132_v16, %v4131_v9  ;;  %v4136_v3 = vor.u32 %v4135_v53, %v4134_v27  ;;  %v4139_v54 = vor.u32 %v4138_v8, %v4137_v59  ;;  %v10720_v63 = vand.u32 8388607, %v13476_v55 }
 0x4e5   :  { %13615 = vst [vmem:[#allocation26_spill] sm:$0xff] %v10714_v42  ;;  %v4073_v10 = vshll.u32 %v10714_v42, 30  ;;  %v4142_v29 = vor.u32 %v4141_v19, %v4140_v24  ;;  %v7215_v32 = vadd.s32 4294967169, %v4222_v12  ;;  %v10724_v41 = vadd.f32 %v3693_v25, %v9861_v38 }
 0x4e6   :  { %v3978_v9 = vsub.s32 32, %v10706_v62  ;;  %v3982_v27 = vsub.s32 4294967266, %v10706_v62  ;;  %v4143_v16 = vshll.u32 %v13539_v60, %v4128_v4  ;;  %v4144_v53 = vshrl.u32 %v13582_v30, %v4129_v45 }
 0x4e7   :  { %13616 = vst [vmem:[#allocation27_spill] sm:$0xff] %v10724_v41  ;;  %v10730_v59 = vsub.s32 %v4070_v26, %v4073_v10  ;;  %vm4146_vm14 = vcmp.lt.s32.totalorder %v4127_v35, 1  ;;  %vm4148_vm15 = vcmp.lt.s32.totalorder %v4127_v35, 3  ;;  %vm4149_vm1 = vcmp.lt.s32.totalorder %v4127_v35, 4 }
 0x4e8   :  { %v4145_v12 = vor.u32 %v4144_v53, %v4143_v16  ;;  %v4151_v38 = vsel %vm4149_vm1, %v4139_v54, 2102212464  ;;  %v4154_v8 = vsel %vm4146_vm14, %v4133_v22, %v4136_v3  ;;  %v4155_v25 = vsel %vm4149_vm1, %v4142_v29, 920167782 }
 0x4e9   :  { %v4076_v24 = vsub.s32 0, %v10730_v59  ;;  %v4130_v19 = vshrl.u32 %v13534_v18, %v4129_v45  ;;  %vm4147_vm8 = vcmp.lt.s32.totalorder %v4127_v35, 2  ;;  %v4156_v4 = vsel %vm4148_vm15, %v4139_v54, %v4155_v25  ;;  %v3695_v45 = vpop.f32.mrf.mxu0 }
 0x4ea   :  { %v10736_v48 = vpop.eup %7699  ;;  %v3983_v26 = vadd.s32 127, %v3982_v27  ;;  %v4157_v5 = vsel %vm4147_vm8, %v4154_v8, %v4156_v4  ;;  %v4158_v40 = vsel %vm4146_vm14, %v4136_v3, %v4139_v54  ;;  %v4159_v10 = vsel %vm4149_vm1, %v4145_v12, 1326507024 }
 0x4eb   :  { %13617 = vst [vmem:[#allocation28_spill] sm:$0xff] %v10736_v48  ;;  %v7208_v16 = vmin.u32 %v4076_v24, %v10730_v59  ;;  %v4150_v53 = vsel %vm4146_vm14, %v4130_v19, %v4133_v22  ;;  %v4152_v58 = vsel %vm4148_vm15, %v4136_v3, %v4151_v38  ;;  %v4160_v55 = vsel %vm4148_vm15, %v4142_v29, %v4159_v10 }
 0x4ec   :  { %v10744_v42 = vpop.eup %7701  ;;  %v4161_v25 = vsel %vm4147_vm8, %v4158_v40, %v4160_v55  ;;  %v10748_v27 = vmul.u32.u64.low %v10704_v28, %v4157_v5  ;;  %v10749_v48 = vmul.u32.u64.high %v10704_v28, %v4157_v5, %v10748_v27  ;;  %v4228_v54 = vadd.s32 1, %v7215_v32 }
 0x4ed   :  { %13618 = vst [vmem:[#allocation29_spill] sm:$0xff] %v10744_v42  ;;  %v3962_v12 = vadd.s32 %v10493_v0, %v10508_v33  ;;  %v4078_v8 = vclz %v7208_v16  ;;  %v10755_v22 = vmul.u32.u64.low %v10704_v28, %v4161_v25  ;;  %v10756_v3 = vmul.u32.u64.high %v10704_v28, %v4161_v25, %v10755_v22 }
 0x4ee   :  { %v4153_v38 = vsel %vm4147_vm8, %v4150_v53, %v4152_v58  ;;  %vm4229_vm6 = vcmp.gt.s32.totalorder %v4228_v54, 0  ;;  %v10761_v55 = vadd.f32 %v3695_v45, %v10095_v17  ;;  %v3984_v19 = vshll.u32 %v3983_v26, 23 }
 0x4ef   :  { %v3980_v24 = vshrl.u32 %v3962_v12, %v3978_v9  ;;  %v7209_v4 = vadd.s32 4294967294, %v4078_v8  ;;  %v4230_v32 = vsel %vm4229_vm6, %v4228_v54, 0  ;;  %v4172_v5 = vadd.s32 1, %v10749_v48 }
 0x4f0   :  { %13619 = vst [vmem:[#allocation30_spill] sm:$0xff] %v10761_v55  ;;  %v4226_v0 = vor.u32 8388608, %v10720_v63  ;;  %v4232_v33 = vand.u32 31, %v4230_v32  ;;  %v13483_v40 = vand.u32 2147483647, %v10724_v41  ;;  %v3979_v10 = vshll.u32 %v10625_v56, %v10706_v62 }
 0x4f1   :  { %vm7210_vm14 = vcmp.lt.s32.totalorder %v7209_v4, 0  ;;  %v4169_v35 = vmul.u32 %v10704_v28, %v4153_v38  ;;  %vm4171_vm15 = vc.u32 %v10756_v3, %v10748_v27  ;;  %v4066_v17 = vadd.s32 %v10655_v51, %v10672_v49 }
 0x4f2   :  { %v4081_v9 = vsel %vm7210_vm14, 0, %v7209_v4  ;;  %v4173_v26 = vsel %vm4171_vm15, %v4172_v5, %v10749_v48  ;;  %v4233_v16 = vsub.s32 32, %v4232_v33  ;;  %v10774_v63 = vor.u32 %v3980_v24, %v3979_v10 }
 0x4f3   :  { %v10776_v53 = vor.u32 4788187, %v3984_v19  ;;  %v4086_v58 = vsub.s32 4294967266, %v4081_v9  ;;  %v4174_v45 = vadd.s32 %v4173_v26, %v4169_v35  ;;  %v10780_v62 = vshll.u32 %v4226_v0, 8 }
 0x4f4   :  { %v4236_v56 = vshrl.u32 %v13536_v14, %v4233_v16  ;;  %v4239_v28 = vshrl.u32 %v13537_v15, %v4233_v16  ;;  %v4325_v25 = vand.u32 2139095040, %v10724_v41  ;;  %v4082_v54 = vsub.s32 32, %v4081_v9 }
 0x4f5   :  { %v4175_v51 = vadd.s32 536870912, %v4174_v45  ;;  %v4231_v49 = vshrl.u32 %v4230_v32, 5  ;;  %v4235_v48 = vshll.u32 %v13534_v18, %v4232_v33  ;;  %v4087_v12 = vadd.s32 127, %v4086_v58 }
 0x4f6   :  { %v4238_v8 = vshll.u32 %v13536_v14, %v4232_v33  ;;  %v4241_v22 = vshll.u32 %v13537_v15, %v4232_v33  ;;  %v4242_v38 = vshrl.u32 %v13538_v52, %v4233_v16  ;;  %v4244_v4 = vshll.u32 %v13538_v52, %v4232_v33 }
 0x4f7   :  { %v10787_v24 = vshrl.u32 %v4175_v51, 30  ;;  %v4237_v19 = vor.u32 %v4236_v56, %v4235_v48  ;;  %v4245_v5 = vshrl.u32 %v13539_v60, %v4233_v16  ;;  %v4247_v32 = vshll.u32 %v13539_v60, %v4232_v33 }
 0x4f8   :  { %v4240_v0 = vor.u32 %v4239_v28, %v4238_v8  ;;  %v4243_v10 = vor.u32 %v4242_v38, %v4241_v22  ;;  %v4248_v35 = vshrl.u32 %v13582_v30, %v4233_v16  ;;  %vm3804_vm1 = vcmp.lt.s32.totalorder %v10117_v34, 0 }
 0x4f9   :  { %13620 = vst [vmem:[#allocation31_spill] sm:$0xff] %v10787_v24  ;;  %v4177_v26 = vshll.u32 %v10787_v24, 30  ;;  %v4246_v58 = vor.u32 %v4245_v5, %v4244_v4  ;;  %v4326_v29 = vshrl.u32 %v4325_v25, 23  ;;  %v4329_v51 = vand.u32 8388607, %v13483_v40 }
 0x4fa   :  { %v4083_v56 = vshll.u32 %v10730_v59, %v4081_v9  ;;  %v4088_v48 = vshll.u32 %v4087_v12, 23  ;;  %v4234_v42 = vshrl.u32 %v13534_v18, %v4233_v16  ;;  %v4249_v28 = vor.u32 %v4248_v35, %v4247_v32 }
 0x4fb   :  { %v4084_v8 = vshrl.u32 %v4066_v17, %v4082_v54  ;;  %v10799_v22 = vsub.s32 %v4174_v45, %v4177_v26  ;;  %vm4250_vm8 = vcmp.lt.s32.totalorder %v4231_v49, 1  ;;  %vm4253_vm6 = vcmp.lt.s32.totalorder %v4231_v49, 4 }
 0x4fc   :  { %vm4252_vm14 = vcmp.lt.s32.totalorder %v4231_v49, 3  ;;  %v4255_v33 = vsel %vm4253_vm6, %v4243_v10, 2102212464  ;;  %v4258_v38 = vsel %vm4250_vm8, %v4237_v19, %v4240_v0  ;;  %v4259_v24 = vsel %vm4253_vm6, %v4246_v58, 920167782 }
 0x4fd   :  { %v4180_v25 = vsub.s32 0, %v10799_v22  ;;  %vm4251_vm15 = vcmp.lt.s32.totalorder %v4231_v49, 2  ;;  %v4260_v4 = vsel %vm4252_vm14, %v4243_v10, %v4259_v24  ;;  %v4262_v5 = vsel %vm4250_vm8, %v4240_v0, %v4243_v10 }
 0x4fe   :  { %v4089_v40 = vor.u32 4788187, %v4088_v48  ;;  %v4261_v59 = vsel %vm4251_vm15, %v4258_v38, %v4260_v4  ;;  %v4263_v9 = vsel %vm4253_vm6, %v4249_v28, 1326507024  ;;  %v7219_v16 = vadd.s32 4294967169, %v4326_v29 }
 0x4ff   :  { %v7212_v17 = vmin.u32 %v4180_v25, %v10799_v22  ;;  %v4254_v45 = vsel %vm4250_vm8, %v4234_v42, %v4237_v19  ;;  %v4256_v54 = vsel %vm4252_vm14, %v4240_v0, %v4255_v33  ;;  %v4264_v12 = vsel %vm4252_vm14, %v4246_v58, %v4263_v9 }
 0x500   :  { %v4265_v32 = vsel %vm4251_vm15, %v4262_v5, %v4264_v12  ;;  %v10806_v35 = vmul.u32.u64.low %v10780_v62, %v4261_v59  ;;  %v10807_v26 = vmul.u32.u64.high %v10780_v62, %v4261_v59, %v10806_v35  ;;  %v4332_v41 = vadd.s32 1, %v7219_v16 }
 0x501   :  { %v4085_v24 = vor.u32 %v4084_v8, %v4083_v56  ;;  %v4182_v10 = vclz %v7212_v17  ;;  %v10811_v48 = vmul.u32.u64.low %v10780_v62, %v4265_v32  ;;  %v10812_v38 = vmul.u32.u64.high %v10780_v62, %v4265_v32, %v10811_v48 }
 0x502   :  { %v13621_v29 = vxor.u32 2147483648, %v10702_v13  ;;  %v3986_v19 = vand.u32 2147483647, %v10776_v53  ;;  %v4257_v0 = vsel %vm4251_vm15, %v4254_v45, %v4256_v54  ;;  %vm4333_vm8 = vcmp.gt.s32.totalorder %v4332_v41, 0 }
 0x503   :  { %v4090_v58 = vand.u32 2147483647, %v4089_v40  ;;  %v7213_v28 = vadd.s32 4294967294, %v4182_v10  ;;  %v4330_v56 = vor.u32 8388608, %v4329_v51  ;;  %v4334_v8 = vsel %vm4333_vm8, %v4332_v41, 0 }
 0x504   :  { %v10819_v42 = vsel %vm3804_vm1, %v13621_v29, %v10702_v13  ;;  %v3988_v33 = vcvt.s32.f32 %v10774_v63  ;;  %v4276_v25 = vadd.s32 1, %v10807_v26  ;;  %v4336_v4 = vand.u32 31, %v4334_v8 }
 0x505   :  { %v13486_v5 = vand.u32 2147483647, %v10761_v55  ;;  %v13622_v59 = vand.u32 2147483647, %v9664_v46  ;;  %v4092_v53 = vcvt.s32.f32 %v4085_v24  ;;  %vm7214_vm14 = vcmp.lt.s32.totalorder %v7213_v28, 0 }
 0x506   :  { %v4273_v40 = vmul.u32 %v10780_v62, %v4257_v0  ;;  %vm4275_vm15 = vc.u32 %v10812_v38, %v10806_v35  ;;  %v10835_v41 = vmul.f32 %v3988_v33, %v3986_v19  ;;  %v4185_v63 = vsel %vm7214_vm14, 0, %v7213_v28 }
 0x507   :  { %vm10828_vm6 = vcmp.le.f32.partialorder %v13622_v59, 0.7853982  ;;  %v4277_v49 = vsel %vm4275_vm15, %v4276_v25, %v10807_v26  ;;  %v4337_v51 = vsub.s32 32, %v4336_v4  ;;  %v10838_v9 = vmul.f32 %v4092_v53, %v4090_v58 }
 0x508   :  { %v4170_v16 = vadd.s32 %v10748_v27, %v10756_v3  ;;  %v4278_v17 = vadd.s32 %v4277_v49, %v4273_v40  ;;  %v10842_v45 = vshll.u32 %v4330_v56, 8  ;;  %v4429_v12 = vand.u32 2139095040, %v10761_v55 }
 0x509   :  { %v4340_v54 = vshrl.u32 %v13536_v14, %v4337_v51  ;;  %v4343_v62 = vshrl.u32 %v13537_v15, %v4337_v51  ;;  %v10849_v32 = vand.u32 8388607, %v13486_v5  ;;  %v4186_v26 = vsub.s32 32, %v4185_v63 }
 0x50a   :  { %v4279_v24 = vadd.s32 536870912, %v4278_v17  ;;  %v4335_v10 = vshrl.u32 %v4334_v8, 5  ;;  %v4339_v48 = vshll.u32 %v13534_v18, %v4336_v4  ;;  %v4190_v29 = vsub.s32 4294967266, %v4185_v63 }
 0x50b   :  { %v4342_v27 = vshll.u32 %v13536_v14, %v4336_v4  ;;  %v4345_v3 = vshll.u32 %v13537_v15, %v4336_v4  ;;  %v4346_v19 = vshrl.u32 %v13538_v52, %v4337_v51  ;;  %v4348_v28 = vshll.u32 %v13538_v52, %v4336_v4 }
 0x50c   :  { %v10855_v0 = vshrl.u32 %v4279_v24, 30  ;;  %v4341_v58 = vor.u32 %v4340_v54, %v4339_v48  ;;  %v4349_v56 = vshrl.u32 %v13539_v60, %v4337_v51  ;;  %v4351_v8 = vshll.u32 %v13539_v60, %v4336_v4 }
 0x50d   :  { %v4344_v33 = vor.u32 %v4343_v62, %v4342_v27  ;;  %v4347_v25 = vor.u32 %v4346_v19, %v4345_v3  ;;  %v4352_v59 = vshrl.u32 %v13582_v30, %v4337_v51  ;;  %v4430_v49 = vshrl.u32 %v4429_v12, 23 }
 0x50e   :  { %13625 = vst [vmem:[#allocation32_spill] sm:$0xff] %v10855_v0  ;;  %v4281_v53 = vshll.u32 %v10855_v0, 30  ;;  %v4350_v40 = vor.u32 %v4349_v56, %v4348_v28  ;;  %v2380_v24 = vsel %vm10828_vm6, %v9664_v46, %v10172_v44  ;;  %v4187_v54 = vshll.u32 %v10799_v22, %v4185_v63 }
 0x50f   :  { %v4191_v48 = vadd.s32 127, %v4190_v29  ;;  %v4338_v5 = vshrl.u32 %v13534_v18, %v4337_v51  ;;  %v4353_v62 = vor.u32 %v4352_v59, %v4351_v8  ;;  %v4188_v27 = vshrl.u32 %v4170_v16, %v4186_v26 }
 0x510   :  { %v10868_v3 = vsub.s32 %v4278_v17, %v4281_v53  ;;  %vm4354_vm8 = vcmp.lt.s32.totalorder %v4335_v10, 1  ;;  %vm4357_vm14 = vcmp.lt.s32.totalorder %v4335_v10, 4  ;;  %vm4356_vm15 = vcmp.lt.s32.totalorder %v4335_v10, 3 }
 0x511   :  { %v4359_v4 = vsel %vm4357_vm14, %v4347_v25, 2102212464  ;;  %v4362_v19 = vsel %vm4354_vm8, %v4341_v58, %v4344_v33  ;;  %v4363_v12 = vsel %vm4357_vm14, %v4350_v40, 920167782  ;;  %vm4355_vm3 = vcmp.lt.s32.totalorder %v4335_v10, 2 }
 0x512   :  { %v4284_v28 = vsub.s32 0, %v10868_v3  ;;  %v4364_v56 = vsel %vm4356_vm15, %v4347_v25, %v4363_v12  ;;  %v4366_v44 = vsel %vm4354_vm8, %v4344_v33, %v4347_v25  ;;  %v4192_v0 = vshll.u32 %v4191_v48, 23 }
 0x513   :  { %v4365_v22 = vsel %vm4355_vm3, %v4362_v19, %v4364_v56  ;;  %v4367_v63 = vsel %vm4357_vm14, %v4353_v62, 1326507024  ;;  %v7223_v51 = vadd.s32 4294967169, %v4430_v49  ;;  %v4358_v17 = vsel %vm4354_vm8, %v4338_v5, %v4341_v58 }
 0x514   :  { %v7216_v16 = vmin.u32 %v4284_v28, %v10868_v3  ;;  %v4360_v26 = vsel %vm4356_vm15, %v4344_v33, %v4359_v4  ;;  %v4368_v29 = vsel %vm4356_vm15, %v4350_v40, %v4367_v63  ;;  %v10883_v49 = vor.u32 %v4188_v27, %v4187_v54 }
 0x515   :  { %v4369_v8 = vsel %vm4355_vm3, %v4366_v44, %v4368_v29  ;;  %v10875_v59 = vmul.u32.u64.low %v10842_v45, %v4365_v22  ;;  %v10876_v53 = vmul.u32.u64.high %v10842_v45, %v4365_v22, %v10875_v59  ;;  %v4436_v55 = vadd.s32 1, %v7223_v51 }
 0x516   :  { %v4286_v25 = vclz %v7216_v16  ;;  %v10880_v48 = vmul.u32.u64.low %v10842_v45, %v4369_v8  ;;  %v10881_v19 = vmul.u32.u64.high %v10842_v45, %v4369_v8, %v10880_v48  ;;  %v4361_v5 = vsel %vm4355_vm3, %v4358_v17, %v4360_v26 }
 0x517   :  { %vm4437_vm8 = vcmp.gt.s32.totalorder %v4436_v55, 0  ;;  %v2378_v58 = vsub.s32 4, %v9773_v43  ;;  %v10887_v33 = vor.u32 4788187, %v4192_v0  ;;  %7703 = vsinq.f32 %v2380_v24 }
 0x518   :  { %v7217_v40 = vadd.s32 4294967294, %v4286_v25  ;;  %v4438_v62 = vsel %vm4437_vm8, %v4436_v55, 0  ;;  %v4380_v28 = vadd.s32 1, %v10876_v53  ;;  %v4434_v56 = vor.u32 8388608, %v10849_v32 }
 0x519   :  { %v4440_v44 = vand.u32 31, %v4438_v62  ;;  %v10894_v54 = vadd.s32 %v10806_v35, %v10812_v38  ;;  %v4377_v10 = vmul.u32 %v10842_v45, %v4361_v5  ;;  %vm4379_vm14 = vc.u32 %v10881_v19, %v10875_v59 }
 0x51a   :  { %vm7218_vm3 = vcmp.lt.s32.totalorder %v7217_v40, 0  ;;  %v4381_v0 = vsel %vm4379_vm14, %v4380_v28, %v10876_v53  ;;  %v2379_v27 = vsel %vm2294_vm11, %v2378_v58, %v9773_v43  ;;  %7705 = vcosq.f32 %v2380_v24 }
 0x51b   :  { %v4441_v55 = vsub.s32 32, %v4440_v44  ;;  %v4194_v32 = vand.u32 2147483647, %v10887_v33  ;;  %v4196_v22 = vcvt.s32.f32 %v10883_v49  ;;  %v10904_v63 = vsel %vm7218_vm3, 0, %v7217_v40  ;;  %v13640_v33 = vld [vmem:[#allocation13_spill] sm:$0xff] }
 0x51c   :  { %v4382_v35 = vadd.s32 %v4381_v0, %v4377_v10  ;;  %v10908_v51 = vshll.u32 %v4434_v56, 8  ;;  %v2274_v16 = vsub.s32 4, %v9744_v36  ;;  %v4439_v26 = vshrl.u32 %v4438_v62, 5 }
 0x51d   :  { %v4444_v38 = vshrl.u32 %v13536_v14, %v4441_v55  ;;  %v4447_v45 = vshrl.u32 %v13537_v15, %v4441_v55  ;;  %v4443_v43 = vshll.u32 %v13534_v18, %v4440_v44  ;;  %v2381_v24 = vsel %vm10828_vm6, 0, %v2379_v27 }
 0x51e   :  { %v4383_v17 = vadd.s32 536870912, %v4382_v35  ;;  %v4294_v29 = vsub.s32 4294967266, %v10904_v63  ;;  %v4446_v8 = vshll.u32 %v13536_v14, %v4440_v44  ;;  %v4449_v53 = vshll.u32 %v13537_v15, %v4440_v44 }
 0x51f   :  { %v4450_v25 = vshrl.u32 %v13538_v52, %v4441_v55  ;;  %v4445_v5 = vor.u32 %v4444_v38, %v4443_v43  ;;  %v4452_v58 = vshll.u32 %v13538_v52, %v4440_v44  ;;  %v4453_v40 = vshrl.u32 %v13539_v60, %v4441_v55 }
 0x520   :  { %v10918_v48 = vshrl.u32 %v4383_v17, 30  ;;  %v4448_v62 = vor.u32 %v4447_v45, %v4446_v8  ;;  %v4455_v13 = vshll.u32 %v13539_v60, %v4440_v44  ;;  %v4456_v56 = vshrl.u32 %v13582_v30, %v4441_v55 }
 0x521   :  { %v4451_v28 = vor.u32 %v4450_v25, %v4449_v53  ;;  %v10925_v10 = vadd.s32 %v10875_v59, %v10881_v19  ;;  %v4454_v27 = vor.u32 %v4453_v40, %v4452_v58  ;;  %v2385_v4 = vadd.s32 3, %v2381_v24 }
 0x522   :  { %v4385_v0 = vshll.u32 %v10918_v48, 30  ;;  %v4295_v17 = vadd.s32 127, %v4294_v29  ;;  %v4442_v38 = vshrl.u32 %v13534_v18, %v4441_v55  ;;  %v4457_v43 = vor.u32 %v4456_v56, %v4455_v13 }
 0x523   :  { %vm4461_vm11 = vcmp.lt.s32.totalorder %v4439_v26, 4  ;;  %vm4458_vm6 = vcmp.lt.s32.totalorder %v4439_v26, 1  ;;  %vm4460_vm15 = vcmp.lt.s32.totalorder %v4439_v26, 3  ;;  %vm4459_vm8 = vcmp.lt.s32.totalorder %v4439_v26, 2 }
 0x524   :  { %v10929_v12 = vsub.s32 %v4382_v35, %v4385_v0  ;;  %v4463_v44 = vsel %vm4461_vm11, %v4451_v28, 2102212464  ;;  %v7704_v45 = vpop.eup %7703  ;;  %v4462_v8 = vsel %vm4458_vm6, %v4442_v38, %v4445_v5  ;;  %v4466_v19 = vsel %vm4458_vm6, %v4445_v5, %v4448_v62 }
 0x525   :  { %v4464_v59 = vsel %vm4460_vm15, %v4448_v62, %v4463_v44  ;;  %v4467_v53 = vsel %vm4461_vm11, %v4454_v27, 920167782  ;;  %v4470_v29 = vsel %vm4458_vm6, %v4448_v62, %v4451_v28  ;;  %vm2384_vm3 = vweird.f32 %v9664_v46 }
 0x526   :  { %v4388_v24 = vsub.s32 0, %v10929_v12  ;;  %v4468_v55 = vsel %vm4460_vm15, %v4451_v28, %v4467_v53  ;;  %v4471_v25 = vsel %vm4461_vm11, %v4457_v43, 1326507024  ;;  %v2386_v58 = vand.u32 3, %v2385_v4 }
 0x527   :  { %v4469_v35 = vsel %vm4459_vm8, %v4466_v19, %v4468_v55  ;;  %v2275_v40 = vsel %vm2190_vm2, %v2274_v16, %v9744_v36  ;;  %v7706_v13 = vpop.eup %7705  ;;  %v4465_v56 = vsel %vm4459_vm8, %v4462_v8, %v4464_v59  ;;  %v4472_v0 = vsel %vm4460_vm15, %v4454_v27, %v4471_v25 }
 0x528   :  { %v7220_v5 = vmin.u32 %v4388_v24, %v10929_v12  ;;  %v2389_v38 = vxor.u32 2147483648, %v7704_v45  ;;  %v4290_v44 = vsub.s32 32, %v10904_v63  ;;  %v4473_v62 = vsel %vm4459_vm8, %v4470_v29, %v4472_v0 }
 0x529   :  { %v10945_v28 = vmul.u32.u64.low %v10908_v51, %v4469_v35  ;;  %v10946_v19 = vmul.u32.u64.high %v10908_v51, %v4469_v35, %v10945_v28  ;;  %v4296_v4 = vshll.u32 %v4295_v17, 23  ;;  %v4481_v16 = vmul.u32 %v10908_v51, %v4465_v56  ;;  %v13626_v35 = vld [vmem:[#allocation15_spill] sm:$0xff] }
 0x52a   :  { %v4390_v43 = vclz %v7220_v5  ;;  %v10950_v53 = vmul.u32.u64.low %v10908_v51, %v4473_v62  ;;  %v10951_v36 = vmul.u32.u64.high %v10908_v51, %v4473_v62, %v10950_v53  ;;  %vm2388_vm2 = vcmp.eq.s32.totalorder %v2386_v58, 0 }
 0x52b   :  { %v2392_v26 = vxor.u32 2147483648, %v7706_v13  ;;  %v2277_v27 = vsel %vm9899_vm0, 0, %v2275_v40  ;;  %v2390_v59 = vsel %vm2388_vm2, %v7706_v13, %v2389_v38  ;;  %vm2391_vm14 = vcmp.eq.s32.totalorder %v2386_v58, 2 }
 0x52c   :  { %v7221_v8 = vadd.s32 4294967294, %v4390_v43  ;;  %v2281_v24 = vadd.s32 3, %v2277_v27  ;;  %v4484_v55 = vadd.s32 1, %v10946_v19  ;;  %vm2387_vm11 = vcmp.lt.s32.totalorder %v2386_v58, 2  ;;  %v13627_v43 = vld [vmem:[#allocation20_spill] sm:$0xff] }
 0x52d   :  { %v2393_v17 = vsel %vm2391_vm14, %v2392_v26, %v7704_v45  ;;  %v2285_v29 = vxor.u32 2147483648, %v10049_v39  ;;  %vm4483_vm15 = vc.u32 %v10951_v36, %v10945_v28  ;;  %v2288_v25 = vxor.u32 2147483648, %v13626_v35  ;;  %v13628_v26 = vld [vmem:[#allocation11_spill] sm:$0xff] }
 0x52e   :  { %vm7222_vm6 = vcmp.lt.s32.totalorder %v7221_v8, 0  ;;  %v2394_v51 = vsel %vm2387_vm11, %v2390_v59, %v2393_v17  ;;  %v4485_v47 = vsel %vm4483_vm15, %v4484_v55, %v10946_v19  ;;  %v2282_v13 = vand.u32 3, %v2281_v24 }
 0x52f   :  { %v4393_v5 = vsel %vm7222_vm6, 0, %v7221_v8  ;;  %v2395_v40 = vsel %vm2384_vm3, nan, %v2394_v51  ;;  %v4291_v58 = vshll.u32 %v10868_v3, %v10904_v63  ;;  %v4292_v45 = vshrl.u32 %v10894_v54, %v4290_v44  ;;  %v13632_v54 = vld [vmem:[#allocation10_spill] sm:$0xff]  ;;  %v13633_v44 = vld [vmem:[#allocation16_spill] sm:$0xff] }
 0x530   :  { %v4398_v56 = vsub.s32 4294967266, %v4393_v5  ;;  %v4486_v0 = vadd.s32 %v4485_v47, %v4481_v16  ;;  %3123 = vmatprep.mubr.f32.mxu1 %v2395_v40  ;;  %v4297_v38 = vor.u32 4788187, %v4296_v4  ;;  %v4394_v62 = vsub.s32 32, %v4393_v5 }
 0x531   :  { %vm2284_vm0 = vcmp.eq.s32.totalorder %v2282_v13, 0  ;;  %vm2287_vm8 = vcmp.eq.s32.totalorder %v2282_v13, 2  ;;  %vm3908_vm2 = vcmp.lt.s32.totalorder %v13627_v43, 0  ;;  %v13629_v27 = vand.u32 2147483647, %v13628_v26 }
 0x532   :  { %v4399_v53 = vadd.s32 127, %v4398_v56  ;;  %v4487_v19 = vadd.s32 536870912, %v4486_v0  ;;  %v2286_v46 = vsel %vm2284_vm0, %v13626_v35, %v2285_v29  ;;  %vm2283_vm14 = vcmp.lt.s32.totalorder %v2282_v13, 2  ;;  %v13638_v13 = vld [vmem:[#allocation14_spill] sm:$0xff] }
 0x533   :  { %vm10971_vm3 = vcmp.le.f32.partialorder %v13629_v27, 0.7853982  ;;  %v2289_v3 = vsel %vm2287_vm8, %v2288_v25, %v10049_v39  ;;  %v2586_v63 = vsub.s32 4, %v13632_v54  ;;  %vm4012_vm11 = vcmp.lt.s32.totalorder %v10244_v57, 0  ;;  %v13634_v25 = vld [vmem:[#allocation12_spill] sm:$0xff] }
 0x534   :  { %v2588_v4 = vsel %vm10971_vm3, %v13628_v26, %v13633_v44  ;;  %v4293_v16 = vor.u32 %v4292_v45, %v4291_v58  ;;  %v10982_v59 = vshrl.u32 %v4487_v19, 30  ;;  %vm2280_vm6 = vweird.f32 %v9659_v37  ;;  %v13639_v45 = vld [vmem:[#allocation19_spill] sm:$0xff] }
 0x535   :  { %v2290_v24 = vsel %vm2283_vm14, %v2286_v46, %v2289_v3  ;;  %v4400_v55 = vshll.u32 %v4399_v53, 23  ;;  %v2587_v39 = vsel %vm2502_vm12, %v2586_v63, %v13632_v54  ;;  %7707 = vcosq.f32 %v2588_v4 }
 0x536   :  { %v2291_v17 = vsel %vm2280_vm6, nan, %v2290_v24  ;;  %v4298_v29 = vand.u32 2147483647, %v4297_v38  ;;  %v4396_v51 = vshrl.u32 %v10925_v10, %v4394_v62  ;;  %v4489_v35 = vshll.u32 %v10982_v59, 30 }
 0x537   :  { %3124 = vmatmul.mubr.f32.vlgmr.msra.gmra.mxu1 %v2291_v17  ;;  %v13635_v47 = vand.u32 2147483647, %v13634_v25  ;;  %v2589_v37 = vsel %vm10971_vm3, 0, %v2587_v39  ;;  %7709 = vsinq.f32 %v2588_v4  ;;  %v2482_v58 = vsub.s32 4, %v13638_v13 }
 0x538   :  { %v11007_v56 = vmul.f32 %v4196_v22, %v4194_v32  ;;  %v4300_v38 = vcvt.s32.f32 %v4293_v16  ;;  %v11009_v62 = vsub.s32 %v4486_v0, %v4489_v35  ;;  %v4395_v53 = vshll.u32 %v10929_v12, %v4393_v5 }
 0x539   :  { %vm10992_vm15 = vcmp.le.f32.partialorder %v13635_v47, 0.7853982  ;;  %v4401_v19 = vor.u32 4788187, %v4400_v55  ;;  %v2483_v46 = vsel %vm2398_vm5, %v2482_v58, %v13638_v13  ;;  %v2593_v8 = vadd.s32 3, %v2589_v37  ;;  %v13649_v58 = vld [vmem:[#allocation18_spill] sm:$0xff] }
 0x53a   :  { %v2484_v10 = vsel %vm10992_vm15, %v13634_v25, %v13639_v45  ;;  %v4492_v27 = vsub.s32 0, %v11009_v62  ;;  %v2485_v49 = vsel %vm10992_vm15, 0, %v2483_v46  ;;  %v2794_v32 = vsub.s32 4, %v13640_v33 }
 0x53b   :  { %7711 = vcosq.f32 %v2484_v10  ;;  %v13641_v22 = vxor.u32 2147483648, %v10835_v41  ;;  %v11026_v5 = vmul.f32 %v4300_v38, %v4298_v29  ;;  %v4397_v0 = vor.u32 %v4396_v51, %v4395_v53 }
 0x53c   :  { %7713 = vsinq.f32 %v2484_v10  ;;  %v13642_v3 = vand.u32 2147483647, %v9871_v23  ;;  %v7224_v63 = vmin.u32 %v4492_v27, %v11009_v62  ;;  %v2489_v44 = vadd.s32 3, %v2485_v49 }
 0x53d   :  { %v11024_v12 = vsel %vm3908_vm2, %v13641_v22, %v10835_v41  ;;  %v2795_v4 = vsel %vm2710_vm7, %v2794_v32, %v13640_v33  ;;  %v13645_v16 = vxor.u32 2147483648, %v10838_v9  ;;  %v4198_v55 = vxor.u32 2147483648, %v11007_v56 }
 0x53e   :  { %vm11030_vm5 = vcmp.le.f32.partialorder %v13642_v3, 0.7853982  ;;  %v4402_v17 = vand.u32 2147483647, %v4401_v19  ;;  %v4494_v39 = vclz %v7224_v63  ;;  %v2594_v29 = vand.u32 3, %v2593_v8 }
 0x53f   :  { %v2796_v41 = vsel %vm11030_vm5, %v9871_v23, %v10668_v50  ;;  %v11047_v24 = vsel %vm4012_vm11, %v13645_v16, %v10838_v9  ;;  %v2797_v51 = vsel %vm11030_vm5, 0, %v2795_v4  ;;  %v4302_v35 = vxor.u32 2147483648, %v11026_v5 }
 0x540   :  { %7715 = vcosq.f32 %v2796_v41  ;;  %v4404_v50 = vcvt.s32.f32 %v4397_v0  ;;  %v4482_v47 = vadd.s32 %v10945_v28, %v10951_v36  ;;  %v13646_v40 = vand.u32 2147483647, %v9801_v61 }
 0x541   :  { %7717 = vsinq.f32 %v2796_v41  ;;  %v7225_v37 = vadd.s32 4294967294, %v4494_v39  ;;  %v2490_v13 = vand.u32 3, %v2489_v44  ;;  %v2690_v45 = vsub.s32 4, %v13649_v58  ;;  %v13653_v41 = vld [vmem:[#allocation21_spill] sm:$0xff] }
 0x542   :  { %vm11057_vm12 = vcmp.le.f32.partialorder %v13646_v40, 0.7853982  ;;  %v11066_v38 = vmul.f32 %v4404_v50, %v4402_v17  ;;  %vm2592_vm7 = vweird.f32 %v13628_v26  ;;  %v2801_v28 = vadd.s32 3, %v2797_v51  ;;  %v7708_v36 = vpop.eup %7707 }
 0x543   :  { %v2692_v10 = vsel %vm11057_vm12, %v9801_v61, %v10518_v31  ;;  %vm7226_vm0 = vcmp.lt.s32.totalorder %v7225_v37, 0  ;;  %vm2595_vm8 = vcmp.lt.s32.totalorder %v2594_v29, 2  ;;  %vm2596_vm3 = vcmp.eq.s32.totalorder %v2594_v29, 0 }
 0x544   :  { %7719 = vcosq.f32 %v2692_v10  ;;  %vm2599_vm14 = vcmp.eq.s32.totalorder %v2594_v29, 2  ;;  %vm2488_vm6 = vweird.f32 %v13634_v25  ;;  %v4497_v53 = vsel %vm7226_vm0, 0, %v7225_v37  ;;  %v7710_v31 = vpop.eup %7709 }
 0x545   :  { %v2600_v19 = vxor.u32 2147483648, %v7708_v36  ;;  %v2691_v46 = vsel %vm2606_vm10, %v2690_v45, %v13649_v58  ;;  %7721 = vsinq.f32 %v2692_v10  ;;  %v4498_v27 = vsub.s32 32, %v4497_v53 }
 0x546   :  { %v4502_v8 = vsub.s32 4294967266, %v4497_v53  ;;  %vm2492_vm15 = vcmp.eq.s32.totalorder %v2490_v13, 0  ;;  %v2693_v49 = vsel %vm11057_vm12, 0, %v2691_v46  ;;  %v2597_v32 = vxor.u32 2147483648, %v7710_v31 }
 0x547   :  { %v2601_v22 = vsel %vm2599_vm14, %v2600_v19, %v7710_v31  ;;  %vm2495_vm5 = vcmp.eq.s32.totalorder %v2490_v13, 2  ;;  %v2802_v0 = vand.u32 3, %v2801_v28  ;;  %v13650_v44 = vand.u32 2147483647, %v9965_v6 }
 0x548   :  { %v7712_v33 = vpop.eup %7711  ;;  %v4503_v54 = vadd.s32 127, %v4502_v8  ;;  %v3002_v16 = vsub.s32 4, %v13653_v41  ;;  %v4500_v17 = vshrl.u32 %v4482_v47, %v4498_v27  ;;  %v2598_v39 = vsel %vm2596_vm3, %v7708_v36, %v2597_v32 }
 0x549   :  { %v7714_v3 = vpop.eup %7713  ;;  %v2496_v63 = vxor.u32 2147483648, %v7712_v33  ;;  %vm11077_vm0 = vcmp.le.f32.partialorder %v13650_v44, 0.7853982  ;;  %vm2800_vm10 = vweird.f32 %v9871_v23  ;;  %v2697_v50 = vadd.s32 3, %v2693_v49  ;;  %v13657_v49 = vld [vmem:[#allocation17_spill] sm:$0xff] }
 0x54a   :  { %v2493_v51 = vxor.u32 2147483648, %v7714_v3  ;;  %v4504_v40 = vshll.u32 %v4503_v54, 23  ;;  %v2602_v9 = vsel %vm2595_vm8, %v2598_v39, %v2601_v22  ;;  %v3004_v58 = vsel %vm11077_vm0, %v9965_v6, %v10699_v11 }
 0x54b   :  { %v2497_v37 = vsel %vm2495_vm5, %v2496_v63, %v7714_v3  ;;  %v2603_v45 = vsel %vm2592_vm7, nan, %v2602_v9  ;;  %vm2491_vm12 = vcmp.lt.s32.totalorder %v2490_v13, 2  ;;  %vm2804_vm3 = vcmp.eq.s32.totalorder %v2802_v0, 0 }
 0x54c   :  { %v2494_v47 = vsel %vm2492_vm15, %v7712_v33, %v2493_v51  ;;  %v4499_v28 = vshll.u32 %v11009_v62, %v4497_v53  ;;  %v4505_v36 = vor.u32 4788187, %v4504_v40  ;;  %3128 = vmatprep.mubr.f32.mxu1 %v2603_v45  ;;  %v3003_v19 = vsel %vm2918_vm13, %v3002_v16, %v13653_v41 }
 0x54d   :  { %v7716_v10 = vpop.eup %7715  ;;  %v2498_v29 = vsel %vm2491_vm12, %v2494_v47, %v2497_v37  ;;  %vm2807_vm8 = vcmp.eq.s32.totalorder %v2802_v0, 2  ;;  %7723 = vcosq.f32 %v3004_v58  ;;  %vm4116_vm7 = vcmp.lt.s32.totalorder %v10389_v2, 0 }
 0x54e   :  { %v7718_v46 = vpop.eup %7717  ;;  %v2499_v11 = vsel %vm2488_vm6, nan, %v2498_v29  ;;  %v2808_v26 = vxor.u32 2147483648, %v7716_v10  ;;  %v4501_v13 = vor.u32 %v4500_v17, %v4499_v28  ;;  %vm2696_vm14 = vweird.f32 %v9801_v61 }
 0x54f   :  { %3129 = vmatmul.mubr.f32.gmra.mxu1 %v2499_v11  ;;  %v2805_v31 = vxor.u32 2147483648, %v7718_v46  ;;  %v2698_v62 = vand.u32 3, %v2697_v50  ;;  %7725 = vsinq.f32 %v3004_v58  ;;  %vm4220_vm15 = vcmp.lt.s32.totalorder %v10591_v20, 0  ;;  %v13661_v58 = vld [vmem:[#allocation23_spill] sm:$0xff] }
 0x550   :  { %v2809_v53 = vsel %vm2807_vm8, %v2808_v26, %v7718_v46  ;;  %v3005_v27 = vsel %vm11077_vm0, 0, %v3003_v19  ;;  %v13654_v25 = vand.u32 2147483647, %v9884_v1  ;;  %v2898_v33 = vsub.s32 4, %v13657_v49 }
 0x551   :  { %v7720_v32 = vpop.eup %7719  ;;  %v4506_v22 = vand.u32 2147483647, %v4505_v36  ;;  %vm2803_vm6 = vcmp.lt.s32.totalorder %v2802_v0, 2  ;;  %v2806_v3 = vsel %vm2804_vm3, %v7716_v10, %v2805_v31  ;;  %v4508_v16 = vcvt.s32.f32 %v4501_v13  ;;  %v13662_v36 = vld [vmem:[#allocation22_spill] sm:$0xff] }
 0x552   :  { %vm11105_vm13 = vcmp.le.f32.partialorder %v13654_v25, 0.7853982  ;;  %v2810_v63 = vsel %vm2803_vm6, %v2806_v3, %v2809_v53  ;;  %v2704_v44 = vxor.u32 2147483648, %v7720_v32  ;;  %v2899_v4 = vsel %vm2814_vm4, %v2898_v33, %v13657_v49  ;;  %v7722_v41 = vpop.eup %7721  ;;  %v13668_v25 = vld [vmem:[#allocation26_spill] sm:$0xff] }
 0x553   :  { %v2900_v54 = vsel %vm11105_vm13, %v9884_v1, %v10686_v7  ;;  %v2811_v17 = vsel %vm2800_vm10, nan, %v2810_v63  ;;  %vm2703_vm5 = vcmp.eq.s32.totalorder %v2698_v62, 2  ;;  %v3009_v0 = vadd.s32 3, %v3005_v27 }
 0x554   :  { %7727 = vcosq.f32 %v2900_v54  ;;  %3133 = vmatprep.mubr.f32.mxu1 %v2811_v17  ;;  %vm2699_vm0 = vcmp.lt.s32.totalorder %v2698_v62, 2  ;;  %v2701_v39 = vxor.u32 2147483648, %v7722_v41  ;;  %v2705_v51 = vsel %vm2703_vm5, %v2704_v44, %v7722_v41 }
 0x555   :  { %v2901_v7 = vsel %vm11105_vm13, 0, %v2899_v4  ;;  %v11122_v50 = vmul.f32 %v4508_v16, %v4506_v22  ;;  %vm2700_vm12 = vcmp.eq.s32.totalorder %v2698_v62, 0  ;;  %7729 = vsinq.f32 %v2900_v54 }
 0x556   :  { %v13658_v40 = vand.u32 2147483647, %v10117_v34  ;;  %v2702_v23 = vsel %vm2700_vm12, %v7720_v32, %v2701_v39  ;;  %v2905_v37 = vadd.s32 3, %v2901_v7  ;;  %v3888_v45 = vsub.s32 4, %v13661_v58  ;;  %v13669_v39 = vld [vmem:[#allocation29_spill] sm:$0xff]  ;;  %v13670_v7 = vld [vmem:[#allocation24_spill] sm:$0xff] }
 0x557   :  { %v2706_v10 = vsel %vm2699_vm0, %v2702_v23, %v2705_v51  ;;  %v3010_v28 = vand.u32 3, %v3009_v0  ;;  %v3784_v29 = vsub.s32 4, %v13662_v36  ;;  %v11141_v19 = vsel %vm4116_vm7, %v4198_v55, %v11007_v56  ;;  %v13671_v23 = vld [vmem:[#allocation28_spill] sm:$0xff] }
 0x558   :  { %vm11126_vm4 = vcmp.le.f32.partialorder %v13658_v40, 0.7853982  ;;  %v2707_v46 = vsel %vm2696_vm14, nan, %v2706_v10  ;;  %v3889_v11 = vsel %vm3804_vm1, %v3888_v45, %v13661_v58  ;;  %v4406_v26 = vxor.u32 2147483648, %v11066_v38  ;;  %v13675_v10 = vld [vmem:[#allocation30_spill] sm:$0xff] }
 0x559   :  { %v3890_v47 = vsel %vm11126_vm4, %v10117_v34, %v10819_v42  ;;  %v11153_v42 = vsel %vm4220_vm15, %v4302_v35, %v11026_v5  ;;  %3134 = vmatmul.mubr.f32.gmra.mxu1 %v2707_v46  ;;  %vm3008_vm10 = vweird.f32 %v9965_v6  ;;  %v3891_v61 = vsel %vm11126_vm4, 0, %v3889_v11 }
 0x55a   :  { %7731 = vcosq.f32 %v3890_v47  ;;  %v4510_v56 = vxor.u32 2147483648, %v11122_v50  ;;  %v2906_v55 = vand.u32 3, %v2905_v37  ;;  %v3895_v13 = vadd.s32 3, %v3891_v61  ;;  %v7724_v62 = vpop.eup %7723 }
 0x55b   :  { %7733 = vsinq.f32 %v3890_v47  ;;  %vm13663_vm1 = vcmp.lt.s32.totalorder %v10090_v21, 0  ;;  %vm3011_vm3 = vcmp.lt.s32.totalorder %v3010_v28, 2  ;;  %v13665_v53 = vand.u32 2147483647, %v10244_v57 }
 0x55c   :  { %v3785_v31 = vsel %vm13663_vm1, %v3784_v29, %v13662_v36  ;;  %v4096_v8 = vsub.s32 4, %v13668_v25  ;;  %v7726_v49 = vpop.eup %7725  ;;  %vm3012_vm14 = vcmp.eq.s32.totalorder %v3010_v28, 0  ;;  %v3016_v33 = vxor.u32 2147483648, %v7724_v62 }
 0x55d   :  { %v3787_v35 = vsel %vm10616_vm9, 0, %v3785_v31  ;;  %vm11167_vm8 = vcmp.le.f32.partialorder %v13665_v53, 0.7853982  ;;  %v3013_v3 = vxor.u32 2147483648, %v7726_v49  ;;  %vm3015_vm13 = vcmp.eq.s32.totalorder %v3010_v28, 2 }
 0x55e   :  { %v3791_v32 = vadd.s32 3, %v3787_v35  ;;  %v4098_v22 = vsel %vm11167_vm8, %v10244_v57, %v11047_v24  ;;  %v4097_v54 = vsel %vm4012_vm11, %v4096_v8, %v13668_v25  ;;  %v3017_v63 = vsel %vm3015_vm13, %v3016_v33, %v7726_v49 }
 0x55f   :  { %7735 = vcosq.f32 %v4098_v22  ;;  %vm2904_vm9 = vweird.f32 %v9884_v1  ;;  %vm2907_vm6 = vcmp.lt.s32.totalorder %v2906_v55, 2  ;;  %vm2908_vm5 = vcmp.eq.s32.totalorder %v2906_v55, 0 }
 0x560   :  { %v3896_v44 = vand.u32 3, %v3895_v13  ;;  %v3014_v41 = vsel %vm3012_vm14, %v7724_v62, %v3013_v3  ;;  %v3792_v16 = vand.u32 3, %v3791_v32  ;;  %v4099_v17 = vsel %vm11167_vm8, 0, %v4097_v54 }
 0x561   :  { %v7728_v4 = vpop.eup %7727  ;;  %7737 = vsinq.f32 %v4098_v22  ;;  %v3018_v24 = vsel %vm3011_vm3, %v3014_v41, %v3017_v63  ;;  %v3795_v51 = vxor.u32 2147483648, %v13669_v39  ;;  %v3992_v40 = vsub.s32 4, %v13670_v7  ;;  %v13679_v22 = vld [vmem:[#allocation32_spill] sm:$0xff] }
 0x562   :  { %v2912_v0 = vxor.u32 2147483648, %v7728_v4  ;;  %v3019_v9 = vsel %vm3008_vm10, nan, %v3018_v24  ;;  %vm2911_vm11 = vcmp.eq.s32.totalorder %v2906_v55, 2  ;;  %vm3894_vm0 = vweird.f32 %v10117_v34  ;;  %v7730_v47 = vpop.eup %7729 }
 0x563   :  { %v3798_v37 = vxor.u32 2147483648, %v13671_v23  ;;  %v13672_v58 = vand.u32 2147483647, %v13627_v43  ;;  %vm4428_vm4 = vcmp.lt.s32.totalorder %v13675_v10, 0  ;;  %3138 = vmatprep.mubr.f32.mxu1 %v3019_v9  ;;  %vm3897_vm1 = vcmp.lt.s32.totalorder %v3896_v44, 2 }
 0x564   :  { %vm3898_vm3 = vcmp.eq.s32.totalorder %v3896_v44, 0  ;;  %vm3794_vm8 = vcmp.eq.s32.totalorder %v3792_v16, 0  ;;  %v4103_v6 = vadd.s32 3, %v4099_v17  ;;  %v2909_v28 = vxor.u32 2147483648, %v7730_v47  ;;  %v13680_v17 = vld [vmem:[#allocation31_spill] sm:$0xff] }
 0x565   :  { %vm11191_vm12 = vcmp.le.f32.partialorder %v13672_v58, 0.7853982  ;;  %v2913_v36 = vsel %vm2911_vm11, %v2912_v0, %v7730_v47  ;;  %v3993_v29 = vsel %vm3908_vm2, %v3992_v40, %v13670_v7  ;;  %vm3901_vm10 = vcmp.eq.s32.totalorder %v3896_v44, 2 }
 0x566   :  { %v3994_v46 = vsel %vm11191_vm12, %v13627_v43, %v11024_v12  ;;  %vm3793_vm14 = vcmp.lt.s32.totalorder %v3792_v16, 2  ;;  %v3796_v61 = vsel %vm3794_vm8, %v13671_v23, %v3795_v51  ;;  %vm3797_vm13 = vcmp.eq.s32.totalorder %v3792_v16, 2 }
 0x567   :  { %v7732_v11 = vpop.eup %7731  ;;  %v2910_v31 = vsel %vm2908_vm5, %v7728_v4, %v2909_v28  ;;  %v3799_v5 = vsel %vm3797_vm13, %v3798_v37, %v13669_v39  ;;  %7739 = vcosq.f32 %v3994_v46  ;;  %v3995_v27 = vsel %vm11191_vm12, 0, %v3993_v29  ;;  %v13687_v28 = vld [vmem:[#allocation27_spill] sm:$0xff] }
 0x568   :  { %v7734_v13 = vpop.eup %7733  ;;  %v3902_v62 = vxor.u32 2147483648, %v7732_v11  ;;  %v2914_v35 = vsel %vm2907_vm6, %v2910_v31, %v2913_v36  ;;  %7741 = vsinq.f32 %v3994_v46  ;;  %v4104_v8 = vand.u32 3, %v4103_v6 }
 0x569   :  { %v3899_v53 = vxor.u32 2147483648, %v7734_v13  ;;  %v2915_v12 = vsel %vm2904_vm9, nan, %v2914_v35  ;;  %v13676_v49 = vand.u32 2147483647, %v10591_v20  ;;  %v3800_v32 = vsel %vm3793_vm14, %v3796_v61, %v3799_v5 }
 0x56a   :  { %v3903_v25 = vsel %vm3901_vm10, %v3902_v62, %v7734_v13  ;;  %3139 = vmatmul.mubr.f32.gmra.mxu1 %v2915_v12  ;;  %v4304_v3 = vsub.s32 4, %v13679_v22  ;;  %vm3790_vm9 = vweird.f32 %v10090_v21  ;;  %v3999_v63 = vadd.s32 3, %v3995_v27 }
 0x56b   :  { %vm11213_vm2 = vcmp.le.f32.partialorder %v13676_v49, 0.7853982  ;;  %v3900_v55 = vsel %vm3898_vm3, %v7732_v11, %v3899_v53  ;;  %v4200_v24 = vsub.s32 4, %v13680_v17  ;;  %v3801_v21 = vsel %vm3790_vm9, nan, %v3800_v32 }
 0x56c   :  { %v4306_v1 = vsel %vm11213_vm2, %v10591_v20, %v11153_v42  ;;  %v3904_v54 = vsel %vm3897_vm1, %v3900_v55, %v3903_v25  ;;  %v7736_v4 = vpop.eup %7735  ;;  %v4305_v16 = vsel %vm4220_vm15, %v4304_v3, %v13679_v22  ;;  %v4511_v42 = vsel %vm4428_vm4, %v4510_v56, %v11122_v50 }
 0x56d   :  { %7743 = vcosq.f32 %v4306_v1  ;;  %v3905_v41 = vsel %vm3894_vm0, nan, %v3904_v54  ;;  %v4110_v44 = vxor.u32 2147483648, %v7736_v4  ;;  %v13681_v0 = vand.u32 2147483647, %v10389_v2 }
 0x56e   :  { %7745 = vsinq.f32 %v4306_v1  ;;  %4670 = vmatprep.mubr.f32.mxu0 %v3905_v41  ;;  %v7738_v39 = vpop.eup %7737  ;;  %vm4105_vm15 = vcmp.lt.s32.totalorder %v4104_v8, 2  ;;  %vm4109_vm5 = vcmp.eq.s32.totalorder %v4104_v8, 2  ;;  %v4307_v51 = vsel %vm11213_vm2, 0, %v4305_v16 }
 0x56f   :  { %vm11239_vm6 = vcmp.le.f32.partialorder %v13681_v0, 0.7853982  ;;  %4671 = vmatmul.mubr.f32.vlgmr.msra.gmra.mxu0 %v3801_v21  ;;  %vm4106_vm11 = vcmp.eq.s32.totalorder %v4104_v8, 0  ;;  %v4107_v56 = vxor.u32 2147483648, %v7738_v39  ;;  %v4111_v7 = vsel %vm4109_vm5, %v4110_v44, %v7738_v39 }
 0x570   :  { %v4202_v50 = vsel %vm11239_vm6, %v10389_v2, %v11141_v19  ;;  %v4000_v40 = vand.u32 3, %v3999_v63  ;;  %v4201_v9 = vsel %vm4116_vm7, %v4200_v24, %v13680_v17  ;;  %v13684_v23 = vand.u32 2147483647, %v13675_v10 }
 0x571   :  { %7747 = vcosq.f32 %v4202_v50  ;;  %v4512_v58 = vsub.s32 4, %v10982_v59  ;;  %v4108_v45 = vsel %vm4106_vm11, %v7736_v4, %v4107_v56  ;;  %v4311_v47 = vadd.s32 3, %v4307_v51 }
 0x572   :  { %vm11254_vm0 = vcmp.le.f32.partialorder %v13684_v23, 0.7853982  ;;  %7749 = vsinq.f32 %v4202_v50  ;;  %vm4102_vm12 = vweird.f32 %v10244_v57  ;;  %v4112_v6 = vsel %vm4105_vm15, %v4108_v45, %v4111_v7 }
 0x573   :  { %v4514_v19 = vsel %vm11254_vm0, %v13675_v10, %v4511_v42  ;;  %vm4324_vm7 = vcmp.lt.s32.totalorder %v13687_v28, 0  ;;  %v4113_v36 = vsel %vm4102_vm12, nan, %v4112_v6  ;;  %v4203_v11 = vsel %vm11239_vm6, 0, %v4201_v9 }
 0x574   :  { %7751 = vcosq.f32 %v4514_v19  ;;  %v7740_v29 = vpop.eup %7739  ;;  %v4407_v46 = vsel %vm4324_vm7, %v4406_v26, %v11066_v38  ;;  %4676 = vmatprep.mubr.f32.mxu0 %v4113_v36  ;;  %v4513_v57 = vsel %vm4428_vm4, %v4512_v58, %v10982_v59  ;;  %vm4002_vm1 = vcmp.eq.s32.totalorder %v4000_v40, 0 }
 0x575   :  { %v7742_v61 = vpop.eup %7741  ;;  %v4006_v13 = vxor.u32 2147483648, %v7740_v29  ;;  %v4312_v31 = vand.u32 3, %v4311_v47  ;;  %7753 = vsinq.f32 %v4514_v19  ;;  %vm4005_vm3 = vcmp.eq.s32.totalorder %v4000_v40, 2 }
 0x576   :  { %v4003_v62 = vxor.u32 2147483648, %v7742_v61  ;;  %v13688_v5 = vand.u32 2147483647, %v13687_v28  ;;  %v4408_v38 = vsub.s32 4, %v10918_v48  ;;  %v4207_v53 = vadd.s32 3, %v4203_v11 }
 0x577   :  { %v4007_v26 = vsel %vm4005_vm3, %v4006_v13, %v7742_v61  ;;  %v4515_v59 = vsel %vm11254_vm0, 0, %v4513_v57  ;;  %vm4001_vm4 = vcmp.lt.s32.totalorder %v4000_v40, 2  ;;  %vm3998_vm10 = vweird.f32 %v13627_v43 }
 0x578   :  { %vm11277_vm8 = vcmp.le.f32.partialorder %v13688_v5, 0.7853982  ;;  %v4004_v25 = vsel %vm4002_vm1, %v7740_v29, %v4003_v62  ;;  %vm4317_vm14 = vcmp.eq.s32.totalorder %v4312_v31, 2  ;;  %v4519_v22 = vadd.s32 3, %v4515_v59 }
 0x579   :  { %v4410_v27 = vsel %vm11277_vm8, %v13687_v28, %v4407_v46  ;;  %v4008_v49 = vsel %vm4001_vm4, %v4004_v25, %v4007_v26  ;;  %v4409_v3 = vsel %vm4324_vm7, %v4408_v38, %v10918_v48  ;;  %vm4314_vm13 = vcmp.eq.s32.totalorder %v4312_v31, 0 }
 0x57a   :  { %v7744_v12 = vpop.eup %7743  ;;  %7755 = vcosq.f32 %v4410_v27  ;;  %v4009_v55 = vsel %vm3998_vm10, nan, %v4008_v49  ;;  %v4208_v54 = vand.u32 3, %v4207_v53  ;;  %vm4313_vm2 = vcmp.lt.s32.totalorder %v4312_v31, 2 }
 0x57b   :  { %v7746_v8 = vpop.eup %7745  ;;  %v4318_v33 = vxor.u32 2147483648, %v7744_v12  ;;  %4677 = vmatmul.mubr.f32.gmra.mxu0 %v4009_v55  ;;  %7757 = vsinq.f32 %v4410_v27  ;;  %vm4310_vm9 = vweird.f32 %v10591_v20  ;;  %v4411_v41 = vsel %vm11277_vm8, 0, %v4409_v3 }
 0x57c   :  { %v4315_v32 = vxor.u32 2147483648, %v7746_v8  ;;  %v4520_v42 = vand.u32 3, %v4519_v22  ;;  %vm4213_vm6 = vcmp.eq.s32.totalorder %v4208_v54, 2  ;;  %vm4210_vm15 = vcmp.eq.s32.totalorder %v4208_v54, 0 }
 0x57d   :  { %v4319_v1 = vsel %vm4317_vm14, %v4318_v33, %v7746_v8  ;;  %v4415_v34 = vadd.s32 3, %v4411_v41  ;;  %vm4209_vm5 = vcmp.lt.s32.totalorder %v4208_v54, 2  ;;  %vm4206_vm11 = vweird.f32 %v10389_v2 }
 0x57e   :  { %v4316_v63 = vsel %vm4314_vm13, %v7744_v12, %v4315_v32  ;;  %v7748_v4 = vpop.eup %7747  ;;  %vm4525_vm0 = vcmp.eq.s32.totalorder %v4520_v42, 2  ;;  %vm4522_vm12 = vcmp.eq.s32.totalorder %v4520_v42, 0  ;;  %vm4521_vm7 = vcmp.lt.s32.totalorder %v4520_v42, 2 }
 0x57f   :  { %v4320_v43 = vsel %vm4313_vm2, %v4316_v63, %v4319_v1  ;;  %v7750_v16 = vpop.eup %7749  ;;  %v4214_v24 = vxor.u32 2147483648, %v7748_v4  ;;  %v4416_v40 = vand.u32 3, %v4415_v34  ;;  %vm4518_vm1 = vweird.f32 %v13675_v10  ;;  %v11300_v10 = vld [vmem:[%s13384_s8] ss:$0 sm:$0xff] }
 0x580   :  { %v4321_v17 = vsel %vm4310_vm9, nan, %v4320_v43  ;;  %v4211_v48 = vxor.u32 2147483648, %v7750_v16  ;;  %vm4414_vm10 = vweird.f32 %v13687_v28 }
 0x581   :  { %v7752_v21 = vpop.eup %7751  ;;  %4682 = vmatprep.mubr.f32.mxu0 %v4321_v17  ;;  %v4215_v44 = vsel %vm4213_vm6, %v4214_v24, %v7750_v16  ;;  %vm4421_vm3 = vcmp.eq.s32.totalorder %v4416_v40, 2  ;;  %vm4418_vm8 = vcmp.eq.s32.totalorder %v4416_v40, 0  ;;  %vm4417_vm4 = vcmp.lt.s32.totalorder %v4416_v40, 2 }
 0x582   :  { %v4526_v0 = vxor.u32 2147483648, %v7752_v21  ;;  %v4212_v39 = vsel %vm4210_vm15, %v7748_v4, %v4211_v48  ;;  %v7754_v51 = vpop.eup %7753 }
 0x583   :  { %v4216_v20 = vsel %vm4209_vm5, %v4212_v39, %v4215_v44  ;;  %v4523_v56 = vxor.u32 2147483648, %v7754_v51 }
 0x584   :  { %v4217_v50 = vsel %vm4206_vm11, nan, %v4216_v20  ;;  %v4527_v7 = vsel %vm4525_vm0, %v4526_v0, %v7754_v51 }
 0x585   :  { %4683 = vmatmul.mubr.f32.gmra.mxu0 %v4217_v50  ;;  %v4524_v23 = vsel %vm4522_vm12, %v7752_v21, %v4523_v56 }
 0x586   :  { %v4528_v37 = vsel %vm4521_vm7, %v4524_v23, %v4527_v7 }
 0x587   :  { %v7756_v9 = vpop.eup %7755  ;;  %v4529_v45 = vsel %vm4518_vm1, nan, %v4528_v37 }
 0x588   :  { %v4422_v58 = vxor.u32 2147483648, %v7756_v9  ;;  %v7758_v47 = vpop.eup %7757  ;;  %4688 = vmatprep.mubr.f32.mxu0 %v4529_v45 }
 0x589   :  { %v4419_v2 = vxor.u32 2147483648, %v7758_v47 }
 0x58a   :  { %v4423_v19 = vsel %vm4421_vm3, %v4422_v58, %v7758_v47 }
 0x58b   :  { %v4420_v6 = vsel %vm4418_vm8, %v7756_v9, %v4419_v2 }
 0x58c   :  { %v4424_v36 = vsel %vm4417_vm4, %v4420_v6, %v4423_v19 }
 0x58d   :  { %v4425_v29 = vsel %vm4414_vm10, nan, %v4424_v36 }
 0x58e   :  { %4689 = vmatmul.mubr.f32.gmra.mxu0 %v4425_v29 }
 0x5f7   :  { %v7340_v46 = vpop.f32.mrf.mxu1 }
 0x5f9   :  { %v7341_v11 = vpop.f32.mrf.mxu1 }
 0x5fa   :  { %v7342_v57 = vadd.f32 %v7341_v11, %v7340_v46 }
 0x5fc   :  { %v11303_v61 = vadd.f32 %v7342_v57, %v11300_v10 }
 0x5fe   :  { %v3147_v13 = vand.u32 2139095040, %v11303_v61  ;;  %v3144_v62 = vand.u32 2147483647, %v11303_v61  ;;  %vm3146_vm11 = vcmp.lt.s32.totalorder %v11303_v61, 0 }
 0x600   :  { %v3148_v31 = vshrl.u32 %v3147_v13, 23  ;;  %v3151_v35 = vand.u32 8388607, %v3144_v62  ;;  %vm11358_vm0 = vcmp.le.f32.partialorder %v3144_v62, 0.7853982 }
 0x602   :  { %v7175_v28 = vadd.s32 4294967169, %v3148_v31  ;;  %v3152_v53 = vor.u32 8388608, %v3151_v35 }
 0x604   :  { %v3154_v5 = vadd.s32 1, %v7175_v28  ;;  %v3192_v41 = vshll.u32 %v3152_v53, 8 }
 0x606   :  { %vm3155_vm14 = vcmp.gt.s32.totalorder %v3154_v5, 0 }
 0x607   :  { %v3156_v38 = vsel %vm3155_vm14, %v3154_v5, 0 }
 0x608   :  { %v3158_v26 = vand.u32 31, %v3156_v38  ;;  %v3157_v27 = vshrl.u32 %v3156_v38, 5 }
 0x60a   :  { %v3159_v59 = vsub.s32 32, %v3158_v26  ;;  %v3161_v12 = vshll.u32 %v13534_v18, %v3158_v26  ;;  %v3164_v25 = vshll.u32 %v13536_v14, %v3158_v26  ;;  %v3167_v33 = vshll.u32 %v13537_v15, %v3158_v26 }
 0x60b   :  { %v3170_v32 = vshll.u32 %v13538_v52, %v3158_v26  ;;  %v3173_v3 = vshll.u32 %v13539_v60, %v3158_v26  ;;  %vm3176_vm13 = vcmp.lt.s32.totalorder %v3157_v27, 1  ;;  %vm3179_vm2 = vcmp.lt.s32.totalorder %v3157_v27, 4 }
 0x60c   :  { %v3162_v8 = vshrl.u32 %v13536_v14, %v3159_v59  ;;  %v3165_v49 = vshrl.u32 %v13537_v15, %v3159_v59  ;;  %v3168_v55 = vshrl.u32 %v13538_v52, %v3159_v59  ;;  %v3171_v22 = vshrl.u32 %v13539_v60, %v3159_v59 }
 0x60d   :  { %v3174_v1 = vshrl.u32 %v13582_v30, %v3159_v59  ;;  %v3160_v42 = vshrl.u32 %v13534_v18, %v3159_v59  ;;  %vm3178_vm9 = vcmp.lt.s32.totalorder %v3157_v27, 3  ;;  %vm3177_vm6 = vcmp.lt.s32.totalorder %v3157_v27, 2 }
 0x60e   :  { %v3163_v63 = vor.u32 %v3162_v8, %v3161_v12  ;;  %v3166_v4 = vor.u32 %v3165_v49, %v3164_v25  ;;  %v3169_v43 = vor.u32 %v3168_v55, %v3167_v33  ;;  %v3172_v16 = vor.u32 %v3171_v22, %v3170_v32 }
 0x60f   :  { %v7343_v54 = vpop.f32.mrf.mxu1  ;;  %v3175_v17 = vor.u32 %v3174_v1, %v3173_v3 }
 0x610   :  { %v3181_v21 = vsel %vm3179_vm2, %v3169_v43, 2102212464  ;;  %v3184_v48 = vsel %vm3176_vm13, %v3163_v63, %v3166_v4  ;;  %v3188_v44 = vsel %vm3176_vm13, %v3166_v4, %v3169_v43  ;;  %v3185_v0 = vsel %vm3179_vm2, %v3172_v16, 920167782 }
 0x611   :  { %v7344_v24 = vpop.f32.mrf.mxu1  ;;  %v3189_v34 = vsel %vm3179_vm2, %v3175_v17, 1326507024  ;;  %v3180_v51 = vsel %vm3176_vm13, %v3160_v42, %v3163_v63  ;;  %v3186_v20 = vsel %vm3178_vm9, %v3169_v43, %v3185_v0  ;;  %v3182_v56 = vsel %vm3178_vm9, %v3166_v4, %v3181_v21 }
 0x612   :  { %v7345_v39 = vadd.f32 %v7344_v24, %v7343_v54  ;;  %v3190_v50 = vsel %vm3178_vm9, %v3172_v16, %v3189_v34  ;;  %v3187_v7 = vsel %vm3177_vm6, %v3184_v48, %v3186_v20  ;;  %v3183_v2 = vsel %vm3177_vm6, %v3180_v51, %v3182_v56 }
 0x613   :  { %v3191_v40 = vsel %vm3177_vm6, %v3188_v44, %v3190_v50  ;;  %v11326_v58 = vmul.u32.u64.low %v3192_v41, %v3187_v7  ;;  %v11327_v45 = vmul.u32.u64.high %v3192_v41, %v3187_v7, %v11326_v58  ;;  %v3199_v29 = vmul.u32 %v3192_v41, %v3183_v2 }
 0x614   :  { %v11321_v9 = vadd.f32 %v7345_v39, %v11300_v10  ;;  %v11323_v23 = vmul.u32.u64.low %v3192_v41, %v3191_v40  ;;  %v11324_v37 = vmul.u32.u64.high %v3192_v41, %v3191_v40, %v11323_v23 }
 0x615   :  { %v3202_v36 = vadd.s32 1, %v11327_v45 }
 0x616   :  { %v3251_v47 = vand.u32 2139095040, %v11321_v9  ;;  %vm3201_vm15 = vc.u32 %v11324_v37, %v11326_v58  ;;  %v3248_v46 = vand.u32 2147483647, %v11321_v9  ;;  %vm3250_vm14 = vcmp.lt.s32.totalorder %v11321_v9, 0 }
 0x617   :  { %v3203_v13 = vsel %vm3201_vm15, %v3202_v36, %v11327_v45 }
 0x618   :  { %v3252_v19 = vshrl.u32 %v3251_v47, 23  ;;  %v3204_v28 = vadd.s32 %v3203_v13, %v3199_v29  ;;  %v3255_v38 = vand.u32 8388607, %v3248_v46  ;;  %vm11442_vm15 = vcmp.le.f32.partialorder %v3248_v46, 0.7853982 }
 0x619   :  { %v7346_v6 = vpop.f32.mrf.mxu1 }
 0x61a   :  { %v7179_v11 = vadd.s32 4294967169, %v3252_v19  ;;  %v3205_v35 = vadd.s32 536870912, %v3204_v28  ;;  %v3256_v25 = vor.u32 8388608, %v3255_v38 }
 0x61b   :  { %v7347_v57 = vpop.f32.mrf.mxu1 }
 0x61c   :  { %v7348_v31 = vadd.f32 %v7347_v57, %v7346_v6  ;;  %v3258_v5 = vadd.s32 1, %v7179_v11  ;;  %v3206_v59 = vshrl.u32 %v3205_v35, 30  ;;  %v3296_v51 = vshll.u32 %v3256_v25, 8 }
 0x61e   :  { %vm3259_vm5 = vcmp.gt.s32.totalorder %v3258_v5, 0  ;;  %v11339_v53 = vadd.f32 %v7348_v31, %v11300_v10  ;;  %v3207_v12 = vshll.u32 %v3206_v59, 30  ;;  %v3230_v49 = vsub.s32 4, %v3206_v59 }
 0x61f   :  { %v3260_v26 = vsel %vm3259_vm5, %v3258_v5, 0  ;;  %v3200_v5 = vadd.s32 %v11326_v58, %v11324_v37  ;;  %v11389_v37 = vld [vmem:[%s13380_s4] sm:$0x3] }
 0x620   :  { %v3262_v27 = vand.u32 31, %v3260_v26  ;;  %v3261_v33 = vshrl.u32 %v3260_v26, 5  ;;  %v3355_v32 = vand.u32 2139095040, %v11339_v53  ;;  %v11343_v22 = vsub.s32 %v3204_v28, %v3207_v12 }
 0x621   :  { %v3231_v20 = vsel %vm3146_vm11, %v3230_v49, %v3206_v59 }
 0x622   :  { %v3263_v8 = vsub.s32 32, %v3262_v27  ;;  %v3265_v55 = vshll.u32 %v13534_v18, %v3262_v27  ;;  %v3268_v1 = vshll.u32 %v13536_v14, %v3262_v27  ;;  %v3271_v54 = vshll.u32 %v13537_v15, %v3262_v27 }
 0x623   :  { %v3274_v43 = vshll.u32 %v13538_v52, %v3262_v27  ;;  %v3210_v16 = vsub.s32 0, %v11343_v22  ;;  %v3277_v24 = vshll.u32 %v13539_v60, %v3262_v27  ;;  %vm3280_vm12 = vcmp.lt.s32.totalorder %v3261_v33, 1 }
 0x624   :  { %v3266_v3 = vshrl.u32 %v13536_v14, %v3263_v8  ;;  %v3269_v63 = vshrl.u32 %v13537_v15, %v3263_v8  ;;  %v3272_v4 = vshrl.u32 %v13538_v52, %v3263_v8  ;;  %v3275_v41 = vshrl.u32 %v13539_v60, %v3263_v8 }
 0x625   :  { %v3278_v42 = vshrl.u32 %v13582_v30, %v3263_v8  ;;  %v7176_v34 = vmin.u32 %v3210_v16, %v11343_v22  ;;  %v3264_v50 = vshrl.u32 %v13534_v18, %v3263_v8  ;;  %v3356_v56 = vshrl.u32 %v3355_v32, 23 }
 0x626   :  { %v3267_v17 = vor.u32 %v3266_v3, %v3265_v55  ;;  %v3270_v21 = vor.u32 %v3269_v63, %v3268_v1  ;;  %v3273_v48 = vor.u32 %v3272_v4, %v3271_v54  ;;  %v3276_v44 = vor.u32 %v3275_v41, %v3274_v43 }
 0x627   :  { %v3279_v39 = vor.u32 %v3278_v42, %v3277_v24  ;;  %v3212_v7 = vclz %v7176_v34  ;;  %vm3282_vm7 = vcmp.lt.s32.totalorder %v3261_v33, 3  ;;  %vm3283_vm1 = vcmp.lt.s32.totalorder %v3261_v33, 4  ;;  %v13693_v42 = vld [vmem:[#allocation8_spill] sm:$0xff] }
 0x628   :  { %v3288_v40 = vsel %vm3280_vm12, %v3267_v17, %v3270_v21  ;;  %v3285_v23 = vsel %vm3283_vm1, %v3273_v48, 2102212464  ;;  %v3289_v62 = vsel %vm3283_vm1, %v3276_v44, 920167782  ;;  %v3292_v45 = vsel %vm3280_vm12, %v3270_v21, %v3273_v48 }
 0x629   :  { %v3293_v47 = vsel %vm3283_vm1, %v3279_v39, 1326507024  ;;  %v7177_v2 = vadd.s32 4294967294, %v3212_v7  ;;  %vm3281_vm3 = vcmp.lt.s32.totalorder %v3261_v33, 2  ;;  %v3290_v19 = vsel %vm3282_vm7, %v3273_v48, %v3289_v62 }
 0x62a   :  { %v3294_v6 = vsel %vm3282_vm7, %v3276_v44, %v3293_v47  ;;  %v3284_v36 = vsel %vm3280_vm12, %v3264_v50, %v3267_v17  ;;  %v3291_v29 = vsel %vm3281_vm3, %v3288_v40, %v3290_v19  ;;  %v7183_v57 = vadd.s32 4294967169, %v3356_v56  ;;  %v7349_v8 = vpop.f32.mrf.mxu1 }
 0x62b   :  { %v3295_v11 = vsel %vm3281_vm3, %v3292_v45, %v3294_v6  ;;  %vm7178_vm8 = vcmp.lt.s32.totalorder %v7177_v2, 0  ;;  %v3286_v13 = vsel %vm3282_vm7, %v3270_v21, %v3285_v23  ;;  %v3233_v12 = vsel %vm11358_vm0, 0, %v3231_v20 }
 0x62c   :  { %v11371_v31 = vmul.u32.u64.low %v3296_v51, %v3295_v11  ;;  %v11372_v28 = vmul.u32.u64.high %v3296_v51, %v3295_v11, %v11371_v31  ;;  %v3215_v35 = vsel %vm7178_vm8, 0, %v7177_v2  ;;  %v3362_v25 = vadd.s32 1, %v7183_v57  ;;  %v7350_v43 = vpop.f32.mrf.mxu1 }
 0x62d   :  { %v11376_v38 = vmul.u32.u64.low %v3296_v51, %v3291_v29  ;;  %v11377_v26 = vmul.u32.u64.high %v3296_v51, %v3291_v29, %v11376_v38  ;;  %v3216_v59 = vsub.s32 32, %v3215_v35  ;;  %v3220_v27 = vsub.s32 4294967266, %v3215_v35 }
 0x62e   :  { %v3287_v49 = vsel %vm3281_vm3, %v3284_v36, %v3286_v13  ;;  %v3217_v55 = vshll.u32 %v11343_v22, %v3215_v35  ;;  %v3237_v58 = vadd.s32 3, %v3233_v12  ;;  %v3352_v54 = vand.u32 2147483647, %v11339_v53 }
 0x62f   :  { %v3218_v32 = vshrl.u32 %v3200_v5, %v3216_v59  ;;  %v3221_v3 = vadd.s32 127, %v3220_v27  ;;  %vm3305_vm4 = vc.u32 %v11372_v28, %v11376_v38  ;;  %v3306_v1 = vadd.s32 1, %v11377_v26 }
 0x630   :  { %vm3363_vm10 = vcmp.gt.s32.totalorder %v3362_v25, 0  ;;  %v3303_v4 = vmul.u32 %v3296_v51, %v3287_v49  ;;  %v11396_v21 = vrot.slane %v11389_v37, %v13693_v42  ;;  %v11398_v48 = vand.u32 3, %v3237_v58  ;;  %v4672_v58 = vpop.f32.mrf.mxu0 }
 0x631   :  { %v3219_v33 = vor.u32 %v3218_v32, %v3217_v55  ;;  %v3222_v63 = vshll.u32 %v3221_v3, 23  ;;  %v3364_v22 = vsel %vm3363_vm10, %v3362_v25, 0  ;;  %v3307_v41 = vsel %vm3305_vm4, %v3306_v1, %v11377_v26 }
 0x632   :  { %v3366_v16 = vand.u32 31, %v3364_v22  ;;  %v3308_v24 = vadd.s32 %v3307_v41, %v3303_v4  ;;  %v3359_v44 = vand.u32 8388607, %v3352_v54  ;;  %v7351_v39 = vadd.f32 %v7350_v43, %v7349_v8 }
 0x633   :  { %v3223_v17 = vor.u32 4788187, %v3222_v63  ;;  %v3226_v51 = vcvt.s32.f32 %v3219_v33  ;;  %v3365_v6 = vshrl.u32 %v3364_v22, 5  ;;  %vm3240_vm5 = vcmp.eq.s32.totalorder %v11398_v48, 0 }
 0x634   :  { %v3367_v34 = vsub.s32 32, %v3366_v16  ;;  %v3309_v50 = vadd.s32 536870912, %v3308_v24  ;;  %v3369_v56 = vshll.u32 %v13534_v18, %v3366_v16  ;;  %v3372_v40 = vshll.u32 %v13536_v14, %v3366_v16 }
 0x635   :  { %v3224_v20 = vand.u32 2147483647, %v3223_v17  ;;  %v3375_v36 = vshll.u32 %v13537_v15, %v3366_v16  ;;  %v3378_v29 = vshll.u32 %v13538_v52, %v3366_v16  ;;  %v3381_v11 = vshll.u32 %v13539_v60, %v3366_v16 }
 0x636   :  { %v3370_v7 = vshrl.u32 %v13536_v14, %v3367_v34  ;;  %v3373_v23 = vshrl.u32 %v13537_v15, %v3367_v34  ;;  %v3376_v62 = vshrl.u32 %v13538_v52, %v3367_v34  ;;  %v3310_v47 = vshrl.u32 %v3309_v50, 30 }
 0x637   :  { %v3227_v45 = vmul.f32 %v3226_v51, %v3224_v20  ;;  %v3379_v2 = vshrl.u32 %v13539_v60, %v3367_v34  ;;  %v3382_v19 = vshrl.u32 %v13582_v30, %v3367_v34  ;;  %v3360_v35 = vor.u32 8388608, %v3359_v44 }
 0x638   :  { %v3311_v13 = vshll.u32 %v3310_v47, 30  ;;  %v3371_v31 = vor.u32 %v3370_v7, %v3369_v56  ;;  %v3374_v5 = vor.u32 %v3373_v23, %v3372_v40  ;;  %v3377_v26 = vor.u32 %v3376_v62, %v3375_v36 }
 0x639   :  { %v3228_v57 = vxor.u32 2147483648, %v3227_v45  ;;  %v3380_v59 = vor.u32 %v3379_v2, %v3378_v29  ;;  %v11414_v27 = vadd.f32 %v7351_v39, %v11300_v10  ;;  %v3368_v8 = vshrl.u32 %v13534_v18, %v3367_v34 }
 0x63a   :  { %v11418_v25 = vsub.s32 %v3308_v24, %v3311_v13  ;;  %v3383_v49 = vor.u32 %v3382_v19, %v3381_v11  ;;  %v3334_v32 = vsub.s32 4, %v3310_v47  ;;  %vm3384_vm13 = vcmp.lt.s32.totalorder %v3365_v6, 1  ;;  %v13696_v19 = vld [vmem:[#allocation9_spill] sm:$0xff] }
 0x63b   :  { %v3229_v12 = vsel %vm3146_vm11, %v3228_v57, %v3227_v45  ;;  %vm3385_vm2 = vcmp.lt.s32.totalorder %v3365_v6, 2  ;;  %vm3387_vm9 = vcmp.lt.s32.totalorder %v3365_v6, 4  ;;  %v3392_v10 = vsel %vm3384_vm13, %v3371_v31, %v3374_v5 }
 0x63c   :  { %v3232_v55 = vsel %vm11358_vm0, %v11303_v61, %v3229_v12  ;;  %v3314_v3 = vsub.s32 0, %v11418_v25  ;;  %vm3386_vm6 = vcmp.lt.s32.totalorder %v3365_v6, 3  ;;  %v3389_v1 = vsel %vm3387_vm9, %v3377_v26, 2102212464 }
 0x63d   :  { %7759 = vcosq.f32 %v3232_v55  ;;  %v3393_v33 = vsel %vm3387_vm9, %v3380_v59, 920167782  ;;  %v3396_v0 = vsel %vm3384_vm13, %v3374_v5, %v3377_v26  ;;  %v3397_v22 = vsel %vm3387_vm9, %v3383_v49, 1326507024 }
 0x63e   :  { %7761 = vsinq.f32 %v3232_v55  ;;  %v7180_v63 = vmin.u32 %v3314_v3, %v11418_v25  ;;  %v3394_v4 = vsel %vm3386_vm6, %v3377_v26, %v3393_v33  ;;  %v3398_v41 = vsel %vm3386_vm6, %v3380_v59, %v3397_v22 }
 0x63f   :  { %v3395_v43 = vsel %vm3385_vm2, %v3392_v10, %v3394_v4  ;;  %v3400_v16 = vshll.u32 %v3360_v35, 8  ;;  %v11430_v17 = vadd.f32 %v4672_v58, %v11396_v21  ;;  %v3335_v44 = vsel %vm3250_vm14, %v3334_v32, %v3310_v47 }
 0x640   :  { %v3316_v24 = vclz %v7180_v63  ;;  %v3388_v34 = vsel %vm3384_vm13, %v3368_v8, %v3371_v31  ;;  %v3390_v39 = vsel %vm3386_vm6, %v3374_v5, %v3389_v1  ;;  %v3399_v20 = vsel %vm3385_vm2, %v3396_v0, %v3398_v41 }
 0x641   :  { %v11436_v51 = vmul.u32.u64.low %v3400_v16, %v3395_v43  ;;  %v11437_v50 = vmul.u32.u64.high %v3400_v16, %v3395_v43, %v11436_v51  ;;  %v3459_v56 = vand.u32 2139095040, %v11414_v27  ;;  %v3337_v45 = vsel %vm11442_vm15, 0, %v3335_v44 }
 0x642   :  { %v7181_v40 = vadd.s32 4294967294, %v3316_v24  ;;  %v11446_v23 = vmul.u32.u64.low %v3400_v16, %v3399_v20  ;;  %v11447_v62 = vmul.u32.u64.high %v3400_v16, %v3399_v20, %v11446_v23  ;;  %v3456_v47 = vand.u32 2147483647, %v11414_v27 }
 0x643   :  { %v3460_v2 = vshrl.u32 %v3459_v56, 23  ;;  %v11454_v36 = vrot.slane %v11389_v37, %v13696_v19  ;;  %vm3243_vm11 = vcmp.eq.s32.totalorder %v11398_v48, 2  ;;  %v3304_v46 = vadd.s32 %v11376_v38, %v11372_v28  ;;  %v4674_v28 = vpop.f32.mrf.mxu0 }
 0x644   :  { %vm7182_vm0 = vcmp.lt.s32.totalorder %v7181_v40, 0  ;;  %v3391_v29 = vsel %vm3385_vm2, %v3388_v34, %v3390_v39  ;;  %vm3239_vm12 = vcmp.lt.s32.totalorder %v11398_v48, 2  ;;  %vm3560_vm7 = vcmask 195584  }
 0x645   :  { %v3319_v11 = vsel %vm7182_vm0, 0, %v7181_v40  ;;  %v3410_v57 = vadd.s32 1, %v11437_v50  ;;  %v7187_v13 = vadd.s32 4294967169, %v3460_v2  ;;  %v4698_v37 = vand.u32 2139095040, %v11430_v17 }
 0x646   :  { %vm3236_vm1 = vweird.f32 %v11303_v61  ;;  %v3320_v31 = vsub.s32 32, %v3319_v11  ;;  %v3324_v5 = vsub.s32 4294967266, %v3319_v11  ;;  %v3341_v35 = vadd.s32 3, %v3337_v45 }
 0x647   :  { %v4695_v26 = vand.u32 2147483647, %v11430_v17  ;;  %v3407_v38 = vmul.u32 %v3400_v16, %v3391_v29  ;;  %vm3409_vm3 = vc.u32 %v11447_v62, %v11436_v51  ;;  %v3463_v6 = vand.u32 8388607, %v3456_v47 }
 0x648   :  { %v3466_v59 = vadd.s32 1, %v7187_v13  ;;  %v3321_v12 = vshll.u32 %v11418_v25, %v3319_v11  ;;  %v3322_v8 = vshrl.u32 %v3304_v46, %v3320_v31  ;;  %v3325_v49 = vadd.s32 127, %v3324_v5 }
 0x649   :  { %v3411_v55 = vsel %vm3409_vm3, %v3410_v57, %v11437_v50  ;;  %v4699_v10 = vshrl.u32 %v4698_v37, 23  ;;  %v11472_v58 = vadd.f32 %v4674_v28, %v11454_v36  ;;  %v3464_v41 = vor.u32 8388608, %v3463_v6 }
 0x64a   :  { %v7760_v32 = vpop.eup %7759  ;;  %v3412_v3 = vadd.s32 %v3411_v55, %v3407_v38  ;;  %vm3467_vm8 = vcmp.gt.s32.totalorder %v3466_v59, 0  ;;  %v3323_v63 = vor.u32 %v3322_v8, %v3321_v12  ;;  %v3326_v4 = vshll.u32 %v3325_v49, 23 }
 0x64b   :  { %v7762_v1 = vpop.eup %7761  ;;  %v3244_v33 = vxor.u32 2147483648, %v7760_v32  ;;  %v3468_v0 = vsel %vm3467_vm8, %v3466_v59, 0  ;;  %v11476_v44 = vand.u32 3, %v3341_v35  ;;  %vm3354_vm4 = vcmp.lt.s32.totalorder %v11339_v53, 0 }
 0x64c   :  { %v3241_v22 = vxor.u32 2147483648, %v7762_v1  ;;  %v3413_v43 = vadd.s32 536870912, %v3412_v3  ;;  %v3470_v25 = vand.u32 31, %v3468_v0  ;;  %v3327_v24 = vor.u32 4788187, %v3326_v4 }
 0x64d   :  { %v3245_v16 = vsel %vm3243_vm11, %v3244_v33, %v7762_v1  ;;  %v11481_v34 = vand.u32 8388607, %v4695_v26  ;;  %v11486_v20 = vadd.s32 %v11436_v51, %v11447_v62  ;;  %v3330_v45 = vcvt.s32.f32 %v3323_v63 }
 0x64e   :  { %v3242_v39 = vsel %vm3240_vm5, %v7760_v32, %v3241_v22  ;;  %v3414_v50 = vshrl.u32 %v3413_v43, 30  ;;  %v3471_v56 = vsub.s32 32, %v3470_v25  ;;  %v3328_v23 = vand.u32 2147483647, %v3327_v24 }
 0x64f   :  { %v3246_v40 = vsel %vm3239_vm12, %v3242_v39, %v3245_v16  ;;  %v7227_v2 = vadd.s32 4294967169, %v4699_v10  ;;  %vm11494_vm10 = vcmp.le.f32.partialorder %v3352_v54, 0.7853982  ;;  %v3473_v51 = vshll.u32 %v13534_v18, %v3470_v25 }
 0x650   :  { %v3247_v46 = vsel %vm3236_vm1, nan, %v3246_v40  ;;  %v3415_v11 = vshll.u32 %v3414_v50, 30  ;;  %v11499_v62 = vshll.u32 %v3464_v41, 8  ;;  %v3331_v48 = vmul.f32 %v3330_v45, %v3328_v23 }
 0x651   :  { %3561 = vst.msk [vmem:[%s13385_s9] sm:$0xff] %vm3560_vm7, %v3247_v46  ;;  %v3474_v61 = vshrl.u32 %v13536_v14, %v3471_v56  ;;  %v3477_v57 = vshrl.u32 %v13537_v15, %v3471_v56  ;;  %v3480_v54 = vshrl.u32 %v13538_v52, %v3471_v56  ;;  %v3438_v37 = vsub.s32 4, %v3414_v50 }
 0x652   :  { %v11508_v13 = vsub.s32 %v3412_v3, %v3415_v11  ;;  %v3476_v31 = vshll.u32 %v13536_v14, %v3470_v25  ;;  %v3483_v5 = vshrl.u32 %v13539_v60, %v3471_v56  ;;  %v3332_v35 = vxor.u32 2147483648, %v3331_v48 }
 0x653   :  { %v3469_v28 = vshrl.u32 %v3468_v0, 5  ;;  %v3479_v38 = vshll.u32 %v13537_v15, %v3470_v25  ;;  %v4705_v6 = vadd.s32 1, %v7227_v2  ;;  %v3475_v12 = vor.u32 %v3474_v61, %v3473_v51 }
 0x654   :  { %v3418_v59 = vsub.s32 0, %v11508_v13  ;;  %v3478_v8 = vor.u32 %v3477_v57, %v3476_v31  ;;  %v3482_v49 = vshll.u32 %v13538_v52, %v3470_v25  ;;  %v3333_v55 = vsel %vm3250_vm14, %v3332_v35, %v3331_v48 }
 0x655   :  { %v3481_v32 = vor.u32 %v3480_v54, %v3479_v38  ;;  %v3485_v3 = vshll.u32 %v13539_v60, %v3470_v25  ;;  %v3486_v10 = vshrl.u32 %v13582_v30, %v3471_v56  ;;  %v3336_v1 = vsel %vm11442_vm15, %v11321_v9, %v3333_v55 }
 0x656   :  { %v7184_v33 = vmin.u32 %v3418_v59, %v11508_v13  ;;  %v3439_v63 = vsel %vm3354_vm4, %v3438_v37, %v3414_v50  ;;  %v3484_v4 = vor.u32 %v3483_v5, %v3482_v49  ;;  %7763 = vcosq.f32 %v3336_v1 }
 0x657   :  { %v3472_v0 = vshrl.u32 %v13534_v18, %v3471_v56  ;;  %v3487_v22 = vor.u32 %v3486_v10, %v3485_v3  ;;  %vm4706_vm14 = vcmp.gt.s32.totalorder %v4705_v6, 0  ;;  %7765 = vsinq.f32 %v3336_v1 }
 0x658   :  { %v3420_v43 = vclz %v7184_v33  ;;  %vm3488_vm13 = vcmp.lt.s32.totalorder %v3469_v28, 1  ;;  %vm3491_vm2 = vcmp.lt.s32.totalorder %v3469_v28, 4  ;;  %v3441_v41 = vsel %vm11494_vm10, 0, %v3439_v63 }
 0x659   :  { %vm3489_vm9 = vcmp.lt.s32.totalorder %v3469_v28, 2  ;;  %v3493_v7 = vsel %vm3491_vm2, %v3481_v32, 2102212464  ;;  %v3496_v25 = vsel %vm3488_vm13, %v3475_v12, %v3478_v8  ;;  %vm3490_vm6 = vcmp.lt.s32.totalorder %v3469_v28, 3 }
 0x65a   :  { %v7185_v16 = vadd.s32 4294967294, %v3420_v43  ;;  %v3497_v24 = vsel %vm3491_vm2, %v3484_v4, 920167782  ;;  %v3500_v39 = vsel %vm3488_vm13, %v3478_v8, %v3481_v32  ;;  %v3492_v50 = vsel %vm3488_vm13, %v3472_v0, %v3475_v12 }
 0x65b   :  { %v3494_v40 = vsel %vm3490_vm6, %v3478_v8, %v3493_v7  ;;  %v3498_v23 = vsel %vm3490_vm6, %v3481_v32, %v3497_v24  ;;  %v3501_v56 = vsel %vm3491_vm2, %v3487_v22, 1326507024  ;;  %v4707_v46 = vsel %vm4706_vm14, %v4705_v6, 0 }
 0x65c   :  { %vm7186_vm15 = vcmp.lt.s32.totalorder %v7185_v16, 0  ;;  %v3499_v45 = vsel %vm3489_vm9, %v3496_v25, %v3498_v23  ;;  %v3502_v2 = vsel %vm3490_vm6, %v3484_v4, %v3501_v56  ;;  %vm3347_vm5 = vcmp.eq.s32.totalorder %v11476_v44, 2 }
 0x65d   :  { %v3423_v11 = vsel %vm7186_vm15, 0, %v7185_v16  ;;  %v3503_v51 = vsel %vm3489_vm9, %v3500_v39, %v3502_v2  ;;  %v11532_v48 = vmul.u32.u64.low %v11499_v62, %v3499_v45  ;;  %v11533_v61 = vmul.u32.u64.high %v11499_v62, %v3499_v45, %v11532_v48 }
 0x65e   :  { %v3424_v57 = vsub.s32 32, %v3423_v11  ;;  %v3428_v54 = vsub.s32 4294967266, %v3423_v11  ;;  %v3495_v37 = vsel %vm3489_vm9, %v3492_v50, %v3494_v40  ;;  %v4703_v31 = vor.u32 8388608, %v11481_v34 }
 0x65f   :  { %vm3344_vm11 = vcmp.eq.s32.totalorder %v11476_v44, 0  ;;  %v11541_v5 = vmul.u32.u64.low %v11499_v62, %v3503_v51  ;;  %v11542_v35 = vmul.u32.u64.high %v11499_v62, %v3503_v51, %v11541_v5  ;;  %v4709_v38 = vand.u32 31, %v4707_v46 }
 0x660   :  { %v4799_v6 = vand.u32 2147483647, %v11472_v58  ;;  %vm3343_vm0 = vcmp.lt.s32.totalorder %v11476_v44, 2  ;;  %v3425_v59 = vshll.u32 %v11508_v13, %v3423_v11  ;;  %v3426_v12 = vshrl.u32 %v11486_v20, %v3424_v57 }
 0x661   :  { %v3429_v8 = vadd.s32 127, %v3428_v54  ;;  %v11548_v28 = vadd.s32 3, %v3441_v41  ;;  %vm3340_vm12 = vweird.f32 %v11321_v9  ;;  %v3511_v34 = vmul.u32 %v11499_v62, %v3495_v37  ;;  %v5542_v37 = vld [vmem:[#allocation4 + $0x78] sm:$0xff] }
 0x662   :  { %v3514_v49 = vadd.s32 1, %v11533_v61  ;;  %v11553_v55 = vshrl.u32 %v4707_v46, 5  ;;  %v4710_v32 = vsub.s32 32, %v4709_v38  ;;  %v3427_v3 = vor.u32 %v3426_v12, %v3425_v59 }
 0x663   :  { %v3430_v10 = vshll.u32 %v3429_v8, 23  ;;  %v4712_v1 = vshll.u32 %v13534_v18, %v4709_v38  ;;  %v11556_v33 = vshll.u32 %v4703_v31, 8  ;;  %vm3513_vm1 = vc.u32 %v11542_v35, %v11532_v48  ;;  %v7764_v63 = vpop.eup %7763 }
 0x664   :  { %v4713_v20 = vshrl.u32 %v13536_v14, %v4710_v32  ;;  %v4715_v13 = vshll.u32 %v13536_v14, %v4709_v38  ;;  %v4718_v62 = vshll.u32 %v13537_v15, %v4709_v38  ;;  %v3515_v0 = vsel %vm3513_vm1, %v3514_v49, %v11533_v61  ;;  %v7766_v41 = vpop.eup %7765 }
 0x665   :  { %v3431_v4 = vor.u32 4788187, %v3430_v10  ;;  %v4716_v22 = vshrl.u32 %v13537_v15, %v4710_v32  ;;  %v4721_v43 = vshll.u32 %v13538_v52, %v4709_v38  ;;  %v3348_v7 = vxor.u32 2147483648, %v7764_v63 }
 0x666   :  { %v3434_v25 = vcvt.s32.f32 %v3427_v3  ;;  %v3516_v16 = vadd.s32 %v3515_v0, %v3511_v34  ;;  %v4719_v24 = vshrl.u32 %v13538_v52, %v4710_v32  ;;  %v3345_v39 = vxor.u32 2147483648, %v7766_v41  ;;  %v4678_v0 = vpop.f32.mrf.mxu0 }
 0x667   :  { %v3432_v50 = vand.u32 2147483647, %v3431_v4  ;;  %vm3458_vm3 = vcmp.lt.s32.totalorder %v11414_v27, 0  ;;  %v4714_v40 = vor.u32 %v4713_v20, %v4712_v1  ;;  %v4722_v23 = vshrl.u32 %v13539_v60, %v4710_v32 }
 0x668   :  { %v3349_v56 = vsel %vm3347_vm5, %v3348_v7, %v7766_v41  ;;  %v3517_v45 = vadd.s32 536870912, %v3516_v16  ;;  %v4717_v2 = vor.u32 %v4716_v22, %v4715_v13  ;;  %v4724_v46 = vshll.u32 %v13539_v60, %v4709_v38 }
 0x669   :  { %v3346_v11 = vsel %vm3344_vm11, %v7764_v63, %v3345_v39  ;;  %v3435_v51 = vmul.f32 %v3434_v25, %v3432_v50  ;;  %v4723_v61 = vor.u32 %v4722_v23, %v4721_v43  ;;  %v4725_v57 = vshrl.u32 %v13582_v30, %v4710_v32 }
 0x66a   :  { %v3350_v54 = vsel %vm3343_vm0, %v3346_v11, %v3349_v56  ;;  %vm11579_vm8 = vcmp.le.f32.partialorder %v3456_v47, 0.7853982  ;;  %v3518_v31 = vshrl.u32 %v3517_v45, 30  ;;  %v4720_v5 = vor.u32 %v4719_v24, %v4718_v62 }
 0x66b   :  { %vm4727_vm14 = vcmp.lt.s32.totalorder %v11553_v55, 1  ;;  %v3351_v38 = vsel %vm3340_vm12, nan, %v3350_v54  ;;  %v3436_v59 = vxor.u32 2147483648, %v3435_v51  ;;  %v4726_v12 = vor.u32 %v4725_v57, %v4724_v46 }
 0x66c   :  { %vm4728_vm13 = vcmp.lt.s32.totalorder %v11553_v55, 2  ;;  %3562 = vst.msk [vmem:[%s13385_s9 + $0x8] sm:$0xff] %vm3560_vm7, %v3351_v38  ;;  %v3519_v47 = vshll.u32 %v3518_v31, 30  ;;  %v3542_v44 = vsub.s32 4, %v3518_v31  ;;  %v4711_v8 = vshrl.u32 %v13534_v18, %v4710_v32 }
 0x66d   :  { %vm4730_vm2 = vcmp.lt.s32.totalorder %v11553_v55, 4  ;;  %v3437_v34 = vsel %vm3354_vm4, %v3436_v59, %v3435_v51  ;;  %vm4729_vm9 = vcmp.lt.s32.totalorder %v11553_v55, 3  ;;  %v4735_v9 = vsel %vm4727_vm14, %v4714_v40, %v4717_v2  ;;  %v4680_v59 = vpop.f32.mrf.mxu0 }
 0x66e   :  { %v4736_v49 = vsel %vm4730_vm2, %v4723_v61, 920167782  ;;  %v3440_v3 = vsel %vm11494_vm10, %v11339_v53, %v3437_v34  ;;  %v11601_v10 = vsub.s32 %v3516_v16, %v3519_v47  ;;  %v4731_v32 = vsel %vm4727_vm14, %v4711_v8, %v4714_v40 }
 0x66f   :  { %v4732_v1 = vsel %vm4730_vm2, %v4720_v5, 2102212464  ;;  %7767 = vcosq.f32 %v3440_v3  ;;  %v4737_v20 = vsel %vm4729_vm9, %v4720_v5, %v4736_v49  ;;  %v4739_v13 = vsel %vm4727_vm14, %v4717_v2, %v4720_v5 }
 0x670   :  { %v4740_v62 = vsel %vm4730_vm2, %v4726_v12, 1326507024  ;;  %7769 = vsinq.f32 %v3440_v3  ;;  %v3522_v63 = vsub.s32 0, %v11601_v10  ;;  %v3543_v29 = vsel %vm3458_vm3, %v3542_v44, %v3518_v31  ;;  %v5558_v3 = vld [vmem:[#allocation4 + $0xf8] sm:$0xff] }
 0x671   :  { %v4738_v4 = vsel %vm4728_vm13, %v4735_v9, %v4737_v20  ;;  %v4733_v22 = vsel %vm4729_vm9, %v4717_v2, %v4732_v1  ;;  %v4741_v43 = vsel %vm4729_vm9, %v4723_v61, %v4740_v62  ;;  %v11624_v25 = vand.u32 3, %v11548_v28  ;;  %5603 = vmatprep.subr.mxu1 %v5558_v3  ;;  %v5557_v1 = vld [vmem:[#allocation4 + $0xf0] sm:$0xff] }
 0x672   :  { %v11619_v41 = vmul.u32.u64.low %v11556_v33, %v4738_v4  ;;  %v11620_v7 = vmul.u32.u64.high %v11556_v33, %v4738_v4, %v11619_v41  ;;  %v7188_v16 = vmin.u32 %v3522_v63, %v11601_v10  ;;  %v4742_v24 = vsel %vm4728_vm13, %v4739_v13, %v4741_v43  ;;  %5604 = vmatpush1.msra.mxu1 %v5557_v1  ;;  %v5556_v4 = vld [vmem:[#allocation4 + $0xe8] sm:$0xff]  ;;  %v5549_v1 = vld [vmem:[#allocation4 + $0xb0] sm:$0xff] }
 0x673   :  { %v4802_v39 = vand.u32 2139095040, %v11472_v58  ;;  %v3545_v50 = vsel %vm11579_vm8, 0, %v3543_v29  ;;  %v11633_v40 = vmul.u32.u64.low %v11556_v33, %v4742_v24  ;;  %v11634_v23 = vmul.u32.u64.high %v11556_v33, %v4742_v24, %v11633_v40  ;;  %5605 = vmatprep.subr.mxu1 %v5556_v4  ;;  %v5555_v24 = vld [vmem:[#allocation4 + $0xe0] sm:$0xff] }
 0x674   :  { %v11637_v56 = vadd.f32 %v4678_v0, %v11396_v21  ;;  %v3524_v45 = vclz %v7188_v16  ;;  %v4734_v28 = vsel %vm4728_vm13, %v4731_v32, %v4733_v22  ;;  %v4753_v2 = vadd.s32 1, %v11620_v7  ;;  %5606 = vmatpush1.msra.mxu1 %v5555_v24 }
 0x675   :  { %v4803_v46 = vshrl.u32 %v4802_v39, 23  ;;  %v4806_v11 = vand.u32 8388607, %v4799_v6  ;;  %v3549_v61 = vadd.s32 3, %v3545_v50  ;;  %vm3448_vm4 = vcmp.eq.s32.totalorder %v11624_v25, 0 }
 0x676   :  { %v7189_v51 = vadd.s32 4294967294, %v3524_v45  ;;  %v4906_v57 = vand.u32 2139095040, %v11637_v56  ;;  %vm3451_vm10 = vcmp.eq.s32.totalorder %v11624_v25, 2  ;;  %v4750_v54 = vmul.u32 %v11556_v33, %v4734_v28  ;;  %v5554_v45 = vld [vmem:[#allocation4 + $0xd8] sm:$0xff] }
 0x677   :  { %vm4752_vm6 = vc.u32 %v11634_v23, %v11619_v41  ;;  %v7231_v55 = vadd.s32 4294967169, %v4803_v46  ;;  %vm3447_vm15 = vcmp.lt.s32.totalorder %v11624_v25, 2  ;;  %v3512_v31 = vadd.s32 %v11532_v48, %v11542_v35  ;;  %5607 = vmatprep.subr.mxu1 %v5554_v45 }
 0x678   :  { %vm7190_vm5 = vcmp.lt.s32.totalorder %v7189_v51, 0  ;;  %v4754_v5 = vsel %vm4752_vm6, %v4753_v2, %v11620_v7  ;;  %v4907_v38 = vshrl.u32 %v4906_v57, 23  ;;  %vm3444_vm11 = vweird.f32 %v11339_v53 }
 0x679   :  { %v3527_v12 = vsel %vm7190_vm5, 0, %v7189_v51  ;;  %v4755_v47 = vadd.s32 %v4754_v5, %v4750_v54  ;;  %v4807_v44 = vor.u32 8388608, %v4806_v11  ;;  %v4809_v33 = vadd.s32 1, %v7231_v55  ;;  %v5553_v51 = vld [vmem:[#allocation4 + $0xd0] sm:$0xff] }
 0x67a   :  { %v3528_v8 = vsub.s32 32, %v3527_v12  ;;  %v3532_v34 = vsub.s32 4294967266, %v3527_v12  ;;  %v11655_v9 = vand.u32 3, %v3549_v61  ;;  %v13496_v49 = vand.u32 2147483647, %v11637_v56  ;;  %5608 = vmatpush1.msra.mxu1 %v5553_v51 }
 0x67b   :  { %v4756_v32 = vadd.s32 536870912, %v4755_v47  ;;  %vm4810_vm0 = vcmp.gt.s32.totalorder %v4809_v33, 0  ;;  %v7235_v48 = vadd.s32 4294967169, %v4907_v38  ;;  %v11659_v35 = vadd.f32 %v4680_v59, %v11454_v36 }
 0x67c   :  { %v7768_v20 = vpop.eup %7767  ;;  %v3529_v13 = vshll.u32 %v11601_v10, %v3527_v12  ;;  %v3530_v62 = vshrl.u32 %v3512_v31, %v3528_v8  ;;  %v3533_v63 = vadd.s32 127, %v3532_v34  ;;  %v4811_v29 = vsel %vm4810_vm0, %v4809_v33, 0  ;;  %v5552_v31 = vld [vmem:[#allocation4 + $0xc8] sm:$0xff] }
 0x67d   :  { %v7770_v0 = vpop.eup %7769  ;;  %v3452_v22 = vxor.u32 2147483648, %v7768_v20  ;;  %v11662_v43 = vshrl.u32 %v4756_v32, 30  ;;  %v4813_v7 = vand.u32 31, %v4811_v29  ;;  %v11664_v16 = vshll.u32 %v4807_v44, 8  ;;  %5609 = vmatprep.subr.mxu1 %v5552_v31  ;;  %v5551_v44 = vld [vmem:[#allocation4 + $0xc0] sm:$0xff]  ;;  %v5550_v32 = vld [vmem:[#allocation4 + $0xb8] sm:$0xff] }
 0x67e   :  { %v3449_v39 = vxor.u32 2147483648, %v7770_v0  ;;  %v3531_v50 = vor.u32 %v3530_v62, %v3529_v13  ;;  %v3534_v40 = vshll.u32 %v3533_v63, 23  ;;  %v11668_v10 = vand.u32 8388607, %v13496_v49  ;;  %5610 = vmatpush1.msra.mxu1 %v5551_v44  ;;  %v5544_v31 = vld [vmem:[#allocation4 + $0x88] sm:$0xff]  ;;  %v5543_v44 = vld [vmem:[#allocation4 + $0x80] sm:$0xff] }
 0x67f   :  { %v3453_v28 = vsel %vm3451_vm10, %v3452_v22, %v7770_v0  ;;  %v4758_v2 = vshll.u32 %v11662_v43, 30  ;;  %v4814_v46 = vsub.s32 32, %v4813_v7  ;;  %v11673_v11 = vadd.s32 1, %v7235_v48  ;;  %5611 = vmatprep.subr.mxu1 %v5550_v32 }
 0x680   :  { %v3450_v61 = vsel %vm3448_vm4, %v7768_v20, %v3449_v39  ;;  %v3535_v57 = vor.u32 4788187, %v3534_v40  ;;  %v11677_v54 = vshrl.u32 %v4811_v29, 5  ;;  %v4816_v55 = vshll.u32 %v13534_v18, %v4813_v7  ;;  %5612 = vmatpush1.msra.mxu1 %v5549_v1  ;;  %v5548_v29 = vld [vmem:[#allocation4 + $0xa8] sm:$0xff]  ;;  %v5547_v39 = vld [vmem:[#allocation4 + $0xa0] sm:$0xff] }
 0x681   :  { %v3454_v5 = vsel %vm3447_vm15, %v3450_v61, %v3453_v28  ;;  %v3538_v38 = vcvt.s32.f32 %v3531_v50  ;;  %v11682_v59 = vsub.s32 %v4755_v47, %v4758_v2  ;;  %v4817_v12 = vshrl.u32 %v13536_v14, %v4814_v46  ;;  %5613 = vmatprep.subr.mxu1 %v5548_v29  ;;  %v5546_v28 = vld [vmem:[#allocation4 + $0x98] sm:$0xff] }
 0x682   :  { %v3455_v33 = vsel %vm3444_vm11, nan, %v3454_v5  ;;  %v3536_v8 = vand.u32 2147483647, %v3535_v57  ;;  %v4819_v34 = vshll.u32 %v13536_v14, %v4813_v7  ;;  %v4820_v3 = vshrl.u32 %v13537_v15, %v4814_v46  ;;  %5614 = vmatpush1.msra.mxu1 %v5547_v39 }
 0x683   :  { %3563 = vst.msk [vmem:[%s13385_s9 + $0x10] sm:$0xff] %vm3560_vm7, %v3455_v33  ;;  %v4761_v25 = vsub.s32 0, %v11682_v59  ;;  %v4818_v47 = vor.u32 %v4817_v12, %v4816_v55  ;;  %v4822_v48 = vshll.u32 %v13537_v15, %v4813_v7  ;;  %v4823_v53 = vshrl.u32 %v13538_v52, %v4814_v46  ;;  %5615 = vmatprep.subr.mxu1 %v5546_v28  ;;  %v5537_v28 = vld [vmem:[#allocation4 + $0x50] sm:$0xff] }
 0x684   :  { %vm4914_vm12 = vcmp.gt.s32.totalorder %v11673_v11, 0  ;;  %v3539_v20 = vmul.f32 %v3538_v38, %v3536_v8  ;;  %v4821_v13 = vor.u32 %v4820_v3, %v4819_v34  ;;  %v4825_v62 = vshll.u32 %v13538_v52, %v4813_v7 }
 0x685   :  { %v4826_v63 = vshrl.u32 %v13539_v60, %v4814_v46  ;;  %v7228_v4 = vmin.u32 %v4761_v25, %v11682_v59  ;;  %v4824_v0 = vor.u32 %v4823_v53, %v4822_v48  ;;  %v4828_v22 = vshll.u32 %v13539_v60, %v4813_v7  ;;  %v5545_v7 = vld [vmem:[#allocation4 + $0x90] sm:$0xff] }
 0x686   :  { %v4829_v24 = vshrl.u32 %v13582_v30, %v4814_v46  ;;  %v3540_v50 = vxor.u32 2147483648, %v3539_v20  ;;  %v4815_v40 = vshrl.u32 %v13534_v18, %v4814_v46  ;;  %vm4831_vm1 = vcmp.lt.s32.totalorder %v11677_v54, 1  ;;  %5616 = vmatpush1.msra.mxu1 %v5545_v7  ;;  %v5541_v25 = vld [vmem:[#allocation4 + $0x70] sm:$0xff] }
 0x687   :  { %v4827_v45 = vor.u32 %v4826_v63, %v4825_v62  ;;  %v4763_v2 = vclz %v7228_v4  ;;  %vm4833_vm14 = vcmp.lt.s32.totalorder %v11677_v54, 3  ;;  %vm4834_vm13 = vcmp.lt.s32.totalorder %v11677_v54, 4  ;;  %5617 = vmatprep.subr.mxu1 %v5544_v31  ;;  %v5539_v4 = vld [vmem:[#allocation4 + $0x60] sm:$0xff] }
 0x688   :  { %v4830_v51 = vor.u32 %v4829_v24, %v4828_v22  ;;  %v3541_v61 = vsel %vm3458_vm3, %v3540_v50, %v3539_v20  ;;  %v4836_v57 = vsel %vm4834_vm13, %v4824_v0, 2102212464  ;;  %v4839_v46 = vsel %vm4831_vm1, %v4818_v47, %v4821_v13  ;;  %5618 = vmatpush1.msra.mxu1 %v5543_v44  ;;  %v5540_v20 = vld [vmem:[#allocation4 + $0x68] sm:$0xff]  ;;  %v5538_v50 = vld [vmem:[#allocation4 + $0x58] sm:$0xff] }
 0x689   :  { %v4840_v55 = vsel %vm4834_vm13, %v4827_v45, 920167782  ;;  %v3544_v5 = vsel %vm11579_vm8, %v11414_v27, %v3541_v61  ;;  %v7229_v38 = vadd.s32 4294967294, %v4763_v2  ;;  %vm4832_vm2 = vcmp.lt.s32.totalorder %v11677_v54, 2  ;;  %5619 = vmatprep.subr.mxu1 %v5542_v37  ;;  %v5535_v61 = vld [vmem:[#allocation4 + $0x40] sm:$0xff] }
 0x68a   :  { %v4841_v12 = vsel %vm4833_vm14, %v4824_v0, %v4840_v55  ;;  %7771 = vcosq.f32 %v3544_v5  ;;  %v4835_v33 = vsel %vm4831_vm1, %v4815_v40, %v4818_v47  ;;  %v4843_v34 = vsel %vm4831_vm1, %v4821_v13, %v4824_v0  ;;  %5620 = vmatpush1.msra.mxu1 %v5541_v25 }
 0x68b   :  { %v4842_v8 = vsel %vm4832_vm2, %v4839_v46, %v4841_v12  ;;  %7773 = vsinq.f32 %v3544_v5  ;;  %vm7230_vm3 = vcmp.lt.s32.totalorder %v7229_v38, 0  ;;  %v4837_v3 = vsel %vm4833_vm14, %v4821_v13, %v4836_v57  ;;  %5621 = vmatprep.subr.mxu1 %v5540_v20  ;;  %v5534_v46 = vld [vmem:[#allocation4 + $0x38] sm:$0xff]  ;;  %v5533_v12 = vld [vmem:[#allocation4 + $0x30] sm:$0xff] }
 0x68c   :  { %v4844_v32 = vsel %vm4834_vm13, %v4830_v51, 1326507024  ;;  %v4766_v48 = vsel %vm7230_vm3, 0, %v7229_v38  ;;  %v11733_v53 = vmul.u32.u64.low %v11664_v16, %v4842_v8  ;;  %v11734_v1 = vmul.u32.u64.high %v11664_v16, %v4842_v8, %v11733_v53  ;;  %5622 = vmatpush1.msra.mxu1 %v5539_v4 }
 0x68d   :  { %v4845_v47 = vsel %vm4833_vm14, %v4827_v45, %v4844_v32  ;;  %v4751_v62 = vadd.s32 %v11619_v41, %v11634_v23  ;;  %v4767_v13 = vsub.s32 32, %v4766_v48  ;;  %v4771_v63 = vsub.s32 4294967266, %v4766_v48  ;;  %5623 = vmatprep.subr.mxu1 %v5538_v50 }
 0x68e   :  { %v4846_v29 = vsel %vm4832_vm2, %v4843_v34, %v4845_v47  ;;  %v4911_v24 = vor.u32 8388608, %v11668_v10  ;;  %v4915_v39 = vsel %vm4914_vm12, %v11673_v11, 0  ;;  %v4838_v40 = vsel %vm4832_vm2, %v4835_v33, %v4837_v3  ;;  %5624 = vmatpush1.msra.mxu1 %v5537_v28  ;;  %v5536_v10 = vld [vmem:[#allocation4 + $0x48] sm:$0xff] }
 0x68f   :  { %v11742_v0 = vmul.u32.u64.low %v11664_v16, %v4846_v29  ;;  %v11743_v22 = vmul.u32.u64.high %v11664_v16, %v4846_v29, %v11742_v0  ;;  %v4769_v41 = vshrl.u32 %v4751_v62, %v4767_v13  ;;  %v4772_v23 = vadd.s32 127, %v4771_v63  ;;  %5625 = vmatprep.subr.mxu1 %v5536_v10  ;;  %v5532_v34 = vld [vmem:[#allocation4 + $0x28] sm:$0xff]  ;;  %v5530_v13 = vld [vmem:[#allocation4 + $0x18] sm:$0xff] }
 0x690   :  { %v4917_v45 = vand.u32 31, %v4915_v39  ;;  %v4768_v2 = vshll.u32 %v11682_v59, %v4766_v48  ;;  %v4857_v51 = vadd.s32 1, %v11734_v1  ;;  %vm3555_vm8 = vcmp.eq.s32.totalorder %v11655_v9, 2  ;;  %5626 = vmatpush1.msra.mxu1 %v5535_v61  ;;  %v5531_v48 = vld [vmem:[#allocation4 + $0x20] sm:$0xff] }
 0x691   :  { %v4773_v7 = vshll.u32 %v4772_v23, 23  ;;  %vm3552_vm9 = vcmp.eq.s32.totalorder %v11655_v9, 0  ;;  %v4854_v54 = vmul.u32 %v11664_v16, %v4838_v40  ;;  %vm4856_vm4 = vc.u32 %v11743_v22, %v11733_v53  ;;  %5627 = vmatprep.subr.mxu1 %v5534_v46 }
 0x692   :  { %v4918_v11 = vsub.s32 32, %v4917_v45  ;;  %v4770_v57 = vor.u32 %v4769_v41, %v4768_v2  ;;  %v13497_v59 = vand.u32 2147483647, %v11659_v35  ;;  %vm3551_vm10 = vcmp.lt.s32.totalorder %v11655_v9, 2  ;;  %5628 = vmatpush1.msra.mxu1 %v5533_v12  ;;  %v5528_v2 = vld [vmem:[#allocation4 + $0x8] sm:$0xff]  ;;  %v5589_v12 = vld [vmem:[#allocation4 + $0x1f0] sm:$0xff] }
 0x693   :  { %v4774_v55 = vor.u32 4788187, %v4773_v7  ;;  %v4858_v31 = vsel %vm4856_vm4, %v4857_v51, %v11734_v1  ;;  %v11761_v5 = vshrl.u32 %v4915_v39, 5  ;;  %v11763_v38 = vshll.u32 %v4911_v24, 8  ;;  %5629 = vmatprep.subr.mxu1 %v5532_v34  ;;  %v5529_v39 = vld [vmem:[#allocation4 + $0x10] sm:$0xff] }
 0x694   :  { %vm3548_vm6 = vweird.f32 %v11414_v27  ;;  %v4859_v16 = vadd.s32 %v4858_v31, %v4854_v54  ;;  %v4921_v44 = vshrl.u32 %v13536_v14, %v4918_v11  ;;  %v4924_v33 = vshrl.u32 %v13537_v15, %v4918_v11  ;;  %5630 = vmatpush1.msra.mxu1 %v5531_v48  ;;  %v5590_v31 = vld [vmem:[#allocation4 + $0x1f8] sm:$0xff] }
 0x695   :  { %v4927_v8 = vshrl.u32 %v13538_v52, %v4918_v11  ;;  %v4920_v37 = vshll.u32 %v13534_v18, %v4917_v45  ;;  %v4923_v3 = vshll.u32 %v13536_v14, %v4917_v45  ;;  %v4930_v32 = vshrl.u32 %v13539_v60, %v4918_v11  ;;  %5631 = vmatprep.subr.mxu1 %v5530_v13 }
 0x696   :  { %v5010_v25 = vand.u32 2139095040, %v11659_v35  ;;  %v4775_v47 = vand.u32 2147483647, %v4774_v55  ;;  %v4777_v1 = vcvt.s32.f32 %v4770_v57  ;;  %v4860_v20 = vadd.s32 536870912, %v4859_v16  ;;  %5632 = vmatpush1.msra.mxu1 %v5529_v39 }
 0x697   :  { %v4926_v62 = vshll.u32 %v13537_v15, %v4917_v45  ;;  %v7772_v63 = vpop.eup %7771  ;;  %v4922_v29 = vor.u32 %v4921_v44, %v4920_v37  ;;  %v4929_v4 = vshll.u32 %v13538_v52, %v4917_v45  ;;  %v4932_v0 = vshll.u32 %v13539_v60, %v4917_v45  ;;  %5633 = vmatprep.subr.mxu1 %v5528_v2  ;;  %v5527_v45 = vld [vmem:[#allocation4] sm:$0xff]  ;;  %v5588_v37 = vld [vmem:[#allocation4 + $0x1e8] sm:$0xff] }
 0x698   :  { %v4933_v24 = vshrl.u32 %v13582_v30, %v4918_v11  ;;  %v7774_v50 = vpop.eup %7773  ;;  %v3556_v41 = vxor.u32 2147483648, %v7772_v63  ;;  %v11777_v23 = vshrl.u32 %v4860_v20, 30  ;;  %v4925_v40 = vor.u32 %v4924_v33, %v4923_v3  ;;  %5634 = vmatpush1.msra.mxu1 %v5527_v45  ;;  %v4684_v20 = vpop.f32.mrf.mxu0 }
 0x699   :  { %v4928_v28 = vor.u32 %v4927_v8, %v4926_v62  ;;  %v3553_v51 = vxor.u32 2147483648, %v7774_v50  ;;  %v4919_v10 = vshrl.u32 %v13534_v18, %v4918_v11  ;;  %v4931_v7 = vor.u32 %v4930_v32, %v4929_v4  ;;  %5635 = vmatprep.subr.mxu1 %v5590_v31  ;;  %v5586_v62 = vld [vmem:[#allocation4 + $0x1d8] sm:$0xff]  ;;  %v5581_v31 = vld [vmem:[#allocation4 + $0x1b0] sm:$0xff] }
 0x69a   :  { %v11782_v61 = vand.u32 8388607, %v13497_v59  ;;  %v3557_v57 = vsel %vm3555_vm8, %v3556_v41, %v7774_v50  ;;  %v11786_v54 = vmul.f32 %v4777_v1, %v4775_v47  ;;  %v4862_v46 = vshll.u32 %v11777_v23, 30  ;;  %5636 = vmatpush2.msra.mxu1 %v5589_v12 }
 0x69b   :  { %v4934_v55 = vor.u32 %v4933_v24, %v4932_v0  ;;  %v3554_v11 = vsel %vm3552_vm9, %v7772_v63, %v3553_v51  ;;  %vm4935_vm15 = vcmp.lt.s32.totalorder %v11761_v5, 1  ;;  %vm4936_vm5 = vcmp.lt.s32.totalorder %v11761_v5, 2  ;;  %5637 = vmatprep.subr.mxu1 %v5588_v37  ;;  %v5585_v24 = vld [vmem:[#allocation4 + $0x1d0] sm:$0xff] }
 0x69c   :  { %vm4938_vm11 = vcmp.lt.s32.totalorder %v11761_v5, 4  ;;  %v3558_v44 = vsel %vm3551_vm10, %v3554_v11, %v3557_v57  ;;  %v11796_v33 = vsub.s32 %v4859_v16, %v4862_v46  ;;  %v4943_v34 = vsel %vm4935_vm15, %v4922_v29, %v4925_v40  ;;  %v5587_v16 = vld [vmem:[#allocation4 + $0x1e0] sm:$0xff]  ;;  %v5582_v46 = vld [vmem:[#allocation4 + $0x1b8] sm:$0xff] }
 0x69d   :  { %v4940_v8 = vsel %vm4938_vm11, %v4928_v28, 2102212464  ;;  %v3559_v3 = vsel %vm3548_vm6, nan, %v3558_v44  ;;  %vm4937_vm0 = vcmp.lt.s32.totalorder %v11761_v5, 3  ;;  %v4944_v32 = vsel %vm4938_vm11, %v4931_v7, 920167782  ;;  %5638 = vmatpush2.msra.mxu1 %v5587_v16 }
 0x69e   :  { %v4947_v9 = vsel %vm4935_vm15, %v4925_v40, %v4928_v28  ;;  %3564 = vst.msk [vmem:[%s13385_s9 + $0x18] sm:$0xff] %vm3560_vm7, %v3559_v3  ;;  %v4865_v48 = vsub.s32 0, %v11796_v33  ;;  %v4939_v27 = vsel %vm4935_vm15, %v4919_v10, %v4922_v29  ;;  %v4945_v47 = vsel %vm4937_vm0, %v4928_v28, %v4944_v32  ;;  %5639 = vmatprep.subr.mxu1 %v5586_v62  ;;  %v5583_v10 = vld [vmem:[#allocation4 + $0x1c0] sm:$0xff]  ;;  %v4686_v3 = vpop.f32.mrf.mxu0 }
 0x69f   :  { %v4948_v1 = vsel %vm4938_vm11, %v4934_v55, 1326507024  ;;  %v4941_v13 = vsel %vm4937_vm0, %v4925_v40, %v4940_v8  ;;  %v4946_v63 = vsel %vm4936_vm5, %v4943_v34, %v4945_v47  ;;  %v5011_v0 = vshrl.u32 %v5010_v25, 23  ;;  %5640 = vmatpush2.msra.mxu1 %v5585_v24  ;;  %v5584_v40 = vld [vmem:[#allocation4 + $0x1c8] sm:$0xff]  ;;  %v5579_v32 = vld [vmem:[#allocation4 + $0x1a0] sm:$0xff]  ;;  %v5577_v47 = vld [vmem:[#allocation4 + $0x190] sm:$0xff] }
 0x6a0   :  { %v4949_v4 = vsel %vm4937_vm0, %v4931_v7, %v4948_v1  ;;  %v7232_v39 = vmin.u32 %v4865_v48, %v11796_v33  ;;  %v11826_v50 = vmul.u32.u64.low %v11763_v38, %v4946_v63  ;;  %v11827_v41 = vmul.u32.u64.high %v11763_v38, %v4946_v63, %v11826_v50  ;;  %5641 = vmatprep.subr.mxu1 %v5584_v40  ;;  %v5580_v34 = vld [vmem:[#allocation4 + $0x1a8] sm:$0xff] }
 0x6a1   :  { %v4950_v29 = vsel %vm4936_vm5, %v4947_v9, %v4949_v4  ;;  %v7239_v51 = vadd.s32 4294967169, %v5011_v0  ;;  %v11835_v25 = vadd.f32 %v4684_v20, %v11396_v21  ;;  %v4779_v7 = vxor.u32 2147483648, %v11786_v54  ;;  %5642 = vmatpush2.msra.mxu1 %v5583_v10 }
 0x6a2   :  { %v11831_v28 = vmul.u32.u64.low %v11763_v38, %v4950_v29  ;;  %v11832_v2 = vmul.u32.u64.high %v11763_v38, %v4950_v29, %v11831_v28  ;;  %v4867_v45 = vclz %v7232_v39  ;;  %v4942_v57 = vsel %vm4936_vm5, %v4939_v27, %v4941_v13  ;;  %5643 = vmatprep.subr.mxu1 %v5582_v46  ;;  %v5576_v13 = vld [vmem:[#allocation4 + $0x188] sm:$0xff]  ;;  %v5575_v39 = vld [vmem:[#allocation4 + $0x180] sm:$0xff]  ;;  %v5573_v46 = vld [vmem:[#allocation4 + $0x170] sm:$0xff] }
 0x6a3   :  { %vm4697_vm12 = vcmp.lt.s32.totalorder %v11430_v17, 0  ;;  %v5017_v55 = vadd.s32 1, %v7239_v51  ;;  %v4855_v11 = vadd.s32 %v11733_v53, %v11743_v22  ;;  %v4961_v44 = vadd.s32 1, %v11827_v41  ;;  %5644 = vmatpush2.msra.mxu1 %v5581_v31  ;;  %v5574_v51 = vld [vmem:[#allocation4 + $0x178] sm:$0xff] }
 0x6a4   :  { %v7233_v12 = vadd.s32 4294967294, %v4867_v45  ;;  %v5015_v8 = vor.u32 8388608, %v11782_v61  ;;  %v4958_v5 = vmul.u32 %v11763_v38, %v4942_v57  ;;  %vm4960_vm1 = vc.u32 %v11832_v2, %v11826_v50  ;;  %5645 = vmatprep.subr.mxu1 %v5580_v34  ;;  %v5578_v38 = vld [vmem:[#allocation4 + $0x198] sm:$0xff] }
 0x6a5   :  { %vm5018_vm14 = vcmp.gt.s32.totalorder %v5017_v55, 0  ;;  %v5114_v37 = vand.u32 2139095040, %v11835_v25  ;;  %v11852_v53 = vsel %vm4697_vm12, %v4779_v7, %v11786_v54  ;;  %v4962_v22 = vsel %vm4960_vm1, %v4961_v44, %v11827_v41  ;;  %5646 = vmatpush2.msra.mxu1 %v5579_v32  ;;  %v5572_v44 = vld [vmem:[#allocation4 + $0x168] sm:$0xff] }
 0x6a6   :  { %vm7234_vm13 = vcmp.lt.s32.totalorder %v7233_v12, 0  ;;  %v5019_v61 = vsel %vm5018_vm14, %v5017_v55, 0  ;;  %v4963_v16 = vadd.s32 %v4962_v22, %v4958_v5  ;;  %v13493_v27 = vand.u32 2147483647, %v11835_v25  ;;  %5647 = vmatprep.subr.mxu1 %v5578_v38 }
 0x6a7   :  { %v4870_v9 = vsel %vm7234_vm13, 0, %v7233_v12  ;;  %v5021_v48 = vand.u32 31, %v5019_v61  ;;  %v11856_v62 = vshll.u32 %v5015_v8, 8  ;;  %v11859_v54 = vadd.f32 %v4686_v3, %v11454_v36  ;;  %5648 = vmatpush2.msra.mxu1 %v5577_v47  ;;  %v5571_v3 = vld [vmem:[#allocation4 + $0x160] sm:$0xff]  ;;  %v5570_v47 = vld [vmem:[#allocation4 + $0x158] sm:$0xff] }
 0x6a8   :  { %v4871_v1 = vsub.s32 32, %v4870_v9  ;;  %v4875_v20 = vsub.s32 4294967266, %v4870_v9  ;;  %v4964_v63 = vadd.s32 536870912, %v4963_v16  ;;  %v11861_v4 = vshrl.u32 %v5019_v61, 5  ;;  %5649 = vmatprep.subr.mxu1 %v5576_v13 }
 0x6a9   :  { %v5022_v0 = vsub.s32 32, %v5021_v48  ;;  %v5115_v24 = vshrl.u32 %v5114_v37, 23  ;;  %v5024_v40 = vshll.u32 %v13534_v18, %v5021_v48  ;;  %v5027_v28 = vshll.u32 %v13536_v14, %v5021_v48  ;;  %5650 = vmatpush2.msra.mxu1 %v5575_v39 }
 0x6aa   :  { %v4873_v29 = vshrl.u32 %v4855_v11, %v4871_v1  ;;  %v4876_v41 = vadd.s32 127, %v4875_v20  ;;  %v11865_v10 = vshrl.u32 %v4964_v63, 30  ;;  %v5030_v57 = vshll.u32 %v13537_v15, %v5021_v48  ;;  %5651 = vmatprep.subr.mxu1 %v5574_v51  ;;  %v5569_v1 = vld [vmem:[#allocation4 + $0x150] sm:$0xff]  ;;  %v5568_v20 = vld [vmem:[#allocation4 + $0x148] sm:$0xff] }
 0x6ab   :  { %v5025_v7 = vshrl.u32 %v13536_v14, %v5022_v0  ;;  %v5028_v45 = vshrl.u32 %v13537_v15, %v5022_v0  ;;  %v5031_v31 = vshrl.u32 %v13538_v52, %v5022_v0  ;;  %v5033_v11 = vshll.u32 %v13538_v52, %v5021_v48  ;;  %5652 = vmatpush2.msra.mxu1 %v5573_v46 }
 0x6ac   :  { %v4877_v55 = vshll.u32 %v4876_v41, 23  ;;  %v5034_v12 = vshrl.u32 %v13539_v60, %v5022_v0  ;;  %v4966_v8 = vshll.u32 %v11865_v10, 30  ;;  %v11876_v37 = vand.u32 8388607, %v13493_v27  ;;  %5653 = vmatprep.subr.mxu1 %v5572_v44 }
 0x6ad   :  { %v5026_v34 = vor.u32 %v5025_v7, %v5024_v40  ;;  %v5029_v5 = vor.u32 %v5028_v45, %v5027_v28  ;;  %v4872_v32 = vshll.u32 %v11796_v33, %v4870_v9  ;;  %v5032_v22 = vor.u32 %v5031_v31, %v5030_v57  ;;  %5654 = vmatpush2.msra.mxu1 %v5571_v3  ;;  %v5567_v40 = vld [vmem:[#allocation4 + $0x140] sm:$0xff]  ;;  %v5566_v33 = vld [vmem:[#allocation4 + $0x138] sm:$0xff]  ;;  %v5565_v7 = vld [vmem:[#allocation4 + $0x130] sm:$0xff] }
 0x6ae   :  { %v5035_v61 = vor.u32 %v5034_v12, %v5033_v11  ;;  %v7243_v38 = vadd.s32 4294967169, %v5115_v24  ;;  %v4878_v13 = vor.u32 4788187, %v4877_v55  ;;  %v11879_v63 = vsub.s32 %v4963_v16, %v4966_v8  ;;  %5655 = vmatprep.subr.mxu1 %v5570_v47  ;;  %v5564_v45 = vld [vmem:[#allocation4 + $0x128] sm:$0xff]  ;;  %v4690_v11 = vpop.f32.mrf.mxu0  ;;  %v5563_v12 = vld [vmem:[#allocation4 + $0x120] sm:$0xff]  ;;  %v5562_v47 = vld [vmem:[#allocation4 + $0x118] sm:$0xff] }
 0x6af   :  { %v5036_v39 = vshll.u32 %v13539_v60, %v5021_v48  ;;  %v5037_v41 = vshrl.u32 %v13582_v30, %v5022_v0  ;;  %v4874_v28 = vor.u32 %v4873_v29, %v4872_v32  ;;  %v5023_v51 = vshrl.u32 %v13534_v18, %v5022_v0  ;;  %5656 = vmatpush2.msra.mxu1 %v5569_v1 }
 0x6b0   :  { %vm5039_vm2 = vcmp.lt.s32.totalorder %v11861_v4, 1  ;;  %vm5042_vm3 = vcmp.lt.s32.totalorder %v11861_v4, 4  ;;  %v4969_v9 = vsub.s32 0, %v11879_v63  ;;  %5657 = vmatprep.subr.mxu1 %v5568_v20  ;;  %vm5040_vm8 = vcmp.lt.s32.totalorder %v11861_v4, 2 }
 0x6b1   :  { %v5038_v24 = vor.u32 %v5037_v41, %v5036_v39  ;;  %v5044_v16 = vsel %vm5042_vm3, %v5032_v22, 2102212464  ;;  %v5047_v48 = vsel %vm5039_vm2, %v5026_v34, %v5029_v5  ;;  %vm5041_vm9 = vcmp.lt.s32.totalorder %v11861_v4, 3  ;;  %5658 = vmatpush2.msra.mxu1 %v5567_v40  ;;  %v5561_v39 = vld [vmem:[#allocation4 + $0x110] sm:$0xff]  ;;  %v5560_v40 = vld [vmem:[#allocation4 + $0x108] sm:$0xff] }
 0x6b2   :  { %v5048_v0 = vsel %vm5042_vm3, %v5035_v61, 920167782  ;;  %v5051_v29 = vsel %vm5039_vm2, %v5029_v5, %v5032_v22  ;;  %v4879_v57 = vand.u32 2147483647, %v4878_v13  ;;  %v7236_v46 = vmin.u32 %v4969_v9, %v11879_v63  ;;  %5659 = vmatprep.subr.mxu1 %v5566_v33 }
 0x6b3   :  { %v5049_v55 = vsel %vm5041_vm9, %v5032_v22, %v5048_v0  ;;  %v5052_v31 = vsel %vm5042_vm3, %v5038_v24, 1326507024  ;;  %v5043_v44 = vsel %vm5039_vm2, %v5023_v51, %v5026_v34  ;;  %v5045_v8 = vsel %vm5041_vm9, %v5029_v5, %v5044_v16  ;;  %5660 = vmatpush2.msra.mxu1 %v5565_v7  ;;  %v5559_v16 = vld [vmem:[#allocation4 + $0x100] sm:$0xff] }
 0x6b4   :  { %v5050_v3 = vsel %vm5040_vm8, %v5047_v48, %v5049_v55  ;;  %v5053_v32 = vsel %vm5041_vm9, %v5035_v61, %v5052_v31  ;;  %v4971_v1 = vclz %v7236_v46  ;;  %5661 = vmatprep.subr.mxu1 %v5564_v45  ;;  %v5121_v41 = vadd.s32 1, %v7243_v38 }
 0x6b5   :  { %v5054_v22 = vsel %vm5040_vm8, %v5051_v29, %v5053_v32  ;;  %v11907_v20 = vmul.u32.u64.low %v11856_v62, %v5050_v3  ;;  %v11908_v13 = vmul.u32.u64.high %v11856_v62, %v5050_v3, %v11907_v20  ;;  %v11916_v61 = vadd.f32 %v4690_v11, %v11396_v21  ;;  %5662 = vmatpush2.msra.mxu1 %v5563_v12 }
 0x6b6   :  { %v11912_v34 = vmul.u32.u64.low %v11856_v62, %v5054_v22  ;;  %v11913_v5 = vmul.u32.u64.high %v11856_v62, %v5054_v22, %v11912_v34  ;;  %v4881_v51 = vcvt.s32.f32 %v4874_v28  ;;  %v7237_v33 = vadd.s32 4294967294, %v4971_v1  ;;  %5663 = vmatprep.subr.mxu1 %v5562_v47 }
 0x6b7   :  { %v5046_v9 = vsel %vm5040_vm8, %v5043_v44, %v5045_v8  ;;  %v5119_v24 = vor.u32 8388608, %v11876_v37  ;;  %v4959_v48 = vadd.s32 %v11826_v50, %v11832_v2  ;;  %vm5122_vm4 = vcmp.gt.s32.totalorder %v5121_v41, 0  ;;  %5664 = vmatpush2.msra.mxu1 %v5561_v39 }
 0x6b8   :  { %v13495_v38 = vand.u32 2147483647, %v11859_v54  ;;  %v5218_v21 = vand.u32 2139095040, %v11859_v54  ;;  %v11925_v7 = vmul.f32 %v4881_v51, %v4879_v57  ;;  %vm7238_vm10 = vcmp.lt.s32.totalorder %v7237_v33, 0  ;;  %5665 = vmatprep.subr.mxu1 %v5560_v40 }
 0x6b9   :  { %v5065_v28 = vadd.s32 1, %v11908_v13  ;;  %v5123_v4 = vsel %vm5122_vm4, %v5121_v41, 0  ;;  %v4974_v0 = vsel %vm7238_vm10, 0, %v7237_v33  ;;  %v5062_v37 = vmul.u32 %v11856_v62, %v5046_v9  ;;  %5666 = vmatpush2.msra.mxu1 %v5559_v16 }
 0x6ba   :  { %vm5064_vm6 = vc.u32 %v11913_v5, %v11907_v20  ;;  %v11931_v50 = vshrl.u32 %v5123_v4, 5  ;;  %v4975_v2 = vsub.s32 32, %v4974_v0  ;;  %v4979_v29 = vsub.s32 4294967266, %v4974_v0 }
 0x6bb   :  { %v5066_v45 = vsel %vm5064_vm6, %v5065_v28, %v11908_v13  ;;  %v11934_v57 = vshll.u32 %v5119_v24, 8  ;;  %v5125_v55 = vand.u32 31, %v5123_v4  ;;  %v5219_v31 = vshrl.u32 %v5218_v21, 23 }
 0x6bc   :  { %v5067_v46 = vadd.s32 %v5066_v45, %v5062_v37  ;;  %v11938_v11 = vand.u32 8388607, %v13495_v38  ;;  %v4976_v62 = vshll.u32 %v11879_v63, %v4974_v0  ;;  %v4977_v12 = vshrl.u32 %v4959_v48, %v4975_v2 }
 0x6bd   :  { %v4980_v44 = vadd.s32 127, %v4979_v29  ;;  %vm5143_vm15 = vcmp.lt.s32.totalorder %v11931_v50, 1  ;;  %v5126_v3 = vsub.s32 32, %v5125_v55  ;;  %vm5144_vm5 = vcmp.lt.s32.totalorder %v11931_v50, 2 }
 0x6be   :  { %v5068_v8 = vadd.s32 536870912, %v5067_v46  ;;  %vm5145_vm11 = vcmp.lt.s32.totalorder %v11931_v50, 3  ;;  %vm5146_vm0 = vcmp.lt.s32.totalorder %v11931_v50, 4  ;;  %v4978_v32 = vor.u32 %v4977_v12, %v4976_v62 }
 0x6bf   :  { %v4981_v47 = vshll.u32 %v4980_v44, 23  ;;  %v5128_v1 = vshll.u32 %v13534_v18, %v5125_v55  ;;  %v5131_v22 = vshll.u32 %v13536_v14, %v5125_v55  ;;  %v5129_v63 = vshrl.u32 %v13536_v14, %v5126_v3 }
 0x6c0   :  { %v11947_v13 = vshrl.u32 %v5068_v8, 30  ;;  %v5132_v39 = vshrl.u32 %v13537_v15, %v5126_v3  ;;  %v5134_v34 = vshll.u32 %v13537_v15, %v5125_v55  ;;  %v5135_v40 = vshrl.u32 %v13538_v52, %v5126_v3 }
 0x6c1   :  { %v4982_v41 = vor.u32 4788187, %v4981_v47  ;;  %v5137_v51 = vshll.u32 %v13538_v52, %v5125_v55  ;;  %v5138_v33 = vshrl.u32 %v13539_v60, %v5126_v3  ;;  %vm11957_vm1 = vcmp.le.f32.partialorder %v4695_v26, 0.7853982 }
 0x6c2   :  { %v5070_v24 = vshll.u32 %v11947_v13, 30  ;;  %v5127_v16 = vshrl.u32 %v13534_v18, %v5126_v3  ;;  %v5130_v48 = vor.u32 %v5129_v63, %v5128_v1  ;;  %v5133_v21 = vor.u32 %v5132_v39, %v5131_v22 }
 0x6c3   :  { %v5136_v28 = vor.u32 %v5135_v40, %v5134_v34  ;;  %v5139_v4 = vor.u32 %v5138_v33, %v5137_v51  ;;  %v5140_v0 = vshll.u32 %v13539_v60, %v5125_v55  ;;  %v5141_v37 = vshrl.u32 %v13582_v30, %v5126_v3 }
 0x6c4   :  { %v4983_v2 = vand.u32 2147483647, %v4982_v41  ;;  %v11965_v29 = vsub.s32 %v5067_v46, %v5070_v24  ;;  %v5147_v26 = vsel %vm5143_vm15, %v5127_v16, %v5130_v48  ;;  %v5151_v45 = vsel %vm5143_vm15, %v5130_v48, %v5133_v21 }
 0x6c5   :  { %v5142_v62 = vor.u32 %v5141_v37, %v5140_v0  ;;  %v5148_v12 = vsel %vm5146_vm0, %v5136_v28, 2102212464  ;;  %v5152_v44 = vsel %vm5146_vm0, %v5139_v4, 920167782  ;;  %v7247_v8 = vadd.s32 4294967169, %v5219_v31 }
 0x6c6   :  { %v5073_v55 = vsub.s32 0, %v11965_v29  ;;  %v5149_v46 = vsel %vm5145_vm11, %v5133_v21, %v5148_v12  ;;  %v5153_v3 = vsel %vm5145_vm11, %v5136_v28, %v5152_v44  ;;  %v5155_v47 = vsel %vm5143_vm15, %v5133_v21, %v5136_v28 }
 0x6c7   :  { %v4985_v1 = vcvt.s32.f32 %v4978_v32  ;;  %v5154_v22 = vsel %vm5144_vm5, %v5151_v45, %v5153_v3  ;;  %v5156_v63 = vsel %vm5146_vm0, %v5142_v62, 1326507024  ;;  %v13492_v31 = vand.u32 2147483647, %v11916_v61 }
 0x6c8   :  { %v7240_v39 = vmin.u32 %v5073_v55, %v11965_v29  ;;  %v5157_v34 = vsel %vm5145_vm11, %v5139_v4, %v5156_v63  ;;  %v11991_v41 = vmul.u32.u64.low %v11934_v57, %v5154_v22  ;;  %v11992_v40 = vmul.u32.u64.high %v11934_v57, %v5154_v22, %v11991_v41 }
 0x6c9   :  { %v11995_v51 = vmul.f32 %v4985_v1, %v4983_v2  ;;  %v5150_v32 = vsel %vm5144_vm5, %v5147_v26, %v5149_v46  ;;  %v5158_v33 = vsel %vm5144_vm5, %v5155_v47, %v5157_v34  ;;  %v5223_v24 = vor.u32 8388608, %v11938_v11 }
 0x6ca   :  { %v5075_v16 = vclz %v7240_v39  ;;  %v12003_v48 = vmul.u32.u64.low %v11934_v57, %v5158_v33  ;;  %v12004_v21 = vmul.u32.u64.high %v11934_v57, %v5158_v33, %v12003_v48  ;;  %v5225_v28 = vadd.s32 1, %v7247_v8 }
 0x6cb   :  { %v12010_v4 = vsel %vm11957_vm1, %v11430_v17, %v11852_v53  ;;  %v5322_v0 = vand.u32 2139095040, %v11916_v61  ;;  %v4883_v37 = vxor.u32 2147483648, %v11925_v7  ;;  %v5169_v2 = vadd.s32 1, %v11992_v40 }
 0x6cc   :  { %v7241_v50 = vadd.s32 4294967294, %v5075_v16  ;;  %vm5226_vm14 = vcmp.gt.s32.totalorder %v5225_v28, 0  ;;  %v4987_v11 = vxor.u32 2147483648, %v11995_v51  ;;  %v5063_v26 = vadd.s32 %v11907_v20, %v11913_v5 }
 0x6cd   :  { %v5166_v45 = vmul.u32 %v11934_v57, %v5150_v32  ;;  %v5227_v62 = vsel %vm5226_vm14, %v5225_v28, 0  ;;  %vm5168_vm2 = vc.u32 %v12004_v21, %v11991_v41  ;;  %v12021_v53 = vshll.u32 %v5223_v24, 8 }
 0x6ce   :  { %vm7242_vm13 = vcmp.lt.s32.totalorder %v7241_v50, 0  ;;  %v12025_v12 = vand.u32 8388607, %v13492_v31  ;;  %v5170_v8 = vsel %vm5168_vm2, %v5169_v2, %v11992_v40  ;;  %v5229_v55 = vand.u32 31, %v5227_v62  ;;  %v4692_v40 = vpop.f32.mrf.mxu0 }
 0x6cf   :  { %v5078_v44 = vsel %vm7242_vm13, 0, %v7241_v50  ;;  %v5323_v46 = vshrl.u32 %v5322_v0, 23  ;;  %v5171_v5 = vadd.s32 %v5170_v8, %v5166_v45  ;;  %v12028_v57 = vshrl.u32 %v5227_v62, 5 }
 0x6d0   :  { %v5079_v3 = vsub.s32 32, %v5078_v44  ;;  %v5083_v20 = vsub.s32 4294967266, %v5078_v44  ;;  %v5080_v47 = vshll.u32 %v11965_v29, %v5078_v44  ;;  %v5230_v1 = vsub.s32 32, %v5229_v55 }
 0x6d1   :  { %v5232_v22 = vshll.u32 %v13534_v18, %v5229_v55  ;;  %v5235_v63 = vshll.u32 %v13536_v14, %v5229_v55  ;;  %v5172_v32 = vadd.s32 536870912, %v5171_v5  ;;  %v5238_v33 = vshll.u32 %v13537_v15, %v5229_v55 }
 0x6d2   :  { %v5081_v39 = vshrl.u32 %v5063_v26, %v5079_v3  ;;  %v5084_v34 = vadd.s32 127, %v5083_v20  ;;  %v5233_v24 = vshrl.u32 %v13536_v14, %v5230_v1  ;;  %v5236_v16 = vshrl.u32 %v13537_v15, %v5230_v1 }
 0x6d3   :  { %v5239_v48 = vshrl.u32 %v13538_v52, %v5230_v1  ;;  %v5241_v28 = vshll.u32 %v13538_v52, %v5229_v55  ;;  %v12038_v50 = vshrl.u32 %v5172_v32, 30  ;;  %v5242_v2 = vshrl.u32 %v13539_v60, %v5230_v1 }
 0x6d4   :  { %v5082_v29 = vor.u32 %v5081_v39, %v5080_v47  ;;  %v5085_v0 = vshll.u32 %v5084_v34, 23  ;;  %v5234_v26 = vor.u32 %v5233_v24, %v5232_v22  ;;  %v5237_v45 = vor.u32 %v5236_v16, %v5235_v63 }
 0x6d5   :  { %v5240_v62 = vor.u32 %v5239_v48, %v5238_v33  ;;  %v12042_v44 = vadd.f32 %v4692_v40, %v11454_v36  ;;  %v5174_v3 = vshll.u32 %v12038_v50, 30  ;;  %v5243_v20 = vor.u32 %v5242_v2, %v5241_v28 }
 0x6d6   :  { %v5086_v8 = vor.u32 4788187, %v5085_v0  ;;  %v7251_v31 = vadd.s32 4294967169, %v5323_v46  ;;  %vm4801_vm3 = vcmp.lt.s32.totalorder %v11472_v58, 0  ;;  %v5089_v27 = vcvt.s32.f32 %v5082_v29 }
 0x6d7   :  { %v5244_v47 = vshll.u32 %v13539_v60, %v5229_v55  ;;  %v5245_v39 = vshrl.u32 %v13582_v30, %v5230_v1  ;;  %vm5247_vm8 = vcmp.lt.s32.totalorder %v12028_v57, 1  ;;  %vm4905_vm9 = vcmp.lt.s32.totalorder %v11637_v56, 0 }
 0x6d8   :  { %v5087_v22 = vand.u32 2147483647, %v5086_v8  ;;  %v12050_v63 = vsub.s32 %v5171_v5, %v5174_v3  ;;  %vm5249_vm4 = vcmp.lt.s32.totalorder %v12028_v57, 3  ;;  %vm5250_vm10 = vcmp.lt.s32.totalorder %v12028_v57, 4 }
 0x6d9   :  { %v5246_v36 = vor.u32 %v5245_v39, %v5244_v47  ;;  %v5252_v46 = vsel %vm5250_vm10, %v5240_v62, 2102212464  ;;  %v5255_v34 = vsel %vm5247_vm8, %v5234_v26, %v5237_v45  ;;  %v5256_v32 = vsel %vm5250_vm10, %v5243_v20, 920167782 }
 0x6da   :  { %vm5009_vm6 = vcmp.lt.s32.totalorder %v11659_v35, 0  ;;  %v5177_v55 = vsub.s32 0, %v12050_v63  ;;  %v5231_v33 = vshrl.u32 %v13534_v18, %v5230_v1  ;;  %vm5248_vm15 = vcmp.lt.s32.totalorder %v12028_v57, 2 }
 0x6db   :  { %v5257_v5 = vsel %vm5249_vm4, %v5240_v62, %v5256_v32  ;;  %v5090_v40 = vmul.f32 %v5089_v27, %v5087_v22  ;;  %v5259_v16 = vsel %vm5247_vm8, %v5237_v45, %v5240_v62  ;;  %v5260_v48 = vsel %vm5250_vm10, %v5246_v36, 1326507024 }
 0x6dc   :  { %v5258_v24 = vsel %vm5248_vm15, %v5255_v34, %v5257_v5  ;;  %v7244_v28 = vmin.u32 %v5177_v55, %v12050_v63  ;;  %v5251_v29 = vsel %vm5247_vm8, %v5231_v33, %v5234_v26  ;;  %v5253_v1 = vsel %vm5249_vm4, %v5237_v45, %v5252_v46 }
 0x6dd   :  { %v5261_v0 = vsel %vm5249_vm4, %v5243_v20, %v5260_v48  ;;  %v12076_v2 = vmul.u32.u64.low %v12021_v53, %v5258_v24  ;;  %v12077_v8 = vmul.u32.u64.high %v12021_v53, %v5258_v24, %v12076_v2  ;;  %v5329_v62 = vadd.s32 1, %v7251_v31 }
 0x6de   :  { %v5262_v27 = vsel %vm5248_vm15, %v5259_v16, %v5261_v0  ;;  %7775 = vcosq.f32 %v12010_v4  ;;  %v5179_v3 = vclz %v7244_v28  ;;  %v5091_v45 = vxor.u32 2147483648, %v5090_v40 }
 0x6df   :  { %v12082_v26 = vmul.u32.u64.low %v12021_v53, %v5262_v27  ;;  %v12083_v47 = vmul.u32.u64.high %v12021_v53, %v5262_v27, %v12082_v26  ;;  %7777 = vsinq.f32 %v12010_v4  ;;  %v5254_v20 = vsel %vm5248_vm15, %v5251_v29, %v5253_v1 }
 0x6e0   :  { %vm5330_vm5 = vcmp.gt.s32.totalorder %v5329_v62, 0  ;;  %v12093_v31 = vsel %vm4801_vm3, %v4883_v37, %v11925_v7  ;;  %v7245_v39 = vadd.s32 4294967294, %v5179_v3  ;;  %v5327_v22 = vor.u32 8388608, %v12025_v12 }
 0x6e1   :  { %v5331_v36 = vsel %vm5330_vm5, %v5329_v62, 0  ;;  %v12101_v4 = vsel %vm4905_vm9, %v4987_v11, %v11995_v51  ;;  %v5273_v57 = vadd.s32 1, %v12077_v8  ;;  %v13494_v34 = vand.u32 2147483647, %v12042_v44 }
 0x6e2   :  { %v5333_v46 = vand.u32 31, %v5331_v36  ;;  %v5167_v7 = vadd.s32 %v11991_v41, %v12004_v21  ;;  %vm7246_vm11 = vcmp.lt.s32.totalorder %v7245_v39, 0  ;;  %v5270_v37 = vmul.u32 %v12021_v53, %v5254_v20 }
 0x6e3   :  { %vm5272_vm0 = vc.u32 %v12083_v47, %v12076_v2  ;;  %v12112_v12 = vsel %vm5009_vm6, %v5091_v45, %v5090_v40  ;;  %v5182_v51 = vsel %vm7246_vm11, 0, %v7245_v39  ;;  %v12115_v5 = vshll.u32 %v5327_v22, 8 }
 0x6e4   :  { %v5274_v11 = vsel %vm5272_vm0, %v5273_v57, %v12077_v8  ;;  %v5334_v32 = vsub.s32 32, %v5333_v46  ;;  %v5187_v55 = vsub.s32 4294967266, %v5182_v51  ;;  %v5426_v41 = vand.u32 2139095040, %v12042_v44 }
 0x6e5   :  { %v5275_v33 = vadd.s32 %v5274_v11, %v5270_v37  ;;  %v5336_v21 = vshll.u32 %v13534_v18, %v5333_v46  ;;  %v12123_v40 = vand.u32 8388607, %v13494_v34  ;;  %v5183_v16 = vsub.s32 32, %v5182_v51 }
 0x6e6   :  { %v5337_v53 = vshrl.u32 %v13536_v14, %v5334_v32  ;;  %v5340_v24 = vshrl.u32 %v13537_v15, %v5334_v32  ;;  %v5188_v48 = vadd.s32 127, %v5187_v55  ;;  %v5332_v29 = vshrl.u32 %v5331_v36, 5 }
 0x6e7   :  { %v5276_v28 = vadd.s32 536870912, %v5275_v33  ;;  %v5339_v0 = vshll.u32 %v13536_v14, %v5333_v46  ;;  %v5342_v27 = vshll.u32 %v13537_v15, %v5333_v46  ;;  %v5343_v8 = vshrl.u32 %v13538_v52, %v5334_v32 }
 0x6e8   :  { %v5338_v1 = vor.u32 %v5337_v53, %v5336_v21  ;;  %v5189_v62 = vshll.u32 %v5188_v48, 23  ;;  %v5345_v26 = vshll.u32 %v13538_v52, %v5333_v46  ;;  %v5346_v45 = vshrl.u32 %v13539_v60, %v5334_v32 }
 0x6e9   :  { %v12128_v3 = vshrl.u32 %v5276_v28, 30  ;;  %v5341_v20 = vor.u32 %v5340_v24, %v5339_v0  ;;  %v5344_v39 = vor.u32 %v5343_v8, %v5342_v27  ;;  %v5348_v22 = vshll.u32 %v13539_v60, %v5333_v46 }
 0x6ea   :  { %v5349_v36 = vshrl.u32 %v13582_v30, %v5334_v32  ;;  %v5347_v37 = vor.u32 %v5346_v45, %v5345_v26  ;;  %v5427_v11 = vshrl.u32 %v5426_v41, 23  ;;  %vm12137_vm14 = vcmp.le.f32.partialorder %v4799_v6, 0.7853982 }
 0x6eb   :  { %v5278_v57 = vshll.u32 %v12128_v3, 30  ;;  %v4885_v21 = vsub.s32 4, %v11777_v23  ;;  %v12142_v53 = vpop.eup %7775  ;;  %v5184_v24 = vshll.u32 %v12050_v63, %v5182_v51  ;;  %v5185_v48 = vshrl.u32 %v5167_v7, %v5183_v16 }
 0x6ec   :  { %v5335_v46 = vshrl.u32 %v13534_v18, %v5334_v32  ;;  %v5350_v28 = vor.u32 %v5349_v36, %v5348_v22  ;;  %v12146_v0 = vpop.eup %7777  ;;  %v5190_v27 = vor.u32 4788187, %v5189_v62  ;;  %vm5351_vm13 = vcmp.lt.s32.totalorder %v5332_v29, 1 }
 0x6ed   :  { %v12148_v41 = vsub.s32 %v5275_v33, %v5278_v57  ;;  %vm5354_vm2 = vcmp.lt.s32.totalorder %v5332_v29, 4  ;;  %vm5353_vm8 = vcmp.lt.s32.totalorder %v5332_v29, 3  ;;  %v5359_v8 = vsel %vm5351_vm13, %v5338_v1, %v5341_v20 }
 0x6ee   :  { %v5356_v6 = vsel %vm5354_vm2, %v5344_v39, 2102212464  ;;  %v5360_v26 = vsel %vm5354_vm2, %v5347_v37, 920167782  ;;  %vm5352_vm4 = vcmp.lt.s32.totalorder %v5332_v29, 2  ;;  %v5363_v63 = vsel %vm5351_vm13, %v5341_v20, %v5344_v39 }
 0x6ef   :  { %v5281_v45 = vsub.s32 0, %v12148_v41  ;;  %v5361_v34 = vsel %vm5353_vm8, %v5344_v39, %v5360_v26  ;;  %v5186_v7 = vor.u32 %v5185_v48, %v5184_v24  ;;  %v5364_v32 = vsel %vm5354_vm2, %v5350_v28, 1326507024 }
 0x6f0   :  { %v5362_v51 = vsel %vm5352_vm4, %v5359_v8, %v5361_v34  ;;  %v7255_v16 = vadd.s32 4294967169, %v5427_v11  ;;  %v5355_v33 = vsel %vm5351_vm13, %v5335_v46, %v5338_v1  ;;  %v5357_v22 = vsel %vm5353_vm8, %v5341_v20, %v5356_v6 }
 0x6f1   :  { %v7248_v62 = vmin.u32 %v5281_v45, %v12148_v41  ;;  %v5365_v36 = vsel %vm5353_vm8, %v5347_v37, %v5364_v32  ;;  %v12155_v38 = vmul.u32.u64.low %v12115_v5, %v5362_v51  ;;  %v12156_v49 = vmul.u32.u64.high %v12115_v5, %v5362_v51, %v12155_v38 }
 0x6f2   :  { %v5366_v57 = vsel %vm5352_vm4, %v5363_v63, %v5365_v36  ;;  %v5433_v59 = vadd.s32 1, %v7255_v16  ;;  %v5191_v26 = vand.u32 2147483647, %v5190_v27  ;;  %v5271_v11 = vadd.s32 %v12076_v2, %v12083_v47 }
 0x6f3   :  { %v5283_v39 = vclz %v7248_v62  ;;  %v12160_v24 = vmul.u32.u64.low %v12115_v5, %v5366_v57  ;;  %v12161_v34 = vmul.u32.u64.high %v12115_v5, %v5366_v57, %v12160_v24  ;;  %v5358_v1 = vsel %vm5352_vm4, %v5355_v33, %v5357_v22 }
 0x6f4   :  { %vm5434_vm10 = vcmp.gt.s32.totalorder %v5433_v59, 0  ;;  %v4887_v20 = vsel %vm12137_vm14, %v11472_v58, %v12093_v31  ;;  %v5193_v37 = vcvt.s32.f32 %v5186_v7  ;;  %v5431_v46 = vor.u32 8388608, %v12123_v40 }
 0x6f5   :  { %v7249_v48 = vadd.s32 4294967294, %v5283_v39  ;;  %v5435_v28 = vsel %vm5434_vm10, %v5433_v59, 0  ;;  %v5377_v27 = vadd.s32 1, %v12156_v49  ;;  %v4886_v2 = vsel %vm4801_vm3, %v4885_v21, %v11777_v23 }
 0x6f6   :  { %v5437_v6 = vand.u32 31, %v5435_v28  ;;  %7779 = vsinq.f32 %v4887_v20  ;;  %v12175_v47 = vmul.f32 %v5193_v37, %v5191_v26  ;;  %v5374_v29 = vmul.u32 %v12115_v5, %v5358_v1 }
 0x6f7   :  { %vm7250_vm15 = vcmp.lt.s32.totalorder %v7249_v48, 0  ;;  %vm5376_vm5 = vc.u32 %v12161_v34, %v12155_v38  ;;  %7781 = vcosq.f32 %v4887_v20  ;;  %v4888_v23 = vsel %vm12137_vm14, 0, %v4886_v2 }
 0x6f8   :  { %v5286_v31 = vsel %vm7250_vm15, 0, %v7249_v48  ;;  %v5378_v40 = vsel %vm5376_vm5, %v5377_v27, %v12156_v49  ;;  %v5438_v59 = vsub.s32 32, %v5437_v6  ;;  %v5436_v21 = vshrl.u32 %v5435_v28, 5 }
 0x6f9   :  { %v5287_v8 = vsub.s32 32, %v5286_v31  ;;  %v5291_v45 = vsub.s32 4294967266, %v5286_v31  ;;  %v5379_v63 = vadd.s32 %v5378_v40, %v5374_v29  ;;  %v5440_v7 = vshll.u32 %v13534_v18, %v5437_v6 }
 0x6fa   :  { %v5441_v51 = vshrl.u32 %v13536_v14, %v5438_v59  ;;  %v5444_v5 = vshrl.u32 %v13537_v15, %v5438_v59  ;;  %v5288_v32 = vshll.u32 %v12148_v41, %v5286_v31  ;;  %v5443_v49 = vshll.u32 %v13536_v14, %v5437_v6 }
 0x6fb   :  { %v5292_v16 = vadd.s32 127, %v5291_v45  ;;  %v5380_v62 = vadd.s32 536870912, %v5379_v63  ;;  %v5289_v33 = vshrl.u32 %v5271_v11, %v5287_v8  ;;  %v5446_v36 = vshll.u32 %v13537_v15, %v5437_v6 }
 0x6fc   :  { %v5442_v22 = vor.u32 %v5441_v51, %v5440_v7  ;;  %v5447_v55 = vshrl.u32 %v13538_v52, %v5438_v59  ;;  %v5449_v39 = vshll.u32 %v13538_v52, %v5437_v6  ;;  %v5450_v24 = vshrl.u32 %v13539_v60, %v5438_v59 }
 0x6fd   :  { %v5293_v57 = vshll.u32 %v5292_v16, 23  ;;  %v12190_v26 = vshrl.u32 %v5380_v62, 30  ;;  %v5445_v1 = vor.u32 %v5444_v5, %v5443_v49  ;;  %v5452_v41 = vshll.u32 %v13539_v60, %v5437_v6 }
 0x6fe   :  { %v5448_v20 = vor.u32 %v5447_v55, %v5446_v36  ;;  %v5453_v37 = vshrl.u32 %v13582_v30, %v5438_v59  ;;  %v5451_v28 = vor.u32 %v5450_v24, %v5449_v39  ;;  %v5471_v27 = vshll.u32 %v5431_v46, 8 }
 0x6ff   :  { %v5294_v48 = vor.u32 4788187, %v5293_v57  ;;  %v5382_v11 = vshll.u32 %v12190_v26, 30  ;;  %v5290_v2 = vor.u32 %v5289_v33, %v5288_v32  ;;  %v5439_v29 = vshrl.u32 %v13534_v18, %v5438_v59 }
 0x700   :  { %v5454_v31 = vor.u32 %v5453_v37, %v5452_v41  ;;  %v4892_v40 = vadd.s32 3, %v4888_v23  ;;  %vm5455_vm3 = vcmp.lt.s32.totalorder %v5436_v21, 1  ;;  %vm5456_vm11 = vcmp.lt.s32.totalorder %v5436_v21, 2 }
 0x701   :  { %v12198_v8 = vsub.s32 %v5379_v63, %v5382_v11  ;;  %vm5458_vm0 = vcmp.lt.s32.totalorder %v5436_v21, 4  ;;  %vm5457_vm14 = vcmp.lt.s32.totalorder %v5436_v21, 3  ;;  %v5463_v6 = vsel %vm5455_vm3, %v5442_v22, %v5445_v1 }
 0x702   :  { %v5460_v45 = vsel %vm5458_vm0, %v5448_v20, 2102212464  ;;  %v5464_v7 = vsel %vm5458_vm0, %v5451_v28, 920167782  ;;  %v5295_v5 = vand.u32 2147483647, %v5294_v48  ;;  %v5467_v32 = vsel %vm5455_vm3, %v5445_v1, %v5448_v20 }
 0x703   :  { %v7780_v51 = vpop.eup %7779  ;;  %v5385_v16 = vsub.s32 0, %v12198_v8  ;;  %v5465_v46 = vsel %vm5457_vm14, %v5448_v20, %v5464_v7  ;;  %vm4891_vm13 = vweird.f32 %v11472_v58  ;;  %v5459_v59 = vsel %vm5455_vm3, %v5439_v29, %v5442_v22 }
 0x704   :  { %v5466_v63 = vsel %vm5456_vm11, %v5463_v6, %v5465_v46  ;;  %v5468_v23 = vsel %vm5458_vm0, %v5454_v31, 1326507024  ;;  %v4893_v62 = vand.u32 3, %v4892_v40  ;;  %v7782_v49 = vpop.eup %7781  ;;  %v5461_v36 = vsel %vm5457_vm14, %v5445_v1, %v5460_v45 }
 0x705   :  { %v7252_v33 = vmin.u32 %v5385_v16, %v12198_v8  ;;  %v5469_v55 = vsel %vm5457_vm14, %v5451_v28, %v5468_v23  ;;  %v4896_v57 = vxor.u32 2147483648, %v7780_v51  ;;  %v5375_v39 = vadd.s32 %v12155_v38, %v12161_v34 }
 0x706   :  { %v5470_v24 = vsel %vm5456_vm11, %v5467_v32, %v5469_v55  ;;  %v12210_v20 = vmul.u32.u64.low %v5471_v27, %v5466_v63  ;;  %v12211_v41 = vmul.u32.u64.high %v5471_v27, %v5466_v63, %v12210_v20  ;;  %v5297_v22 = vcvt.s32.f32 %v5290_v2 }
 0x707   :  { %v5387_v37 = vclz %v7252_v33  ;;  %v12214_v48 = vmul.u32.u64.low %v5471_v27, %v5470_v24  ;;  %v12215_v11 = vmul.u32.u64.high %v5471_v27, %v5470_v24, %v12214_v48  ;;  %v5462_v29 = vsel %vm5456_vm11, %v5459_v59, %v5461_v36 }
 0x708   :  { %vm4895_vm2 = vcmp.eq.s32.totalorder %v4893_v62, 0  ;;  %v4899_v1 = vxor.u32 2147483648, %v7782_v49  ;;  %v4781_v28 = vsub.s32 4, %v11662_v43  ;;  %v5298_v31 = vmul.f32 %v5297_v22, %v5295_v5 }
 0x709   :  { %v7253_v40 = vadd.s32 4294967294, %v5387_v37  ;;  %v4897_v38 = vsel %vm4895_vm2, %v7782_v49, %v4896_v57  ;;  %vm4898_vm8 = vcmp.eq.s32.totalorder %v4893_v62, 2  ;;  %v5481_v34 = vadd.s32 1, %v12211_v41 }
 0x70a   :  { %vm4894_vm4 = vcmp.lt.s32.totalorder %v4893_v62, 2  ;;  %v4900_v45 = vsel %vm4898_vm8, %v4899_v1, %v7780_v51  ;;  %v4782_v2 = vsel %vm4697_vm12, %v4781_v28, %v11662_v43  ;;  %v5478_v6 = vmul.u32 %v5471_v27, %v5462_v29 }
 0x70b   :  { %vm7254_vm10 = vcmp.lt.s32.totalorder %v7253_v40, 0  ;;  %vm5480_vm15 = vc.u32 %v12215_v11, %v12210_v20  ;;  %v4901_v21 = vsel %vm4894_vm4, %v4897_v38, %v4900_v45  ;;  %v4784_v46 = vsel %vm11957_vm1, 0, %v4782_v2 }
 0x70c   :  { %v5390_v7 = vsel %vm7254_vm10, 0, %v7253_v40  ;;  %v5482_v5 = vsel %vm5480_vm15, %v5481_v34, %v12211_v41  ;;  %v4902_v16 = vsel %vm4891_vm13, nan, %v4901_v21  ;;  %v5299_v51 = vxor.u32 2147483648, %v5298_v31 }
 0x70d   :  { %v5391_v32 = vsub.s32 32, %v5390_v7  ;;  %v5395_v59 = vsub.s32 4294967266, %v5390_v7  ;;  %v5483_v63 = vadd.s32 %v5482_v5, %v5478_v6  ;;  %5667 = vmatprep.mubr.f32.mxu1 %v4902_v16  ;;  %vm5217_vm12 = vcmp.lt.s32.totalorder %v11859_v54, 0 }
 0x70e   :  { %vm4787_vm5 = vweird.f32 %v11430_v17  ;;  %v4788_v43 = vadd.s32 3, %v4784_v46  ;;  %v13705_v27 = vand.u32 2147483647, %v11659_v35  ;;  %v5093_v58 = vsub.s32 4, %v11947_v13 }
 0x70f   :  { %v5396_v9 = vadd.s32 127, %v5395_v59  ;;  %v5484_v62 = vadd.s32 536870912, %v5483_v63  ;;  %v4792_v49 = vxor.u32 2147483648, %v12146_v0  ;;  %v4795_v55 = vxor.u32 2147483648, %v12142_v53 }
 0x710   :  { %vm12234_vm3 = vcmp.le.f32.partialorder %v13705_v27, 0.7853982  ;;  %v4789_v36 = vand.u32 3, %v4788_v43  ;;  %v5094_v57 = vsel %vm5009_vm6, %v5093_v58, %v11947_v13  ;;  %v5392_v24 = vshll.u32 %v12198_v8, %v5390_v7 }
 0x711   :  { %v5095_v33 = vsel %vm12234_vm3, %v11659_v35, %v12112_v12  ;;  %v5393_v41 = vshrl.u32 %v5375_v39, %v5391_v32  ;;  %v5397_v22 = vshll.u32 %v5396_v9, 23  ;;  %v12249_v37 = vshrl.u32 %v5484_v62, 30 }
 0x712   :  { %7783 = vcosq.f32 %v5095_v33  ;;  %vm4791_vm1 = vcmp.eq.s32.totalorder %v4789_v36, 0  ;;  %v5096_v48 = vsel %vm12234_vm3, 0, %v5094_v57  ;;  %v13708_v12 = vand.u32 2147483647, %v11637_v56 }
 0x713   :  { %7785 = vsinq.f32 %v5095_v33  ;;  %v5486_v13 = vshll.u32 %v12249_v37, 30  ;;  %vm4790_vm6 = vcmp.lt.s32.totalorder %v4789_v36, 2  ;;  %v4793_v8 = vsel %vm4791_vm1, %v12142_v53, %v4792_v49 }
 0x714   :  { %vm12255_vm11 = vcmp.le.f32.partialorder %v13708_v12, 0.7853982  ;;  %vm4794_vm0 = vcmp.eq.s32.totalorder %v4789_v36, 2  ;;  %v5398_v39 = vor.u32 4788187, %v5397_v22  ;;  %v4989_v28 = vsub.s32 4, %v11865_v10 }
 0x715   :  { %v4796_v1 = vsel %vm4794_vm0, %v4795_v55, %v12146_v0  ;;  %v4991_v40 = vsel %vm12255_vm11, %v11637_v56, %v12101_v4  ;;  %v5394_v38 = vor.u32 %v5393_v41, %v5392_v24  ;;  %v12267_v34 = vsub.s32 %v5483_v63, %v5486_v13 }
 0x716   :  { %v4797_v45 = vsel %vm4790_vm6, %v4793_v8, %v4796_v1  ;;  %7787 = vcosq.f32 %v4991_v40  ;;  %v5100_v53 = vadd.s32 3, %v5096_v48  ;;  %v4990_v0 = vsel %vm4905_vm9, %v4989_v28, %v11865_v10 }
 0x717   :  { %v4798_v2 = vsel %vm4787_vm5, nan, %v4797_v45  ;;  %7789 = vsinq.f32 %v4991_v40  ;;  %v5195_v6 = vxor.u32 2147483648, %v12175_v47  ;;  %v5300_v21 = vsel %vm5217_vm12, %v5299_v51, %v5298_v31 }
 0x718   :  { %v5489_v4 = vsub.s32 0, %v12267_v34  ;;  %5668 = vmatmul.mubr.f32.vlgmr.msra.gmra.mxu1 %v4798_v2  ;;  %v5399_v7 = vand.u32 2147483647, %v5398_v39  ;;  %v4992_v17 = vsel %vm12255_vm11, 0, %v4990_v0  ;;  %v13711_v16 = vand.u32 2147483647, %v11859_v54 }
 0x719   :  { %v5301_v10 = vsub.s32 4, %v12128_v3  ;;  %vm5113_vm9 = vcmp.lt.s32.totalorder %v11835_v25, 0  ;;  %v5401_v31 = vcvt.s32.f32 %v5394_v38  ;;  %v5101_v51 = vand.u32 3, %v5100_v53 }
 0x71a   :  { %v7256_v5 = vmin.u32 %v5489_v4, %v12267_v34  ;;  %vm12283_vm14 = vcmp.le.f32.partialorder %v13711_v16, 0.7853982  ;;  %v5196_v59 = vsel %vm5113_vm9, %v5195_v6, %v12175_v47  ;;  %v5479_v63 = vadd.s32 %v12210_v20, %v12215_v11 }
 0x71b   :  { %v5303_v32 = vsel %vm12283_vm14, %v11859_v54, %v5300_v21  ;;  %v5402_v27 = vmul.f32 %v5401_v31, %v5399_v7  ;;  %vm5099_vm13 = vweird.f32 %v11659_v35  ;;  %v4996_v23 = vadd.s32 3, %v4992_v17 }
 0x71c   :  { %v5491_v43 = vclz %v7256_v5  ;;  %7791 = vcosq.f32 %v5303_v32  ;;  %v5302_v58 = vsel %vm5217_vm12, %v5301_v10, %v12128_v3  ;;  %v13714_v49 = vand.u32 2147483647, %v11835_v25 }
 0x71d   :  { %7793 = vsinq.f32 %v5303_v32  ;;  %v5197_v20 = vsub.s32 4, %v12038_v50  ;;  %vm5321_vm8 = vcmp.lt.s32.totalorder %v11916_v61, 0  ;;  %vm5102_vm4 = vcmp.lt.s32.totalorder %v5101_v51, 2 }
 0x71e   :  { %v7257_v62 = vadd.s32 4294967294, %v5491_v43  ;;  %vm12303_vm2 = vcmp.le.f32.partialorder %v13714_v49, 0.7853982  ;;  %vm5103_vm10 = vcmp.eq.s32.totalorder %v5101_v51, 0  ;;  %vm5106_vm12 = vcmp.eq.s32.totalorder %v5101_v51, 2 }
 0x71f   :  { %v7784_v9 = vpop.eup %7783  ;;  %v5199_v3 = vsel %vm12303_vm2, %v11835_v25, %v5196_v59  ;;  %v5304_v36 = vsel %vm12283_vm14, 0, %v5302_v58  ;;  %v4997_v41 = vand.u32 3, %v4996_v23  ;;  %v5403_v22 = vxor.u32 2147483648, %v5402_v27 }
 0x720   :  { %v5107_v11 = vxor.u32 2147483648, %v7784_v9  ;;  %v7786_v33 = vpop.eup %7785  ;;  %vm7258_vm15 = vcmp.lt.s32.totalorder %v7257_v62, 0  ;;  %7795 = vcosq.f32 %v5199_v3  ;;  %v5198_v29 = vsel %vm5113_vm9, %v5197_v20, %v12038_v50 }
 0x721   :  { %v5494_v55 = vsel %vm7258_vm15, 0, %v7257_v62  ;;  %v5104_v57 = vxor.u32 2147483648, %v7786_v33  ;;  %v5308_v1 = vadd.s32 3, %v5304_v36  ;;  %7797 = vsinq.f32 %v5199_v3 }
 0x722   :  { %v5108_v24 = vsel %vm5106_vm12, %v5107_v11, %v7786_v33  ;;  %v5495_v48 = vsub.s32 32, %v5494_v55  ;;  %v5499_v12 = vsub.s32 4294967266, %v5494_v55  ;;  %v5496_v8 = vshll.u32 %v12267_v34, %v5494_v55 }
 0x723   :  { %v7788_v13 = vpop.eup %7787  ;;  %v5105_v39 = vsel %vm5103_vm10, %v7784_v9, %v5104_v57  ;;  %vm5002_vm5 = vcmp.eq.s32.totalorder %v4997_v41, 2  ;;  %v5200_v50 = vsel %vm12303_vm2, 0, %v5198_v29  ;;  %vm4999_vm3 = vcmp.eq.s32.totalorder %v4997_v41, 0 }
 0x724   :  { %v7790_v28 = vpop.eup %7789  ;;  %v5497_v40 = vshrl.u32 %v5479_v63, %v5495_v48  ;;  %v5500_v38 = vadd.s32 127, %v5499_v12  ;;  %v5109_v45 = vsel %vm5102_vm4, %v5105_v39, %v5108_v24  ;;  %v5003_v2 = vxor.u32 2147483648, %v7788_v13 }
 0x725   :  { %v5110_v53 = vsel %vm5099_vm13, nan, %v5109_v45  ;;  %v5000_v0 = vxor.u32 2147483648, %v7790_v28  ;;  %vm4995_vm1 = vweird.f32 %v11637_v56  ;;  %vm4998_vm11 = vcmp.lt.s32.totalorder %v4997_v41, 2 }
 0x726   :  { %v5498_v6 = vor.u32 %v5497_v40, %v5496_v8  ;;  %v5501_v34 = vshll.u32 %v5500_v38, 23  ;;  %5673 = vmatprep.mubr.f32.mxu1 %v5110_v53  ;;  %v5004_v21 = vsel %vm5002_vm5, %v5003_v2, %v7790_v28  ;;  %v5309_v7 = vand.u32 3, %v5308_v1 }
 0x727   :  { %v5001_v4 = vsel %vm4999_vm3, %v7788_v13, %v5000_v0  ;;  %v5404_v5 = vsel %vm5321_vm8, %v5403_v22, %v5402_v27  ;;  %v5204_v16 = vadd.s32 3, %v5200_v50  ;;  %v13717_v59 = vand.u32 2147483647, %v11916_v61 }
 0x728   :  { %v5502_v35 = vor.u32 4788187, %v5501_v34  ;;  %v5005_v17 = vsel %vm4998_vm11, %v5001_v4, %v5004_v21  ;;  %v5505_v51 = vcvt.s32.f32 %v5498_v6  ;;  %vm5314_vm0 = vcmp.eq.s32.totalorder %v5309_v7, 2 }
 0x729   :  { %v7792_v46 = vpop.eup %7791  ;;  %v5006_v10 = vsel %vm4995_vm1, nan, %v5005_v17  ;;  %vm12329_vm6 = vcmp.le.f32.partialorder %v13717_v59, 0.7853982  ;;  %v5205_v9 = vand.u32 3, %v5204_v16  ;;  %vm5425_vm14 = vcmp.lt.s32.totalorder %v12042_v44, 0 }
 0x72a   :  { %v5503_v31 = vand.u32 2147483647, %v5502_v35  ;;  %5674 = vmatmul.mubr.f32.gmra.mxu1 %v5006_v10  ;;  %v5315_v32 = vxor.u32 2147483648, %v7792_v46  ;;  %v7794_v56 = vpop.eup %7793  ;;  %v5407_v43 = vsel %vm12329_vm6, %v11916_v61, %v5404_v5  ;;  %vm5311_vm9 = vcmp.eq.s32.totalorder %v5309_v7, 0  ;;  %v5591_v10 = vld [vmem:[%s13382_s6] sm:$0x3] }
 0x72b   :  { %v5312_v23 = vxor.u32 2147483648, %v7794_v56  ;;  %v5405_v49 = vsub.s32 4, %v12190_v26  ;;  %7799 = vcosq.f32 %v5407_v43  ;;  %vm5310_vm13 = vcmp.lt.s32.totalorder %v5309_v7, 2 }
 0x72c   :  { %v5506_v27 = vmul.f32 %v5505_v51, %v5503_v31  ;;  %v5316_v58 = vsel %vm5314_vm0, %v5315_v32, %v7794_v56  ;;  %vm5307_vm2 = vweird.f32 %v11859_v54  ;;  %v13720_v33 = vand.u32 2147483647, %v12042_v44 }
 0x72d   :  { %v7796_v62 = vpop.eup %7795  ;;  %v5313_v20 = vsel %vm5311_vm9, %v7792_v46, %v5312_v23  ;;  %v5509_v55 = vsub.s32 4, %v12249_v37  ;;  %vm5210_vm10 = vcmp.eq.s32.totalorder %v5205_v9, 2  ;;  %7801 = vsinq.f32 %v5407_v43 }
 0x72e   :  { %v5507_v47 = vxor.u32 2147483648, %v5506_v27  ;;  %v5211_v11 = vxor.u32 2147483648, %v7796_v62  ;;  %v5317_v3 = vsel %vm5310_vm13, %v5313_v20, %v5316_v58  ;;  %vm12341_vm4 = vcmp.le.f32.partialorder %v13720_v33, 0.7853982  ;;  %v7798_v57 = vpop.eup %7797 }
 0x72f   :  { %v5318_v41 = vsel %vm5307_vm2, nan, %v5317_v3  ;;  %v5208_v22 = vxor.u32 2147483648, %v7798_v57  ;;  %v5406_v12 = vsel %vm5321_vm8, %v5405_v49, %v12190_v26  ;;  %vm5207_vm15 = vcmp.eq.s32.totalorder %v5205_v9, 0 }
 0x730   :  { %v5508_v24 = vsel %vm5425_vm14, %v5507_v47, %v5506_v27  ;;  %5679 = vmatprep.mubr.f32.mxu1 %v5318_v41  ;;  %v5212_v48 = vsel %vm5210_vm10, %v5211_v11, %v7798_v57  ;;  %vm5206_vm12 = vcmp.lt.s32.totalorder %v5205_v9, 2  ;;  %v5510_v13 = vsel %vm5425_vm14, %v5509_v55, %v12249_v37 }
 0x731   :  { %v5511_v54 = vsel %vm12341_vm4, %v12042_v44, %v5508_v24  ;;  %v5209_v29 = vsel %vm5207_vm15, %v7796_v62, %v5208_v22  ;;  %vm5203_vm5 = vweird.f32 %v11835_v25  ;;  %v5408_v39 = vsel %vm12329_vm6, 0, %v5406_v12 }
 0x732   :  { %7803 = vcosq.f32 %v5511_v54  ;;  %v5213_v8 = vsel %vm5206_vm12, %v5209_v29, %v5212_v48  ;;  %v5512_v26 = vsel %vm12341_vm4, 0, %v5510_v13  ;;  %v5412_v28 = vadd.s32 3, %v5408_v39 }
 0x733   :  { %7805 = vsinq.f32 %v5511_v54  ;;  %v5214_v1 = vsel %vm5203_vm5, nan, %v5213_v8  ;;  %v5516_v40 = vadd.s32 3, %v5512_v26  ;;  %vm5515_vm14 = vweird.f32 %v12042_v44 }
 0x734   :  { %5680 = vmatmul.mubr.f32.gmra.mxu1 %v5214_v1  ;;  %v5413_v45 = vand.u32 3, %v5412_v28  ;;  %vm5411_vm9 = vweird.f32 %v11916_v61  ;;  %v12368_v31 = vrot.slane %v5591_v10, %v13693_v42  ;;  %v12371_v51 = vrot.slane %v5591_v10, %v13696_v19 }
 0x735   :  { %v5517_v0 = vand.u32 3, %v5516_v40 }
 0x736   :  { %vm5415_vm8 = vcmp.eq.s32.totalorder %v5413_v45, 0  ;;  %vm5418_vm3 = vcmp.eq.s32.totalorder %v5413_v45, 2  ;;  %vm5414_vm6 = vcmp.lt.s32.totalorder %v5413_v45, 2 }
 0x737   :  { %vm5522_vm1 = vcmp.eq.s32.totalorder %v5517_v0, 2  ;;  %vm5519_vm11 = vcmp.eq.s32.totalorder %v5517_v0, 0  ;;  %vm5518_vm0 = vcmp.lt.s32.totalorder %v5517_v0, 2 }
 0x738   :  { %v7800_v38 = vpop.eup %7799 }
 0x739   :  { %v5419_v2 = vxor.u32 2147483648, %v7800_v38 }
 0x73a   :  { %v7802_v53 = vpop.eup %7801 }
 0x73b   :  { %v5416_v37 = vxor.u32 2147483648, %v7802_v53  ;;  %v5420_v21 = vsel %vm5418_vm3, %v5419_v2, %v7802_v53 }
 0x73d   :  { %v5417_v34 = vsel %vm5415_vm8, %v7800_v38, %v5416_v37 }
 0x73e   :  { %v5421_v35 = vsel %vm5414_vm6, %v5417_v34, %v5420_v21 }
 0x73f   :  { %v7804_v50 = vpop.eup %7803  ;;  %v5422_v46 = vsel %vm5411_vm9, nan, %v5421_v35 }
 0x740   :  { %v7806_v25 = vpop.eup %7805  ;;  %v5523_v6 = vxor.u32 2147483648, %v7804_v50 }
 0x741   :  { %v5520_v4 = vxor.u32 2147483648, %v7806_v25 }
 0x742   :  { %v5524_v7 = vsel %vm5522_vm1, %v5523_v6, %v7806_v25 }
 0x743   :  { %v5521_v5 = vsel %vm5519_vm11, %v7804_v50, %v5520_v4 }
 0x744   :  { %v5525_v17 = vsel %vm5518_vm0, %v5521_v5, %v5524_v7 }
 0x745   :  { %v5526_v16 = vsel %vm5515_vm14, nan, %v5525_v17 }
 0x746   :  { %5685 = vmatprep.mubr.f32.mxu1 %v5526_v16 }
 0x747   :  { %5686 = vmatmul.mubr.f32.gmra.mxu1 %v5422_v46 }
 0x7d8   :  { %v5669_v32 = vpop.f32.mrf.mxu1 }
 0x7d9   :  { %v12374_v44 = vadd.f32 %v5669_v32, %v12368_v31 }
 0x7da   :  { %v5671_v59 = vpop.f32.mrf.mxu1 }
 0x7db   :  { %v5692_v61 = vand.u32 2147483647, %v12374_v44  ;;  %v5695_v63 = vand.u32 2139095040, %v12374_v44  ;;  %v12379_v56 = vadd.f32 %v5671_v59, %v12371_v51 }
 0x7dd   :  { %v5696_v43 = vshrl.u32 %v5695_v63, 23  ;;  %v5699_v42 = vand.u32 8388607, %v5692_v61  ;;  %v5796_v27 = vand.u32 2147483647, %v12379_v56  ;;  %v5799_v19 = vand.u32 2139095040, %v12379_v56 }
 0x7df   :  { %v7259_v23 = vadd.s32 4294967169, %v5696_v43  ;;  %v5800_v58 = vshrl.u32 %v5799_v19, 23  ;;  %v5700_v62 = vor.u32 8388608, %v5699_v42  ;;  %v5803_v47 = vand.u32 8388607, %v5796_v27 }
 0x7e1   :  { %v5702_v9 = vadd.s32 1, %v7259_v23  ;;  %v7263_v49 = vadd.s32 4294967169, %v5800_v58  ;;  %v12387_v36 = vshll.u32 %v5700_v62, 8  ;;  %v5804_v55 = vor.u32 8388608, %v5803_v47 }
 0x7e3   :  { %vm5703_vm13 = vcmp.gt.s32.totalorder %v5702_v9, 0  ;;  %v5806_v11 = vadd.s32 1, %v7263_v49  ;;  %v12408_v17 = vshll.u32 %v5804_v55, 8 }
 0x7e4   :  { %v5704_v20 = vsel %vm5703_vm13, %v5702_v9, 0 }
 0x7e5   :  { %v5705_v3 = vshrl.u32 %v5704_v20, 5  ;;  %v5706_v33 = vand.u32 31, %v5704_v20  ;;  %vm5807_vm2 = vcmp.gt.s32.totalorder %v5806_v11, 0 }
 0x7e6   :  { %v5808_v38 = vsel %vm5807_vm2, %v5806_v11, 0 }
 0x7e7   :  { %v5707_v57 = vsub.s32 32, %v5706_v33  ;;  %v5709_v24 = vshll.u32 %v13534_v18, %v5706_v33  ;;  %v5712_v41 = vshll.u32 %v13536_v14, %v5706_v33  ;;  %v5715_v22 = vshll.u32 %v13537_v15, %v5706_v33 }
 0x7e8   :  { %v5718_v48 = vshll.u32 %v13538_v52, %v5706_v33  ;;  %v5721_v54 = vshll.u32 %v13539_v60, %v5706_v33  ;;  %vm5724_vm4 = vcmp.lt.s32.totalorder %v5705_v3, 1  ;;  %vm5725_vm10 = vcmp.lt.s32.totalorder %v5705_v3, 2 }
 0x7e9   :  { %v5710_v12 = vshrl.u32 %v13536_v14, %v5707_v57  ;;  %v5713_v29 = vshrl.u32 %v13537_v15, %v5707_v57  ;;  %v5716_v13 = vshrl.u32 %v13538_v52, %v5707_v57  ;;  %v5708_v8 = vshrl.u32 %v13534_v18, %v5707_v57 }
 0x7ea   :  { %v5719_v39 = vshrl.u32 %v13539_v60, %v5707_v57  ;;  %v5722_v1 = vshrl.u32 %v13582_v30, %v5707_v57  ;;  %vm5726_vm15 = vcmp.lt.s32.totalorder %v5705_v3, 3  ;;  %vm5727_vm12 = vcmp.lt.s32.totalorder %v5705_v3, 4 }
 0x7eb   :  { %v5711_v26 = vor.u32 %v5710_v12, %v5709_v24  ;;  %v5714_v28 = vor.u32 %v5713_v29, %v5712_v41  ;;  %v5717_v40 = vor.u32 %v5716_v13, %v5715_v22  ;;  %v5810_v53 = vand.u32 31, %v5808_v38  ;;  %v5675_v41 = vpop.f32.mrf.mxu1 }
 0x7ec   :  { %v5720_v45 = vor.u32 %v5719_v39, %v5718_v48  ;;  %v5723_v2 = vor.u32 %v5722_v1, %v5721_v54  ;;  %v5809_v10 = vshrl.u32 %v5808_v38, 5 }
 0x7ed   :  { %v5728_v0 = vsel %vm5724_vm4, %v5708_v8, %v5711_v26  ;;  %v5729_v37 = vsel %vm5727_vm12, %v5717_v40, 2102212464  ;;  %v5732_v50 = vsel %vm5724_vm4, %v5711_v26, %v5714_v28  ;;  %v5736_v25 = vsel %vm5724_vm4, %v5714_v28, %v5717_v40  ;;  %v5677_v38 = vpop.f32.mrf.mxu1 }
 0x7ee   :  { %v5730_v6 = vsel %vm5726_vm15, %v5714_v28, %v5729_v37  ;;  %v5733_v34 = vsel %vm5727_vm12, %v5720_v45, 920167782  ;;  %v5737_v21 = vsel %vm5727_vm12, %v5723_v2, 1326507024  ;;  %v5811_v4 = vsub.s32 32, %v5810_v53 }
 0x7ef   :  { %v5731_v7 = vsel %vm5725_vm10, %v5728_v0, %v5730_v6  ;;  %v5734_v5 = vsel %vm5726_vm15, %v5717_v40, %v5733_v34  ;;  %v5738_v35 = vsel %vm5726_vm15, %v5720_v45, %v5737_v21  ;;  %v5813_v32 = vshll.u32 %v13534_v18, %v5810_v53 }
 0x7f0   :  { %v5735_v16 = vsel %vm5725_vm10, %v5732_v50, %v5734_v5  ;;  %v5739_v46 = vsel %vm5725_vm10, %v5736_v25, %v5738_v35  ;;  %v5747_v19 = vmul.u32 %v12387_v36, %v5731_v7  ;;  %v5814_v23 = vshrl.u32 %v13536_v14, %v5811_v4 }
 0x7f1   :  { %v12414_v59 = vmul.u32.u64.low %v12387_v36, %v5739_v46  ;;  %v12415_v63 = vmul.u32.u64.high %v12387_v36, %v5739_v46, %v12414_v59  ;;  %v12418_v43 = vmul.u32.u64.low %v12387_v36, %v5735_v16  ;;  %v12419_v42 = vmul.u32.u64.high %v12387_v36, %v5735_v16, %v12418_v43 }
 0x7f2   :  { %v5816_v58 = vshll.u32 %v13536_v14, %v5810_v53  ;;  %v5817_v9 = vshrl.u32 %v13537_v15, %v5811_v4  ;;  %v5819_v62 = vshll.u32 %v13537_v15, %v5810_v53  ;;  %v5820_v49 = vshrl.u32 %v13538_v52, %v5811_v4 }
 0x7f3   :  { %v5822_v47 = vshll.u32 %v13538_v52, %v5810_v53  ;;  %v5823_v20 = vshrl.u32 %v13539_v60, %v5811_v4  ;;  %v5815_v11 = vor.u32 %v5814_v23, %v5813_v32  ;;  %v5825_v33 = vshll.u32 %v13539_v60, %v5810_v53 }
 0x7f4   :  { %v5818_v3 = vor.u32 %v5817_v9, %v5816_v58  ;;  %v5826_v36 = vshrl.u32 %v13582_v30, %v5811_v4  ;;  %vm5749_vm5 = vc.u32 %v12415_v63, %v12418_v43  ;;  %v5750_v55 = vadd.s32 1, %v12419_v42  ;;  %v5681_v16 = vpop.f32.mrf.mxu1 }
 0x7f5   :  { %v5812_v57 = vshrl.u32 %v13534_v18, %v5811_v4  ;;  %v5821_v24 = vor.u32 %v5820_v49, %v5819_v62  ;;  %v5824_v22 = vor.u32 %v5823_v20, %v5822_v47  ;;  %vm5828_vm8 = vcmp.lt.s32.totalorder %v5809_v10, 1 }
 0x7f6   :  { %v5827_v48 = vor.u32 %v5826_v36, %v5825_v33  ;;  %vm5829_vm3 = vcmp.lt.s32.totalorder %v5809_v10, 2  ;;  %v5751_v54 = vsel %vm5749_vm5, %v5750_v55, %v12419_v42  ;;  %vm5830_vm1 = vcmp.lt.s32.totalorder %v5809_v10, 3 }
 0x7f7   :  { %vm5831_vm11 = vcmp.lt.s32.totalorder %v5809_v10, 4  ;;  %v5836_v12 = vsel %vm5828_vm8, %v5815_v11, %v5818_v3  ;;  %v5752_v29 = vadd.s32 %v5751_v54, %v5747_v19  ;;  %v5840_v39 = vsel %vm5828_vm8, %v5818_v3, %v5821_v24 }
 0x7f8   :  { %v5833_v13 = vsel %vm5831_vm11, %v5821_v24, 2102212464  ;;  %v5837_v8 = vsel %vm5831_vm11, %v5824_v22, 920167782  ;;  %v5832_v1 = vsel %vm5828_vm8, %v5812_v57, %v5815_v11  ;;  %v5841_v28 = vsel %vm5831_vm11, %v5827_v48, 1326507024  ;;  %v5683_v11 = vpop.f32.mrf.mxu1 }
 0x7f9   :  { %v5838_v26 = vsel %vm5830_vm1, %v5821_v24, %v5837_v8  ;;  %v12438_v40 = vadd.f32 %v5675_v41, %v12368_v31  ;;  %v5753_v45 = vadd.s32 536870912, %v5752_v29  ;;  %v5834_v2 = vsel %vm5830_vm1, %v5818_v3, %v5833_v13 }
 0x7fa   :  { %v5839_v53 = vsel %vm5829_vm3, %v5836_v12, %v5838_v26  ;;  %v5842_v0 = vsel %vm5830_vm1, %v5824_v22, %v5841_v28  ;;  %v5835_v7 = vsel %vm5829_vm3, %v5832_v1, %v5834_v2  ;;  %v12456_v35 = vadd.f32 %v5677_v38, %v12371_v51 }
 0x7fb   :  { %v5843_v37 = vsel %vm5829_vm3, %v5840_v39, %v5842_v0  ;;  %v12443_v50 = vmul.u32.u64.low %v12408_v17, %v5839_v53  ;;  %v12444_v25 = vmul.u32.u64.high %v12408_v17, %v5839_v53, %v12443_v50  ;;  %v12446_v6 = vshrl.u32 %v5753_v45, 30 }
 0x7fc   :  { %v12449_v34 = vmul.u32.u64.low %v12408_v17, %v5843_v37  ;;  %v12450_v21 = vmul.u32.u64.high %v12408_v17, %v5843_v37, %v12449_v34  ;;  %v5900_v4 = vand.u32 2147483647, %v12438_v40  ;;  %v5903_v5 = vand.u32 2139095040, %v12438_v40 }
 0x7fd   :  { %v5755_v46 = vshll.u32 %v12446_v6, 30  ;;  %v5854_v32 = vadd.s32 1, %v12444_v25  ;;  %v6004_v19 = vand.u32 2147483647, %v12456_v35  ;;  %v5851_v10 = vmul.u32 %v12408_v17, %v5835_v7 }
 0x7fe   :  { %v5904_v59 = vshrl.u32 %v5903_v5, 23  ;;  %v5907_v42 = vand.u32 8388607, %v5900_v4  ;;  %vm5853_vm6 = vc.u32 %v12450_v21, %v12443_v50  ;;  %v12468_v58 = vadd.f32 %v5681_v16, %v12368_v31 }
 0x7ff   :  { %v12463_v23 = vsub.s32 %v5752_v29, %v5755_v46  ;;  %v5855_v9 = vsel %vm5853_vm6, %v5854_v32, %v12444_v25  ;;  %v6007_v49 = vand.u32 2139095040, %v12456_v35  ;;  %v12475_v36 = vand.u32 8388607, %v6004_v19 }
 0x800   :  { %v7267_v62 = vadd.s32 4294967169, %v5904_v59  ;;  %v5856_v20 = vadd.s32 %v5855_v9, %v5851_v10  ;;  %v5908_v3 = vor.u32 8388608, %v5907_v42  ;;  %v13500_v24 = vand.u32 2147483647, %v12468_v58 }
 0x801   :  { %v5758_v47 = vsub.s32 0, %v12463_v23  ;;  %v6008_v57 = vshrl.u32 %v6007_v49, 23  ;;  %v5748_v41 = vadd.s32 %v12418_v43, %v12415_v63  ;;  %v12482_v22 = vadd.f32 %v5683_v11, %v12371_v51 }
 0x802   :  { %v5910_v33 = vadd.s32 1, %v7267_v62  ;;  %v5857_v55 = vadd.s32 536870912, %v5856_v20  ;;  %v12485_v54 = vadd.s32 %v12443_v50, %v12450_v21  ;;  %v12489_v8 = vshll.u32 %v5908_v3, 8  ;;  %v6555_v62 = vld [vmem:[%s13383_s7 + $0xf8] sm:$0xff] }
 0x803   :  { %v7260_v17 = vmin.u32 %v5758_v47, %v12463_v23  ;;  %v6012_v39 = vor.u32 8388608, %v12475_v36  ;;  %v6111_v1 = vand.u32 2139095040, %v12468_v58  ;;  %v7271_v43 = vadd.s32 4294967169, %v6008_v57  ;;  %7352 = vmatprep.subr.mxu0 %v6555_v62  ;;  %v6554_v57 = vld [vmem:[%s13383_s7 + $0xf0] sm:$0xff]  ;;  %v6548_v36 = vld [vmem:[%s13383_s7 + $0xc0] sm:$0xff] }
 0x804   :  { %vm5911_vm0 = vcmp.gt.s32.totalorder %v5910_v33, 0  ;;  %v12487_v12 = vshrl.u32 %v5857_v55, 30  ;;  %v12496_v28 = vand.u32 8388607, %v13500_v24  ;;  %vm5694_vm12 = vcmp.lt.s32.totalorder %v12374_v44, 0 }
 0x805   :  { %v5760_v48 = vclz %v7260_v17  ;;  %v5912_v29 = vsel %vm5911_vm0, %v5910_v33, 0  ;;  %v6014_v55 = vadd.s32 1, %v7271_v43  ;;  %vm12643_vm8 = vcmp.le.f32.partialorder %v5692_v61, 0.7853982  ;;  %v6544_v61 = vld [vmem:[%s13383_s7 + $0xa0] sm:$0xff] }
 0x806   :  { %v5914_v13 = vand.u32 31, %v5912_v29  ;;  %v5859_v63 = vshll.u32 %v12487_v12, 30  ;;  %v12498_v38 = vshrl.u32 %v5912_v29, 5 }
 0x807   :  { %v7261_v26 = vadd.s32 4294967294, %v5760_v48  ;;  %vm6015_vm15 = vcmp.gt.s32.totalorder %v6014_v55, 0 }
 0x808   :  { %v5915_v45 = vsub.s32 32, %v5914_v13  ;;  %v5917_v2 = vshll.u32 %v13534_v18, %v5914_v13  ;;  %v5920_v53 = vshll.u32 %v13536_v14, %v5914_v13  ;;  %v12502_v0 = vsub.s32 %v5856_v20, %v5859_v63  ;;  %v6553_v63 = vld [vmem:[%s13383_s7 + $0xe8] sm:$0xff] }
 0x809   :  { %vm7262_vm14 = vcmp.lt.s32.totalorder %v7261_v26, 0  ;;  %v5923_v37 = vshll.u32 %v13537_v15, %v5914_v13  ;;  %v5926_v50 = vshll.u32 %v13538_v52, %v5914_v13  ;;  %v5929_v7 = vshll.u32 %v13539_v60, %v5914_v13 }
 0x80a   :  { %v5763_v25 = vsel %vm7262_vm14, 0, %v7261_v26  ;;  %v5918_v34 = vshrl.u32 %v13536_v14, %v5915_v45  ;;  %v5921_v21 = vshrl.u32 %v13537_v15, %v5915_v45  ;;  %v5862_v32 = vsub.s32 0, %v12502_v0  ;;  %v6538_v26 = vld [vmem:[%s13383_s7 + $0x70] sm:$0xff] }
 0x80b   :  { %v5764_v5 = vsub.s32 32, %v5763_v25  ;;  %v5765_v16 = vshll.u32 %v12463_v23, %v5763_v25  ;;  %v5768_v46 = vsub.s32 4294967266, %v5763_v25  ;;  %v5924_v10 = vshrl.u32 %v13538_v52, %v5915_v45  ;;  %v6539_v23 = vld [vmem:[%s13383_s7 + $0x78] sm:$0xff] }
 0x80c   :  { %v5919_v59 = vor.u32 %v5918_v34, %v5917_v2  ;;  %v5922_v42 = vor.u32 %v5921_v21, %v5920_v53  ;;  %v5927_v9 = vshrl.u32 %v13539_v60, %v5915_v45  ;;  %v7264_v20 = vmin.u32 %v5862_v32, %v12502_v0  ;;  %7353 = vmatpush3.msra.mxu0 %v6539_v23  ;;  %v6536_v32 = vld [vmem:[%s13383_s7 + $0x60] sm:$0xff] }
 0x80d   :  { %v5766_v49 = vshrl.u32 %v5748_v41, %v5764_v5  ;;  %v5769_v47 = vadd.s32 127, %v5768_v46  ;;  %v5930_v11 = vshrl.u32 %v13582_v30, %v5915_v45  ;;  %v5916_v3 = vshrl.u32 %v13534_v18, %v5915_v45  ;;  %7354 = vmatprep.subr.mxu0 %v6554_v57  ;;  %v6550_v57 = vld [vmem:[%s13383_s7 + $0xd0] sm:$0xff] }
 0x80e   :  { %v5925_v33 = vor.u32 %v5924_v10, %v5923_v37  ;;  %v5928_v17 = vor.u32 %v5927_v9, %v5926_v50  ;;  %v5864_v29 = vclz %v7264_v20  ;;  %vm5932_vm9 = vcmp.lt.s32.totalorder %v12498_v38, 1  ;;  %7355 = vmatpush3.msra.mxu0 %v6538_v26  ;;  %v6537_v37 = vld [vmem:[%s13383_s7 + $0x68] sm:$0xff] }
 0x80f   :  { %v5767_v41 = vor.u32 %v5766_v49, %v5765_v16  ;;  %v5770_v48 = vshll.u32 %v5769_v47, 23  ;;  %v5931_v13 = vor.u32 %v5930_v11, %v5929_v7  ;;  %vm5933_vm13 = vcmp.lt.s32.totalorder %v12498_v38, 2  ;;  %7356 = vmatprep.subr.mxu0 %v6553_v63  ;;  %v6552_v7 = vld [vmem:[%s13383_s7 + $0xe0] sm:$0xff]  ;;  %v6551_v49 = vld [vmem:[%s13383_s7 + $0xd8] sm:$0xff] }
 0x810   :  { %vm5934_vm2 = vcmp.lt.s32.totalorder %v12498_v38, 3  ;;  %vm5935_vm4 = vcmp.lt.s32.totalorder %v12498_v38, 4  ;;  %v7265_v45 = vadd.s32 4294967294, %v5864_v29  ;;  %v5940_v53 = vsel %vm5932_vm9, %v5919_v59, %v5922_v42  ;;  %7357 = vmatpush3.msra.mxu0 %v6537_v37 }
 0x811   :  { %v5771_v43 = vor.u32 4788187, %v5770_v48  ;;  %v5937_v2 = vsel %vm5935_vm4, %v5925_v33, 2102212464  ;;  %v5774_v50 = vcvt.s32.f32 %v5767_v41  ;;  %v5936_v25 = vsel %vm5932_vm9, %v5916_v3, %v5919_v59  ;;  %7358 = vmatprep.subr.mxu0 %v6552_v7 }
 0x812   :  { %v5941_v34 = vsel %vm5935_vm4, %v5928_v17, 920167782  ;;  %v5945_v21 = vsel %vm5935_vm4, %v5931_v13, 1326507024  ;;  %vm7266_vm10 = vcmp.lt.s32.totalorder %v7265_v45, 0  ;;  %v5944_v46 = vsel %vm5932_vm9, %v5922_v42, %v5925_v33  ;;  %7359 = vmatpush3.msra.mxu0 %v6536_v32  ;;  %v6534_v13 = vld [vmem:[%s13383_s7 + $0x50] sm:$0xff] }
 0x813   :  { %v5772_v5 = vand.u32 2147483647, %v5771_v43  ;;  %v5942_v16 = vsel %vm5934_vm2, %v5925_v33, %v5941_v34  ;;  %v5867_v59 = vsel %vm7266_vm10, 0, %v7265_v45  ;;  %v5938_v10 = vsel %vm5934_vm2, %v5922_v42, %v5937_v2  ;;  %7360 = vmatprep.subr.mxu0 %v6551_v49  ;;  %v6535_v42 = vld [vmem:[%s13383_s7 + $0x58] sm:$0xff]  ;;  %v6549_v2 = vld [vmem:[%s13383_s7 + $0xc8] sm:$0xff] }
 0x814   :  { %v5943_v9 = vsel %vm5933_vm13, %v5940_v53, %v5942_v16  ;;  %v5946_v62 = vsel %vm5934_vm2, %v5928_v17, %v5945_v21  ;;  %v5868_v20 = vsub.s32 32, %v5867_v59  ;;  %v5872_v11 = vsub.s32 4294967266, %v5867_v59  ;;  %7361 = vmatpush3.msra.mxu0 %v6535_v42  ;;  %v6531_v49 = vld [vmem:[%s13383_s7 + $0x38] sm:$0xff]  ;;  %v6546_v42 = vld [vmem:[%s13383_s7 + $0xb0] sm:$0xff] }
 0x815   :  { %v5775_v47 = vmul.f32 %v5774_v50, %v5772_v5  ;;  %v6112_v23 = vshrl.u32 %v6111_v1, 23  ;;  %v5947_v3 = vsel %vm5933_vm13, %v5944_v46, %v5946_v62  ;;  %v5939_v48 = vsel %vm5933_vm13, %v5936_v25, %v5938_v10  ;;  %7362 = vmatprep.subr.mxu0 %v6550_v57 }
 0x816   :  { %v12569_v33 = vmul.u32.u64.low %v12489_v8, %v5943_v9  ;;  %v12570_v17 = vmul.u32.u64.high %v12489_v8, %v5943_v9, %v12569_v33  ;;  %v5873_v41 = vadd.s32 127, %v5872_v11  ;;  %v6016_v29 = vsel %vm6015_vm15, %v6014_v55, 0  ;;  %7363 = vmatpush3.msra.mxu0 %v6534_v13 }
 0x817   :  { %v5776_v1 = vxor.u32 2147483648, %v5775_v47  ;;  %v5870_v26 = vshrl.u32 %v12485_v54, %v5868_v20  ;;  %v12583_v63 = vmul.u32.u64.low %v12489_v8, %v5947_v3  ;;  %v12584_v43 = vmul.u32.u64.high %v12489_v8, %v5947_v3, %v12583_v63  ;;  %7364 = vmatprep.subr.mxu0 %v6549_v2  ;;  %v6533_v54 = vld [vmem:[%s13383_s7 + $0x48] sm:$0xff] }
 0x818   :  { %v6018_v45 = vand.u32 31, %v6016_v29  ;;  %v5874_v38 = vshll.u32 %v5873_v41, 23  ;;  %v12592_v55 = vshll.u32 %v6012_v39, 8  ;;  %v6212_v53 = vand.u32 2147483647, %v12482_v22  ;;  %7365 = vmatpush3.msra.mxu0 %v6533_v54  ;;  %v6530_v41 = vld [vmem:[%s13383_s7 + $0x30] sm:$0xff] }
 0x819   :  { %v5869_v37 = vshll.u32 %v12502_v0, %v5867_v59  ;;  %v5958_v50 = vadd.s32 1, %v12570_v17  ;;  %v7275_v34 = vadd.s32 4294967169, %v6112_v23  ;;  %v12605_v39 = vsel %vm5694_vm12, %v5776_v1, %v5775_v47  ;;  %7366 = vmatprep.subr.mxu0 %v6548_v36  ;;  %v6532_v0 = vld [vmem:[%s13383_s7 + $0x40] sm:$0xff]  ;;  %v6545_v2 = vld [vmem:[%s13383_s7 + $0xa8] sm:$0xff] }
 0x81a   :  { %v6019_v25 = vsub.s32 32, %v6018_v45  ;;  %v5955_v21 = vmul.u32 %v12489_v8, %v5939_v48  ;;  %v12608_v7 = vshrl.u32 %v6016_v29, 5  ;;  %v6116_v5 = vor.u32 8388608, %v12496_v28  ;;  %7367 = vmatpush3.msra.mxu0 %v6532_v0  ;;  %v6547_v8 = vld [vmem:[%s13383_s7 + $0xb8] sm:$0xff] }
 0x81b   :  { %v12614_v16 = vor.u32 %v5870_v26, %v5869_v37  ;;  %v12616_v46 = vor.u32 4788187, %v5874_v38  ;;  %vm5957_vm5 = vc.u32 %v12584_v43, %v12569_v33  ;;  %v6021_v32 = vshll.u32 %v13534_v18, %v6018_v45  ;;  %7368 = vmatprep.subr.mxu0 %v6547_v8  ;;  %v6529_v38 = vld [vmem:[%s13383_s7 + $0x28] sm:$0xff]  ;;  %v6543_v0 = vld [vmem:[%s13383_s7 + $0x98] sm:$0xff] }
 0x81c   :  { %v5959_v59 = vsel %vm5957_vm5, %v5958_v50, %v12570_v17  ;;  %v6022_v10 = vshrl.u32 %v13536_v14, %v6019_v25  ;;  %v6024_v9 = vshll.u32 %v13536_v14, %v6018_v45  ;;  %v6025_v62 = vshrl.u32 %v13537_v15, %v6019_v25  ;;  %7369 = vmatpush3.msra.mxu0 %v6531_v49 }
 0x81d   :  { %v5960_v47 = vadd.s32 %v5959_v59, %v5955_v21  ;;  %v6027_v20 = vshll.u32 %v13537_v15, %v6018_v45  ;;  %v6028_v11 = vshrl.u32 %v13538_v52, %v6019_v25  ;;  %v6118_v23 = vadd.s32 1, %v7275_v34  ;;  %7370 = vmatprep.subr.mxu0 %v6546_v42  ;;  %v6528_v34 = vld [vmem:[%s13383_s7 + $0x20] sm:$0xff] }
 0x81e   :  { %v6023_v3 = vor.u32 %v6022_v10, %v6021_v32  ;;  %v6026_v17 = vor.u32 %v6025_v62, %v6024_v9  ;;  %v6030_v57 = vshll.u32 %v13538_v52, %v6018_v45  ;;  %v6031_v1 = vshrl.u32 %v13539_v60, %v6019_v25  ;;  %7371 = vmatpush3.msra.mxu0 %v6530_v41  ;;  %v6527_v32 = vld [vmem:[%s13383_s7 + $0x18] sm:$0xff]  ;;  %v6542_v62 = vld [vmem:[%s13383_s7 + $0x90] sm:$0xff] }
 0x81f   :  { %v5961_v29 = vadd.s32 536870912, %v5960_v47  ;;  %v6029_v13 = vor.u32 %v6028_v11, %v6027_v20  ;;  %v6033_v26 = vshll.u32 %v13539_v60, %v6018_v45  ;;  %v6034_v63 = vshrl.u32 %v13582_v30, %v6019_v25  ;;  %7372 = vmatprep.subr.mxu0 %v6545_v2  ;;  %v6526_v11 = vld [vmem:[%s13383_s7 + $0x10] sm:$0xff] }
 0x820   :  { %v5876_v54 = vand.u32 2147483647, %v12616_v46  ;;  %v5878_v37 = vcvt.s32.f32 %v12614_v16  ;;  %v6020_v45 = vshrl.u32 %v13534_v18, %v6019_v25  ;;  %v6032_v50 = vor.u32 %v6031_v1, %v6030_v57  ;;  %7373 = vmatpush3.msra.mxu0 %v6529_v38  ;;  %v6541_v1 = vld [vmem:[%s13383_s7 + $0x88] sm:$0xff] }
 0x821   :  { %v12664_v36 = vshrl.u32 %v5961_v29, 30  ;;  %v6035_v21 = vor.u32 %v6034_v63, %v6033_v26  ;;  %vm6036_vm3 = vcmp.lt.s32.totalorder %v12608_v7, 1  ;;  %vm6039_vm1 = vcmp.lt.s32.totalorder %v12608_v7, 4  ;;  %7374 = vmatprep.subr.mxu0 %v6544_v61  ;;  %v6540_v61 = vld [vmem:[%s13383_s7 + $0x80] sm:$0xff] }
 0x822   :  { %vm6038_vm11 = vcmp.lt.s32.totalorder %v12608_v7, 3  ;;  %v6040_v25 = vsel %vm6036_vm3, %v6020_v45, %v6023_v3  ;;  %v6041_v16 = vsel %vm6039_vm1, %v6029_v13, 2102212464  ;;  %v6044_v46 = vsel %vm6036_vm3, %v6023_v3, %v6026_v17  ;;  %7375 = vmatpush3.msra.mxu0 %v6528_v34 }
 0x823   :  { %v5963_v8 = vshll.u32 %v12664_v36, 30  ;;  %v6042_v59 = vsel %vm6038_vm11, %v6026_v17, %v6041_v16  ;;  %v6045_v10 = vsel %vm6039_vm1, %v6032_v50, 920167782  ;;  %v6048_v9 = vsel %vm6036_vm3, %v6026_v17, %v6029_v13  ;;  %7376 = vmatprep.subr.mxu0 %v6543_v0 }
 0x824   :  { %vm6037_vm6 = vcmp.lt.s32.totalorder %v12608_v7, 2  ;;  %v6046_v49 = vsel %vm6038_vm11, %v6029_v13, %v6045_v10  ;;  %v6049_v20 = vsel %vm6039_vm1, %v6035_v21, 1326507024  ;;  %vm6119_vm0 = vcmp.gt.s32.totalorder %v6118_v23, 0  ;;  %7377 = vmatpush3.msra.mxu0 %v6527_v32  ;;  %v6524_v21 = vld [vmem:[%s13383_s7] sm:$0xff] }
 0x825   :  { %v12693_v42 = vsub.s32 %v5960_v47, %v5963_v8  ;;  %v6043_v3 = vsel %vm6037_vm6, %v6040_v25, %v6042_v59  ;;  %v6047_v17 = vsel %vm6037_vm6, %v6044_v46, %v6046_v49  ;;  %v6050_v57 = vsel %vm6038_vm11, %v6032_v50, %v6049_v20  ;;  %7378 = vmatprep.subr.mxu0 %v6542_v62  ;;  %v6525_v47 = vld [vmem:[%s13383_s7 + $0x8] sm:$0xff] }
 0x826   :  { %v6051_v41 = vsel %vm6037_vm6, %v6048_v9, %v6050_v57  ;;  %v12701_v29 = vmul.u32.u64.low %v12592_v55, %v6047_v17  ;;  %v12702_v13 = vmul.u32.u64.high %v12592_v55, %v6047_v17, %v12701_v29  ;;  %v6120_v26 = vsel %vm6119_vm0, %v6118_v23, 0  ;;  %7379 = vmatpush3.msra.mxu0 %v6526_v11 }
 0x827   :  { %v5966_v7 = vsub.s32 0, %v12693_v42  ;;  %v12710_v63 = vmul.u32.u64.low %v12592_v55, %v6051_v41  ;;  %v12711_v2 = vmul.u32.u64.high %v12592_v55, %v6051_v41, %v12710_v63  ;;  %v12713_v38 = vshrl.u32 %v6120_v26, 5  ;;  %7380 = vmatprep.subr.mxu0 %v6541_v1 }
 0x828   :  { %v12722_v23 = vsel %vm12643_vm8, %v12374_v44, %v12605_v39  ;;  %v12724_v45 = vmul.f32 %v5878_v37, %v5876_v54  ;;  %v5956_v50 = vadd.s32 %v12569_v33, %v12584_v43  ;;  %v6122_v34 = vand.u32 31, %v6120_v26  ;;  %7381 = vmatpush3.msra.mxu0 %v6525_v47 }
 0x829   :  { %v7268_v0 = vmin.u32 %v5966_v7, %v12693_v42  ;;  %v6059_v25 = vmul.u32 %v12592_v55, %v6043_v3  ;;  %v12735_v16 = vshll.u32 %v6116_v5, 8  ;;  %v6215_v39 = vand.u32 2139095040, %v12482_v22  ;;  %7382 = vmatprep.subr.mxu0 %v6540_v61 }
 0x82a   :  { %v6062_v54 = vadd.s32 1, %v12702_v13  ;;  %v6123_v33 = vsub.s32 32, %v6122_v34  ;;  %vm6140_vm14 = vcmp.lt.s32.totalorder %v12713_v38, 1  ;;  %v12742_v43 = vand.u32 8388607, %v6212_v53  ;;  %7383 = vmatpush3.msra.mxu0 %v6524_v21 }
 0x82b   :  { %v5968_v37 = vclz %v7268_v0  ;;  %vm6061_vm9 = vc.u32 %v12711_v2, %v12701_v29  ;;  %v6125_v28 = vshll.u32 %v13534_v18, %v6122_v34  ;;  %vm6142_vm13 = vcmp.lt.s32.totalorder %v12713_v38, 3 }
 0x82c   :  { %v6063_v55 = vsel %vm6061_vm9, %v6062_v54, %v12702_v13  ;;  %v6126_v5 = vshrl.u32 %v13536_v14, %v6123_v33  ;;  %v6128_v46 = vshll.u32 %v13536_v14, %v6122_v34  ;;  %v6129_v32 = vshrl.u32 %v13537_v15, %v6123_v33 }
 0x82d   :  { %vm6141_vm2 = vcmp.lt.s32.totalorder %v12713_v38, 2  ;;  %v7269_v8 = vadd.s32 4294967294, %v5968_v37  ;;  %v6064_v59 = vadd.s32 %v6063_v55, %v6059_v25  ;;  %v6131_v10 = vshll.u32 %v13537_v15, %v6122_v34 }
 0x82e   :  { %v6132_v9 = vshrl.u32 %v13538_v52, %v6123_v33  ;;  %v6127_v62 = vor.u32 %v6126_v5, %v6125_v28  ;;  %v6130_v49 = vor.u32 %v6129_v32, %v6128_v46  ;;  %v6134_v20 = vshll.u32 %v13538_v52, %v6122_v34 }
 0x82f   :  { %v6135_v11 = vshrl.u32 %v13539_v60, %v6123_v33  ;;  %vm7270_vm4 = vcmp.lt.s32.totalorder %v7269_v8, 0  ;;  %v6065_v3 = vadd.s32 536870912, %v6064_v59  ;;  %v6138_v57 = vshrl.u32 %v13582_v30, %v6123_v33 }
 0x830   :  { %v6133_v17 = vor.u32 %v6132_v9, %v6131_v10  ;;  %v5971_v1 = vsel %vm7270_vm4, 0, %v7269_v8  ;;  %v6124_v41 = vshrl.u32 %v13534_v18, %v6123_v33  ;;  %v6137_v26 = vshll.u32 %v13539_v60, %v6122_v34 }
 0x831   :  { %v6136_v13 = vor.u32 %v6135_v11, %v6134_v20  ;;  %v5972_v47 = vsub.s32 32, %v5971_v1  ;;  %v5976_v7 = vsub.s32 4294967266, %v5971_v1  ;;  %v12760_v63 = vshrl.u32 %v6065_v3, 30  ;;  %v5687_v11 = vpop.f32.mrf.mxu1 }
 0x832   :  { %vm6143_vm10 = vcmp.lt.s32.totalorder %v12713_v38, 4  ;;  %vm5798_vm15 = vcmp.lt.s32.totalorder %v12379_v56, 0  ;;  %v6139_v61 = vor.u32 %v6138_v57, %v6137_v26  ;;  %v6148_v0 = vsel %vm6140_vm14, %v6127_v62, %v6130_v49 }
 0x833   :  { %v6145_v21 = vsel %vm6143_vm10, %v6133_v17, 2102212464  ;;  %v6149_v25 = vsel %vm6143_vm10, %v6136_v13, 920167782  ;;  %v5974_v54 = vshrl.u32 %v5956_v50, %v5972_v47  ;;  %v5977_v37 = vadd.s32 127, %v5976_v7 }
 0x834   :  { %v6067_v33 = vshll.u32 %v12760_v63, 30  ;;  %v6144_v34 = vsel %vm6140_vm14, %v6124_v41, %v6127_v62  ;;  %v5973_v28 = vshll.u32 %v12693_v42, %v5971_v1  ;;  %v6150_v55 = vsel %vm6142_vm13, %v6133_v17, %v6149_v25 }
 0x835   :  { %v6152_v5 = vsel %vm6140_vm14, %v6130_v49, %v6133_v17  ;;  %v6153_v46 = vsel %vm6143_vm10, %v6139_v61, 1326507024  ;;  %v5978_v32 = vshll.u32 %v5977_v37, 23  ;;  %v6146_v50 = vsel %vm6142_vm13, %v6130_v49, %v6145_v21  ;;  %v5689_v37 = vpop.f32.mrf.mxu1 }
 0x836   :  { %v12774_v8 = vsub.s32 %v6064_v59, %v6067_v33  ;;  %v6151_v10 = vsel %vm6141_vm2, %v6148_v0, %v6150_v55  ;;  %v5975_v9 = vor.u32 %v5974_v54, %v5973_v28  ;;  %v6154_v42 = vsel %vm6142_vm13, %v6136_v13, %v6153_v46 }
 0x837   :  { %v12783_v62 = vmul.u32.u64.low %v12735_v16, %v6151_v10  ;;  %v12784_v20 = vmul.u32.u64.high %v12735_v16, %v6151_v10, %v12783_v62  ;;  %v5880_v3 = vxor.u32 2147483648, %v12724_v45  ;;  %v5979_v59 = vor.u32 4788187, %v5978_v32 }
 0x838   :  { %v6070_v17 = vsub.s32 0, %v12774_v8  ;;  %v6155_v49 = vsel %vm6141_vm2, %v6152_v5, %v6154_v42  ;;  %7807 = vcosq.f32 %v12722_v23  ;;  %v6216_v41 = vshrl.u32 %v6215_v39, 23 }
 0x839   :  { %v12793_v57 = vmul.u32.u64.low %v12735_v16, %v6155_v49  ;;  %v12794_v1 = vmul.u32.u64.high %v12735_v16, %v6155_v49, %v12793_v57  ;;  %v5980_v13 = vand.u32 2147483647, %v5979_v59  ;;  %v6147_v47 = vsel %vm6141_vm2, %v6144_v34, %v6146_v50 }
 0x83a   :  { %v7272_v26 = vmin.u32 %v6070_v17, %v12774_v8  ;;  %v12802_v7 = vadd.f32 %v5687_v11, %v12368_v31  ;;  %v5982_v61 = vcvt.s32.f32 %v5975_v9  ;;  %v6166_v21 = vadd.s32 1, %v12784_v20 }
 0x83b   :  { %v7279_v0 = vadd.s32 4294967169, %v6216_v41  ;;  %v6220_v25 = vor.u32 8388608, %v12742_v43  ;;  %7809 = vsinq.f32 %v12722_v23  ;;  %v12810_v39 = vsel %vm5798_vm15, %v5880_v3, %v12724_v45 }
 0x83c   :  { %v6072_v54 = vclz %v7272_v26  ;;  %v5778_v38 = vsub.s32 4, %v12446_v6  ;;  %v12813_v33 = vmul.f32 %v5982_v61, %v5980_v13  ;;  %v6163_v31 = vmul.u32 %v12735_v16, %v6147_v47 }
 0x83d   :  { %vm6165_vm5 = vc.u32 %v12794_v1, %v12783_v62  ;;  %v6222_v34 = vadd.s32 1, %v7279_v0  ;;  %v6060_v23 = vadd.s32 %v12701_v29, %v12711_v2  ;;  %v6319_v45 = vand.u32 2139095040, %v12802_v7 }
 0x83e   :  { %v7273_v43 = vadd.s32 4294967294, %v6072_v54  ;;  %v6167_v28 = vsel %vm6165_vm5, %v6166_v21, %v12784_v20  ;;  %v12822_v5 = vshll.u32 %v6220_v25, 8  ;;  %v12825_v46 = vadd.f32 %v5689_v37, %v12371_v51 }
 0x83f   :  { %v6168_v55 = vadd.s32 %v6167_v28, %v6163_v31  ;;  %vm6223_vm3 = vcmp.gt.s32.totalorder %v6222_v34, 0  ;;  %v13498_v32 = vand.u32 2147483647, %v12802_v7  ;;  %v5882_v50 = vsub.s32 4, %v12487_v12 }
 0x840   :  { %vm7274_vm1 = vcmp.lt.s32.totalorder %v7273_v43, 0  ;;  %v6224_v16 = vsel %vm6223_vm3, %v6222_v34, 0  ;;  %v5984_v29 = vxor.u32 2147483648, %v12813_v33  ;;  %v6320_v3 = vshrl.u32 %v6319_v45, 23 }
 0x841   :  { %v6075_v2 = vsel %vm7274_vm1, 0, %v7273_v43  ;;  %v6169_v10 = vadd.s32 536870912, %v6168_v55  ;;  %v6226_v9 = vand.u32 31, %v6224_v16  ;;  %v12830_v11 = vshrl.u32 %v6224_v16, 5 }
 0x842   :  { %v6076_v42 = vsub.s32 32, %v6075_v2  ;;  %v6080_v20 = vsub.s32 4294967266, %v6075_v2  ;;  %v6077_v59 = vshll.u32 %v12774_v8, %v6075_v2  ;;  %v12850_v28 = vand.u32 8388607, %v13498_v32 }
 0x843   :  { %v12833_v51 = vshrl.u32 %v6169_v10, 30  ;;  %v6227_v17 = vsub.s32 32, %v6226_v9  ;;  %v6229_v49 = vshll.u32 %v13534_v18, %v6226_v9  ;;  %v6232_v13 = vshll.u32 %v13536_v14, %v6226_v9 }
 0x844   :  { %v6078_v57 = vshrl.u32 %v6060_v23, %v6076_v42  ;;  %v6081_v41 = vadd.s32 127, %v6080_v20  ;;  %v6235_v26 = vshll.u32 %v13537_v15, %v6226_v9  ;;  %v6238_v0 = vshll.u32 %v13538_v52, %v6226_v9 }
 0x845   :  { %v6171_v47 = vshll.u32 %v12833_v51, 30  ;;  %v6230_v61 = vshrl.u32 %v13536_v14, %v6227_v17  ;;  %v6233_v21 = vshrl.u32 %v13537_v15, %v6227_v17  ;;  %v12842_v8 = vpop.eup %7807  ;;  %v6236_v37 = vshrl.u32 %v13538_v52, %v6227_v17 }
 0x846   :  { %v6079_v25 = vor.u32 %v6078_v57, %v6077_v59  ;;  %v6082_v54 = vshll.u32 %v6081_v41, 23  ;;  %v6239_v31 = vshrl.u32 %v13539_v60, %v6227_v17  ;;  %v7283_v10 = vadd.s32 4294967169, %v6320_v3 }
 0x847   :  { %v12846_v34 = vsub.s32 %v6168_v55, %v6171_v47  ;;  %v6231_v23 = vor.u32 %v6230_v61, %v6229_v49  ;;  %v6234_v43 = vor.u32 %v6233_v21, %v6232_v13  ;;  %v6237_v16 = vor.u32 %v6236_v37, %v6235_v26 }
 0x848   :  { %v6083_v45 = vor.u32 4788187, %v6082_v54  ;;  %v6240_v2 = vor.u32 %v6239_v31, %v6238_v0  ;;  %v12852_v42 = vpop.eup %7809  ;;  %vm5902_vm11 = vcmp.lt.s32.totalorder %v12438_v40, 0  ;;  %v6228_v59 = vshrl.u32 %v13534_v18, %v6227_v17 }
 0x849   :  { %v6174_v20 = vsub.s32 0, %v12846_v34  ;;  %v6241_v55 = vshll.u32 %v13539_v60, %v6226_v9  ;;  %v6242_v49 = vshrl.u32 %v13582_v30, %v6227_v17  ;;  %v6086_v41 = vcvt.s32.f32 %v6079_v25 }
 0x84a   :  { %v6084_v57 = vand.u32 2147483647, %v6083_v45  ;;  %vm6244_vm6 = vcmp.lt.s32.totalorder %v12830_v11, 1  ;;  %vm6247_vm0 = vcmp.lt.s32.totalorder %v12830_v11, 4  ;;  %vm6245_vm14 = vcmp.lt.s32.totalorder %v12830_v11, 2 }
 0x84b   :  { %v7276_v3 = vmin.u32 %v6174_v20, %v12846_v34  ;;  %v6243_v13 = vor.u32 %v6242_v49, %v6241_v55  ;;  %v6249_v26 = vsel %vm6247_vm0, %v6237_v16, 2102212464  ;;  %v6252_v47 = vsel %vm6244_vm6, %v6231_v23, %v6234_v43 }
 0x84c   :  { %vm6246_vm9 = vcmp.lt.s32.totalorder %v12830_v11, 3  ;;  %v6253_v61 = vsel %vm6247_vm0, %v6240_v2, 920167782  ;;  %v6256_v21 = vsel %vm6244_vm6, %v6234_v43, %v6237_v16  ;;  %vm6006_vm13 = vcmp.lt.s32.totalorder %v12456_v35, 0 }
 0x84d   :  { %v6176_v9 = vclz %v7276_v3  ;;  %v6248_v17 = vsel %vm6244_vm6, %v6228_v59, %v6231_v23  ;;  %v6254_v0 = vsel %vm6246_vm9, %v6237_v16, %v6253_v61  ;;  %v6257_v25 = vsel %vm6247_vm0, %v6243_v13, 1326507024 }
 0x84e   :  { %v6087_v54 = vmul.f32 %v6086_v41, %v6084_v57  ;;  %v6250_v37 = vsel %vm6246_vm9, %v6234_v43, %v6249_v26  ;;  %v6255_v31 = vsel %vm6245_vm14, %v6252_v47, %v6254_v0  ;;  %v6258_v45 = vsel %vm6246_vm9, %v6240_v2, %v6257_v25 }
 0x84f   :  { %v7277_v20 = vadd.s32 4294967294, %v6176_v9  ;;  %v6259_v55 = vsel %vm6245_vm14, %v6256_v21, %v6258_v45  ;;  %v12870_v49 = vmul.u32.u64.low %v12822_v5, %v6255_v31  ;;  %v12871_v32 = vmul.u32.u64.high %v12822_v5, %v6255_v31, %v12870_v49 }
 0x850   :  { %v6164_v23 = vadd.s32 %v12783_v62, %v12794_v1  ;;  %v12877_v16 = vmul.u32.u64.low %v12822_v5, %v6259_v55  ;;  %v12878_v59 = vmul.u32.u64.high %v12822_v5, %v6259_v55, %v12877_v16  ;;  %v6326_v43 = vadd.s32 1, %v7283_v10 }
 0x851   :  { %vm7278_vm2 = vcmp.lt.s32.totalorder %v7277_v20, 0  ;;  %v6251_v2 = vsel %vm6245_vm14, %v6248_v17, %v6250_v37  ;;  %v13499_v57 = vand.u32 2147483647, %v12825_v46  ;;  %v6423_v41 = vand.u32 2139095040, %v12825_v46 }
 0x852   :  { %v12889_v3 = vsel %vm5902_vm11, %v5984_v29, %v12813_v33  ;;  %v6088_v62 = vxor.u32 2147483648, %v6087_v54  ;;  %v6179_v1 = vsel %vm7278_vm2, 0, %v7277_v20  ;;  %vm6327_vm4 = vcmp.gt.s32.totalorder %v6326_v43, 0 }
 0x853   :  { %v6180_v13 = vsub.s32 32, %v6179_v1  ;;  %v6184_v10 = vsub.s32 4294967266, %v6179_v1  ;;  %v6270_v26 = vadd.s32 1, %v12871_v32  ;;  %v6324_v11 = vor.u32 8388608, %v12850_v28 }
 0x854   :  { %v6267_v47 = vmul.u32 %v12822_v5, %v6251_v2  ;;  %vm6269_vm10 = vc.u32 %v12878_v59, %v12870_v49  ;;  %v6328_v61 = vsel %vm6327_vm4, %v6326_v43, 0  ;;  %v6424_v21 = vshrl.u32 %v6423_v41, 23 }
 0x855   :  { %v6182_v9 = vshrl.u32 %v6164_v23, %v6180_v13  ;;  %v6185_v17 = vadd.s32 127, %v6184_v10  ;;  %v6271_v33 = vsel %vm6269_vm10, %v6270_v26, %v12871_v32  ;;  %v6329_v29 = vshrl.u32 %v6328_v61, 5 }
 0x856   :  { %v12899_v0 = vsel %vm6006_vm13, %v6088_v62, %v6087_v54  ;;  %v6181_v25 = vshll.u32 %v12846_v34, %v6179_v1  ;;  %v6272_v37 = vadd.s32 %v6271_v33, %v6267_v47  ;;  %v6330_v28 = vand.u32 31, %v6328_v61 }
 0x857   :  { %v12902_v31 = vshll.u32 %v6324_v11, 8  ;;  %v7287_v5 = vadd.s32 4294967169, %v6424_v21  ;;  %v12906_v45 = vand.u32 8388607, %v13499_v57  ;;  %v12913_v32 = vsel %vm5798_vm15, %v5882_v50, %v12487_v12 }
 0x858   :  { %v6183_v54 = vor.u32 %v6182_v9, %v6181_v25  ;;  %v6186_v20 = vshll.u32 %v6185_v17, 23  ;;  %v6273_v55 = vadd.s32 536870912, %v6272_v37  ;;  %v6331_v34 = vsub.s32 32, %v6330_v28 }
 0x859   :  { %v6333_v23 = vshll.u32 %v13534_v18, %v6330_v28  ;;  %v6336_v16 = vshll.u32 %v13536_v14, %v6330_v28  ;;  %vm6348_vm5 = vcmp.lt.s32.totalorder %v6329_v29, 1  ;;  %vm6349_vm3 = vcmp.lt.s32.totalorder %v6329_v29, 2 }
 0x85a   :  { %v12917_v43 = vshrl.u32 %v6273_v55, 30  ;;  %v6334_v2 = vshrl.u32 %v13536_v14, %v6331_v34  ;;  %v6337_v41 = vshrl.u32 %v13537_v15, %v6331_v34  ;;  %v6339_v62 = vshll.u32 %v13537_v15, %v6330_v28 }
 0x85b   :  { %v6340_v12 = vshrl.u32 %v13538_v52, %v6331_v34  ;;  %v6342_v50 = vshll.u32 %v13538_v52, %v6330_v28  ;;  %v6343_v1 = vshrl.u32 %v13539_v60, %v6331_v34  ;;  %v6345_v13 = vshll.u32 %v13539_v60, %v6330_v28 }
 0x85c   :  { %vm12928_vm15 = vcmp.le.f32.partialorder %v5796_v27, 0.7853982  ;;  %v6275_v26 = vshll.u32 %v12917_v43, 30  ;;  %v6335_v11 = vor.u32 %v6334_v2, %v6333_v23  ;;  %v6338_v47 = vor.u32 %v6337_v41, %v6336_v16 }
 0x85d   :  { %v6346_v61 = vshrl.u32 %v13582_v30, %v6331_v34  ;;  %v6187_v21 = vor.u32 4788187, %v6186_v20  ;;  %v6332_v9 = vshrl.u32 %v13534_v18, %v6331_v34  ;;  %v6341_v17 = vor.u32 %v6340_v12, %v6339_v62 }
 0x85e   :  { %v6344_v33 = vor.u32 %v6343_v1, %v6342_v50  ;;  %v12935_v25 = vsub.s32 %v6272_v37, %v6275_v26  ;;  %vm6350_vm1 = vcmp.lt.s32.totalorder %v6329_v29, 3  ;;  %vm6351_vm6 = vcmp.lt.s32.totalorder %v6329_v29, 4 }
 0x85f   :  { %v6347_v28 = vor.u32 %v6346_v61, %v6345_v13  ;;  %v6352_v27 = vsel %vm6348_vm5, %v6332_v9, %v6335_v11  ;;  %v6353_v55 = vsel %vm6351_vm6, %v6341_v17, 2102212464  ;;  %v6356_v57 = vsel %vm6348_vm5, %v6335_v11, %v6338_v47 }
 0x860   :  { %v6357_v24 = vsel %vm6351_vm6, %v6344_v33, 920167782  ;;  %v6278_v23 = vsub.s32 0, %v12935_v25  ;;  %v6354_v16 = vsel %vm6350_vm1, %v6338_v47, %v6353_v55  ;;  %v6360_v20 = vsel %vm6348_vm5, %v6338_v47, %v6341_v17 }
 0x861   :  { %v6358_v2 = vsel %vm6350_vm1, %v6341_v17, %v6357_v24  ;;  %v6188_v34 = vand.u32 2147483647, %v6187_v21  ;;  %v6361_v37 = vsel %vm6351_vm6, %v6347_v28, 1326507024  ;;  %v6428_v62 = vor.u32 8388608, %v12906_v45 }
 0x862   :  { %v6359_v41 = vsel %vm6349_vm3, %v6356_v57, %v6358_v2  ;;  %v7280_v12 = vmin.u32 %v6278_v23, %v12935_v25  ;;  %v6362_v50 = vsel %vm6350_vm1, %v6344_v33, %v6361_v37  ;;  %v6190_v26 = vcvt.s32.f32 %v6183_v54 }
 0x863   :  { %v12945_v1 = vmul.u32.u64.low %v12902_v31, %v6359_v41  ;;  %v12946_v13 = vmul.u32.u64.high %v12902_v31, %v6359_v41, %v12945_v1  ;;  %v6355_v11 = vsel %vm6349_vm3, %v6352_v27, %v6354_v16  ;;  %v6363_v24 = vsel %vm6349_vm3, %v6360_v20, %v6362_v50 }
 0x864   :  { %v6430_v47 = vadd.s32 1, %v7287_v5  ;;  %v6280_v61 = vclz %v7280_v12  ;;  %v12952_v57 = vmul.u32.u64.low %v12902_v31, %v6363_v24  ;;  %v12953_v21 = vmul.u32.u64.high %v12902_v31, %v6363_v24, %v12952_v57 }
 0x865   :  { %v5884_v45 = vsel %vm12928_vm15, %v12379_v56, %v12810_v39  ;;  %v12959_v9 = vmul.f32 %v6190_v26, %v6188_v34  ;;  %v6268_v54 = vadd.s32 %v12870_v49, %v12878_v59  ;;  %v5779_v29 = vsel %vm5694_vm12, %v5778_v38, %v12446_v6 }
 0x866   :  { %vm6431_vm0 = vcmp.gt.s32.totalorder %v6430_v47, 0  ;;  %v7281_v5 = vadd.s32 4294967294, %v6280_v61  ;;  %v6374_v17 = vadd.s32 1, %v12946_v13  ;;  %7811 = vsinq.f32 %v5884_v45 }
 0x867   :  { %v6432_v33 = vsel %vm6431_vm0, %v6430_v47, 0  ;;  %v6371_v28 = vmul.u32 %v12902_v31, %v6355_v11  ;;  %v12970_v27 = vshll.u32 %v6428_v62, 8  ;;  %v5885_v49 = vsel %vm12928_vm15, 0, %v12913_v32 }
 0x868   :  { %v6434_v39 = vand.u32 31, %v6432_v33  ;;  %vm7282_vm14 = vcmp.lt.s32.totalorder %v7281_v5, 0  ;;  %vm6373_vm9 = vc.u32 %v12953_v21, %v12945_v1  ;;  %7813 = vcosq.f32 %v5884_v45 }
 0x869   :  { %v5781_v6 = vsel %vm12643_vm8, 0, %v5779_v29  ;;  %v6283_v38 = vsel %vm7282_vm14, 0, %v7281_v5  ;;  %v6375_v59 = vsel %vm6373_vm9, %v6374_v17, %v12946_v13  ;;  %v6433_v55 = vshrl.u32 %v6432_v33, 5 }
 0x86a   :  { %v6435_v31 = vsub.s32 32, %v6434_v39  ;;  %v6284_v23 = vsub.s32 32, %v6283_v38  ;;  %v6288_v16 = vsub.s32 4294967266, %v6283_v38  ;;  %v6376_v2 = vadd.s32 %v6375_v59, %v6371_v28 }
 0x86b   :  { %v5889_v20 = vadd.s32 3, %v5885_v49  ;;  %v6437_v10 = vshll.u32 %v13534_v18, %v6434_v39  ;;  %v5785_v41 = vadd.s32 3, %v5781_v6  ;;  %v6285_v37 = vshll.u32 %v12935_v25, %v6283_v38 }
 0x86c   :  { %v6438_v32 = vshrl.u32 %v13536_v14, %v6435_v31  ;;  %v6441_v34 = vshrl.u32 %v13537_v15, %v6435_v31  ;;  %v6289_v48 = vadd.s32 127, %v6288_v16  ;;  %v6377_v62 = vadd.s32 536870912, %v6376_v2 }
 0x86d   :  { %v6440_v12 = vshll.u32 %v13536_v14, %v6434_v39  ;;  %v6286_v50 = vshrl.u32 %v6268_v54, %v6284_v23  ;;  %v6443_v26 = vshll.u32 %v13537_v15, %v6434_v39  ;;  %v6444_v11 = vshrl.u32 %v13538_v52, %v6435_v31 }
 0x86e   :  { %v6439_v13 = vor.u32 %v6438_v32, %v6437_v10  ;;  %v6290_v24 = vshll.u32 %v6289_v48, 23  ;;  %v12987_v47 = vshrl.u32 %v6377_v62, 30  ;;  %v6446_v61 = vshll.u32 %v13538_v52, %v6434_v39 }
 0x86f   :  { %v6447_v57 = vshrl.u32 %v13539_v60, %v6435_v31  ;;  %v6442_v45 = vor.u32 %v6441_v34, %v6440_v12  ;;  %v6445_v29 = vor.u32 %v6444_v11, %v6443_v26  ;;  %v6449_v25 = vshll.u32 %v13539_v60, %v6434_v39 }
 0x870   :  { %v6450_v5 = vshrl.u32 %v13582_v30, %v6435_v31  ;;  %v6291_v17 = vor.u32 4788187, %v6290_v24  ;;  %v6379_v54 = vshll.u32 %v12987_v47, 30  ;;  %v6436_v33 = vshrl.u32 %v13534_v18, %v6435_v31 }
 0x871   :  { %v6448_v28 = vor.u32 %v6447_v57, %v6446_v61  ;;  %v6287_v49 = vor.u32 %v6286_v50, %v6285_v37  ;;  %vm6452_vm12 = vcmp.lt.s32.totalorder %v6433_v55, 1  ;;  %vm6455_vm8 = vcmp.lt.s32.totalorder %v6433_v55, 4 }
 0x872   :  { %v6451_v6 = vor.u32 %v6450_v5, %v6449_v25  ;;  %v6292_v38 = vand.u32 2147483647, %v6291_v17  ;;  %v12995_v59 = vsub.s32 %v6376_v2, %v6379_v54  ;;  %vm6454_vm2 = vcmp.lt.s32.totalorder %v6433_v55, 3 }
 0x873   :  { %v6457_v23 = vsel %vm6455_vm8, %v6445_v29, 2102212464  ;;  %v7812_v16 = vpop.eup %7811  ;;  %v6456_v39 = vsel %vm6452_vm12, %v6436_v33, %v6439_v13  ;;  %v6460_v32 = vsel %vm6452_vm12, %v6439_v13, %v6442_v45  ;;  %v6461_v34 = vsel %vm6455_vm8, %v6448_v28, 920167782 }
 0x874   :  { %v6458_v10 = vsel %vm6454_vm2, %v6442_v45, %v6457_v23  ;;  %v6382_v31 = vsub.s32 0, %v12995_v59  ;;  %vm6453_vm4 = vcmp.lt.s32.totalorder %v6433_v55, 2  ;;  %v6462_v37 = vsel %vm6454_vm2, %v6445_v29, %v6461_v34 }
 0x875   :  { %v6464_v48 = vsel %vm6452_vm12, %v6442_v45, %v6445_v29  ;;  %vm5888_vm10 = vweird.f32 %v12379_v56  ;;  %v7814_v2 = vpop.eup %7813  ;;  %v6294_v62 = vcvt.s32.f32 %v6287_v49  ;;  %v6463_v12 = vsel %vm6453_vm4, %v6460_v32, %v6462_v37 }
 0x876   :  { %v6465_v50 = vsel %vm6455_vm8, %v6451_v6, 1326507024  ;;  %v5890_v26 = vand.u32 3, %v5889_v20  ;;  %v7284_v11 = vmin.u32 %v6382_v31, %v12995_v59  ;;  %v6459_v24 = vsel %vm6453_vm4, %v6456_v39, %v6458_v10 }
 0x877   :  { %v6466_v13 = vsel %vm6454_vm2, %v6448_v28, %v6465_v50  ;;  %v5893_v61 = vxor.u32 2147483648, %v7812_v16  ;;  %v6295_v57 = vmul.f32 %v6294_v62, %v6292_v38  ;;  %v6372_v45 = vadd.s32 %v12945_v1, %v12953_v21 }
 0x878   :  { %v6467_v25 = vsel %vm6453_vm4, %v6464_v48, %v6466_v13  ;;  %v13007_v5 = vmul.u32.u64.low %v12970_v27, %v6463_v12  ;;  %v13008_v17 = vmul.u32.u64.high %v12970_v27, %v6463_v12, %v13007_v5  ;;  %v6384_v29 = vclz %v7284_v11 }
 0x879   :  { %v13014_v54 = vmul.u32.u64.low %v12970_v27, %v6467_v25  ;;  %v13015_v20 = vmul.u32.u64.high %v12970_v27, %v6467_v25, %v13014_v54  ;;  %v6475_v33 = vmul.u32 %v12970_v27, %v6459_v24  ;;  %vm5892_vm5 = vcmp.eq.s32.totalorder %v5890_v26, 0 }
 0x87a   :  { %v5896_v55 = vxor.u32 2147483648, %v7814_v2  ;;  %vm5784_vm3 = vweird.f32 %v12374_v44  ;;  %v5786_v28 = vand.u32 3, %v5785_v41  ;;  %v7285_v49 = vadd.s32 4294967294, %v6384_v29 }
 0x87b   :  { %v5894_v6 = vsel %vm5892_vm5, %v7814_v2, %v5893_v61  ;;  %vm5895_vm15 = vcmp.eq.s32.totalorder %v5890_v26, 2  ;;  %v5789_v38 = vxor.u32 2147483648, %v12852_v42  ;;  %vm6214_vm1 = vcmp.lt.s32.totalorder %v12482_v22, 0 }
 0x87c   :  { %v6296_v1 = vxor.u32 2147483648, %v6295_v57  ;;  %v6478_v21 = vadd.s32 1, %v13008_v17  ;;  %vm5891_vm6 = vcmp.lt.s32.totalorder %v5890_v26, 2  ;;  %v5897_v23 = vsel %vm5895_vm15, %v5896_v55, %v7812_v16 }
 0x87d   :  { %vm7286_vm0 = vcmp.lt.s32.totalorder %v7285_v49, 0  ;;  %vm6477_vm14 = vc.u32 %v13015_v20, %v13007_v5  ;;  %v5898_v27 = vsel %vm5891_vm6, %v5894_v6, %v5897_v23  ;;  %v5792_v39 = vxor.u32 2147483648, %v12842_v8 }
 0x87e   :  { %v6387_v41 = vsel %vm7286_vm0, 0, %v7285_v49  ;;  %v6479_v10 = vsel %vm6477_vm14, %v6478_v21, %v13008_v17  ;;  %v5899_v32 = vsel %vm5888_vm10, nan, %v5898_v27  ;;  %vm5788_vm9 = vcmp.eq.s32.totalorder %v5786_v28, 0 }
 0x87f   :  { %v6388_v34 = vsub.s32 32, %v6387_v41  ;;  %v6392_v31 = vsub.s32 4294967266, %v6387_v41  ;;  %v6480_v37 = vadd.s32 %v6479_v10, %v6475_v33  ;;  %6627 = vmatprep.mubr.f32.mxu0 %v5899_v32  ;;  %v5790_v16 = vsel %vm5788_vm9, %v12842_v8, %v5789_v38 }
 0x880   :  { %v6389_v48 = vshll.u32 %v12995_v59, %v6387_v41  ;;  %vm5787_vm12 = vcmp.lt.s32.totalorder %v5786_v28, 2  ;;  %vm5791_vm8 = vcmp.eq.s32.totalorder %v5786_v28, 2  ;;  %v6090_v2 = vsub.s32 4, %v12760_v63 }
 0x881   :  { %v6393_v62 = vadd.s32 127, %v6392_v31  ;;  %v6481_v12 = vadd.s32 536870912, %v6480_v37  ;;  %v5793_v50 = vsel %vm5791_vm8, %v5792_v39, %v12852_v42  ;;  %vm13034_vm2 = vcmp.le.f32.partialorder %v6004_v19, 0.7853982 }
 0x882   :  { %v6390_v26 = vshrl.u32 %v6372_v45, %v6388_v34  ;;  %v5794_v11 = vsel %vm5787_vm12, %v5790_v16, %v5793_v50  ;;  %v6091_v8 = vsel %vm6006_vm13, %v6090_v2, %v12760_v63  ;;  %v6092_v59 = vsel %vm13034_vm2, %v12456_v35, %v12899_v0 }
 0x883   :  { %v6394_v24 = vshll.u32 %v6393_v62, 23  ;;  %v13045_v13 = vshrl.u32 %v6481_v12, 30  ;;  %v5795_v19 = vsel %vm5784_vm3, nan, %v5794_v11  ;;  %vm13051_vm4 = vcmp.le.f32.partialorder %v5900_v4, 0.7853982 }
 0x884   :  { %6628 = vmatmul.mubr.f32.vlgmr.msra.gmra.mxu0 %v5795_v19  ;;  %v6093_v63 = vsel %vm13034_vm2, 0, %v6091_v8  ;;  %7815 = vcosq.f32 %v6092_v59  ;;  %v5986_v61 = vsub.s32 4, %v12664_v36  ;;  %v5988_v0 = vsel %vm13051_vm4, %v12438_v40, %v12889_v3 }
 0x885   :  { %v6297_v44 = vsel %vm6214_vm1, %v6296_v1, %v6295_v57  ;;  %v6395_v25 = vor.u32 4788187, %v6394_v24  ;;  %v6483_v4 = vshll.u32 %v13045_v13, 30  ;;  %7817 = vsinq.f32 %v6092_v59 }
 0x886   :  { %v6391_v17 = vor.u32 %v6390_v26, %v6389_v48  ;;  %v6097_v45 = vadd.s32 3, %v6093_v63  ;;  %v5987_v29 = vsel %vm5902_vm11, %v5986_v61, %v12664_v36  ;;  %7819 = vcosq.f32 %v5988_v0 }
 0x887   :  { %v13068_v54 = vsub.s32 %v6480_v37, %v6483_v4  ;;  %v5989_v33 = vsel %vm13051_vm4, 0, %v5987_v29  ;;  %7821 = vsinq.f32 %v5988_v0  ;;  %v6192_v3 = vxor.u32 2147483648, %v12959_v9 }
 0x888   :  { %v6396_v57 = vand.u32 2147483647, %v6395_v25  ;;  %vm13075_vm13 = vcmp.le.f32.partialorder %v6212_v53, 0.7853982  ;;  %v6298_v28 = vsub.s32 4, %v12917_v43  ;;  %v5993_v49 = vadd.s32 3, %v5989_v33 }
 0x889   :  { %v6486_v36 = vsub.s32 0, %v13068_v54  ;;  %v6300_v6 = vsel %vm13075_vm13, %v12482_v22, %v6297_v44  ;;  %v6398_v38 = vcvt.s32.f32 %v6391_v17  ;;  %v6098_v1 = vand.u32 3, %v6097_v45 }
 0x88a   :  { %vm6110_vm11 = vcmp.lt.s32.totalorder %v12468_v58, 0  ;;  %7823 = vcosq.f32 %v6300_v6  ;;  %vm6318_vm10 = vcmp.lt.s32.totalorder %v12802_v7, 0  ;;  %v6299_v27 = vsel %vm6214_vm1, %v6298_v28, %v12917_v43 }
 0x88b   :  { %v7288_v21 = vmin.u32 %v6486_v36, %v13068_v54  ;;  %v6193_v53 = vsel %vm6110_vm11, %v6192_v3, %v12959_v9  ;;  %v6399_v23 = vmul.f32 %v6398_v38, %v6396_v57  ;;  %v6476_v39 = vadd.s32 %v13007_v5, %v13015_v20 }
 0x88c   :  { %v5994_v10 = vand.u32 3, %v5993_v49  ;;  %7825 = vsinq.f32 %v6300_v6  ;;  %vm6096_vm5 = vweird.f32 %v12456_v35  ;;  %vm6099_vm3 = vcmp.lt.s32.totalorder %v6098_v1, 2 }
 0x88d   :  { %v6488_v41 = vclz %v7288_v21  ;;  %v13733_v32 = vand.u32 2147483647, %v12468_v58  ;;  %v6194_v34 = vsub.s32 4, %v12833_v51  ;;  %vm6100_vm6 = vcmp.eq.s32.totalorder %v6098_v1, 0 }
 0x88e   :  { %v6301_v43 = vsel %vm13075_vm13, 0, %v6299_v27  ;;  %v6400_v20 = vxor.u32 2147483648, %v6399_v23  ;;  %vm6103_vm1 = vcmp.eq.s32.totalorder %v6098_v1, 2  ;;  %vm5995_vm14 = vcmp.lt.s32.totalorder %v5994_v10, 2 }
 0x88f   :  { %vm13098_vm15 = vcmp.le.f32.partialorder %v13733_v32, 0.7853982  ;;  %v7289_v31 = vadd.s32 4294967294, %v6488_v41  ;;  %v6195_v37 = vsel %vm6110_vm11, %v6194_v34, %v12833_v51  ;;  %vm5996_vm9 = vcmp.eq.s32.totalorder %v5994_v10, 0 }
 0x890   :  { %v6196_v5 = vsel %vm13098_vm15, %v12468_v58, %v6193_v53  ;;  %vm5999_vm12 = vcmp.eq.s32.totalorder %v5994_v10, 2  ;;  %v6305_v12 = vadd.s32 3, %v6301_v43  ;;  %v6197_v8 = vsel %vm13098_vm15, 0, %v6195_v37 }
 0x891   :  { %7827 = vcosq.f32 %v6196_v5  ;;  %v7816_v16 = vpop.eup %7815  ;;  %vm7290_vm0 = vcmp.lt.s32.totalorder %v7289_v31, 0  ;;  %v6401_v51 = vsel %vm6318_vm10, %v6400_v20, %v6399_v23  ;;  %v6201_v45 = vadd.s32 3, %v6197_v8 }
 0x892   :  { %v7818_v48 = vpop.eup %7817  ;;  %v6491_v2 = vsel %vm7290_vm0, 0, %v7289_v31  ;;  %v6104_v62 = vxor.u32 2147483648, %v7816_v16  ;;  %7829 = vsinq.f32 %v6196_v5  ;;  %v6306_v17 = vand.u32 3, %v6305_v12 }
 0x893   :  { %v7820_v50 = vpop.eup %7819  ;;  %v6492_v56 = vsub.s32 32, %v6491_v2  ;;  %v6496_v26 = vsub.s32 4294967266, %v6491_v2  ;;  %v6101_v11 = vxor.u32 2147483648, %v7818_v48  ;;  %v6493_v24 = vshll.u32 %v13068_v54, %v6491_v2 }
 0x894   :  { %v7822_v59 = vpop.eup %7821  ;;  %v6105_v19 = vsel %vm6103_vm1, %v6104_v62, %v7818_v48  ;;  %v6000_v42 = vxor.u32 2147483648, %v7820_v50  ;;  %vm5992_vm8 = vweird.f32 %v12438_v40  ;;  %v13736_v6 = vand.u32 2147483647, %v12802_v7 }
 0x895   :  { %v6494_v63 = vshrl.u32 %v6476_v39, %v6492_v56  ;;  %v6497_v61 = vadd.s32 127, %v6496_v26  ;;  %v6102_v0 = vsel %vm6100_vm6, %v7816_v16, %v6101_v11  ;;  %v5997_v44 = vxor.u32 2147483648, %v7822_v59 }
 0x896   :  { %v6106_v25 = vsel %vm6099_vm3, %v6102_v0, %v6105_v19  ;;  %v6001_v4 = vsel %vm5999_vm12, %v6000_v42, %v7822_v59  ;;  %vm13127_vm2 = vcmp.le.f32.partialorder %v13736_v6, 0.7853982  ;;  %vm6311_vm4 = vcmp.eq.s32.totalorder %v6306_v17, 2 }
 0x897   :  { %v6495_v29 = vor.u32 %v6494_v63, %v6493_v24  ;;  %v6498_v33 = vshll.u32 %v6497_v61, 23  ;;  %v6107_v3 = vsel %vm6096_vm5, nan, %v6106_v25  ;;  %v5998_v54 = vsel %vm5996_vm9, %v7820_v50, %v5997_v44  ;;  %v7824_v57 = vpop.eup %7823 }
 0x898   :  { %6632 = vmatprep.mubr.f32.mxu0 %v6107_v3  ;;  %v6002_v55 = vsel %vm5995_vm14, %v5998_v54, %v6001_v4  ;;  %v6312_v49 = vxor.u32 2147483648, %v7824_v57  ;;  %v6202_v35 = vand.u32 3, %v6201_v45  ;;  %v6404_v21 = vsel %vm13127_vm2, %v12802_v7, %v6401_v51 }
 0x899   :  { %v6499_v28 = vor.u32 4788187, %v6498_v33  ;;  %v6003_v36 = vsel %vm5992_vm8, nan, %v6002_v55  ;;  %v7826_v1 = vpop.eup %7825  ;;  %v6502_v53 = vcvt.s32.f32 %v6495_v29  ;;  %vm6308_vm13 = vcmp.eq.s32.totalorder %v6306_v17, 0 }
 0x89a   :  { %6633 = vmatmul.mubr.f32.gmra.mxu0 %v6003_v36  ;;  %v6309_v23 = vxor.u32 2147483648, %v7826_v1  ;;  %v6313_v27 = vsel %vm6311_vm4, %v6312_v49, %v7826_v1  ;;  %7831 = vcosq.f32 %v6404_v21  ;;  %vm6307_vm11 = vcmp.lt.s32.totalorder %v6306_v17, 2 }
 0x89b   :  { %v6500_v40 = vand.u32 2147483647, %v6499_v28  ;;  %7833 = vsinq.f32 %v6404_v21  ;;  %vm6304_vm5 = vweird.f32 %v12482_v22  ;;  %v6402_v34 = vsub.s32 4, %v12987_v47  ;;  %v13165_v28 = vld [vmem:[%s13384_s8] ss:$0 sm:$0xff] }
 0x89c   :  { %v6310_v10 = vsel %vm6308_vm13, %v7824_v57, %v6309_v23  ;;  %vm6207_vm3 = vcmp.eq.s32.totalorder %v6202_v35, 2  ;;  %vm6422_vm15 = vcmp.lt.s32.totalorder %v12825_v46, 0  ;;  %v6506_v16 = vsub.s32 4, %v13045_v13 }
 0x89d   :  { %v6503_v41 = vmul.f32 %v6502_v53, %v6500_v40  ;;  %v6314_v32 = vsel %vm6307_vm11, %v6310_v10, %v6313_v27  ;;  %vm6204_vm6 = vcmp.eq.s32.totalorder %v6202_v35, 0  ;;  %v13739_v22 = vand.u32 2147483647, %v12825_v46 }
 0x89e   :  { %v7828_v39 = vpop.eup %7827  ;;  %v6315_v5 = vsel %vm6304_vm5, nan, %v6314_v32  ;;  %vm6203_vm0 = vcmp.lt.s32.totalorder %v6202_v35, 2  ;;  %v6403_v50 = vsel %vm6318_vm10, %v6402_v34, %v12987_v47  ;;  %vm6200_vm14 = vweird.f32 %v12468_v58 }
 0x89f   :  { %v6208_v9 = vxor.u32 2147483648, %v7828_v39  ;;  %v7830_v31 = vpop.eup %7829  ;;  %v6504_v43 = vxor.u32 2147483648, %v6503_v41  ;;  %6637 = vmatprep.mubr.f32.mxu0 %v6315_v5  ;;  %vm13142_vm1 = vcmp.le.f32.partialorder %v13739_v22, 0.7853982  ;;  %v6507_v11 = vsel %vm6422_vm15, %v6506_v16, %v13045_v13 }
 0x8a0   :  { %v6205_v20 = vxor.u32 2147483648, %v7830_v31  ;;  %v6405_v8 = vsel %vm13127_vm2, 0, %v6403_v50  ;;  %v6509_v59 = vsel %vm13142_vm1, 0, %v6507_v11  ;;  %vm6512_vm13 = vweird.f32 %v12825_v46 }
 0x8a1   :  { %v6209_v37 = vsel %vm6207_vm3, %v6208_v9, %v7830_v31  ;;  %v6505_v48 = vsel %vm6422_vm15, %v6504_v43, %v6503_v41  ;;  %v6409_v51 = vadd.s32 3, %v6405_v8  ;;  %v6513_v19 = vadd.s32 3, %v6509_v59 }
 0x8a2   :  { %v6206_v62 = vsel %vm6204_vm6, %v7828_v39, %v6205_v20  ;;  %v6508_v12 = vsel %vm13142_vm1, %v12825_v46, %v6505_v48  ;;  %vm6408_vm11 = vweird.f32 %v12802_v7 }
 0x8a3   :  { %v6210_v56 = vsel %vm6203_vm0, %v6206_v62, %v6209_v37  ;;  %7835 = vcosq.f32 %v6508_v12  ;;  %v6410_v58 = vand.u32 3, %v6409_v51  ;;  %v6514_v61 = vand.u32 3, %v6513_v19 }
 0x8a4   :  { %v6211_v26 = vsel %vm6200_vm14, nan, %v6210_v56  ;;  %7837 = vsinq.f32 %v6508_v12 }
 0x8a5   :  { %6638 = vmatmul.mubr.f32.gmra.mxu0 %v6211_v26  ;;  %vm6412_vm10 = vcmp.eq.s32.totalorder %v6410_v58, 0  ;;  %vm6415_vm9 = vcmp.eq.s32.totalorder %v6410_v58, 2  ;;  %vm6519_vm12 = vcmp.eq.s32.totalorder %v6514_v61, 2  ;;  %vm6516_vm8 = vcmp.eq.s32.totalorder %v6514_v61, 0 }
 0x8a6   :  { %vm6411_vm2 = vcmp.lt.s32.totalorder %v6410_v58, 2  ;;  %vm6515_vm4 = vcmp.lt.s32.totalorder %v6514_v61, 2 }
 0x8a7   :  { %v7832_v24 = vpop.eup %7831 }
 0x8a8   :  { %v7834_v47 = vpop.eup %7833  ;;  %v6416_v63 = vxor.u32 2147483648, %v7832_v24 }
 0x8a9   :  { %v6413_v42 = vxor.u32 2147483648, %v7834_v47 }
 0x8aa   :  { %v6417_v4 = vsel %vm6415_vm9, %v6416_v63, %v7834_v47 }
 0x8ab   :  { %v6414_v25 = vsel %vm6412_vm10, %v7832_v24, %v6413_v42 }
 0x8ac   :  { %v6418_v33 = vsel %vm6411_vm2, %v6414_v25, %v6417_v4 }
 0x8ad   :  { %v6419_v57 = vsel %vm6408_vm11, nan, %v6418_v33 }
 0x8b0   :  { %v7836_v0 = vpop.eup %7835 }
 0x8b1   :  { %v7838_v13 = vpop.eup %7837  ;;  %v6520_v44 = vxor.u32 2147483648, %v7836_v0 }
 0x8b2   :  { %v6517_v17 = vxor.u32 2147483648, %v7838_v13 }
 0x8b3   :  { %v6521_v45 = vsel %vm6519_vm12, %v6520_v44, %v7838_v13 }
 0x8b4   :  { %v6518_v29 = vsel %vm6516_vm8, %v7836_v0, %v6517_v17 }
 0x8b5   :  { %v6522_v3 = vsel %vm6515_vm4, %v6518_v29, %v6521_v45 }
 0x8b6   :  { %v6523_v54 = vsel %vm6512_vm13, nan, %v6522_v3 }
 0x8b7   :  { %6642 = vmatprep.mubr.f32.mxu0 %v6523_v54 }
 0x8b8   :  { %6643 = vmatmul.mubr.f32.gmra.mxu0 %v6419_v57 }
 0x944   :  { %v7384_v55 = vpop.f32.mrf.mxu0 }
 0x946   :  { %v7385_v36 = vpop.f32.mrf.mxu0 }
 0x947   :  { %v7386_v49 = vadd.f32 %v7385_v36, %v7384_v55 }
 0x949   :  { %v13168_v6 = vadd.f32 %v7386_v49, %v13165_v28 }
 0x94b   :  { %v6651_v46 = vand.u32 2139095040, %v13168_v6  ;;  %v6648_v1 = vand.u32 2147483647, %v13168_v6  ;;  %vm6650_vm11 = vcmp.lt.s32.totalorder %v13168_v6, 0 }
 0x94d   :  { %v6652_v38 = vshrl.u32 %v6651_v46, 23  ;;  %v6655_v21 = vand.u32 8388607, %v6648_v1 }
 0x94f   :  { %v7292_v7 = vadd.s32 4294967169, %v6652_v38  ;;  %v6656_v23 = vor.u32 8388608, %v6655_v21 }
 0x951   :  { %v6658_v35 = vadd.s32 1, %v7292_v7  ;;  %v6696_v62 = vshll.u32 %v6656_v23, 8 }
 0x953   :  { %vm6659_vm5 = vcmp.gt.s32.totalorder %v6658_v35, 0 }
 0x954   :  { %v6660_v40 = vsel %vm6659_vm5, %v6658_v35, 0  ;;  %vm13244_vm5 = vcmp.le.f32.partialorder %v6648_v1, 0.7853982 }
 0x955   :  { %v6662_v53 = vand.u32 31, %v6660_v40  ;;  %v6661_v39 = vshrl.u32 %v6660_v40, 5 }
 0x957   :  { %v6663_v27 = vsub.s32 32, %v6662_v53  ;;  %v6665_v41 = vshll.u32 %v13534_v18, %v6662_v53  ;;  %v6668_v10 = vshll.u32 %v13536_v14, %v6662_v53  ;;  %v6671_v34 = vshll.u32 %v13537_v15, %v6662_v53 }
 0x958   :  { %v6674_v43 = vshll.u32 %v13538_v52, %v6662_v53  ;;  %v6677_v20 = vshll.u32 %v13539_v60, %v6662_v53  ;;  %vm6680_vm3 = vcmp.lt.s32.totalorder %v6661_v39, 1  ;;  %vm6683_vm15 = vcmp.lt.s32.totalorder %v6661_v39, 4 }
 0x959   :  { %v6666_v32 = vshrl.u32 %v13536_v14, %v6663_v27  ;;  %v6669_v9 = vshrl.u32 %v13537_v15, %v6663_v27  ;;  %v6672_v31 = vshrl.u32 %v13538_v52, %v6663_v27  ;;  %v6675_v5 = vshrl.u32 %v13539_v60, %v6663_v27 }
 0x95a   :  { %v6678_v37 = vshrl.u32 %v13582_v30, %v6663_v27  ;;  %v7387_v16 = vpop.f32.mrf.mxu0  ;;  %v6664_v26 = vshrl.u32 %v13534_v18, %v6663_v27  ;;  %vm6682_vm6 = vcmp.lt.s32.totalorder %v6661_v39, 3  ;;  %vm6681_vm1 = vcmp.lt.s32.totalorder %v6661_v39, 2 }
 0x95b   :  { %v6667_v48 = vor.u32 %v6666_v32, %v6665_v41  ;;  %v6670_v22 = vor.u32 %v6669_v9, %v6668_v10  ;;  %v6673_v2 = vor.u32 %v6672_v31, %v6671_v34  ;;  %v6676_v12 = vor.u32 %v6675_v5, %v6674_v43 }
 0x95c   :  { %v6679_v50 = vor.u32 %v6678_v37, %v6677_v20  ;;  %v7388_v56 = vpop.f32.mrf.mxu0 }
 0x95d   :  { %v6685_v11 = vsel %vm6683_vm15, %v6673_v2, 2102212464  ;;  %v6688_v8 = vsel %vm6680_vm3, %v6667_v48, %v6670_v22  ;;  %v6692_v59 = vsel %vm6680_vm3, %v6670_v22, %v6673_v2  ;;  %v6689_v51 = vsel %vm6683_vm15, %v6676_v12, 920167782 }
 0x95e   :  { %v6693_v24 = vsel %vm6683_vm15, %v6679_v50, 1326507024  ;;  %v7389_v47 = vadd.f32 %v7388_v56, %v7387_v16  ;;  %v6684_v19 = vsel %vm6680_vm3, %v6664_v26, %v6667_v48  ;;  %v6690_v58 = vsel %vm6682_vm6, %v6673_v2, %v6689_v51 }
 0x95f   :  { %v6694_v42 = vsel %vm6682_vm6, %v6676_v12, %v6693_v24  ;;  %v6686_v63 = vsel %vm6682_vm6, %v6670_v22, %v6685_v11  ;;  %v6691_v61 = vsel %vm6681_vm1, %v6688_v8, %v6690_v58 }
 0x960   :  { %v6695_v0 = vsel %vm6681_vm1, %v6692_v59, %v6694_v42  ;;  %v13186_v13 = vadd.f32 %v7389_v47, %v13165_v28  ;;  %v13191_v4 = vmul.u32.u64.low %v6696_v62, %v6691_v61  ;;  %v13192_v17 = vmul.u32.u64.high %v6696_v62, %v6691_v61, %v13191_v4 }
 0x961   :  { %v13188_v44 = vmul.u32.u64.low %v6696_v62, %v6695_v0  ;;  %v13189_v25 = vmul.u32.u64.high %v6696_v62, %v6695_v0, %v13188_v44  ;;  %v6687_v29 = vsel %vm6681_vm1, %v6684_v19, %v6686_v63 }
 0x962   :  { %v6755_v45 = vand.u32 2139095040, %v13186_v13  ;;  %v6706_v3 = vadd.s32 1, %v13192_v17  ;;  %v6703_v57 = vmul.u32 %v6696_v62, %v6687_v29  ;;  %v6752_v49 = vand.u32 2147483647, %v13186_v13 }
 0x963   :  { %vm6705_vm0 = vc.u32 %v13189_v25, %v13191_v4 }
 0x964   :  { %v6756_v33 = vshrl.u32 %v6755_v45, 23  ;;  %v6707_v36 = vsel %vm6705_vm0, %v6706_v3, %v13192_v17  ;;  %v6759_v21 = vand.u32 8388607, %v6752_v49 }
 0x965   :  { %v7390_v54 = vpop.f32.mrf.mxu0  ;;  %v6708_v46 = vadd.s32 %v6707_v36, %v6703_v57 }
 0x966   :  { %v7296_v55 = vadd.s32 4294967169, %v6756_v33  ;;  %v6760_v10 = vor.u32 8388608, %v6759_v21  ;;  %v6704_v21 = vadd.s32 %v13191_v4, %v13189_v25 }
 0x967   :  { %v7391_v7 = vpop.f32.mrf.mxu0  ;;  %v6709_v35 = vadd.s32 536870912, %v6708_v46 }
 0x968   :  { %v6762_v38 = vadd.s32 1, %v7296_v55  ;;  %v7392_v53 = vadd.f32 %v7391_v7, %v7390_v54  ;;  %v6800_v24 = vshll.u32 %v6760_v10, 8 }
 0x969   :  { %v13203_v23 = vshrl.u32 %v6709_v35, 30 }
 0x96a   :  { %vm6763_vm14 = vcmp.gt.s32.totalorder %v6762_v38, 0  ;;  %v13208_v34 = vadd.f32 %v7392_v53, %v13165_v28 }
 0x96b   :  { %v6764_v40 = vsel %vm6763_vm14, %v6762_v38, 0  ;;  %v6711_v39 = vshll.u32 %v13203_v23, 30  ;;  %v6734_v4 = vsub.s32 4, %v13203_v23  ;;  %vm6740_vm14 = vweird.f32 %v13168_v6 }
 0x96c   :  { %v6766_v27 = vand.u32 31, %v6764_v40  ;;  %v6765_v32 = vshrl.u32 %v6764_v40, 5  ;;  %v6859_v47 = vand.u32 2139095040, %v13208_v34 }
 0x96d   :  { %v6712_v31 = vsub.s32 %v6708_v46, %v6711_v39  ;;  %v6856_v39 = vand.u32 2147483647, %v13208_v34 }
 0x96e   :  { %v6767_v41 = vsub.s32 32, %v6766_v27  ;;  %v6769_v9 = vshll.u32 %v13534_v18, %v6766_v27  ;;  %v6772_v5 = vshll.u32 %v13536_v14, %v6766_v27  ;;  %v6775_v20 = vshll.u32 %v13537_v15, %v6766_v27 }
 0x96f   :  { %v6778_v48 = vshll.u32 %v13538_v52, %v6766_v27  ;;  %v6714_v2 = vsub.s32 0, %v6712_v31  ;;  %v6781_v12 = vshll.u32 %v13539_v60, %v6766_v27  ;;  %vm6784_vm10 = vcmp.lt.s32.totalorder %v6765_v32, 1 }
 0x970   :  { %v6770_v43 = vshrl.u32 %v13536_v14, %v6767_v41  ;;  %v6773_v37 = vshrl.u32 %v13537_v15, %v6767_v41  ;;  %v6776_v16 = vshrl.u32 %v13538_v52, %v6767_v41  ;;  %v6779_v22 = vshrl.u32 %v13539_v60, %v6767_v41 }
 0x971   :  { %v6782_v50 = vshrl.u32 %v13582_v30, %v6767_v41  ;;  %v7293_v8 = vmin.u32 %v6714_v2, %v6712_v31  ;;  %v6768_v51 = vshrl.u32 %v13534_v18, %v6767_v41  ;;  %vm6786_vm9 = vcmp.lt.s32.totalorder %v6765_v32, 3 }
 0x972   :  { %v6771_v62 = vor.u32 %v6770_v43, %v6769_v9  ;;  %v6774_v56 = vor.u32 %v6773_v37, %v6772_v5  ;;  %v6777_v26 = vor.u32 %v6776_v16, %v6775_v20  ;;  %v6780_v11 = vor.u32 %v6779_v22, %v6778_v48 }
 0x973   :  { %v6783_v59 = vor.u32 %v6782_v50, %v6781_v12  ;;  %v6716_v19 = vclz %v7293_v8  ;;  %vm6787_vm12 = vcmp.lt.s32.totalorder %v6765_v32, 4  ;;  %vm6785_vm8 = vcmp.lt.s32.totalorder %v6765_v32, 2 }
 0x974   :  { %v6792_v58 = vsel %vm6784_vm10, %v6771_v62, %v6774_v56  ;;  %v6789_v42 = vsel %vm6787_vm12, %v6777_v26, 2102212464  ;;  %v6793_v63 = vsel %vm6787_vm12, %v6780_v11, 920167782  ;;  %v6796_v61 = vsel %vm6784_vm10, %v6774_v56, %v6777_v26 }
 0x975   :  { %v6797_v0 = vsel %vm6787_vm12, %v6783_v59, 1326507024  ;;  %v7294_v44 = vadd.s32 4294967294, %v6716_v19  ;;  %v6794_v17 = vsel %vm6786_vm9, %v6777_v26, %v6793_v63  ;;  %v6788_v29 = vsel %vm6784_vm10, %v6768_v51, %v6771_v62 }
 0x976   :  { %v6798_v45 = vsel %vm6786_vm9, %v6780_v11, %v6797_v0  ;;  %v6795_v33 = vsel %vm6785_vm8, %v6792_v58, %v6794_v17  ;;  %v6790_v54 = vsel %vm6786_vm9, %v6774_v56, %v6789_v42  ;;  %v6860_v7 = vshrl.u32 %v6859_v47, 23 }
 0x977   :  { %v6799_v3 = vsel %vm6785_vm8, %v6796_v61, %v6798_v45  ;;  %vm7295_vm2 = vcmp.lt.s32.totalorder %v7294_v44, 0  ;;  %v13226_v46 = vmul.u32.u64.low %v6800_v24, %v6795_v33  ;;  %v13227_v38 = vmul.u32.u64.high %v6800_v24, %v6795_v33, %v13226_v46 }
 0x978   :  { %v13223_v57 = vmul.u32.u64.low %v6800_v24, %v6799_v3  ;;  %v13224_v55 = vmul.u32.u64.high %v6800_v24, %v6799_v3, %v13223_v57  ;;  %v6719_v36 = vsel %vm7295_vm2, 0, %v7294_v44  ;;  %v7393_v35 = vpop.f32.mrf.mxu0  ;;  %v6791_v27 = vsel %vm6785_vm8, %v6788_v29, %v6790_v54 }
 0x979   :  { %v6720_v40 = vsub.s32 32, %v6719_v36  ;;  %v6724_v53 = vsub.s32 4294967266, %v6719_v36  ;;  %v7300_v41 = vadd.s32 4294967169, %v6860_v7  ;;  %v6721_v10 = vshll.u32 %v6712_v31, %v6719_v36 }
 0x97a   :  { %vm6809_vm4 = vc.u32 %v13224_v55, %v13226_v46  ;;  %v6810_v5 = vadd.s32 1, %v13227_v38  ;;  %v7394_v37 = vpop.f32.mrf.mxu0  ;;  %v6807_v25 = vmul.u32 %v6800_v24, %v6791_v27  ;;  %v6863_v22 = vand.u32 8388607, %v6856_v39 }
 0x97b   :  { %v6722_v9 = vshrl.u32 %v6704_v21, %v6720_v40  ;;  %v6725_v43 = vadd.s32 127, %v6724_v53  ;;  %v6866_v20 = vadd.s32 1, %v7300_v41  ;;  %v7395_v12 = vadd.f32 %v7394_v37, %v7393_v35 }
 0x97c   :  { %v6811_v32 = vsel %vm6809_vm4, %v6810_v5, %v13227_v38  ;;  %v6735_v59 = vsel %vm6650_vm11, %v6734_v4, %v13203_v23  ;;  %v6864_v51 = vor.u32 8388608, %v6863_v22  ;;  %vm6754_vm12 = vcmp.lt.s32.totalorder %v13186_v13, 0 }
 0x97d   :  { %v6723_v16 = vor.u32 %v6722_v9, %v6721_v10  ;;  %v6726_v48 = vshll.u32 %v6725_v43, 23  ;;  %vm6867_vm13 = vcmp.gt.s32.totalorder %v6866_v20, 0  ;;  %v6812_v2 = vadd.s32 %v6811_v32, %v6807_v25 }
 0x97e   :  { %v6868_v62 = vsel %vm6867_vm13, %v6866_v20, 0  ;;  %v13254_v42 = vadd.f32 %v7395_v12, %v13165_v28  ;;  %v6737_v53 = vsel %vm13244_vm5, 0, %v6735_v59  ;;  %v6904_v41 = vshll.u32 %v6864_v51, 8 }
 0x97f   :  { %v6727_v31 = vor.u32 4788187, %v6726_v48  ;;  %v6870_v50 = vand.u32 31, %v6868_v62  ;;  %v6730_v26 = vcvt.s32.f32 %v6723_v16  ;;  %v6813_v11 = vadd.s32 536870912, %v6812_v2 }
 0x980   :  { %v6869_v58 = vshrl.u32 %v6868_v62, 5  ;;  %v6963_v10 = vand.u32 2139095040, %v13254_v42  ;;  %v6741_v62 = vadd.s32 3, %v6737_v53  ;;  %vm13306_vm13 = vcmp.le.f32.partialorder %v6752_v49, 0.7853982 }
 0x981   :  { %v6728_v56 = vand.u32 2147483647, %v6727_v31  ;;  %v6871_v24 = vsub.s32 32, %v6870_v50  ;;  %v13251_v19 = vshrl.u32 %v6813_v11, 30  ;;  %v6873_v63 = vshll.u32 %v13534_v18, %v6870_v50 }
 0x982   :  { %v6879_v17 = vshll.u32 %v13537_v15, %v6870_v50  ;;  %v6876_v29 = vshll.u32 %v13536_v14, %v6870_v50  ;;  %v6882_v28 = vshll.u32 %v13538_v52, %v6870_v50  ;;  %v6885_v33 = vshll.u32 %v13539_v60, %v6870_v50 }
 0x983   :  { %v6731_v47 = vmul.f32 %v6730_v26, %v6728_v56  ;;  %v6874_v1 = vshrl.u32 %v13536_v14, %v6871_v24  ;;  %v6877_v61 = vshrl.u32 %v13537_v15, %v6871_v24  ;;  %v6880_v0 = vshrl.u32 %v13538_v52, %v6871_v24 }
 0x984   :  { %v6815_v23 = vshll.u32 %v13251_v19, 30  ;;  %v6883_v45 = vshrl.u32 %v13539_v60, %v6871_v24  ;;  %v6886_v3 = vshrl.u32 %v13582_v30, %v6871_v24  ;;  %vm6891_vm3 = vcmp.lt.s32.totalorder %v6869_v58, 4 }
 0x985   :  { %v6732_v44 = vxor.u32 2147483648, %v6731_v47  ;;  %v6875_v36 = vor.u32 %v6874_v1, %v6873_v63  ;;  %v6881_v38 = vor.u32 %v6880_v0, %v6879_v17  ;;  %v6878_v35 = vor.u32 %v6877_v61, %v6876_v29 }
 0x986   :  { %v13269_v57 = vsub.s32 %v6812_v2, %v6815_v23  ;;  %v6884_v21 = vor.u32 %v6883_v45, %v6882_v28  ;;  %v6887_v40 = vor.u32 %v6886_v3, %v6885_v33  ;;  %v6872_v43 = vshrl.u32 %v13534_v18, %v6871_v24 }
 0x987   :  { %v6733_v54 = vsel %vm6650_vm11, %v6732_v44, %v6731_v47  ;;  %vm6888_vm15 = vcmp.lt.s32.totalorder %v6869_v58, 1  ;;  %v6893_v5 = vsel %vm6891_vm3, %v6881_v38, 2102212464  ;;  %vm6889_vm6 = vcmp.lt.s32.totalorder %v6869_v58, 2 }
 0x988   :  { %v6736_v7 = vsel %vm13244_vm5, %v13168_v6, %v6733_v54  ;;  %v6818_v27 = vsub.s32 0, %v13269_v57  ;;  %v6896_v20 = vsel %vm6888_vm15, %v6875_v36, %v6878_v35  ;;  %v6897_v37 = vsel %vm6891_vm3, %v6884_v21, 920167782 }
 0x989   :  { %7839 = vcosq.f32 %v6736_v7  ;;  %v6900_v16 = vsel %vm6888_vm15, %v6878_v35, %v6881_v38  ;;  %v6901_v48 = vsel %vm6891_vm3, %v6887_v40, 1326507024  ;;  %vm6890_vm1 = vcmp.lt.s32.totalorder %v6869_v58, 3 }
 0x98a   :  { %7841 = vsinq.f32 %v6736_v7  ;;  %v7297_v9 = vmin.u32 %v6818_v27, %v13269_v57  ;;  %v6892_v4 = vsel %vm6888_vm15, %v6872_v43, %v6875_v36  ;;  %v6894_v32 = vsel %vm6890_vm1, %v6878_v35, %v6893_v5 }
 0x98b   :  { %v6898_v22 = vsel %vm6890_vm1, %v6881_v38, %v6897_v37  ;;  %v6902_v31 = vsel %vm6890_vm1, %v6884_v21, %v6901_v48  ;;  %v6964_v2 = vshrl.u32 %v6963_v10, 23  ;;  %v6895_v51 = vsel %vm6889_vm6, %v6892_v4, %v6894_v32 }
 0x98c   :  { %v6820_v25 = vclz %v7297_v9  ;;  %v6899_v50 = vsel %vm6889_vm6, %v6896_v20, %v6898_v22  ;;  %v6903_v56 = vsel %vm6889_vm6, %v6900_v16, %v6902_v31  ;;  %v6808_v58 = vadd.s32 %v13226_v46, %v13224_v55 }
 0x98d   :  { %v13280_v26 = vmul.u32.u64.low %v6904_v41, %v6903_v56  ;;  %v13281_v11 = vmul.u32.u64.high %v6904_v41, %v6903_v56, %v13280_v26  ;;  %v13283_v8 = vmul.u32.u64.low %v6904_v41, %v6899_v50  ;;  %v13284_v59 = vmul.u32.u64.high %v6904_v41, %v6899_v50, %v13283_v8 }
 0x98e   :  { %v7298_v12 = vadd.s32 4294967294, %v6820_v25  ;;  %v7304_v24 = vadd.s32 4294967169, %v6964_v2  ;;  %v6742_v0 = vand.u32 3, %v6741_v62  ;;  %v6911_v44 = vmul.u32 %v6904_v41, %v6895_v51 }
 0x98f   :  { %vm6913_vm10 = vc.u32 %v13281_v11, %v13283_v8  ;;  %v6914_v23 = vadd.s32 1, %v13284_v59  ;;  %v6960_v46 = vand.u32 2147483647, %v13254_v42 }
 0x990   :  { %vm7299_vm0 = vcmp.lt.s32.totalorder %v7298_v12, 0  ;;  %v6970_v61 = vadd.s32 1, %v7304_v24  ;;  %vm6747_vm8 = vcmp.eq.s32.totalorder %v6742_v0, 2  ;;  %vm6744_vm2 = vcmp.eq.s32.totalorder %v6742_v0, 0 }
 0x991   :  { %v6823_v47 = vsel %vm7299_vm0, 0, %v7298_v12  ;;  %v6915_v55 = vsel %vm6913_vm10, %v6914_v23, %v13284_v59  ;;  %vm6743_vm4 = vcmp.lt.s32.totalorder %v6742_v0, 2  ;;  %v6967_v10 = vand.u32 8388607, %v6960_v46 }
 0x992   :  { %v6824_v63 = vsub.s32 32, %v6823_v47  ;;  %v6828_v1 = vsub.s32 4294967266, %v6823_v47  ;;  %v6825_v17 = vshll.u32 %v13269_v57, %v6823_v47  ;;  %vm6971_vm9 = vcmp.gt.s32.totalorder %v6970_v61, 0 }
 0x993   :  { %v6972_v33 = vsel %vm6971_vm9, %v6970_v61, 0  ;;  %v6916_v7 = vadd.s32 %v6915_v55, %v6911_v44  ;;  %v6838_v57 = vsub.s32 4, %v13251_v19  ;;  %v6968_v49 = vor.u32 8388608, %v6967_v10 }
 0x994   :  { %v6826_v45 = vshrl.u32 %v6808_v58, %v6824_v63  ;;  %v6829_v29 = vadd.s32 127, %v6828_v1  ;;  %v6974_v21 = vand.u32 31, %v6972_v33  ;;  %v6973_v31 = vshrl.u32 %v6972_v33, 5 }
 0x995   :  { %v6917_v27 = vadd.s32 536870912, %v6916_v7  ;;  %v6839_v25 = vsel %vm6754_vm12, %v6838_v57, %v13251_v19  ;;  %vm6844_vm9 = vweird.f32 %v13186_v13 }
 0x996   :  { %v7840_v28 = vpop.eup %7839  ;;  %v6827_v36 = vor.u32 %v6826_v45, %v6825_v17  ;;  %v6830_v38 = vshll.u32 %v6829_v29, 23  ;;  %v6975_v9 = vsub.s32 32, %v6974_v21  ;;  %v6977_v50 = vshll.u32 %v13534_v18, %v6974_v21 }
 0x997   :  { %v7842_v3 = vpop.eup %7841  ;;  %v6748_v54 = vxor.u32 2147483648, %v7840_v28  ;;  %v13300_v37 = vshrl.u32 %v6917_v27, 30  ;;  %v6980_v56 = vshll.u32 %v13536_v14, %v6974_v21  ;;  %v6983_v26 = vshll.u32 %v13537_v15, %v6974_v21 }
 0x998   :  { %v6745_v35 = vxor.u32 2147483648, %v7842_v3  ;;  %v6831_v53 = vor.u32 4788187, %v6830_v38  ;;  %v6834_v20 = vcvt.s32.f32 %v6827_v36  ;;  %v6978_v6 = vshrl.u32 %v13536_v14, %v6975_v9 }
 0x999   :  { %v6749_v40 = vsel %vm6747_vm8, %v6748_v54, %v7842_v3  ;;  %v6919_v32 = vshll.u32 %v13300_v37, 30  ;;  %v6981_v22 = vshrl.u32 %v13537_v15, %v6975_v9  ;;  %v6984_v2 = vshrl.u32 %v13538_v52, %v6975_v9 }
 0x99a   :  { %v6746_v41 = vsel %vm6744_vm2, %v7840_v28, %v6745_v35  ;;  %v6832_v5 = vand.u32 2147483647, %v6831_v53  ;;  %v6987_v62 = vshrl.u32 %v13539_v60, %v6975_v9  ;;  %v6986_v59 = vshll.u32 %v13538_v52, %v6974_v21 }
 0x99b   :  { %v6750_v43 = vsel %vm6743_vm4, %v6746_v41, %v6749_v40  ;;  %v6920_v19 = vsub.s32 %v6916_v7, %v6919_v32  ;;  %v6989_v51 = vshll.u32 %v13539_v60, %v6974_v21  ;;  %v6990_v24 = vshrl.u32 %v13582_v30, %v6975_v9 }
 0x99c   :  { %v6751_v16 = vsel %vm6740_vm14, nan, %v6750_v43  ;;  %v6835_v4 = vmul.f32 %v6834_v20, %v6832_v5  ;;  %v6979_v63 = vor.u32 %v6978_v6, %v6977_v50  ;;  %v6982_v1 = vor.u32 %v6981_v22, %v6980_v56 }
 0x99d   :  { %7064 = vst.msk [vmem:[%s13385_s9 + $0x20] sm:$0xff] %vm3560_vm7, %v6751_v16  ;;  %v6922_v58 = vsub.s32 0, %v6920_v19  ;;  %v6985_v0 = vor.u32 %v6984_v2, %v6983_v26  ;;  %v6988_v14 = vor.u32 %v6987_v62, %v6986_v59  ;;  %v6991_v44 = vor.u32 %v6990_v24, %v6989_v51 }
 0x99e   :  { %v6836_v12 = vxor.u32 2147483648, %v6835_v4  ;;  %v6841_v15 = vsel %vm13306_vm13, 0, %v6839_v25  ;;  %v6976_v60 = vshrl.u32 %v13534_v18, %v6975_v9  ;;  %vm6992_vm11 = vcmp.lt.s32.totalorder %v6973_v31, 1 }
 0x99f   :  { %v7301_v52 = vmin.u32 %v6922_v58, %v6920_v19  ;;  %v7008_v30 = vshll.u32 %v6968_v49, 8  ;;  %vm6994_vm5 = vcmp.lt.s32.totalorder %v6973_v31, 3  ;;  %vm6995_vm3 = vcmp.lt.s32.totalorder %v6973_v31, 4 }
 0x9a0   :  { %v6837_v47 = vsel %vm6754_vm12, %v6836_v12, %v6835_v4  ;;  %v7000_v17 = vsel %vm6992_vm11, %v6979_v63, %v6982_v1  ;;  %v6997_v45 = vsel %vm6995_vm3, %v6985_v0, 2102212464  ;;  %v7001_v29 = vsel %vm6995_vm3, %v6988_v14, 920167782 }
 0x9a1   :  { %v6840_v61 = vsel %vm13306_vm13, %v13186_v13, %v6837_v47  ;;  %v6924_v23 = vclz %v7301_v52  ;;  %v7004_v28 = vsel %vm6992_vm11, %v6982_v1, %v6985_v0  ;;  %v7005_v55 = vsel %vm6995_vm3, %v6991_v44, 1326507024 }
 0x9a2   :  { %7843 = vcosq.f32 %v6840_v61  ;;  %vm6993_vm15 = vcmp.lt.s32.totalorder %v6973_v31, 2  ;;  %v7002_v3 = vsel %vm6994_vm5, %v6985_v0, %v7001_v29  ;;  %v7006_v54 = vsel %vm6994_vm5, %v6988_v14, %v7005_v55 }
 0x9a3   :  { %7845 = vsinq.f32 %v6840_v61  ;;  %v7302_v33 = vadd.s32 4294967294, %v6924_v23  ;;  %v6996_v36 = vsel %vm6992_vm11, %v6976_v60, %v6979_v63  ;;  %v7003_v38 = vsel %vm6993_vm15, %v7000_v17, %v7002_v3 }
 0x9a4   :  { %v7007_v7 = vsel %vm6993_vm15, %v7004_v28, %v7006_v54  ;;  %v6998_v18 = vsel %vm6994_vm5, %v6982_v1, %v6997_v45  ;;  %v6845_v21 = vadd.s32 3, %v6841_v15  ;;  %v6912_v41 = vadd.s32 %v13283_v8, %v13281_v11 }
 0x9a5   :  { %vm7303_vm6 = vcmp.lt.s32.totalorder %v7302_v33, 0  ;;  %v13338_v35 = vmul.u32.u64.low %v7008_v30, %v7007_v7  ;;  %v13339_v57 = vmul.u32.u64.high %v7008_v30, %v7007_v7, %v13338_v35  ;;  %v6999_v43 = vsel %vm6993_vm15, %v6996_v36, %v6998_v18 }
 0x9a6   :  { %v6927_v40 = vsel %vm7303_vm6, 0, %v7302_v33  ;;  %v13341_v53 = vmul.u32.u64.low %v7008_v30, %v7003_v38  ;;  %v13342_v27 = vmul.u32.u64.high %v7008_v30, %v7003_v38, %v13341_v53  ;;  %v6846_v48 = vand.u32 3, %v6845_v21 }
 0x9a7   :  { %v6928_v10 = vsub.s32 32, %v6927_v40  ;;  %v6932_v9 = vsub.s32 4294967266, %v6927_v40  ;;  %v6929_v5 = vshll.u32 %v6920_v19, %v6927_v40  ;;  %v7015_v6 = vmul.u32 %v7008_v30, %v6999_v43 }
 0x9a8   :  { %vm7017_vm1 = vc.u32 %v13339_v57, %v13341_v53  ;;  %v7018_v25 = vadd.s32 1, %v13342_v27  ;;  %vm6848_vm0 = vcmp.eq.s32.totalorder %v6846_v48, 0  ;;  %vm6851_vm14 = vcmp.eq.s32.totalorder %v6846_v48, 2 }
 0x9a9   :  { %v6930_v20 = vshrl.u32 %v6912_v41, %v6928_v10  ;;  %v6933_v16 = vadd.s32 127, %v6932_v9  ;;  %vm6847_vm10 = vcmp.lt.s32.totalorder %v6846_v48, 2  ;;  %vm6858_vm12 = vcmp.lt.s32.totalorder %v13208_v34, 0 }
 0x9aa   :  { %v7019_v49 = vsel %vm7017_vm1, %v7018_v25, %v13342_v27  ;;  %v6942_v1 = vsub.s32 4, %v13300_v37  ;;  %vm6857_vm8 = vcmp.le.f32.partialorder %v6856_v39, 0.7853982  ;;  %v7016_v45 = vadd.s32 %v13341_v53, %v13339_v57 }
 0x9ab   :  { %v6931_v4 = vor.u32 %v6930_v20, %v6929_v5  ;;  %v6934_v32 = vshll.u32 %v6933_v16, 23  ;;  %v7020_v62 = vadd.s32 %v7019_v49, %v7015_v6  ;;  %vm6948_vm5 = vweird.f32 %v13208_v34 }
 0x9ac   :  { %v6943_v44 = vsel %vm6858_vm12, %v6942_v1, %v13300_v37  ;;  %vm6962_vm3 = vcmp.lt.s32.totalorder %v13254_v42, 0  ;;  %vm6961_vm15 = vcmp.le.f32.partialorder %v6960_v46, 0.7853982 }
 0x9ad   :  { %v6935_v8 = vor.u32 4788187, %v6934_v32  ;;  %v6938_v50 = vcvt.s32.f32 %v6931_v4  ;;  %v7021_v56 = vadd.s32 536870912, %v7020_v62  ;;  %v6945_v52 = vsel %vm6857_vm8, 0, %v6943_v44 }
 0x9ae   :  { %v6949_v23 = vadd.s32 3, %v6945_v52 }
 0x9af   :  { %v7844_v22 = vpop.eup %7843  ;;  %v6936_v19 = vand.u32 2147483647, %v6935_v8  ;;  %v7022_v24 = vshrl.u32 %v7021_v56, 30 }
 0x9b0   :  { %v7846_v2 = vpop.eup %7845  ;;  %v6852_v11 = vxor.u32 2147483648, %v7844_v22  ;;  %v6950_v28 = vand.u32 3, %v6949_v23 }
 0x9b1   :  { %v6849_v31 = vxor.u32 2147483648, %v7846_v2  ;;  %v6939_v51 = vmul.f32 %v6938_v50, %v6936_v19  ;;  %v7023_v63 = vshll.u32 %v7022_v24, 30  ;;  %v7046_v43 = vsub.s32 4, %v7022_v24 }
 0x9b2   :  { %v6853_v12 = vsel %vm6851_vm14, %v6852_v11, %v7846_v2  ;;  %vm6955_vm4 = vcmp.eq.s32.totalorder %v6950_v28, 2  ;;  %vm6952_vm13 = vcmp.eq.s32.totalorder %v6950_v28, 0  ;;  %vm6951_vm11 = vcmp.lt.s32.totalorder %v6950_v28, 2 }
 0x9b3   :  { %v6850_v26 = vsel %vm6848_vm0, %v7844_v22, %v6849_v31  ;;  %v6940_v58 = vxor.u32 2147483648, %v6939_v51  ;;  %v7024_v13 = vsub.s32 %v7020_v62, %v7023_v63  ;;  %v7047_v20 = vsel %vm6962_vm3, %v7046_v43, %v7022_v24 }
 0x9b4   :  { %v6854_v59 = vsel %vm6847_vm10, %v6850_v26, %v6853_v12  ;;  %v7049_v16 = vsel %vm6961_vm15, 0, %v7047_v20  ;;  %vm7052_vm14 = vweird.f32 %v13254_v42 }
 0x9b5   :  { %v6855_v47 = vsel %vm6844_vm9, nan, %v6854_v59  ;;  %v6941_v61 = vsel %vm6858_vm12, %v6940_v58, %v6939_v51  ;;  %v7026_v14 = vsub.s32 0, %v7024_v13  ;;  %v7053_v48 = vadd.s32 3, %v7049_v16 }
 0x9b6   :  { %7065 = vst.msk [vmem:[%s13385_s9 + $0x28] sm:$0xff] %vm3560_vm7, %v6855_v47  ;;  %v6944_v0 = vsel %vm6857_vm8, %v13208_v34, %v6941_v61 }
 0x9b7   :  { %7847 = vcosq.f32 %v6944_v0  ;;  %v7305_v15 = vmin.u32 %v7026_v14, %v7024_v13  ;;  %v7054_v25 = vand.u32 3, %v7053_v48 }
 0x9b8   :  { %7849 = vsinq.f32 %v6944_v0 }
 0x9b9   :  { %v7028_v60 = vclz %v7305_v15  ;;  %vm7059_vm6 = vcmp.eq.s32.totalorder %v7054_v25, 2  ;;  %vm7056_vm1 = vcmp.eq.s32.totalorder %v7054_v25, 0  ;;  %vm7055_vm0 = vcmp.lt.s32.totalorder %v7054_v25, 2 }
 0x9bb   :  { %v7306_v30 = vadd.s32 4294967294, %v7028_v60 }
 0x9bd   :  { %vm7307_vm2 = vcmp.lt.s32.totalorder %v7306_v30, 0 }
 0x9be   :  { %v7031_v17 = vsel %vm7307_vm2, 0, %v7306_v30 }
 0x9bf   :  { %v7032_v29 = vsub.s32 32, %v7031_v17  ;;  %v7036_v39 = vsub.s32 4294967266, %v7031_v17  ;;  %v7033_v55 = vshll.u32 %v7024_v13, %v7031_v17 }
 0x9c1   :  { %v7034_v33 = vshrl.u32 %v7016_v45, %v7032_v29  ;;  %v7037_v3 = vadd.s32 127, %v7036_v39 }
 0x9c3   :  { %v7035_v37 = vor.u32 %v7034_v33, %v7033_v55  ;;  %v7038_v7 = vshll.u32 %v7037_v3, 23 }
 0x9c4   :  { %v7848_v54 = vpop.eup %7847 }
 0x9c5   :  { %v7850_v36 = vpop.eup %7849  ;;  %v6956_v38 = vxor.u32 2147483648, %v7848_v54  ;;  %v7039_v21 = vor.u32 4788187, %v7038_v7  ;;  %v7042_v27 = vcvt.s32.f32 %v7035_v37 }
 0x9c6   :  { %v6953_v18 = vxor.u32 2147483648, %v7850_v36 }
 0x9c7   :  { %v6957_v35 = vsel %vm6955_vm4, %v6956_v38, %v7850_v36  ;;  %v7040_v53 = vand.u32 2147483647, %v7039_v21 }
 0x9c8   :  { %v6954_v40 = vsel %vm6952_vm13, %v7848_v54, %v6953_v18 }
 0x9c9   :  { %v6958_v57 = vsel %vm6951_vm11, %v6954_v40, %v6957_v35  ;;  %v7043_v10 = vmul.f32 %v7042_v27, %v7040_v53 }
 0x9ca   :  { %v6959_v41 = vsel %vm6948_vm5, nan, %v6958_v57 }
 0x9cb   :  { %7066 = vst.msk [vmem:[%s13385_s9 + $0x30] sm:$0xff] %vm3560_vm7, %v6959_v41  ;;  %v7044_v9 = vxor.u32 2147483648, %v7043_v10 }
 0x9cd   :  { %v7045_v5 = vsel %vm6962_vm3, %v7044_v9, %v7043_v10 }
 0x9ce   :  { %v7048_v34 = vsel %vm6961_vm15, %v13254_v42, %v7045_v5 }
 0x9cf   :  { %7851 = vcosq.f32 %v7048_v34 }
 0x9d0   :  { %7853 = vsinq.f32 %v7048_v34 }
 0x9dc   :  { %v7852_v4 = vpop.eup %7851 }
 0x9dd   :  { %v7854_v32 = vpop.eup %7853  ;;  %v7060_v6 = vxor.u32 2147483648, %v7852_v4 }
 0x9de   :  { %v7057_v22 = vxor.u32 2147483648, %v7854_v32 }
 0x9df   :  { %v7061_v49 = vsel %vm7059_vm6, %v7060_v6, %v7854_v32 }
 0x9e0   :  { %v7058_v2 = vsel %vm7056_vm1, %v7852_v4, %v7057_v22 }
 0x9e1   :  { %v7062_v46 = vsel %vm7055_vm0, %v7058_v2, %v7061_v49 }
 0x9e2   :  { %v7063_v11 = vsel %vm7052_vm14, nan, %v7062_v46 }
 0x9e3   :  { %7067 = vst.msk [vmem:[%s13385_s9 + $0x38] sm:$0xff] %vm3560_vm7, %v7063_v11 }
 0x9e4   :  { %7072 = vsyncpa [#allocation3], 1 }
 0x9e5   :  { %7073 = vsyncpa [#allocation5], 1 }

</bundles_post_ra>
